<compile_context>
chip_gen: v7x
topology: tpu7x:2x2x1
jax: 0.10.0
libtpu: 0.0.40
codegen_flags: <defaults>
</compile_context>

<pallas_src>
import functools

import jax
import jax.numpy as jnp
from jax import lax
from jax.experimental import pallas as pl
from jax.experimental.pallas import tpu as pltpu


# ----------------------------------------------------------------------------
# VMEM budget / tiling helpers
# ----------------------------------------------------------------------------
@functools.lru_cache()
def _vmem_budget_bytes():
    """Generation-aware scoped-VMEM limit: ~52 MiB on 64 MiB parts (v7x),
    ~108 MiB on 128 MiB parts (v5e/v6e); leaves headroom for compiler scratch."""
    try:
        cap = int(getattr(pltpu.get_tpu_info(), "vmem_capacity_bytes",
                          64 * 2 ** 20))
    except Exception:  # not a TPU / API unavailable -> conservative default
        cap = 64 * 2 ** 20
    return max(32 * 2 ** 20, min(int(cap * 0.85), cap - 12 * 2 ** 20))


def _cout_tile(cout):
    # Keep the output lane axis dense: multiples of 128 (256 matches the
    # 256-wide MXU N on v6e/v7x) when the channel count allows; tiny heads
    # (classifier Cout=2, small ndf) keep the full Cout.
    if cout >= 256 and cout % 256 == 0:
        return 256
    if cout >= 128 and cout % 128 == 0:
        return 128
    return cout


def _fused_footprint(xs, n_taps, M, tcout, out_bytes):
    """Rough per-program VMEM footprint of the single-pass fused path."""
    total = 0
    for x in xs:
        m2, k = int(x.shape[1]), int(x.shape[2])
        total += 2 * (m2 * k * 2 + n_taps * k * tcout * 2)   # 2x-buffered bf16
    total += 2 * M * tcout * out_bytes                        # output block
    total += 2 * M * tcout * 4                                # f32 acc value
    return total


# ----------------------------------------------------------------------------
# Pallas kernels
# ----------------------------------------------------------------------------
def _fused_conv_kernel(*refs, n_in, offsets, norm, act, has_bias, inv_n):
    """Single-pass fused conv(+concat) + instance-norm + activation.

    refs = x_0, w_0, [x_1, w_1,] [bias,] out
      x_i : (M2, K_i)     bf16   dx-folded, row stride = W, M2 = M + 2*W
      w_i : (T, K_i, TCo) bf16   one (K, TCo) matrix per dy tap
      bias: (1, TCo)      f32    only when norm=False
      out : (M, TCo)
    Tap t reads the contiguous row slice x_i[offsets[t] : offsets[t]+M].
    Accumulation stays in value form (vregs / MXU result buffer); no VMEM
    accumulator round-trips.
    """
    o_ref = refs[-1]
    ins = refs[:-1]
    x_refs = [ins[2 * i] for i in range(n_in)]
    w_refs = [ins[2 * i + 1] for i in range(n_in)]
    b_ref = ins[2 * n_in] if has_bias else None

    M = o_ref.shape[0]
    acc = None
    for x_ref, w_ref in zip(x_refs, w_refs):          # fused channel-concat
        for t, off in enumerate(offsets):             # 3 dy taps (1 for 1x1)
            c = jnp.dot(x_ref[off:off + M, :], w_ref[t],
                        preferred_element_type=jnp.float32)
            acc = c if acc is None else acc + c
    y = acc
    if has_bias:                 # bias dropped when norm=True (IN cancels it)
        y = y + b_ref[...]
    if norm:
        # Instance norm (no affine); every output row is a valid position, so
        # plain (unmasked) statistics.  Centered variance (numerically safer
        # than E[y^2]-mean^2) — the (y - mean) pass is needed anyway.
        mean = jnp.sum(y, axis=0, keepdims=True) * inv_n
        yc = y - mean
        var = jnp.sum(yc * yc, axis=0, keepdims=True) * inv_n
        y = yc * lax.rsqrt(var + 1e-5)
    if act == "leaky":
        y = jnp.where(y > 0, y, 0.2 * y)
    elif act == "relu":
        y = jnp.maximum(y, 0.0)
    o_ref[...] = y.astype(o_ref.dtype)


def _tiled_conv_kernel(*refs, n_in, n_taps, norm, act, has_bias):
    """Row-tiled conv pass (kernel A of the two-pass path).

    refs = [per input i: x_tap0..x_tap{T-1}, w_i] [bias] y [stats]
      x_tapt : (TM, K_i)  bf16   non-overlapping row block of tap t
      w_i    : (T, K_i, TCo) bf16
      y      : (TM, TCo)  f32 pre-norm conv output (or final when norm=False)
      stats  : (2, TCo)   f32 per-(batch,row-tile) [sum, sum_sq]
    """
    if norm:
        y_ref, stats_ref = refs[-2], refs[-1]
        ins = refs[:-2]
    else:
        y_ref = refs[-1]
        ins = refs[:-1]
        stats_ref = None
    per = n_taps + 1
    acc = None
    for i in range(n_in):
        base = i * per
        w_ref = ins[base + n_taps]
        for t in range(n_taps):
            c = jnp.dot(ins[base + t][...], w_ref[t],
                        preferred_element_type=jnp.float32)
            acc = c if acc is None else acc + c
    if has_bias:
        acc = acc + ins[n_in * per][...]
    if norm:
        y_ref[...] = acc
        stats_ref[0:1, :] = jnp.sum(acc, axis=0, keepdims=True)
        stats_ref[1:2, :] = jnp.sum(acc * acc, axis=0, keepdims=True)
    else:
        y = acc
        if act == "leaky":
            y = jnp.where(y > 0, y, 0.2 * y)
        elif act == "relu":
            y = jnp.maximum(y, 0.0)
        y_ref[...] = y.astype(y_ref.dtype)


def _norm_act_kernel(y_ref, mean_ref, rstd_ref, o_ref, *, act):
    """Kernel B of the two-pass path: normalize + activation per row tile."""
    y = (y_ref[...] - mean_ref[...]) * rstd_ref[...]
    if act == "leaky":
        y = jnp.where(y > 0, y, 0.2 * y)
    elif act == "relu":
        y = jnp.maximum(y, 0.0)
    o_ref[...] = y.astype(o_ref.dtype)


# ----------------------------------------------------------------------------
# pallas_call wrappers
# ----------------------------------------------------------------------------
def _fused_conv_call(xs, ws, bias, M, Cout, *, norm, act, offsets, out_dtype):
    B = int(xs[0].shape[0])
    n_in = len(xs)
    T = len(offsets)
    tcout = _cout_tile(Cout)
    grid = (B, Cout // tcout)

    in_specs, args = [], []
    for x, w in zip(xs, ws):
        m2, k = int(x.shape[1]), int(x.shape[2])
        in_specs.append(pl.BlockSpec((pl.Squeezed(), m2, k),
                                     lambda b, j: (b, 0, 0)))
        in_specs.append(pl.BlockSpec((T, k, tcout), lambda b, j: (0, 0, j)))
        args += [x, w]
    has_bias = bias is not None
    if has_bias:
        in_specs.append(pl.BlockSpec((1, tcout), lambda b, j: (0, j)))
        args.append(bias)

    kern = functools.partial(_fused_conv_kernel, n_in=n_in, offsets=offsets,
                             norm=norm, act=act, has_bias=has_bias,
                             inv_n=1.0 / M)
    out_bytes = jnp.dtype(out_dtype).itemsize
    flops = 2 * B * M * Cout * sum(T * int(x.shape[2]) for x in xs)
    bytes_accessed = (sum(int(a.size) * a.dtype.itemsize for a in args)
                      + B * M * Cout * out_bytes)
    cost = pl.CostEstimate(flops=int(flops),
                           transcendentals=int(B * Cout) if norm else 0,
                           bytes_accessed=int(bytes_accessed))

    return pl.pallas_call(
        kern,
        out_shape=jax.ShapeDtypeStruct((B, M, Cout), out_dtype),
        grid=grid,
        in_specs=in_specs,
        out_specs=pl.BlockSpec((pl.Squeezed(), M, tcout),
                               lambda b, j: (b, 0, j)),
        compiler_params=pltpu.CompilerParams(
            dimension_semantics=("parallel", "parallel"),
            vmem_limit_bytes=_vmem_budget_bytes()),
        cost_estimate=cost,
    )(*args)


def _tiled_conv_call(xs, ws, bias, M, Cout, W, TM, *, norm, act, out_dtype):
    """Row-tiled two-pass conv (+IN+act).  TM must divide W (so each dy tap is
    a whole number of row blocks) and be a multiple of 8."""
    B = int(xs[0].shape[0])
    n_in = len(xs)
    T = int(ws[0].shape[0])
    tcout = _cout_tile(Cout)
    n_rows = M // TM
    shift = W // TM
    grid = (B, n_rows, Cout // tcout)

    in_specs, args = [], []
    for x, w in zip(xs, ws):
        k = int(x.shape[2])
        for t in range(T):
            in_specs.append(pl.BlockSpec(
                (pl.Squeezed(), TM, k),
                lambda b, r, j, t=t: (b, r + t * shift, 0)))
            args.append(x)
        in_specs.append(pl.BlockSpec((T, k, tcout), lambda b, r, j: (0, 0, j)))
        args.append(w)
    has_bias = bias is not None
    if has_bias:
        in_specs.append(pl.BlockSpec((1, tcout), lambda b, r, j: (0, j)))
        args.append(bias)

    kern = functools.partial(_tiled_conv_kernel, n_in=n_in, n_taps=T,
                             norm=norm, act=act, has_bias=has_bias)

    if norm:
        out_shape = (jax.ShapeDtypeStruct((B, M, Cout), jnp.float32),
                     jax.ShapeDtypeStruct((B, n_rows, 2, Cout), jnp.float32))
        out_specs = (pl.BlockSpec((pl.Squeezed(), TM, tcout),
                                  lambda b, r, j: (b, r, j)),
                     pl.BlockSpec((pl.Squeezed(), pl.Squeezed(), 2, tcout),
                                  lambda b, r, j: (b, r, 0, j)))
    else:
        out_shape = jax.ShapeDtypeStruct((B, M, Cout), out_dtype)
        out_specs = pl.BlockSpec((pl.Squeezed(), TM, tcout),
                                 lambda b, r, j: (b, r, j))

    flops = 2 * B * M * Cout * sum(T * int(x.shape[2]) for x in xs)
    bytes_accessed = int(3 * sum(int(x.size) * x.dtype.itemsize for x in xs)
                         + n_rows * sum(int(w.size) * w.dtype.itemsize
                                        for w in ws)
                         + B * M * Cout * 4)
    cost = pl.CostEstimate(flops=int(flops), transcendentals=0,
                           bytes_accessed=bytes_accessed)

    conv_out = pl.pallas_call(
        kern, out_shape=out_shape, grid=grid,
        in_specs=in_specs, out_specs=out_specs,
        compiler_params=pltpu.CompilerParams(
            dimension_semantics=("parallel", "parallel", "parallel"),
            vmem_limit_bytes=_vmem_budget_bytes()),
        cost_estimate=cost,
    )(*args)

    if not norm:
        return conv_out

    y, stats = conv_out
    # Tiny XLA reduction over row tiles -> per-(batch, channel) mean / rstd.
    sums = jnp.sum(stats, axis=1)                       # (B, 2, Cout)
    mean = sums[:, 0, :] * (1.0 / M)
    ex2 = sums[:, 1, :] * (1.0 / M)
    var = jnp.maximum(ex2 - mean * mean, 0.0)
    # TODO(synk): E[y^2]-mean^2 can cancel for large-mean channels; a Welford /
    # centered second pass would be safer at the cost of one more y read.
    rstd = lax.rsqrt(var + 1e-5)
    mean3 = mean[:, None, :].astype(jnp.float32)
    rstd3 = rstd[:, None, :].astype(jnp.float32)

    stat_spec = pl.BlockSpec((pl.Squeezed(), 1, tcout), lambda b, r, j: (b, 0, j))
    return pl.pallas_call(
        functools.partial(_norm_act_kernel, act=act),
        out_shape=jax.ShapeDtypeStruct((B, M, Cout), out_dtype),
        grid=grid,
        in_specs=[pl.BlockSpec((pl.Squeezed(), TM, tcout),
                               lambda b, r, j: (b, r, j)),
                  stat_spec, stat_spec],
        out_specs=pl.BlockSpec((pl.Squeezed(), TM, tcout),
                               lambda b, r, j: (b, r, j)),
        compiler_params=pltpu.CompilerParams(
            dimension_semantics=("parallel", "parallel", "parallel"),
            vmem_limit_bytes=_vmem_budget_bytes()),
    )(y, mean3, rstd3)


# ----------------------------------------------------------------------------
# Conv wrappers (padding / dx-folding glue in XLA, all math in Pallas)
# ----------------------------------------------------------------------------
def _fold_dx(x):
    """NHWC -> bf16 (B, (H+2)*W, 3*C): pad H,W by 1 and concatenate the three
    dx-shifted channel slices.  Row stride of the result is W, so the 3 dy taps
    are contiguous row slices and every kernel output row is a valid output
    position (no masks, no guard rows, no border garbage)."""
    B, H, W, C = x.shape
    xp = jnp.pad(x.astype(jnp.bfloat16), ((0, 0), (1, 1), (1, 1), (0, 0)))
    xf = jnp.concatenate([xp[:, :, 0:W, :], xp[:, :, 1:W + 1, :],
                          xp[:, :, 2:W + 2, :]], axis=-1)
    return xf.reshape(B, (H + 2) * W, 3 * C)
    # TODO(synk): for large-Cin layers a 9-tap in-kernel variant would avoid
    # the 3x activation HBM traffic of this fold; all layers here are Cin<=64.


def conv3x3(inputs, packed_ws, bias=None, *, norm, act,
            out_dtype=jnp.bfloat16, force_tiled=False):
    """3x3/pad-1 conv of channel-concat(inputs) + optional IN + activation.
    packed_ws[i] is the HWIO weight reshaped to (3, 3*Cin_i, Cout) bf16."""
    B, H, W, _ = inputs[0].shape
    M = H * W
    Cout = int(packed_ws[0].shape[-1])
    xs = [_fold_dx(x) for x in inputs]
    ws = list(packed_ws)
    b = None if (norm or bias is None) else bias       # IN cancels conv bias
    offsets = tuple(dy * W for dy in range(3))
    tcout = _cout_tile(Cout)

    # Row-tiling: possible when W is a multiple of 8 (dy taps are whole,
    # sublane-aligned row blocks of TM=W rows).  Chosen when the single-pass
    # footprint exceeds half the VMEM budget, when forced, or to guarantee
    # >=2 parallel grid blocks (v7x dual-TC) at batch 1.
    can_tile = (W % 8 == 0) and (M // W >= 2)
    fused_bytes = _fused_footprint(xs, len(offsets), M, tcout,
                                   jnp.dtype(out_dtype).itemsize)
    use_tiled = can_tile and (force_tiled
                              or fused_bytes > _vmem_budget_bytes() // 2
                              or B * (Cout // tcout) < 2)
    # TODO(synk): row tiles larger than W rows need a manual halo DMA
    # (memory_space=pl.ANY + make_async_copy); TM=W is enough at these shapes.
    if use_tiled:
        out = _tiled_conv_call(xs, ws, b, M, Cout, W, W, norm=norm, act=act,
                               out_dtype=out_dtype)
    else:
        out = _fused_conv_call(xs, ws, b, M, Cout, norm=norm, act=act,
                               offsets=offsets, out_dtype=out_dtype)
    return out.reshape(B, H, W, Cout)


def conv1x1(x, w_packed, b, *, out_dtype=jnp.bfloat16):
    B, H, W, Cin = x.shape
    Cout = int(w_packed.shape[-1])
    xf = x.reshape(B, H * W, Cin).astype(jnp.bfloat16)
    out = _fused_conv_call([xf], [w_packed], b, H * W, Cout, norm=False,
                           act="none", offsets=(0,), out_dtype=out_dtype)
    return out.reshape(B, H, W, Cout)


# TODO(synk): maxpool / nearest-upsample remain XLA ops between pallas_calls;
# fusing them into the conv epilogue/prologue would save further HBM trips.
def maxpool2x2(x):
    B, H, W, C = x.shape
    return x.reshape(B, H // 2, 2, W // 2, 2, C).max(axis=(2, 4))


def upsample_nearest(x, size):
    B, H, W, C = x.shape
    th, tw = size
    x = jnp.repeat(x, th // H, axis=1)
    return jnp.repeat(x, tw // W, axis=2)


# ----------------------------------------------------------------------------
# Parameters (deterministic init + pre-packing outside jit)
# ----------------------------------------------------------------------------
def _recnet_layer_defs(ndf, num_out):
    # name -> (kernel_size, Cin_total, Cout, split=channels of first concat branch)
    return {
        "enc1": (3, 2, ndf, None), "enc2": (3, ndf, ndf * 2, None),
        "enc3": (3, ndf * 2, ndf * 4, None), "enc4": (3, ndf * 4, ndf * 8, None),
        "bott1": (3, ndf * 8, ndf * 16, None), "bott2": (3, ndf * 16, ndf * 16, None),
        "bott_skip": (1, ndf * 8, ndf * 16, None),
        "upconv1": (3, ndf * 16, ndf * 8, None), "dec1": (3, ndf * 16, ndf * 8, ndf * 8),
        "upconv2": (3, ndf * 8, ndf * 4, None), "dec2": (3, ndf * 8, ndf * 4, ndf * 4),
        "upconv3": (3, ndf * 4, ndf * 2, None), "dec3": (3, ndf * 4, ndf * 2, ndf * 2),
        "upconv4": (3, ndf * 2, ndf, None), "dec4": (3, ndf * 2, ndf, ndf),
        "classifier": (3, ndf, num_out, None),
    }


def _init_conv(key, ks, cin, cout):
    kw_key, kb_key = jax.random.split(key)
    fan_in = ks * ks * cin
    w = jax.random.normal(kw_key, (ks, ks, cin, cout), jnp.float32) / jnp.sqrt(fan_in)
    b = jax.random.normal(kb_key, (cout,), jnp.float32) * 0.01
    return w, b


def init_recnet_params(key, ndf, num_output_channels):
    defs = _recnet_layer_defs(ndf, num_output_channels)
    keys = jax.random.split(key, len(defs))
    return {name: _init_conv(k, ks, cin, cout)
            for k, (name, (ks, cin, cout, _)) in zip(keys, defs.items())}


def pack_recnet_params(params, ndf, num_output_channels):
    """Pre-pack (outside jit) into kernel layout: 3x3 -> (3, 3*Cin, Cout) bf16
    (split along Cin for decoder skip-concat, matching torch.cat((t, skip), 1));
    1x1 -> (1, Cin, Cout) bf16; bias -> (1, Cout) f32."""
    defs = _recnet_layer_defs(ndf, num_output_channels)
    packed = {}
    for name, (ks, cin, cout, split) in defs.items():
        w, b = params[name]
        wb = jnp.asarray(w, jnp.bfloat16)
        if ks == 1:
            ws = (wb.reshape(1, cin, cout),)
        elif split is None:
            ws = (wb.reshape(3, 3 * cin, cout),)
        else:
            ws = (wb[:, :, :split, :].reshape(3, 3 * split, cout),
                  wb[:, :, split:, :].reshape(3, 3 * (cin - split), cout))
        packed[name] = {"w": ws,
                        "b": jnp.asarray(b, jnp.float32).reshape(1, cout)}
    return packed


# ----------------------------------------------------------------------------
# RecNet forward
# ----------------------------------------------------------------------------
def recnet_forward(params, x_nchw, height, width, force_tiled=False):
    x = jnp.transpose(x_nchw, (0, 2, 3, 1))            # NCHW -> NHWC

    def cb(t, name, skip=None, act="leaky"):            # conv_block_unet / upconv
        p = params[name]
        ins = [t] if skip is None else [t, skip]        # torch.cat((t, skip), 1)
        return conv3x3(ins, p["w"], norm=True, act=act, force_tiled=force_tiled)

    # encoder
    s1 = cb(x, "enc1");   out = maxpool2x2(s1)
    s2 = cb(out, "enc2"); out = maxpool2x2(s2)
    s3 = cb(out, "enc3"); out = maxpool2x2(s3)
    s4 = cb(out, "enc4"); out = maxpool2x2(s4)

    # bottleneck (ResConv: two conv blocks + 1x1 residual)
    m = cb(out, "bott1")
    m = cb(m, "bott2")
    out = m + conv1x1(out, params["bott_skip"]["w"][0], params["bott_skip"]["b"])

    # decoder (skip-concat fused into the decoder conv kernels)
    out = upsample_nearest(out, (height // 8, width // 8))
    out = cb(out, "upconv1", act="relu"); out = cb(out, "dec1", skip=s4)
    out = upsample_nearest(out, (height // 4, width // 4))
    out = cb(out, "upconv2", act="relu"); out = cb(out, "dec2", skip=s3)
    out = upsample_nearest(out, (height // 2, width // 2))
    out = cb(out, "upconv3", act="relu"); out = cb(out, "dec3", skip=s2)
    out = upsample_nearest(out, (height, width))
    out = cb(out, "upconv4", act="relu"); out = cb(out, "dec4", skip=s1)

    p = params["classifier"]
    out = conv3x3([out], p["w"], p["b"], norm=False, act="none",
                  out_dtype=jnp.float32, force_tiled=force_tiled)
    return jnp.transpose(out, (0, 3, 1, 2))             # NHWC -> NCHW


# ----------------------------------------------------------------------------
if __name__ == "__main__":
    B, C_in, H, W = 2, 2, 16, 16          # RecNet input has 2 channels
    ndf, num_output_channels = 4, 2

    key = jax.random.PRNGKey(0)
    key_x, key_p = jax.random.split(key)
    x = jax.random.normal(key_x, (B, C_in, H, W), jnp.float32)
    raw_params = init_recnet_params(key_p, ndf, num_output_channels)
    params = pack_recnet_params(raw_params, ndf, num_output_channels)

    fwd = jax.jit(recnet_forward,
                  static_argnames=("height", "width", "force_tiled"))

    out = jax.block_until_ready(fwd(params, x, height=H, width=W))
    assert out.shape == (B, num_output_channels, H, W), out.shape
    assert bool(jnp.all(jnp.isfinite(out)))

    # Also exercise the row-tiled / two-pass-IN path and cross-check it against
    # the single-pass fused path (same bf16 math, so they must agree closely).
    out_tiled = jax.block_until_ready(
        fwd(params, x, height=H, width=W, force_tiled=True))
    assert out_tiled.shape == out.shape
    assert bool(jnp.all(jnp.isfinite(out_tiled)))
    max_diff = float(jnp.max(jnp.abs(out - out_tiled)))
    assert max_diff < 0.1, max_diff

    print("KERNEL_OK")
</pallas_src>

<mosaic_0001>
module attributes {stable_mosaic.version = 11 : i64} {
  func.func @_fused_conv_kernel(%arg0: i32, %arg1: i32, %arg2: memref<1x288x6xbf16, #tpu.memory_space<vmem>>, %arg3: memref<3x6x4xbf16, #tpu.memory_space<vmem>>, %arg4: memref<1x256x4xbf16, #tpu.memory_space<vmem>>) attributes {dimension_semantics = [#tpu.dimension_semantics<parallel>, #tpu.dimension_semantics<parallel>], iteration_bounds = array<i64: 2, 1>, scalar_prefetch = 0 : i64, scratch_operands = 0 : i64, tpu.core_type = #tpu.core_type<tc>, window_params = [{transform_indices = @transform_0, window_bounds = array<i64: 1, 288, 6>}, {transform_indices = @transform_1, window_bounds = array<i64: 3, 6, 4>}, {transform_indices = @transform_2, window_bounds = array<i64: 1, 256, 4>}]} {
    %c0 = arith.constant 0 : index
    %c0_0 = arith.constant 0 : index
    %c0_1 = arith.constant 0 : index
    %0 = vector.load %arg2[%c0, %c0_0, %c0_1] : memref<1x288x6xbf16, #tpu.memory_space<vmem>>, vector<1x256x6xbf16>
    %1 = vector.shape_cast %0 : vector<1x256x6xbf16> to vector<256x6xbf16>
    %c0_2 = arith.constant 0 : index
    %c0_3 = arith.constant 0 : index
    %c0_4 = arith.constant 0 : index
    %2 = vector.load %arg3[%c0_2, %c0_3, %c0_4] : memref<3x6x4xbf16, #tpu.memory_space<vmem>>, vector<1x6x4xbf16>
    %3 = vector.shape_cast %2 : vector<1x6x4xbf16> to vector<6x4xbf16>
    %cst = arith.constant dense<0.000000e+00> : vector<256x4xf32>
    %4 = tpu.matmul %1, %3, %cst {dimension_numbers = #tpu.dot_dimension_numbers<[1], [0], [0], [1], [0, 0, 1, 1], [], []>} : vector<256x6xbf16>, vector<6x4xbf16>, vector<256x4xf32> -> vector<256x4xf32>
    %c0_5 = arith.constant 0 : index
    %c16 = arith.constant 16 : index
    %c0_6 = arith.constant 0 : index
    %5 = vector.load %arg2[%c0_5, %c16, %c0_6] : memref<1x288x6xbf16, #tpu.memory_space<vmem>>, vector<1x256x6xbf16>
    %6 = vector.shape_cast %5 : vector<1x256x6xbf16> to vector<256x6xbf16>
    %c1 = arith.constant 1 : index
    %c0_7 = arith.constant 0 : index
    %c0_8 = arith.constant 0 : index
    %7 = vector.load %arg3[%c1, %c0_7, %c0_8] : memref<3x6x4xbf16, #tpu.memory_space<vmem>>, vector<1x6x4xbf16>
    %8 = vector.shape_cast %7 : vector<1x6x4xbf16> to vector<6x4xbf16>
    %cst_9 = arith.constant dense<0.000000e+00> : vector<256x4xf32>
    %9 = tpu.matmul %6, %8, %cst_9 {dimension_numbers = #tpu.dot_dimension_numbers<[1], [0], [0], [1], [0, 0, 1, 1], [], []>} : vector<256x6xbf16>, vector<6x4xbf16>, vector<256x4xf32> -> vector<256x4xf32>
    %10 = arith.addf %4, %9 : vector<256x4xf32>
    %c0_10 = arith.constant 0 : index
    %c32 = arith.constant 32 : index
    %c0_11 = arith.constant 0 : index
    %11 = vector.load %arg2[%c0_10, %c32, %c0_11] : memref<1x288x6xbf16, #tpu.memory_space<vmem>>, vector<1x256x6xbf16>
    %12 = vector.shape_cast %11 : vector<1x256x6xbf16> to vector<256x6xbf16>
    %c2 = arith.constant 2 : index
    %c0_12 = arith.constant 0 : index
    %c0_13 = arith.constant 0 : index
    %13 = vector.load %arg3[%c2, %c0_12, %c0_13] : memref<3x6x4xbf16, #tpu.memory_space<vmem>>, vector<1x6x4xbf16>
    %14 = vector.shape_cast %13 : vector<1x6x4xbf16> to vector<6x4xbf16>
    %cst_14 = arith.constant dense<0.000000e+00> : vector<256x4xf32>
    %15 = tpu.matmul %12, %14, %cst_14 {dimension_numbers = #tpu.dot_dimension_numbers<[1], [0], [0], [1], [0, 0, 1, 1], [], []>} : vector<256x6xbf16>, vector<6x4xbf16>, vector<256x4xf32> -> vector<256x4xf32>
    %16 = arith.addf %10, %15 : vector<256x4xf32>
    %cst_15 = arith.constant dense<0.000000e+00> : vector<4xf32>
    %17 = vector.multi_reduction <add>, %16, %cst_15 [0] : vector<256x4xf32> to vector<4xf32>
    %18 = vector.shape_cast %17 : vector<4xf32> to vector<1x4xf32>
    %cst_16 = arith.constant 3.906250e-03 : f32
    %19 = vector.broadcast %cst_16 : f32 to vector<1x4xf32>
    %20 = arith.mulf %18, %19 : vector<1x4xf32>
    %21 = vector.broadcast %20 : vector<1x4xf32> to vector<256x4xf32>
    %22 = arith.subf %16, %21 : vector<256x4xf32>
    %23 = arith.mulf %22, %22 : vector<256x4xf32>
    %cst_17 = arith.constant dense<0.000000e+00> : vector<4xf32>
    %24 = vector.multi_reduction <add>, %23, %cst_17 [0] : vector<256x4xf32> to vector<4xf32>
    %25 = vector.shape_cast %24 : vector<4xf32> to vector<1x4xf32>
    %cst_18 = arith.constant 3.906250e-03 : f32
    %26 = vector.broadcast %cst_18 : f32 to vector<1x4xf32>
    %27 = arith.mulf %25, %26 : vector<1x4xf32>
    %cst_19 = arith.constant 9.99999974E-6 : f32
    %28 = vector.broadcast %cst_19 : f32 to vector<1x4xf32>
    %29 = arith.addf %27, %28 : vector<1x4xf32>
    %30 = math.rsqrt %29 : vector<1x4xf32>
    %31 = vector.broadcast %30 : vector<1x4xf32> to vector<256x4xf32>
    %32 = arith.mulf %22, %31 : vector<256x4xf32>
    %cst_20 = arith.constant 0.000000e+00 : f32
    %33 = vector.broadcast %cst_20 : f32 to vector<256x4xf32>
    %34 = arith.cmpf ogt, %32, %33 : vector<256x4xf32>
    %cst_21 = arith.constant 2.000000e-01 : f32
    %35 = vector.broadcast %cst_21 : f32 to vector<256x4xf32>
    %36 = arith.mulf %35, %32 : vector<256x4xf32>
    %37 = arith.select %34, %32, %36 : vector<256x4xi1>, vector<256x4xf32>
    %38 = arith.truncf %37 : vector<256x4xf32> to vector<256x4xbf16>
    %c0_22 = arith.constant 0 : index
    %c0_23 = arith.constant 0 : index
    %c0_24 = arith.constant 0 : index
    %39 = vector.load %arg4[%c0_22, %c0_23, %c0_24] : memref<1x256x4xbf16, #tpu.memory_space<vmem>>, vector<1x256x4xbf16>
    %40 = vector.shape_cast %39 : vector<1x256x4xbf16> to vector<256x4xbf16>
    %41 = vector.shape_cast %38 : vector<256x4xbf16> to vector<1x256x4xbf16>
    tpu.vector_store %arg4[%c0_22, %c0_23, %c0_24], %41 {strides = array<i32>} : memref<1x256x4xbf16, #tpu.memory_space<vmem>>, vector<1x256x4xbf16>,
    return
  }
  func.func @transform_0(%arg0: i32, %arg1: i32) -> (i32, i32, i32) {
    %c0_i32 = arith.constant 0 : i32
    %c0_i32_0 = arith.constant 0 : i32
    %c0_i32_1 = arith.constant 0 : i32
    return %arg0, %c0_i32, %c0_i32_0 : i32, i32, i32
  }
  func.func @transform_1(%arg0: i32, %arg1: i32) -> (i32, i32, i32) {
    %c0_i32 = arith.constant 0 : i32
    %c0_i32_0 = arith.constant 0 : i32
    %c0_i32_1 = arith.constant 0 : i32
    return %c0_i32, %c0_i32_0, %arg1 : i32, i32, i32
  }
  func.func @transform_2(%arg0: i32, %arg1: i32) -> (i32, i32, i32) {
    %c0_i32 = arith.constant 0 : i32
    %c0_i32_0 = arith.constant 0 : i32
    return %arg0, %c0_i32, %arg1 : i32, i32, i32
  }
}

module attributes {stable_mosaic.version = 11 : i64} {
  func.func @_fused_conv_kernel(%arg0: i32, %arg1: i32, %arg2: memref<1x80x12xbf16, #tpu.memory_space<vmem>>, %arg3: memref<3x12x8xbf16, #tpu.memory_space<vmem>>, %arg4: memref<1x64x8xbf16, #tpu.memory_space<vmem>>) attributes {dimension_semantics = [#tpu.dimension_semantics<parallel>, #tpu.dimension_semantics<parallel>], iteration_bounds = array<i64: 2, 1>, scalar_prefetch = 0 : i64, scratch_operands = 0 : i64, tpu.core_type = #tpu.core_type<tc>, window_params = [{transform_indices = @transform_0, window_bounds = array<i64: 1, 80, 12>}, {transform_indices = @transform_1, window_bounds = array<i64: 3, 12, 8>}, {transform_indices = @transform_2, window_bounds = array<i64: 1, 64, 8>}]} {
    %c0 = arith.constant 0 : index
    %c0_0 = arith.constant 0 : index
    %c0_1 = arith.constant 0 : index
    %0 = vector.load %arg2[%c0, %c0_0, %c0_1] : memref<1x80x12xbf16, #tpu.memory_space<vmem>>, vector<1x64x12xbf16>
    %1 = vector.shape_cast %0 : vector<1x64x12xbf16> to vector<64x12xbf16>
    %c0_2 = arith.constant 0 : index
    %c0_3 = arith.constant 0 : index
    %c0_4 = arith.constant 0 : index
    %2 = vector.load %arg3[%c0_2, %c0_3, %c0_4] : memref<3x12x8xbf16, #tpu.memory_space<vmem>>, vector<1x12x8xbf16>
    %3 = vector.shape_cast %2 : vector<1x12x8xbf16> to vector<12x8xbf16>
    %cst = arith.constant dense<0.000000e+00> : vector<64x8xf32>
    %4 = tpu.matmul %1, %3, %cst {dimension_numbers = #tpu.dot_dimension_numbers<[1], [0], [0], [1], [0, 0, 1, 1], [], []>} : vector<64x12xbf16>, vector<12x8xbf16>, vector<64x8xf32> -> vector<64x8xf32>
    %c0_5 = arith.constant 0 : index
    %c8 = arith.constant 8 : index
    %c0_6 = arith.constant 0 : index
    %5 = vector.load %arg2[%c0_5, %c8, %c0_6] : memref<1x80x12xbf16, #tpu.memory_space<vmem>>, vector<1x64x12xbf16>
    %6 = vector.shape_cast %5 : vector<1x64x12xbf16> to vector<64x12xbf16>
    %c1 = arith.constant 1 : index
    %c0_7 = arith.constant 0 : index
    %c0_8 = arith.constant 0 : index
    %7 = vector.load %arg3[%c1, %c0_7, %c0_8] : memref<3x12x8xbf16, #tpu.memory_space<vmem>>, vector<1x12x8xbf16>
    %8 = vector.shape_cast %7 : vector<1x12x8xbf16> to vector<12x8xbf16>
    %cst_9 = arith.constant dense<0.000000e+00> : vector<64x8xf32>
    %9 = tpu.matmul %6, %8, %cst_9 {dimension_numbers = #tpu.dot_dimension_numbers<[1], [0], [0], [1], [0, 0, 1, 1], [], []>} : vector<64x12xbf16>, vector<12x8xbf16>, vector<64x8xf32> -> vector<64x8xf32>
    %10 = arith.addf %4, %9 : vector<64x8xf32>
    %c0_10 = arith.constant 0 : index
    %c16 = arith.constant 16 : index
    %c0_11 = arith.constant 0 : index
    %11 = vector.load %arg2[%c0_10, %c16, %c0_11] : memref<1x80x12xbf16, #tpu.memory_space<vmem>>, vector<1x64x12xbf16>
    %12 = vector.shape_cast %11 : vector<1x64x12xbf16> to vector<64x12xbf16>
    %c2 = arith.constant 2 : index
    %c0_12 = arith.constant 0 : index
    %c0_13 = arith.constant 0 : index
    %13 = vector.load %arg3[%c2, %c0_12, %c0_13] : memref<3x12x8xbf16, #tpu.memory_space<vmem>>, vector<1x12x8xbf16>
    %14 = vector.shape_cast %13 : vector<1x12x8xbf16> to vector<12x8xbf16>
    %cst_14 = arith.constant dense<0.000000e+00> : vector<64x8xf32>
    %15 = tpu.matmul %12, %14, %cst_14 {dimension_numbers = #tpu.dot_dimension_numbers<[1], [0], [0], [1], [0, 0, 1, 1], [], []>} : vector<64x12xbf16>, vector<12x8xbf16>, vector<64x8xf32> -> vector<64x8xf32>
    %16 = arith.addf %10, %15 : vector<64x8xf32>
    %cst_15 = arith.constant dense<0.000000e+00> : vector<8xf32>
    %17 = vector.multi_reduction <add>, %16, %cst_15 [0] : vector<64x8xf32> to vector<8xf32>
    %18 = vector.shape_cast %17 : vector<8xf32> to vector<1x8xf32>
    %cst_16 = arith.constant 1.562500e-02 : f32
    %19 = vector.broadcast %cst_16 : f32 to vector<1x8xf32>
    %20 = arith.mulf %18, %19 : vector<1x8xf32>
    %21 = vector.broadcast %20 : vector<1x8xf32> to vector<64x8xf32>
    %22 = arith.subf %16, %21 : vector<64x8xf32>
    %23 = arith.mulf %22, %22 : vector<64x8xf32>
    %cst_17 = arith.constant dense<0.000000e+00> : vector<8xf32>
    %24 = vector.multi_reduction <add>, %23, %cst_17 [0] : vector<64x8xf32> to vector<8xf32>
    %25 = vector.shape_cast %24 : vector<8xf32> to vector<1x8xf32>
    %cst_18 = arith.constant 1.562500e-02 : f32
    %26 = vector.broadcast %cst_18 : f32 to vector<1x8xf32>
    %27 = arith.mulf %25, %26 : vector<1x8xf32>
    %cst_19 = arith.constant 9.99999974E-6 : f32
    %28 = vector.broadcast %cst_19 : f32 to vector<1x8xf32>
    %29 = arith.addf %27, %28 : vector<1x8xf32>
    %30 = math.rsqrt %29 : vector<1x8xf32>
    %31 = vector.broadcast %30 : vector<1x8xf32> to vector<64x8xf32>
    %32 = arith.mulf %22, %31 : vector<64x8xf32>
    %cst_20 = arith.constant 0.000000e+00 : f32
    %33 = vector.broadcast %cst_20 : f32 to vector<64x8xf32>
    %34 = arith.cmpf ogt, %32, %33 : vector<64x8xf32>
    %cst_21 = arith.constant 2.000000e-01 : f32
    %35 = vector.broadcast %cst_21 : f32 to vector<64x8xf32>
    %36 = arith.mulf %35, %32 : vector<64x8xf32>
    %37 = arith.select %34, %32, %36 : vector<64x8xi1>, vector<64x8xf32>
    %38 = arith.truncf %37 : vector<64x8xf32> to vector<64x8xbf16>
    %c0_22 = arith.constant 0 : index
    %c0_23 = arith.constant 0 : index
    %c0_24 = arith.constant 0 : index
    %39 = vector.load %arg4[%c0_22, %c0_23, %c0_24] : memref<1x64x8xbf16, #tpu.memory_space<vmem>>, vector<1x64x8xbf16>
    %40 = vector.shape_cast %39 : vector<1x64x8xbf16> to vector<64x8xbf16>
    %41 = vector.shape_cast %38 : vector<64x8xbf16> to vector<1x64x8xbf16>
    tpu.vector_store %arg4[%c0_22, %c0_23, %c0_24], %41 {strides = array<i32>} : memref<1x64x8xbf16, #tpu.memory_space<vmem>>, vector<1x64x8xbf16>,
    return
  }
  func.func @transform_0(%arg0: i32, %arg1: i32) -> (i32, i32, i32) {
    %c0_i32 = arith.constant 0 : i32
    %c0_i32_0 = arith.constant 0 : i32
    %c0_i32_1 = arith.constant 0 : i32
    return %arg0, %c0_i32, %c0_i32_0 : i32, i32, i32
  }
  func.func @transform_1(%arg0: i32, %arg1: i32) -> (i32, i32, i32) {
    %c0_i32 = arith.constant 0 : i32
    %c0_i32_0 = arith.constant 0 : i32
    %c0_i32_1 = arith.constant 0 : i32
    return %c0_i32, %c0_i32_0, %arg1 : i32, i32, i32
  }
  func.func @transform_2(%arg0: i32, %arg1: i32) -> (i32, i32, i32) {
    %c0_i32 = arith.constant 0 : i32
    %c0_i32_0 = arith.constant 0 : i32
    return %arg0, %c0_i32, %arg1 : i32, i32, i32
  }
}

module attributes {stable_mosaic.version = 11 : i64} {
  func.func @_fused_conv_kernel(%arg0: i32, %arg1: i32, %arg2: memref<1x24x24xbf16, #tpu.memory_space<vmem>>, %arg3: memref<3x24x16xbf16, #tpu.memory_space<vmem>>, %arg4: memref<1x16x16xbf16, #tpu.memory_space<vmem>>) attributes {dimension_semantics = [#tpu.dimension_semantics<parallel>, #tpu.dimension_semantics<parallel>], iteration_bounds = array<i64: 2, 1>, scalar_prefetch = 0 : i64, scratch_operands = 0 : i64, tpu.core_type = #tpu.core_type<tc>, window_params = [{transform_indices = @transform_0, window_bounds = array<i64: 1, 24, 24>}, {transform_indices = @transform_1, window_bounds = array<i64: 3, 24, 16>}, {transform_indices = @transform_2, window_bounds = array<i64: 1, 16, 16>}]} {
    %c0 = arith.constant 0 : index
    %c0_0 = arith.constant 0 : index
    %c0_1 = arith.constant 0 : index
    %0 = vector.load %arg2[%c0, %c0_0, %c0_1] : memref<1x24x24xbf16, #tpu.memory_space<vmem>>, vector<1x16x24xbf16>
    %1 = vector.shape_cast %0 : vector<1x16x24xbf16> to vector<16x24xbf16>
    %c0_2 = arith.constant 0 : index
    %c0_3 = arith.constant 0 : index
    %c0_4 = arith.constant 0 : index
    %2 = vector.load %arg3[%c0_2, %c0_3, %c0_4] : memref<3x24x16xbf16, #tpu.memory_space<vmem>>, vector<1x24x16xbf16>
    %3 = vector.shape_cast %2 : vector<1x24x16xbf16> to vector<24x16xbf16>
    %cst = arith.constant dense<0.000000e+00> : vector<16x16xf32>
    %4 = tpu.matmul %1, %3, %cst {dimension_numbers = #tpu.dot_dimension_numbers<[1], [0], [0], [1], [0, 0, 1, 1], [], []>} : vector<16x24xbf16>, vector<24x16xbf16>, vector<16x16xf32> -> vector<16x16xf32>
    %c0_5 = arith.constant 0 : index
    %c4 = arith.constant 4 : index
    %c0_6 = arith.constant 0 : index
    %5 = vector.load %arg2[%c0_5, %c4, %c0_6] : memref<1x24x24xbf16, #tpu.memory_space<vmem>>, vector<1x16x24xbf16>
    %6 = vector.shape_cast %5 : vector<1x16x24xbf16> to vector<16x24xbf16>
    %c1 = arith.constant 1 : index
    %c0_7 = arith.constant 0 : index
    %c0_8 = arith.constant 0 : index
    %7 = vector.load %arg3[%c1, %c0_7, %c0_8] : memref<3x24x16xbf16, #tpu.memory_space<vmem>>, vector<1x24x16xbf16>
    %8 = vector.shape_cast %7 : vector<1x24x16xbf16> to vector<24x16xbf16>
    %cst_9 = arith.constant dense<0.000000e+00> : vector<16x16xf32>
    %9 = tpu.matmul %6, %8, %cst_9 {dimension_numbers = #tpu.dot_dimension_numbers<[1], [0], [0], [1], [0, 0, 1, 1], [], []>} : vector<16x24xbf16>, vector<24x16xbf16>, vector<16x16xf32> -> vector<16x16xf32>
    %10 = arith.addf %4, %9 : vector<16x16xf32>
    %c0_10 = arith.constant 0 : index
    %c8 = arith.constant 8 : index
    %c0_11 = arith.constant 0 : index
    %11 = vector.load %arg2[%c0_10, %c8, %c0_11] : memref<1x24x24xbf16, #tpu.memory_space<vmem>>, vector<1x16x24xbf16>
    %12 = vector.shape_cast %11 : vector<1x16x24xbf16> to vector<16x24xbf16>
    %c2 = arith.constant 2 : index
    %c0_12 = arith.constant 0 : index
    %c0_13 = arith.constant 0 : index
    %13 = vector.load %arg3[%c2, %c0_12, %c0_13] : memref<3x24x16xbf16, #tpu.memory_space<vmem>>, vector<1x24x16xbf16>
    %14 = vector.shape_cast %13 : vector<1x24x16xbf16> to vector<24x16xbf16>
    %cst_14 = arith.constant dense<0.000000e+00> : vector<16x16xf32>
    %15 = tpu.matmul %12, %14, %cst_14 {dimension_numbers = #tpu.dot_dimension_numbers<[1], [0], [0], [1], [0, 0, 1, 1], [], []>} : vector<16x24xbf16>, vector<24x16xbf16>, vector<16x16xf32> -> vector<16x16xf32>
    %16 = arith.addf %10, %15 : vector<16x16xf32>
    %cst_15 = arith.constant dense<0.000000e+00> : vector<16xf32>
    %17 = vector.multi_reduction <add>, %16, %cst_15 [0] : vector<16x16xf32> to vector<16xf32>
    %18 = vector.shape_cast %17 : vector<16xf32> to vector<1x16xf32>
    %cst_16 = arith.constant 6.250000e-02 : f32
    %19 = vector.broadcast %cst_16 : f32 to vector<1x16xf32>
    %20 = arith.mulf %18, %19 : vector<1x16xf32>
    %21 = vector.broadcast %20 : vector<1x16xf32> to vector<16x16xf32>
    %22 = arith.subf %16, %21 : vector<16x16xf32>
    %23 = arith.mulf %22, %22 : vector<16x16xf32>
    %cst_17 = arith.constant dense<0.000000e+00> : vector<16xf32>
    %24 = vector.multi_reduction <add>, %23, %cst_17 [0] : vector<16x16xf32> to vector<16xf32>
    %25 = vector.shape_cast %24 : vector<16xf32> to vector<1x16xf32>
    %cst_18 = arith.constant 6.250000e-02 : f32
    %26 = vector.broadcast %cst_18 : f32 to vector<1x16xf32>
    %27 = arith.mulf %25, %26 : vector<1x16xf32>
    %cst_19 = arith.constant 9.99999974E-6 : f32
    %28 = vector.broadcast %cst_19 : f32 to vector<1x16xf32>
    %29 = arith.addf %27, %28 : vector<1x16xf32>
    %30 = math.rsqrt %29 : vector<1x16xf32>
    %31 = vector.broadcast %30 : vector<1x16xf32> to vector<16x16xf32>
    %32 = arith.mulf %22, %31 : vector<16x16xf32>
    %cst_20 = arith.constant 0.000000e+00 : f32
    %33 = vector.broadcast %cst_20 : f32 to vector<16x16xf32>
    %34 = arith.cmpf ogt, %32, %33 : vector<16x16xf32>
    %cst_21 = arith.constant 2.000000e-01 : f32
    %35 = vector.broadcast %cst_21 : f32 to vector<16x16xf32>
    %36 = arith.mulf %35, %32 : vector<16x16xf32>
    %37 = arith.select %34, %32, %36 : vector<16x16xi1>, vector<16x16xf32>
    %38 = arith.truncf %37 : vector<16x16xf32> to vector<16x16xbf16>
    %c0_22 = arith.constant 0 : index
    %c0_23 = arith.constant 0 : index
    %c0_24 = arith.constant 0 : index
    %39 = vector.load %arg4[%c0_22, %c0_23, %c0_24] : memref<1x16x16xbf16, #tpu.memory_space<vmem>>, vector<1x16x16xbf16>
    %40 = vector.shape_cast %39 : vector<1x16x16xbf16> to vector<16x16xbf16>
    %41 = vector.shape_cast %38 : vector<16x16xbf16> to vector<1x16x16xbf16>
    tpu.vector_store %arg4[%c0_22, %c0_23, %c0_24], %41 {strides = array<i32>} : memref<1x16x16xbf16, #tpu.memory_space<vmem>>, vector<1x16x16xbf16>,
    return
  }
  func.func @transform_0(%arg0: i32, %arg1: i32) -> (i32, i32, i32) {
    %c0_i32 = arith.constant 0 : i32
    %c0_i32_0 = arith.constant 0 : i32
    %c0_i32_1 = arith.constant 0 : i32
    return %arg0, %c0_i32, %c0_i32_0 : i32, i32, i32
  }
  func.func @transform_1(%arg0: i32, %arg1: i32) -> (i32, i32, i32) {
    %c0_i32 = arith.constant 0 : i32
    %c0_i32_0 = arith.constant 0 : i32
    %c0_i32_1 = arith.constant 0 : i32
    return %c0_i32, %c0_i32_0, %arg1 : i32, i32, i32
  }
  func.func @transform_2(%arg0: i32, %arg1: i32) -> (i32, i32, i32) {
    %c0_i32 = arith.constant 0 : i32
    %c0_i32_0 = arith.constant 0 : i32
    return %arg0, %c0_i32, %arg1 : i32, i32, i32
  }
}

module attributes {stable_mosaic.version = 11 : i64} {
  func.func @_fused_conv_kernel(%arg0: i32, %arg1: i32, %arg2: memref<1x8x48xbf16, #tpu.memory_space<vmem>>, %arg3: memref<3x48x32xbf16, #tpu.memory_space<vmem>>, %arg4: memref<1x4x32xbf16, #tpu.memory_space<vmem>>) attributes {dimension_semantics = [#tpu.dimension_semantics<parallel>, #tpu.dimension_semantics<parallel>], iteration_bounds = array<i64: 2, 1>, scalar_prefetch = 0 : i64, scratch_operands = 0 : i64, tpu.core_type = #tpu.core_type<tc>, window_params = [{transform_indices = @transform_0, window_bounds = array<i64: 1, 8, 48>}, {transform_indices = @transform_1, window_bounds = array<i64: 3, 48, 32>}, {transform_indices = @transform_2, window_bounds = array<i64: 1, 4, 32>}]} {
    %c0 = arith.constant 0 : index
    %c0_0 = arith.constant 0 : index
    %c0_1 = arith.constant 0 : index
    %0 = vector.load %arg2[%c0, %c0_0, %c0_1] : memref<1x8x48xbf16, #tpu.memory_space<vmem>>, vector<1x4x48xbf16>
    %1 = vector.shape_cast %0 : vector<1x4x48xbf16> to vector<4x48xbf16>
    %c0_2 = arith.constant 0 : index
    %c0_3 = arith.constant 0 : index
    %c0_4 = arith.constant 0 : index
    %2 = vector.load %arg3[%c0_2, %c0_3, %c0_4] : memref<3x48x32xbf16, #tpu.memory_space<vmem>>, vector<1x48x32xbf16>
    %3 = vector.shape_cast %2 : vector<1x48x32xbf16> to vector<48x32xbf16>
    %cst = arith.constant dense<0.000000e+00> : vector<4x32xf32>
    %4 = tpu.matmul %1, %3, %cst {dimension_numbers = #tpu.dot_dimension_numbers<[1], [0], [0], [1], [0, 0, 1, 1], [], []>} : vector<4x48xbf16>, vector<48x32xbf16>, vector<4x32xf32> -> vector<4x32xf32>
    %c0_5 = arith.constant 0 : index
    %c2 = arith.constant 2 : index
    %c0_6 = arith.constant 0 : index
    %5 = vector.load %arg2[%c0_5, %c2, %c0_6] : memref<1x8x48xbf16, #tpu.memory_space<vmem>>, vector<1x4x48xbf16>
    %6 = vector.shape_cast %5 : vector<1x4x48xbf16> to vector<4x48xbf16>
    %c1 = arith.constant 1 : index
    %c0_7 = arith.constant 0 : index
    %c0_8 = arith.constant 0 : index
    %7 = vector.load %arg3[%c1, %c0_7, %c0_8] : memref<3x48x32xbf16, #tpu.memory_space<vmem>>, vector<1x48x32xbf16>
    %8 = vector.shape_cast %7 : vector<1x48x32xbf16> to vector<48x32xbf16>
    %cst_9 = arith.constant dense<0.000000e+00> : vector<4x32xf32>
    %9 = tpu.matmul %6, %8, %cst_9 {dimension_numbers = #tpu.dot_dimension_numbers<[1], [0], [0], [1], [0, 0, 1, 1], [], []>} : vector<4x48xbf16>, vector<48x32xbf16>, vector<4x32xf32> -> vector<4x32xf32>
    %10 = arith.addf %4, %9 : vector<4x32xf32>
    %c0_10 = arith.constant 0 : index
    %c4 = arith.constant 4 : index
    %c0_11 = arith.constant 0 : index
    %11 = vector.load %arg2[%c0_10, %c4, %c0_11] : memref<1x8x48xbf16, #tpu.memory_space<vmem>>, vector<1x4x48xbf16>
    %12 = vector.shape_cast %11 : vector<1x4x48xbf16> to vector<4x48xbf16>
    %c2_12 = arith.constant 2 : index
    %c0_13 = arith.constant 0 : index
    %c0_14 = arith.constant 0 : index
    %13 = vector.load %arg3[%c2_12, %c0_13, %c0_14] : memref<3x48x32xbf16, #tpu.memory_space<vmem>>, vector<1x48x32xbf16>
    %14 = vector.shape_cast %13 : vector<1x48x32xbf16> to vector<48x32xbf16>
    %cst_15 = arith.constant dense<0.000000e+00> : vector<4x32xf32>
    %15 = tpu.matmul %12, %14, %cst_15 {dimension_numbers = #tpu.dot_dimension_numbers<[1], [0], [0], [1], [0, 0, 1, 1], [], []>} : vector<4x48xbf16>, vector<48x32xbf16>, vector<4x32xf32> -> vector<4x32xf32>
    %16 = arith.addf %10, %15 : vector<4x32xf32>
    %cst_16 = arith.constant dense<0.000000e+00> : vector<32xf32>
    %17 = vector.multi_reduction <add>, %16, %cst_16 [0] : vector<4x32xf32> to vector<32xf32>
    %18 = vector.shape_cast %17 : vector<32xf32> to vector<1x32xf32>
    %cst_17 = arith.constant 2.500000e-01 : f32
    %19 = vector.broadcast %cst_17 : f32 to vector<1x32xf32>
    %20 = arith.mulf %18, %19 : vector<1x32xf32>
    %21 = vector.broadcast %20 : vector<1x32xf32> to vector<4x32xf32>
    %22 = arith.subf %16, %21 : vector<4x32xf32>
    %23 = arith.mulf %22, %22 : vector<4x32xf32>
    %cst_18 = arith.constant dense<0.000000e+00> : vector<32xf32>
    %24 = vector.multi_reduction <add>, %23, %cst_18 [0] : vector<4x32xf32> to vector<32xf32>
    %25 = vector.shape_cast %24 : vector<32xf32> to vector<1x32xf32>
    %cst_19 = arith.constant 2.500000e-01 : f32
    %26 = vector.broadcast %cst_19 : f32 to vector<1x32xf32>
    %27 = arith.mulf %25, %26 : vector<1x32xf32>
    %cst_20 = arith.constant 9.99999974E-6 : f32
    %28 = vector.broadcast %cst_20 : f32 to vector<1x32xf32>
    %29 = arith.addf %27, %28 : vector<1x32xf32>
    %30 = math.rsqrt %29 : vector<1x32xf32>
    %31 = vector.broadcast %30 : vector<1x32xf32> to vector<4x32xf32>
    %32 = arith.mulf %22, %31 : vector<4x32xf32>
    %cst_21 = arith.constant 0.000000e+00 : f32
    %33 = vector.broadcast %cst_21 : f32 to vector<4x32xf32>
    %34 = arith.cmpf ogt, %32, %33 : vector<4x32xf32>
    %cst_22 = arith.constant 2.000000e-01 : f32
    %35 = vector.broadcast %cst_22 : f32 to vector<4x32xf32>
    %36 = arith.mulf %35, %32 : vector<4x32xf32>
    %37 = arith.select %34, %32, %36 : vector<4x32xi1>, vector<4x32xf32>
    %38 = arith.truncf %37 : vector<4x32xf32> to vector<4x32xbf16>
    %c0_23 = arith.constant 0 : index
    %c0_24 = arith.constant 0 : index
    %c0_25 = arith.constant 0 : index
    %39 = vector.load %arg4[%c0_23, %c0_24, %c0_25] : memref<1x4x32xbf16, #tpu.memory_space<vmem>>, vector<1x4x32xbf16>
    %40 = vector.shape_cast %39 : vector<1x4x32xbf16> to vector<4x32xbf16>
    %41 = vector.shape_cast %38 : vector<4x32xbf16> to vector<1x4x32xbf16>
    tpu.vector_store %arg4[%c0_23, %c0_24, %c0_25], %41 {strides = array<i32>} : memref<1x4x32xbf16, #tpu.memory_space<vmem>>, vector<1x4x32xbf16>,
    return
  }
  func.func @transform_0(%arg0: i32, %arg1: i32) -> (i32, i32, i32) {
    %c0_i32 = arith.constant 0 : i32
    %c0_i32_0 = arith.constant 0 : i32
    %c0_i32_1 = arith.constant 0 : i32
    return %arg0, %c0_i32, %c0_i32_0 : i32, i32, i32
  }
  func.func @transform_1(%arg0: i32, %arg1: i32) -> (i32, i32, i32) {
    %c0_i32 = arith.constant 0 : i32
    %c0_i32_0 = arith.constant 0 : i32
    %c0_i32_1 = arith.constant 0 : i32
    return %c0_i32, %c0_i32_0, %arg1 : i32, i32, i32
  }
  func.func @transform_2(%arg0: i32, %arg1: i32) -> (i32, i32, i32) {
    %c0_i32 = arith.constant 0 : i32
    %c0_i32_0 = arith.constant 0 : i32
    return %arg0, %c0_i32, %arg1 : i32, i32, i32
  }
}

module attributes {stable_mosaic.version = 11 : i64} {
  func.func @_fused_conv_kernel(%arg0: i32, %arg1: i32, %arg2: memref<1x3x96xbf16, #tpu.memory_space<vmem>>, %arg3: memref<3x96x64xbf16, #tpu.memory_space<vmem>>, %arg4: memref<1x1x64xbf16, #tpu.memory_space<vmem>>) attributes {dimension_semantics = [#tpu.dimension_semantics<parallel>, #tpu.dimension_semantics<parallel>], iteration_bounds = array<i64: 2, 1>, scalar_prefetch = 0 : i64, scratch_operands = 0 : i64, tpu.core_type = #tpu.core_type<tc>, window_params = [{transform_indices = @transform_0, window_bounds = array<i64: 1, 3, 96>}, {transform_indices = @transform_1, window_bounds = array<i64: 3, 96, 64>}, {transform_indices = @transform_2, window_bounds = array<i64: 1, 1, 64>}]} {
    %c0 = arith.constant 0 : index
    %c0_0 = arith.constant 0 : index
    %c0_1 = arith.constant 0 : index
    %0 = vector.load %arg2[%c0, %c0_0, %c0_1] : memref<1x3x96xbf16, #tpu.memory_space<vmem>>, vector<1x1x96xbf16>
    %1 = vector.shape_cast %0 : vector<1x1x96xbf16> to vector<1x96xbf16>
    %c0_2 = arith.constant 0 : index
    %c0_3 = arith.constant 0 : index
    %c0_4 = arith.constant 0 : index
    %2 = vector.load %arg3[%c0_2, %c0_3, %c0_4] : memref<3x96x64xbf16, #tpu.memory_space<vmem>>, vector<1x96x64xbf16>
    %3 = vector.shape_cast %2 : vector<1x96x64xbf16> to vector<96x64xbf16>
    %cst = arith.constant dense<0.000000e+00> : vector<1x64xf32>
    %4 = tpu.matmul %1, %3, %cst {dimension_numbers = #tpu.dot_dimension_numbers<[1], [0], [0], [1], [0, 0, 1, 1], [], []>} : vector<1x96xbf16>, vector<96x64xbf16>, vector<1x64xf32> -> vector<1x64xf32>
    %c0_5 = arith.constant 0 : index
    %c1 = arith.constant 1 : index
    %c0_6 = arith.constant 0 : index
    %5 = vector.load %arg2[%c0_5, %c1, %c0_6] : memref<1x3x96xbf16, #tpu.memory_space<vmem>>, vector<1x1x96xbf16>
    %6 = vector.shape_cast %5 : vector<1x1x96xbf16> to vector<1x96xbf16>
    %c1_7 = arith.constant 1 : index
    %c0_8 = arith.constant 0 : index
    %c0_9 = arith.constant 0 : index
    %7 = vector.load %arg3[%c1_7, %c0_8, %c0_9] : memref<3x96x64xbf16, #tpu.memory_space<vmem>>, vector<1x96x64xbf16>
    %8 = vector.shape_cast %7 : vector<1x96x64xbf16> to vector<96x64xbf16>
    %cst_10 = arith.constant dense<0.000000e+00> : vector<1x64xf32>
    %9 = tpu.matmul %6, %8, %cst_10 {dimension_numbers = #tpu.dot_dimension_numbers<[1], [0], [0], [1], [0, 0, 1, 1], [], []>} : vector<1x96xbf16>, vector<96x64xbf16>, vector<1x64xf32> -> vector<1x64xf32>
    %10 = arith.addf %4, %9 : vector<1x64xf32>
    %c0_11 = arith.constant 0 : index
    %c2 = arith.constant 2 : index
    %c0_12 = arith.constant 0 : index
    %11 = vector.load %arg2[%c0_11, %c2, %c0_12] : memref<1x3x96xbf16, #tpu.memory_space<vmem>>, vector<1x1x96xbf16>
    %12 = vector.shape_cast %11 : vector<1x1x96xbf16> to vector<1x96xbf16>
    %c2_13 = arith.constant 2 : index
    %c0_14 = arith.constant 0 : index
    %c0_15 = arith.constant 0 : index
    %13 = vector.load %arg3[%c2_13, %c0_14, %c0_15] : memref<3x96x64xbf16, #tpu.memory_space<vmem>>, vector<1x96x64xbf16>
    %14 = vector.shape_cast %13 : vector<1x96x64xbf16> to vector<96x64xbf16>
    %cst_16 = arith.constant dense<0.000000e+00> : vector<1x64xf32>
    %15 = tpu.matmul %12, %14, %cst_16 {dimension_numbers = #tpu.dot_dimension_numbers<[1], [0], [0], [1], [0, 0, 1, 1], [], []>} : vector<1x96xbf16>, vector<96x64xbf16>, vector<1x64xf32> -> vector<1x64xf32>
    %16 = arith.addf %10, %15 : vector<1x64xf32>
    %cst_17 = arith.constant dense<0.000000e+00> : vector<64xf32>
    %17 = vector.multi_reduction <add>, %16, %cst_17 [0] : vector<1x64xf32> to vector<64xf32>
    %18 = vector.shape_cast %17 : vector<64xf32> to vector<1x64xf32>
    %cst_18 = arith.constant 1.000000e+00 : f32
    %19 = vector.broadcast %cst_18 : f32 to vector<1x64xf32>
    %20 = arith.mulf %18, %19 : vector<1x64xf32>
    %21 = arith.subf %16, %20 : vector<1x64xf32>
    %22 = arith.mulf %21, %21 : vector<1x64xf32>
    %cst_19 = arith.constant dense<0.000000e+00> : vector<64xf32>
    %23 = vector.multi_reduction <add>, %22, %cst_19 [0] : vector<1x64xf32> to vector<64xf32>
    %24 = vector.shape_cast %23 : vector<64xf32> to vector<1x64xf32>
    %cst_20 = arith.constant 1.000000e+00 : f32
    %25 = vector.broadcast %cst_20 : f32 to vector<1x64xf32>
    %26 = arith.mulf %24, %25 : vector<1x64xf32>
    %cst_21 = arith.constant 9.99999974E-6 : f32
    %27 = vector.broadcast %cst_21 : f32 to vector<1x64xf32>
    %28 = arith.addf %26, %27 : vector<1x64xf32>
    %29 = math.rsqrt %28 : vector<1x64xf32>
    %30 = arith.mulf %21, %29 : vector<1x64xf32>
    %cst_22 = arith.constant 0.000000e+00 : f32
    %31 = vector.broadcast %cst_22 : f32 to vector<1x64xf32>
    %32 = arith.cmpf ogt, %30, %31 : vector<1x64xf32>
    %cst_23 = arith.constant 2.000000e-01 : f32
    %33 = vector.broadcast %cst_23 : f32 to vector<1x64xf32>
    %34 = arith.mulf %33, %30 : vector<1x64xf32>
    %35 = arith.select %32, %30, %34 : vector<1x64xi1>, vector<1x64xf32>
    %36 = arith.truncf %35 : vector<1x64xf32> to vector<1x64xbf16>
    %c0_24 = arith.constant 0 : index
    %c0_25 = arith.constant 0 : index
    %c0_26 = arith.constant 0 : index
    %37 = vector.load %arg4[%c0_24, %c0_25, %c0_26] : memref<1x1x64xbf16, #tpu.memory_space<vmem>>, vector<1x1x64xbf16>
    %38 = vector.shape_cast %37 : vector<1x1x64xbf16> to vector<1x64xbf16>
    %39 = vector.shape_cast %36 : vector<1x64xbf16> to vector<1x1x64xbf16>
    tpu.vector_store %arg4[%c0_24, %c0_25, %c0_26], %39 {strides = array<i32>} : memref<1x1x64xbf16, #tpu.memory_space<vmem>>, vector<1x1x64xbf16>,
    return
  }
  func.func @transform_0(%arg0: i32, %arg1: i32) -> (i32, i32, i32) {
    %c0_i32 = arith.constant 0 : i32
    %c0_i32_0 = arith.constant 0 : i32
    %c0_i32_1 = arith.constant 0 : i32
    return %arg0, %c0_i32, %c0_i32_0 : i32, i32, i32
  }
  func.func @transform_1(%arg0: i32, %arg1: i32) -> (i32, i32, i32) {
    %c0_i32 = arith.constant 0 : i32
    %c0_i32_0 = arith.constant 0 : i32
    %c0_i32_1 = arith.constant 0 : i32
    return %c0_i32, %c0_i32_0, %arg1 : i32, i32, i32
  }
  func.func @transform_2(%arg0: i32, %arg1: i32) -> (i32, i32, i32) {
    %c0_i32 = arith.constant 0 : i32
    %c0_i32_0 = arith.constant 0 : i32
    return %arg0, %c0_i32, %arg1 : i32, i32, i32
  }
}

module attributes {stable_mosaic.version = 11 : i64} {
  func.func @_fused_conv_kernel(%arg0: i32, %arg1: i32, %arg2: memref<1x1x32xbf16, #tpu.memory_space<vmem>>, %arg3: memref<1x32x64xbf16, #tpu.memory_space<vmem>>, %arg4: memref<1x64xf32, #tpu.memory_space<vmem>>, %arg5: memref<1x1x64xbf16, #tpu.memory_space<vmem>>) attributes {dimension_semantics = [#tpu.dimension_semantics<parallel>, #tpu.dimension_semantics<parallel>], iteration_bounds = array<i64: 2, 1>, scalar_prefetch = 0 : i64, scratch_operands = 0 : i64, tpu.core_type = #tpu.core_type<tc>, window_params = [{transform_indices = @transform_0, window_bounds = array<i64: 1, 1, 32>}, {transform_indices = @transform_1, window_bounds = array<i64: 1, 32, 64>}, {transform_indices = @transform_2, window_bounds = array<i64: 1, 64>}, {transform_indices = @transform_3, window_bounds = array<i64: 1, 1, 64>}]} {
    %c0 = arith.constant 0 : index
    %c0_0 = arith.constant 0 : index
    %c0_1 = arith.constant 0 : index
    %0 = vector.load %arg2[%c0, %c0_0, %c0_1] : memref<1x1x32xbf16, #tpu.memory_space<vmem>>, vector<1x1x32xbf16>
    %1 = vector.shape_cast %0 : vector<1x1x32xbf16> to vector<1x32xbf16>
    %c0_2 = arith.constant 0 : index
    %c0_3 = arith.constant 0 : index
    %c0_4 = arith.constant 0 : index
    %2 = vector.load %arg3[%c0_2, %c0_3, %c0_4] : memref<1x32x64xbf16, #tpu.memory_space<vmem>>, vector<1x32x64xbf16>
    %3 = vector.shape_cast %2 : vector<1x32x64xbf16> to vector<32x64xbf16>
    %cst = arith.constant dense<0.000000e+00> : vector<1x64xf32>
    %4 = tpu.matmul %1, %3, %cst {dimension_numbers = #tpu.dot_dimension_numbers<[1], [0], [0], [1], [0, 0, 1, 1], [], []>} : vector<1x32xbf16>, vector<32x64xbf16>, vector<1x64xf32> -> vector<1x64xf32>
    %c0_5 = arith.constant 0 : index
    %c0_6 = arith.constant 0 : index
    %5 = vector.load %arg4[%c0_5, %c0_6] : memref<1x64xf32, #tpu.memory_space<vmem>>, vector<1x64xf32>
    %6 = arith.addf %4, %5 : vector<1x64xf32>
    %7 = arith.truncf %6 : vector<1x64xf32> to vector<1x64xbf16>
    %c0_7 = arith.constant 0 : index
    %c0_8 = arith.constant 0 : index
    %c0_9 = arith.constant 0 : index
    %8 = vector.load %arg5[%c0_7, %c0_8, %c0_9] : memref<1x1x64xbf16, #tpu.memory_space<vmem>>, vector<1x1x64xbf16>
    %9 = vector.shape_cast %8 : vector<1x1x64xbf16> to vector<1x64xbf16>
    %10 = vector.shape_cast %7 : vector<1x64xbf16> to vector<1x1x64xbf16>
    tpu.vector_store %arg5[%c0_7, %c0_8, %c0_9], %10 {strides = array<i32>} : memref<1x1x64xbf16, #tpu.memory_space<vmem>>, vector<1x1x64xbf16>,
    return
  }
  func.func @transform_0(%arg0: i32, %arg1: i32) -> (i32, i32, i32) {
    %c0_i32 = arith.constant 0 : i32
    %c0_i32_0 = arith.constant 0 : i32
    %c0_i32_1 = arith.constant 0 : i32
    return %arg0, %c0_i32, %c0_i32_0 : i32, i32, i32
  }
  func.func @transform_1(%arg0: i32, %arg1: i32) -> (i32, i32, i32) {
    %c0_i32 = arith.constant 0 : i32
    %c0_i32_0 = arith.constant 0 : i32
    %c0_i32_1 = arith.constant 0 : i32
    return %c0_i32, %c0_i32_0, %arg1 : i32, i32, i32
  }
  func.func @transform_2(%arg0: i32, %arg1: i32) -> (i32, i32) {
    %c0_i32 = arith.constant 0 : i32
    %c0_i32_0 = arith.constant 0 : i32
    return %c0_i32, %arg1 : i32, i32
  }
  func.func @transform_3(%arg0: i32, %arg1: i32) -> (i32, i32, i32) {
    %c0_i32 = arith.constant 0 : i32
    %c0_i32_0 = arith.constant 0 : i32
    return %arg0, %c0_i32, %arg1 : i32, i32, i32
  }
}

module attributes {stable_mosaic.version = 11 : i64} {
  func.func @_fused_conv_kernel(%arg0: i32, %arg1: i32, %arg2: memref<1x3x192xbf16, #tpu.memory_space<vmem>>, %arg3: memref<3x192x64xbf16, #tpu.memory_space<vmem>>, %arg4: memref<1x1x64xbf16, #tpu.memory_space<vmem>>) attributes {dimension_semantics = [#tpu.dimension_semantics<parallel>, #tpu.dimension_semantics<parallel>], iteration_bounds = array<i64: 2, 1>, scalar_prefetch = 0 : i64, scratch_operands = 0 : i64, tpu.core_type = #tpu.core_type<tc>, window_params = [{transform_indices = @transform_0, window_bounds = array<i64: 1, 3, 192>}, {transform_indices = @transform_1, window_bounds = array<i64: 3, 192, 64>}, {transform_indices = @transform_2, window_bounds = array<i64: 1, 1, 64>}]} {
    %c0 = arith.constant 0 : index
    %c0_0 = arith.constant 0 : index
    %c0_1 = arith.constant 0 : index
    %0 = vector.load %arg2[%c0, %c0_0, %c0_1] : memref<1x3x192xbf16, #tpu.memory_space<vmem>>, vector<1x1x192xbf16>
    %1 = vector.shape_cast %0 : vector<1x1x192xbf16> to vector<1x192xbf16>
    %c0_2 = arith.constant 0 : index
    %c0_3 = arith.constant 0 : index
    %c0_4 = arith.constant 0 : index
    %2 = vector.load %arg3[%c0_2, %c0_3, %c0_4] : memref<3x192x64xbf16, #tpu.memory_space<vmem>>, vector<1x192x64xbf16>
    %3 = vector.shape_cast %2 : vector<1x192x64xbf16> to vector<192x64xbf16>
    %cst = arith.constant dense<0.000000e+00> : vector<1x64xf32>
    %4 = tpu.matmul %1, %3, %cst {dimension_numbers = #tpu.dot_dimension_numbers<[1], [0], [0], [1], [0, 0, 1, 1], [], []>} : vector<1x192xbf16>, vector<192x64xbf16>, vector<1x64xf32> -> vector<1x64xf32>
    %c0_5 = arith.constant 0 : index
    %c1 = arith.constant 1 : index
    %c0_6 = arith.constant 0 : index
    %5 = vector.load %arg2[%c0_5, %c1, %c0_6] : memref<1x3x192xbf16, #tpu.memory_space<vmem>>, vector<1x1x192xbf16>
    %6 = vector.shape_cast %5 : vector<1x1x192xbf16> to vector<1x192xbf16>
    %c1_7 = arith.constant 1 : index
    %c0_8 = arith.constant 0 : index
    %c0_9 = arith.constant 0 : index
    %7 = vector.load %arg3[%c1_7, %c0_8, %c0_9] : memref<3x192x64xbf16, #tpu.memory_space<vmem>>, vector<1x192x64xbf16>
    %8 = vector.shape_cast %7 : vector<1x192x64xbf16> to vector<192x64xbf16>
    %cst_10 = arith.constant dense<0.000000e+00> : vector<1x64xf32>
    %9 = tpu.matmul %6, %8, %cst_10 {dimension_numbers = #tpu.dot_dimension_numbers<[1], [0], [0], [1], [0, 0, 1, 1], [], []>} : vector<1x192xbf16>, vector<192x64xbf16>, vector<1x64xf32> -> vector<1x64xf32>
    %10 = arith.addf %4, %9 : vector<1x64xf32>
    %c0_11 = arith.constant 0 : index
    %c2 = arith.constant 2 : index
    %c0_12 = arith.constant 0 : index
    %11 = vector.load %arg2[%c0_11, %c2, %c0_12] : memref<1x3x192xbf16, #tpu.memory_space<vmem>>, vector<1x1x192xbf16>
    %12 = vector.shape_cast %11 : vector<1x1x192xbf16> to vector<1x192xbf16>
    %c2_13 = arith.constant 2 : index
    %c0_14 = arith.constant 0 : index
    %c0_15 = arith.constant 0 : index
    %13 = vector.load %arg3[%c2_13, %c0_14, %c0_15] : memref<3x192x64xbf16, #tpu.memory_space<vmem>>, vector<1x192x64xbf16>
    %14 = vector.shape_cast %13 : vector<1x192x64xbf16> to vector<192x64xbf16>
    %cst_16 = arith.constant dense<0.000000e+00> : vector<1x64xf32>
    %15 = tpu.matmul %12, %14, %cst_16 {dimension_numbers = #tpu.dot_dimension_numbers<[1], [0], [0], [1], [0, 0, 1, 1], [], []>} : vector<1x192xbf16>, vector<192x64xbf16>, vector<1x64xf32> -> vector<1x64xf32>
    %16 = arith.addf %10, %15 : vector<1x64xf32>
    %cst_17 = arith.constant dense<0.000000e+00> : vector<64xf32>
    %17 = vector.multi_reduction <add>, %16, %cst_17 [0] : vector<1x64xf32> to vector<64xf32>
    %18 = vector.shape_cast %17 : vector<64xf32> to vector<1x64xf32>
    %cst_18 = arith.constant 1.000000e+00 : f32
    %19 = vector.broadcast %cst_18 : f32 to vector<1x64xf32>
    %20 = arith.mulf %18, %19 : vector<1x64xf32>
    %21 = arith.subf %16, %20 : vector<1x64xf32>
    %22 = arith.mulf %21, %21 : vector<1x64xf32>
    %cst_19 = arith.constant dense<0.000000e+00> : vector<64xf32>
    %23 = vector.multi_reduction <add>, %22, %cst_19 [0] : vector<1x64xf32> to vector<64xf32>
    %24 = vector.shape_cast %23 : vector<64xf32> to vector<1x64xf32>
    %cst_20 = arith.constant 1.000000e+00 : f32
    %25 = vector.broadcast %cst_20 : f32 to vector<1x64xf32>
    %26 = arith.mulf %24, %25 : vector<1x64xf32>
    %cst_21 = arith.constant 9.99999974E-6 : f32
    %27 = vector.broadcast %cst_21 : f32 to vector<1x64xf32>
    %28 = arith.addf %26, %27 : vector<1x64xf32>
    %29 = math.rsqrt %28 : vector<1x64xf32>
    %30 = arith.mulf %21, %29 : vector<1x64xf32>
    %cst_22 = arith.constant 0.000000e+00 : f32
    %31 = vector.broadcast %cst_22 : f32 to vector<1x64xf32>
    %32 = arith.cmpf ogt, %30, %31 : vector<1x64xf32>
    %cst_23 = arith.constant 2.000000e-01 : f32
    %33 = vector.broadcast %cst_23 : f32 to vector<1x64xf32>
    %34 = arith.mulf %33, %30 : vector<1x64xf32>
    %35 = arith.select %32, %30, %34 : vector<1x64xi1>, vector<1x64xf32>
    %36 = arith.truncf %35 : vector<1x64xf32> to vector<1x64xbf16>
    %c0_24 = arith.constant 0 : index
    %c0_25 = arith.constant 0 : index
    %c0_26 = arith.constant 0 : index
    %37 = vector.load %arg4[%c0_24, %c0_25, %c0_26] : memref<1x1x64xbf16, #tpu.memory_space<vmem>>, vector<1x1x64xbf16>
    %38 = vector.shape_cast %37 : vector<1x1x64xbf16> to vector<1x64xbf16>
    %39 = vector.shape_cast %36 : vector<1x64xbf16> to vector<1x1x64xbf16>
    tpu.vector_store %arg4[%c0_24, %c0_25, %c0_26], %39 {strides = array<i32>} : memref<1x1x64xbf16, #tpu.memory_space<vmem>>, vector<1x1x64xbf16>,
    return
  }
  func.func @transform_0(%arg0: i32, %arg1: i32) -> (i32, i32, i32) {
    %c0_i32 = arith.constant 0 : i32
    %c0_i32_0 = arith.constant 0 : i32
    %c0_i32_1 = arith.constant 0 : i32
    return %arg0, %c0_i32, %c0_i32_0 : i32, i32, i32
  }
  func.func @transform_1(%arg0: i32, %arg1: i32) -> (i32, i32, i32) {
    %c0_i32 = arith.constant 0 : i32
    %c0_i32_0 = arith.constant 0 : i32
    %c0_i32_1 = arith.constant 0 : i32
    return %c0_i32, %c0_i32_0, %arg1 : i32, i32, i32
  }
  func.func @transform_2(%arg0: i32, %arg1: i32) -> (i32, i32, i32) {
    %c0_i32 = arith.constant 0 : i32
    %c0_i32_0 = arith.constant 0 : i32
    return %arg0, %c0_i32, %arg1 : i32, i32, i32
  }
}

module attributes {stable_mosaic.version = 11 : i64} {
  func.func @_fused_conv_kernel(%arg0: i32, %arg1: i32, %arg2: memref<1x8x192xbf16, #tpu.memory_space<vmem>>, %arg3: memref<3x192x32xbf16, #tpu.memory_space<vmem>>, %arg4: memref<1x4x32xbf16, #tpu.memory_space<vmem>>) attributes {dimension_semantics = [#tpu.dimension_semantics<parallel>, #tpu.dimension_semantics<parallel>], iteration_bounds = array<i64: 2, 1>, scalar_prefetch = 0 : i64, scratch_operands = 0 : i64, tpu.core_type = #tpu.core_type<tc>, window_params = [{transform_indices = @transform_0, window_bounds = array<i64: 1, 8, 192>}, {transform_indices = @transform_1, window_bounds = array<i64: 3, 192, 32>}, {transform_indices = @transform_2, window_bounds = array<i64: 1, 4, 32>}]} {
    %c0 = arith.constant 0 : index
    %c0_0 = arith.constant 0 : index
    %c0_1 = arith.constant 0 : index
    %0 = vector.load %arg2[%c0, %c0_0, %c0_1] : memref<1x8x192xbf16, #tpu.memory_space<vmem>>, vector<1x4x192xbf16>
    %1 = vector.shape_cast %0 : vector<1x4x192xbf16> to vector<4x192xbf16>
    %c0_2 = arith.constant 0 : index
    %c0_3 = arith.constant 0 : index
    %c0_4 = arith.constant 0 : index
    %2 = vector.load %arg3[%c0_2, %c0_3, %c0_4] : memref<3x192x32xbf16, #tpu.memory_space<vmem>>, vector<1x192x32xbf16>
    %3 = vector.shape_cast %2 : vector<1x192x32xbf16> to vector<192x32xbf16>
    %cst = arith.constant dense<0.000000e+00> : vector<4x32xf32>
    %4 = tpu.matmul %1, %3, %cst {dimension_numbers = #tpu.dot_dimension_numbers<[1], [0], [0], [1], [0, 0, 1, 1], [], []>} : vector<4x192xbf16>, vector<192x32xbf16>, vector<4x32xf32> -> vector<4x32xf32>
    %c0_5 = arith.constant 0 : index
    %c2 = arith.constant 2 : index
    %c0_6 = arith.constant 0 : index
    %5 = vector.load %arg2[%c0_5, %c2, %c0_6] : memref<1x8x192xbf16, #tpu.memory_space<vmem>>, vector<1x4x192xbf16>
    %6 = vector.shape_cast %5 : vector<1x4x192xbf16> to vector<4x192xbf16>
    %c1 = arith.constant 1 : index
    %c0_7 = arith.constant 0 : index
    %c0_8 = arith.constant 0 : index
    %7 = vector.load %arg3[%c1, %c0_7, %c0_8] : memref<3x192x32xbf16, #tpu.memory_space<vmem>>, vector<1x192x32xbf16>
    %8 = vector.shape_cast %7 : vector<1x192x32xbf16> to vector<192x32xbf16>
    %cst_9 = arith.constant dense<0.000000e+00> : vector<4x32xf32>
    %9 = tpu.matmul %6, %8, %cst_9 {dimension_numbers = #tpu.dot_dimension_numbers<[1], [0], [0], [1], [0, 0, 1, 1], [], []>} : vector<4x192xbf16>, vector<192x32xbf16>, vector<4x32xf32> -> vector<4x32xf32>
    %10 = arith.addf %4, %9 : vector<4x32xf32>
    %c0_10 = arith.constant 0 : index
    %c4 = arith.constant 4 : index
    %c0_11 = arith.constant 0 : index
    %11 = vector.load %arg2[%c0_10, %c4, %c0_11] : memref<1x8x192xbf16, #tpu.memory_space<vmem>>, vector<1x4x192xbf16>
    %12 = vector.shape_cast %11 : vector<1x4x192xbf16> to vector<4x192xbf16>
    %c2_12 = arith.constant 2 : index
    %c0_13 = arith.constant 0 : index
    %c0_14 = arith.constant 0 : index
    %13 = vector.load %arg3[%c2_12, %c0_13, %c0_14] : memref<3x192x32xbf16, #tpu.memory_space<vmem>>, vector<1x192x32xbf16>
    %14 = vector.shape_cast %13 : vector<1x192x32xbf16> to vector<192x32xbf16>
    %cst_15 = arith.constant dense<0.000000e+00> : vector<4x32xf32>
    %15 = tpu.matmul %12, %14, %cst_15 {dimension_numbers = #tpu.dot_dimension_numbers<[1], [0], [0], [1], [0, 0, 1, 1], [], []>} : vector<4x192xbf16>, vector<192x32xbf16>, vector<4x32xf32> -> vector<4x32xf32>
    %16 = arith.addf %10, %15 : vector<4x32xf32>
    %cst_16 = arith.constant dense<0.000000e+00> : vector<32xf32>
    %17 = vector.multi_reduction <add>, %16, %cst_16 [0] : vector<4x32xf32> to vector<32xf32>
    %18 = vector.shape_cast %17 : vector<32xf32> to vector<1x32xf32>
    %cst_17 = arith.constant 2.500000e-01 : f32
    %19 = vector.broadcast %cst_17 : f32 to vector<1x32xf32>
    %20 = arith.mulf %18, %19 : vector<1x32xf32>
    %21 = vector.broadcast %20 : vector<1x32xf32> to vector<4x32xf32>
    %22 = arith.subf %16, %21 : vector<4x32xf32>
    %23 = arith.mulf %22, %22 : vector<4x32xf32>
    %cst_18 = arith.constant dense<0.000000e+00> : vector<32xf32>
    %24 = vector.multi_reduction <add>, %23, %cst_18 [0] : vector<4x32xf32> to vector<32xf32>
    %25 = vector.shape_cast %24 : vector<32xf32> to vector<1x32xf32>
    %cst_19 = arith.constant 2.500000e-01 : f32
    %26 = vector.broadcast %cst_19 : f32 to vector<1x32xf32>
    %27 = arith.mulf %25, %26 : vector<1x32xf32>
    %cst_20 = arith.constant 9.99999974E-6 : f32
    %28 = vector.broadcast %cst_20 : f32 to vector<1x32xf32>
    %29 = arith.addf %27, %28 : vector<1x32xf32>
    %30 = math.rsqrt %29 : vector<1x32xf32>
    %31 = vector.broadcast %30 : vector<1x32xf32> to vector<4x32xf32>
    %32 = arith.mulf %22, %31 : vector<4x32xf32>
    %cst_21 = arith.constant 0.000000e+00 : f32
    %33 = vector.broadcast %cst_21 : f32 to vector<4x32xf32>
    %34 = arith.maximumf %32, %33 : vector<4x32xf32>
    %35 = arith.truncf %34 : vector<4x32xf32> to vector<4x32xbf16>
    %c0_22 = arith.constant 0 : index
    %c0_23 = arith.constant 0 : index
    %c0_24 = arith.constant 0 : index
    %36 = vector.load %arg4[%c0_22, %c0_23, %c0_24] : memref<1x4x32xbf16, #tpu.memory_space<vmem>>, vector<1x4x32xbf16>
    %37 = vector.shape_cast %36 : vector<1x4x32xbf16> to vector<4x32xbf16>
    %38 = vector.shape_cast %35 : vector<4x32xbf16> to vector<1x4x32xbf16>
    tpu.vector_store %arg4[%c0_22, %c0_23, %c0_24], %38 {strides = array<i32>} : memref<1x4x32xbf16, #tpu.memory_space<vmem>>, vector<1x4x32xbf16>,
    return
  }
  func.func @transform_0(%arg0: i32, %arg1: i32) -> (i32, i32, i32) {
    %c0_i32 = arith.constant 0 : i32
    %c0_i32_0 = arith.constant 0 : i32
    %c0_i32_1 = arith.constant 0 : i32
    return %arg0, %c0_i32, %c0_i32_0 : i32, i32, i32
  }
  func.func @transform_1(%arg0: i32, %arg1: i32) -> (i32, i32, i32) {
    %c0_i32 = arith.constant 0 : i32
    %c0_i32_0 = arith.constant 0 : i32
    %c0_i32_1 = arith.constant 0 : i32
    return %c0_i32, %c0_i32_0, %arg1 : i32, i32, i32
  }
  func.func @transform_2(%arg0: i32, %arg1: i32) -> (i32, i32, i32) {
    %c0_i32 = arith.constant 0 : i32
    %c0_i32_0 = arith.constant 0 : i32
    return %arg0, %c0_i32, %arg1 : i32, i32, i32
  }
}

module attributes {stable_mosaic.version = 11 : i64} {
  func.func @_fused_conv_kernel(%arg0: i32, %arg1: i32, %arg2: memref<1x8x96xbf16, #tpu.memory_space<vmem>>, %arg3: memref<3x96x32xbf16, #tpu.memory_space<vmem>>, %arg4: memref<1x8x96xbf16, #tpu.memory_space<vmem>>, %arg5: memref<3x96x32xbf16, #tpu.memory_space<vmem>>, %arg6: memref<1x4x32xbf16, #tpu.memory_space<vmem>>) attributes {dimension_semantics = [#tpu.dimension_semantics<parallel>, #tpu.dimension_semantics<parallel>], iteration_bounds = array<i64: 2, 1>, scalar_prefetch = 0 : i64, scratch_operands = 0 : i64, tpu.core_type = #tpu.core_type<tc>, window_params = [{transform_indices = @transform_0, window_bounds = array<i64: 1, 8, 96>}, {transform_indices = @transform_1, window_bounds = array<i64: 3, 96, 32>}, {transform_indices = @transform_2, window_bounds = array<i64: 1, 8, 96>}, {transform_indices = @transform_3, window_bounds = array<i64: 3, 96, 32>}, {transform_indices = @transform_4, window_bounds = array<i64: 1, 4, 32>}]} {
    %c0 = arith.constant 0 : index
    %c0_0 = arith.constant 0 : index
    %c0_1 = arith.constant 0 : index
    %0 = vector.load %arg2[%c0, %c0_0, %c0_1] : memref<1x8x96xbf16, #tpu.memory_space<vmem>>, vector<1x4x96xbf16>
    %1 = vector.shape_cast %0 : vector<1x4x96xbf16> to vector<4x96xbf16>
    %c0_2 = arith.constant 0 : index
    %c0_3 = arith.constant 0 : index
    %c0_4 = arith.constant 0 : index
    %2 = vector.load %arg3[%c0_2, %c0_3, %c0_4] : memref<3x96x32xbf16, #tpu.memory_space<vmem>>, vector<1x96x32xbf16>
    %3 = vector.shape_cast %2 : vector<1x96x32xbf16> to vector<96x32xbf16>
    %cst = arith.constant dense<0.000000e+00> : vector<4x32xf32>
    %4 = tpu.matmul %1, %3, %cst {dimension_numbers = #tpu.dot_dimension_numbers<[1], [0], [0], [1], [0, 0, 1, 1], [], []>} : vector<4x96xbf16>, vector<96x32xbf16>, vector<4x32xf32> -> vector<4x32xf32>
    %c0_5 = arith.constant 0 : index
    %c2 = arith.constant 2 : index
    %c0_6 = arith.constant 0 : index
    %5 = vector.load %arg2[%c0_5, %c2, %c0_6] : memref<1x8x96xbf16, #tpu.memory_space<vmem>>, vector<1x4x96xbf16>
    %6 = vector.shape_cast %5 : vector<1x4x96xbf16> to vector<4x96xbf16>
    %c1 = arith.constant 1 : index
    %c0_7 = arith.constant 0 : index
    %c0_8 = arith.constant 0 : index
    %7 = vector.load %arg3[%c1, %c0_7, %c0_8] : memref<3x96x32xbf16, #tpu.memory_space<vmem>>, vector<1x96x32xbf16>
    %8 = vector.shape_cast %7 : vector<1x96x32xbf16> to vector<96x32xbf16>
    %cst_9 = arith.constant dense<0.000000e+00> : vector<4x32xf32>
    %9 = tpu.matmul %6, %8, %cst_9 {dimension_numbers = #tpu.dot_dimension_numbers<[1], [0], [0], [1], [0, 0, 1, 1], [], []>} : vector<4x96xbf16>, vector<96x32xbf16>, vector<4x32xf32> -> vector<4x32xf32>
    %10 = arith.addf %4, %9 : vector<4x32xf32>
    %c0_10 = arith.constant 0 : index
    %c4 = arith.constant 4 : index
    %c0_11 = arith.constant 0 : index
    %11 = vector.load %arg2[%c0_10, %c4, %c0_11] : memref<1x8x96xbf16, #tpu.memory_space<vmem>>, vector<1x4x96xbf16>
    %12 = vector.shape_cast %11 : vector<1x4x96xbf16> to vector<4x96xbf16>
    %c2_12 = arith.constant 2 : index
    %c0_13 = arith.constant 0 : index
    %c0_14 = arith.constant 0 : index
    %13 = vector.load %arg3[%c2_12, %c0_13, %c0_14] : memref<3x96x32xbf16, #tpu.memory_space<vmem>>, vector<1x96x32xbf16>
    %14 = vector.shape_cast %13 : vector<1x96x32xbf16> to vector<96x32xbf16>
    %cst_15 = arith.constant dense<0.000000e+00> : vector<4x32xf32>
    %15 = tpu.matmul %12, %14, %cst_15 {dimension_numbers = #tpu.dot_dimension_numbers<[1], [0], [0], [1], [0, 0, 1, 1], [], []>} : vector<4x96xbf16>, vector<96x32xbf16>, vector<4x32xf32> -> vector<4x32xf32>
    %16 = arith.addf %10, %15 : vector<4x32xf32>
    %c0_16 = arith.constant 0 : index
    %c0_17 = arith.constant 0 : index
    %c0_18 = arith.constant 0 : index
    %17 = vector.load %arg4[%c0_16, %c0_17, %c0_18] : memref<1x8x96xbf16, #tpu.memory_space<vmem>>, vector<1x4x96xbf16>
    %18 = vector.shape_cast %17 : vector<1x4x96xbf16> to vector<4x96xbf16>
    %c0_19 = arith.constant 0 : index
    %c0_20 = arith.constant 0 : index
    %c0_21 = arith.constant 0 : index
    %19 = vector.load %arg5[%c0_19, %c0_20, %c0_21] : memref<3x96x32xbf16, #tpu.memory_space<vmem>>, vector<1x96x32xbf16>
    %20 = vector.shape_cast %19 : vector<1x96x32xbf16> to vector<96x32xbf16>
    %cst_22 = arith.constant dense<0.000000e+00> : vector<4x32xf32>
    %21 = tpu.matmul %18, %20, %cst_22 {dimension_numbers = #tpu.dot_dimension_numbers<[1], [0], [0], [1], [0, 0, 1, 1], [], []>} : vector<4x96xbf16>, vector<96x32xbf16>, vector<4x32xf32> -> vector<4x32xf32>
    %22 = arith.addf %16, %21 : vector<4x32xf32>
    %c0_23 = arith.constant 0 : index
    %c2_24 = arith.constant 2 : index
    %c0_25 = arith.constant 0 : index
    %23 = vector.load %arg4[%c0_23, %c2_24, %c0_25] : memref<1x8x96xbf16, #tpu.memory_space<vmem>>, vector<1x4x96xbf16>
    %24 = vector.shape_cast %23 : vector<1x4x96xbf16> to vector<4x96xbf16>
    %c1_26 = arith.constant 1 : index
    %c0_27 = arith.constant 0 : index
    %c0_28 = arith.constant 0 : index
    %25 = vector.load %arg5[%c1_26, %c0_27, %c0_28] : memref<3x96x32xbf16, #tpu.memory_space<vmem>>, vector<1x96x32xbf16>
    %26 = vector.shape_cast %25 : vector<1x96x32xbf16> to vector<96x32xbf16>
    %cst_29 = arith.constant dense<0.000000e+00> : vector<4x32xf32>
    %27 = tpu.matmul %24, %26, %cst_29 {dimension_numbers = #tpu.dot_dimension_numbers<[1], [0], [0], [1], [0, 0, 1, 1], [], []>} : vector<4x96xbf16>, vector<96x32xbf16>, vector<4x32xf32> -> vector<4x32xf32>
    %28 = arith.addf %22, %27 : vector<4x32xf32>
    %c0_30 = arith.constant 0 : index
    %c4_31 = arith.constant 4 : index
    %c0_32 = arith.constant 0 : index
    %29 = vector.load %arg4[%c0_30, %c4_31, %c0_32] : memref<1x8x96xbf16, #tpu.memory_space<vmem>>, vector<1x4x96xbf16>
    %30 = vector.shape_cast %29 : vector<1x4x96xbf16> to vector<4x96xbf16>
    %c2_33 = arith.constant 2 : index
    %c0_34 = arith.constant 0 : index
    %c0_35 = arith.constant 0 : index
    %31 = vector.load %arg5[%c2_33, %c0_34, %c0_35] : memref<3x96x32xbf16, #tpu.memory_space<vmem>>, vector<1x96x32xbf16>
    %32 = vector.shape_cast %31 : vector<1x96x32xbf16> to vector<96x32xbf16>
    %cst_36 = arith.constant dense<0.000000e+00> : vector<4x32xf32>
    %33 = tpu.matmul %30, %32, %cst_36 {dimension_numbers = #tpu.dot_dimension_numbers<[1], [0], [0], [1], [0, 0, 1, 1], [], []>} : vector<4x96xbf16>, vector<96x32xbf16>, vector<4x32xf32> -> vector<4x32xf32>
    %34 = arith.addf %28, %33 : vector<4x32xf32>
    %cst_37 = arith.constant dense<0.000000e+00> : vector<32xf32>
    %35 = vector.multi_reduction <add>, %34, %cst_37 [0] : vector<4x32xf32> to vector<32xf32>
    %36 = vector.shape_cast %35 : vector<32xf32> to vector<1x32xf32>
    %cst_38 = arith.constant 2.500000e-01 : f32
    %37 = vector.broadcast %cst_38 : f32 to vector<1x32xf32>
    %38 = arith.mulf %36, %37 : vector<1x32xf32>
    %39 = vector.broadcast %38 : vector<1x32xf32> to vector<4x32xf32>
    %40 = arith.subf %34, %39 : vector<4x32xf32>
    %41 = arith.mulf %40, %40 : vector<4x32xf32>
    %cst_39 = arith.constant dense<0.000000e+00> : vector<32xf32>
    %42 = vector.multi_reduction <add>, %41, %cst_39 [0] : vector<4x32xf32> to vector<32xf32>
    %43 = vector.shape_cast %42 : vector<32xf32> to vector<1x32xf32>
    %cst_40 = arith.constant 2.500000e-01 : f32
    %44 = vector.broadcast %cst_40 : f32 to vector<1x32xf32>
    %45 = arith.mulf %43, %44 : vector<1x32xf32>
    %cst_41 = arith.constant 9.99999974E-6 : f32
    %46 = vector.broadcast %cst_41 : f32 to vector<1x32xf32>
    %47 = arith.addf %45, %46 : vector<1x32xf32>
    %48 = math.rsqrt %47 : vector<1x32xf32>
    %49 = vector.broadcast %48 : vector<1x32xf32> to vector<4x32xf32>
    %50 = arith.mulf %40, %49 : vector<4x32xf32>
    %cst_42 = arith.constant 0.000000e+00 : f32
    %51 = vector.broadcast %cst_42 : f32 to vector<4x32xf32>
    %52 = arith.cmpf ogt, %50, %51 : vector<4x32xf32>
    %cst_43 = arith.constant 2.000000e-01 : f32
    %53 = vector.broadcast %cst_43 : f32 to vector<4x32xf32>
    %54 = arith.mulf %53, %50 : vector<4x32xf32>
    %55 = arith.select %52, %50, %54 : vector<4x32xi1>, vector<4x32xf32>
    %56 = arith.truncf %55 : vector<4x32xf32> to vector<4x32xbf16>
    %c0_44 = arith.constant 0 : index
    %c0_45 = arith.constant 0 : index
    %c0_46 = arith.constant 0 : index
    %57 = vector.load %arg6[%c0_44, %c0_45, %c0_46] : memref<1x4x32xbf16, #tpu.memory_space<vmem>>, vector<1x4x32xbf16>
    %58 = vector.shape_cast %57 : vector<1x4x32xbf16> to vector<4x32xbf16>
    %59 = vector.shape_cast %56 : vector<4x32xbf16> to vector<1x4x32xbf16>
    tpu.vector_store %arg6[%c0_44, %c0_45, %c0_46], %59 {strides = array<i32>} : memref<1x4x32xbf16, #tpu.memory_space<vmem>>, vector<1x4x32xbf16>,
    return
  }
  func.func @transform_0(%arg0: i32, %arg1: i32) -> (i32, i32, i32) {
    %c0_i32 = arith.constant 0 : i32
    %c0_i32_0 = arith.constant 0 : i32
    %c0_i32_1 = arith.constant 0 : i32
    return %arg0, %c0_i32, %c0_i32_0 : i32, i32, i32
  }
  func.func @transform_1(%arg0: i32, %arg1: i32) -> (i32, i32, i32) {
    %c0_i32 = arith.constant 0 : i32
    %c0_i32_0 = arith.constant 0 : i32
    %c0_i32_1 = arith.constant 0 : i32
    return %c0_i32, %c0_i32_0, %arg1 : i32, i32, i32
  }
  func.func @transform_2(%arg0: i32, %arg1: i32) -> (i32, i32, i32) {
    %c0_i32 = arith.constant 0 : i32
    %c0_i32_0 = arith.constant 0 : i32
    %c0_i32_1 = arith.constant 0 : i32
    return %arg0, %c0_i32, %c0_i32_0 : i32, i32, i32
  }
  func.func @transform_3(%arg0: i32, %arg1: i32) -> (i32, i32, i32) {
    %c0_i32 = arith.constant 0 : i32
    %c0_i32_0 = arith.constant 0 : i32
    %c0_i32_1 = arith.constant 0 : i32
    return %c0_i32, %c0_i32_0, %arg1 : i32, i32, i32
  }
  func.func @transform_4(%arg0: i32, %arg1: i32) -> (i32, i32, i32) {
    %c0_i32 = arith.constant 0 : i32
    %c0_i32_0 = arith.constant 0 : i32
    return %arg0, %c0_i32, %arg1 : i32, i32, i32
  }
}

module attributes {stable_mosaic.version = 11 : i64} {
  func.func @_fused_conv_kernel(%arg0: i32, %arg1: i32, %arg2: memref<1x24x48xbf16, #tpu.memory_space<vmem>>, %arg3: memref<3x48x16xbf16, #tpu.memory_space<vmem>>, %arg4: memref<1x24x48xbf16, #tpu.memory_space<vmem>>, %arg5: memref<3x48x16xbf16, #tpu.memory_space<vmem>>, %arg6: memref<1x16x16xbf16, #tpu.memory_space<vmem>>) attributes {dimension_semantics = [#tpu.dimension_semantics<parallel>, #tpu.dimension_semantics<parallel>], iteration_bounds = array<i64: 2, 1>, scalar_prefetch = 0 : i64, scratch_operands = 0 : i64, tpu.core_type = #tpu.core_type<tc>, window_params = [{transform_indices = @transform_0, window_bounds = array<i64: 1, 24, 48>}, {transform_indices = @transform_1, window_bounds = array<i64: 3, 48, 16>}, {transform_indices = @transform_2, window_bounds = array<i64: 1, 24, 48>}, {transform_indices = @transform_3, window_bounds = array<i64: 3, 48, 16>}, {transform_indices = @transform_4, window_bounds = array<i64: 1, 16, 16>}]} {
    %c0 = arith.constant 0 : index
    %c0_0 = arith.constant 0 : index
    %c0_1 = arith.constant 0 : index
    %0 = vector.load %arg2[%c0, %c0_0, %c0_1] : memref<1x24x48xbf16, #tpu.memory_space<vmem>>, vector<1x16x48xbf16>
    %1 = vector.shape_cast %0 : vector<1x16x48xbf16> to vector<16x48xbf16>
    %c0_2 = arith.constant 0 : index
    %c0_3 = arith.constant 0 : index
    %c0_4 = arith.constant 0 : index
    %2 = vector.load %arg3[%c0_2, %c0_3, %c0_4] : memref<3x48x16xbf16, #tpu.memory_space<vmem>>, vector<1x48x16xbf16>
    %3 = vector.shape_cast %2 : vector<1x48x16xbf16> to vector<48x16xbf16>
    %cst = arith.constant dense<0.000000e+00> : vector<16x16xf32>
    %4 = tpu.matmul %1, %3, %cst {dimension_numbers = #tpu.dot_dimension_numbers<[1], [0], [0], [1], [0, 0, 1, 1], [], []>} : vector<16x48xbf16>, vector<48x16xbf16>, vector<16x16xf32> -> vector<16x16xf32>
    %c0_5 = arith.constant 0 : index
    %c4 = arith.constant 4 : index
    %c0_6 = arith.constant 0 : index
    %5 = vector.load %arg2[%c0_5, %c4, %c0_6] : memref<1x24x48xbf16, #tpu.memory_space<vmem>>, vector<1x16x48xbf16>
    %6 = vector.shape_cast %5 : vector<1x16x48xbf16> to vector<16x48xbf16>
    %c1 = arith.constant 1 : index
    %c0_7 = arith.constant 0 : index
    %c0_8 = arith.constant 0 : index
    %7 = vector.load %arg3[%c1, %c0_7, %c0_8] : memref<3x48x16xbf16, #tpu.memory_space<vmem>>, vector<1x48x16xbf16>
    %8 = vector.shape_cast %7 : vector<1x48x16xbf16> to vector<48x16xbf16>
    %cst_9 = arith.constant dense<0.000000e+00> : vector<16x16xf32>
    %9 = tpu.matmul %6, %8, %cst_9 {dimension_numbers = #tpu.dot_dimension_numbers<[1], [0], [0], [1], [0, 0, 1, 1], [], []>} : vector<16x48xbf16>, vector<48x16xbf16>, vector<16x16xf32> -> vector<16x16xf32>
    %10 = arith.addf %4, %9 : vector<16x16xf32>
    %c0_10 = arith.constant 0 : index
    %c8 = arith.constant 8 : index
    %c0_11 = arith.constant 0 : index
    %11 = vector.load %arg2[%c0_10, %c8, %c0_11] : memref<1x24x48xbf16, #tpu.memory_space<vmem>>, vector<1x16x48xbf16>
    %12 = vector.shape_cast %11 : vector<1x16x48xbf16> to vector<16x48xbf16>
    %c2 = arith.constant 2 : index
    %c0_12 = arith.constant 0 : index
    %c0_13 = arith.constant 0 : index
    %13 = vector.load %arg3[%c2, %c0_12, %c0_13] : memref<3x48x16xbf16, #tpu.memory_space<vmem>>, vector<1x48x16xbf16>
    %14 = vector.shape_cast %13 : vector<1x48x16xbf16> to vector<48x16xbf16>
    %cst_14 = arith.constant dense<0.000000e+00> : vector<16x16xf32>
    %15 = tpu.matmul %12, %14, %cst_14 {dimension_numbers = #tpu.dot_dimension_numbers<[1], [0], [0], [1], [0, 0, 1, 1], [], []>} : vector<16x48xbf16>, vector<48x16xbf16>, vector<16x16xf32> -> vector<16x16xf32>
    %16 = arith.addf %10, %15 : vector<16x16xf32>
    %c0_15 = arith.constant 0 : index
    %c0_16 = arith.constant 0 : index
    %c0_17 = arith.constant 0 : index
    %17 = vector.load %arg4[%c0_15, %c0_16, %c0_17] : memref<1x24x48xbf16, #tpu.memory_space<vmem>>, vector<1x16x48xbf16>
    %18 = vector.shape_cast %17 : vector<1x16x48xbf16> to vector<16x48xbf16>
    %c0_18 = arith.constant 0 : index
    %c0_19 = arith.constant 0 : index
    %c0_20 = arith.constant 0 : index
    %19 = vector.load %arg5[%c0_18, %c0_19, %c0_20] : memref<3x48x16xbf16, #tpu.memory_space<vmem>>, vector<1x48x16xbf16>
    %20 = vector.shape_cast %19 : vector<1x48x16xbf16> to vector<48x16xbf16>
    %cst_21 = arith.constant dense<0.000000e+00> : vector<16x16xf32>
    %21 = tpu.matmul %18, %20, %cst_21 {dimension_numbers = #tpu.dot_dimension_numbers<[1], [0], [0], [1], [0, 0, 1, 1], [], []>} : vector<16x48xbf16>, vector<48x16xbf16>, vector<16x16xf32> -> vector<16x16xf32>
    %22 = arith.addf %16, %21 : vector<16x16xf32>
    %c0_22 = arith.constant 0 : index
    %c4_23 = arith.constant 4 : index
    %c0_24 = arith.constant 0 : index
    %23 = vector.load %arg4[%c0_22, %c4_23, %c0_24] : memref<1x24x48xbf16, #tpu.memory_space<vmem>>, vector<1x16x48xbf16>
    %24 = vector.shape_cast %23 : vector<1x16x48xbf16> to vector<16x48xbf16>
    %c1_25 = arith.constant 1 : index
    %c0_26 = arith.constant 0 : index
    %c0_27 = arith.constant 0 : index
    %25 = vector.load %arg5[%c1_25, %c0_26, %c0_27] : memref<3x48x16xbf16, #tpu.memory_space<vmem>>, vector<1x48x16xbf16>
    %26 = vector.shape_cast %25 : vector<1x48x16xbf16> to vector<48x16xbf16>
    %cst_28 = arith.constant dense<0.000000e+00> : vector<16x16xf32>
    %27 = tpu.matmul %24, %26, %cst_28 {dimension_numbers = #tpu.dot_dimension_numbers<[1], [0], [0], [1], [0, 0, 1, 1], [], []>} : vector<16x48xbf16>, vector<48x16xbf16>, vector<16x16xf32> -> vector<16x16xf32>
    %28 = arith.addf %22, %27 : vector<16x16xf32>
    %c0_29 = arith.constant 0 : index
    %c8_30 = arith.constant 8 : index
    %c0_31 = arith.constant 0 : index
    %29 = vector.load %arg4[%c0_29, %c8_30, %c0_31] : memref<1x24x48xbf16, #tpu.memory_space<vmem>>, vector<1x16x48xbf16>
    %30 = vector.shape_cast %29 : vector<1x16x48xbf16> to vector<16x48xbf16>
    %c2_32 = arith.constant 2 : index
    %c0_33 = arith.constant 0 : index
    %c0_34 = arith.constant 0 : index
    %31 = vector.load %arg5[%c2_32, %c0_33, %c0_34] : memref<3x48x16xbf16, #tpu.memory_space<vmem>>, vector<1x48x16xbf16>
    %32 = vector.shape_cast %31 : vector<1x48x16xbf16> to vector<48x16xbf16>
    %cst_35 = arith.constant dense<0.000000e+00> : vector<16x16xf32>
    %33 = tpu.matmul %30, %32, %cst_35 {dimension_numbers = #tpu.dot_dimension_numbers<[1], [0], [0], [1], [0, 0, 1, 1], [], []>} : vector<16x48xbf16>, vector<48x16xbf16>, vector<16x16xf32> -> vector<16x16xf32>
    %34 = arith.addf %28, %33 : vector<16x16xf32>
    %cst_36 = arith.constant dense<0.000000e+00> : vector<16xf32>
    %35 = vector.multi_reduction <add>, %34, %cst_36 [0] : vector<16x16xf32> to vector<16xf32>
    %36 = vector.shape_cast %35 : vector<16xf32> to vector<1x16xf32>
    %cst_37 = arith.constant 6.250000e-02 : f32
    %37 = vector.broadcast %cst_37 : f32 to vector<1x16xf32>
    %38 = arith.mulf %36, %37 : vector<1x16xf32>
    %39 = vector.broadcast %38 : vector<1x16xf32> to vector<16x16xf32>
    %40 = arith.subf %34, %39 : vector<16x16xf32>
    %41 = arith.mulf %40, %40 : vector<16x16xf32>
    %cst_38 = arith.constant dense<0.000000e+00> : vector<16xf32>
    %42 = vector.multi_reduction <add>, %41, %cst_38 [0] : vector<16x16xf32> to vector<16xf32>
    %43 = vector.shape_cast %42 : vector<16xf32> to vector<1x16xf32>
    %cst_39 = arith.constant 6.250000e-02 : f32
    %44 = vector.broadcast %cst_39 : f32 to vector<1x16xf32>
    %45 = arith.mulf %43, %44 : vector<1x16xf32>
    %cst_40 = arith.constant 9.99999974E-6 : f32
    %46 = vector.broadcast %cst_40 : f32 to vector<1x16xf32>
    %47 = arith.addf %45, %46 : vector<1x16xf32>
    %48 = math.rsqrt %47 : vector<1x16xf32>
    %49 = vector.broadcast %48 : vector<1x16xf32> to vector<16x16xf32>
    %50 = arith.mulf %40, %49 : vector<16x16xf32>
    %cst_41 = arith.constant 0.000000e+00 : f32
    %51 = vector.broadcast %cst_41 : f32 to vector<16x16xf32>
    %52 = arith.cmpf ogt, %50, %51 : vector<16x16xf32>
    %cst_42 = arith.constant 2.000000e-01 : f32
    %53 = vector.broadcast %cst_42 : f32 to vector<16x16xf32>
    %54 = arith.mulf %53, %50 : vector<16x16xf32>
    %55 = arith.select %52, %50, %54 : vector<16x16xi1>, vector<16x16xf32>
    %56 = arith.truncf %55 : vector<16x16xf32> to vector<16x16xbf16>
    %c0_43 = arith.constant 0 : index
    %c0_44 = arith.constant 0 : index
    %c0_45 = arith.constant 0 : index
    %57 = vector.load %arg6[%c0_43, %c0_44, %c0_45] : memref<1x16x16xbf16, #tpu.memory_space<vmem>>, vector<1x16x16xbf16>
    %58 = vector.shape_cast %57 : vector<1x16x16xbf16> to vector<16x16xbf16>
    %59 = vector.shape_cast %56 : vector<16x16xbf16> to vector<1x16x16xbf16>
    tpu.vector_store %arg6[%c0_43, %c0_44, %c0_45], %59 {strides = array<i32>} : memref<1x16x16xbf16, #tpu.memory_space<vmem>>, vector<1x16x16xbf16>,
    return
  }
  func.func @transform_0(%arg0: i32, %arg1: i32) -> (i32, i32, i32) {
    %c0_i32 = arith.constant 0 : i32
    %c0_i32_0 = arith.constant 0 : i32
    %c0_i32_1 = arith.constant 0 : i32
    return %arg0, %c0_i32, %c0_i32_0 : i32, i32, i32
  }
  func.func @transform_1(%arg0: i32, %arg1: i32) -> (i32, i32, i32) {
    %c0_i32 = arith.constant 0 : i32
    %c0_i32_0 = arith.constant 0 : i32
    %c0_i32_1 = arith.constant 0 : i32
    return %c0_i32, %c0_i32_0, %arg1 : i32, i32, i32
  }
  func.func @transform_2(%arg0: i32, %arg1: i32) -> (i32, i32, i32) {
    %c0_i32 = arith.constant 0 : i32
    %c0_i32_0 = arith.constant 0 : i32
    %c0_i32_1 = arith.constant 0 : i32
    return %arg0, %c0_i32, %c0_i32_0 : i32, i32, i32
  }
  func.func @transform_3(%arg0: i32, %arg1: i32) -> (i32, i32, i32) {
    %c0_i32 = arith.constant 0 : i32
    %c0_i32_0 = arith.constant 0 : i32
    %c0_i32_1 = arith.constant 0 : i32
    return %c0_i32, %c0_i32_0, %arg1 : i32, i32, i32
  }
  func.func @transform_4(%arg0: i32, %arg1: i32) -> (i32, i32, i32) {
    %c0_i32 = arith.constant 0 : i32
    %c0_i32_0 = arith.constant 0 : i32
    return %arg0, %c0_i32, %arg1 : i32, i32, i32
  }
}

module attributes {stable_mosaic.version = 11 : i64} {
  func.func @_fused_conv_kernel(%arg0: i32, %arg1: i32, %arg2: memref<1x24x96xbf16, #tpu.memory_space<vmem>>, %arg3: memref<3x96x16xbf16, #tpu.memory_space<vmem>>, %arg4: memref<1x16x16xbf16, #tpu.memory_space<vmem>>) attributes {dimension_semantics = [#tpu.dimension_semantics<parallel>, #tpu.dimension_semantics<parallel>], iteration_bounds = array<i64: 2, 1>, scalar_prefetch = 0 : i64, scratch_operands = 0 : i64, tpu.core_type = #tpu.core_type<tc>, window_params = [{transform_indices = @transform_0, window_bounds = array<i64: 1, 24, 96>}, {transform_indices = @transform_1, window_bounds = array<i64: 3, 96, 16>}, {transform_indices = @transform_2, window_bounds = array<i64: 1, 16, 16>}]} {
    %c0 = arith.constant 0 : index
    %c0_0 = arith.constant 0 : index
    %c0_1 = arith.constant 0 : index
    %0 = vector.load %arg2[%c0, %c0_0, %c0_1] : memref<1x24x96xbf16, #tpu.memory_space<vmem>>, vector<1x16x96xbf16>
    %1 = vector.shape_cast %0 : vector<1x16x96xbf16> to vector<16x96xbf16>
    %c0_2 = arith.constant 0 : index
    %c0_3 = arith.constant 0 : index
    %c0_4 = arith.constant 0 : index
    %2 = vector.load %arg3[%c0_2, %c0_3, %c0_4] : memref<3x96x16xbf16, #tpu.memory_space<vmem>>, vector<1x96x16xbf16>
    %3 = vector.shape_cast %2 : vector<1x96x16xbf16> to vector<96x16xbf16>
    %cst = arith.constant dense<0.000000e+00> : vector<16x16xf32>
    %4 = tpu.matmul %1, %3, %cst {dimension_numbers = #tpu.dot_dimension_numbers<[1], [0], [0], [1], [0, 0, 1, 1], [], []>} : vector<16x96xbf16>, vector<96x16xbf16>, vector<16x16xf32> -> vector<16x16xf32>
    %c0_5 = arith.constant 0 : index
    %c4 = arith.constant 4 : index
    %c0_6 = arith.constant 0 : index
    %5 = vector.load %arg2[%c0_5, %c4, %c0_6] : memref<1x24x96xbf16, #tpu.memory_space<vmem>>, vector<1x16x96xbf16>
    %6 = vector.shape_cast %5 : vector<1x16x96xbf16> to vector<16x96xbf16>
    %c1 = arith.constant 1 : index
    %c0_7 = arith.constant 0 : index
    %c0_8 = arith.constant 0 : index
    %7 = vector.load %arg3[%c1, %c0_7, %c0_8] : memref<3x96x16xbf16, #tpu.memory_space<vmem>>, vector<1x96x16xbf16>
    %8 = vector.shape_cast %7 : vector<1x96x16xbf16> to vector<96x16xbf16>
    %cst_9 = arith.constant dense<0.000000e+00> : vector<16x16xf32>
    %9 = tpu.matmul %6, %8, %cst_9 {dimension_numbers = #tpu.dot_dimension_numbers<[1], [0], [0], [1], [0, 0, 1, 1], [], []>} : vector<16x96xbf16>, vector<96x16xbf16>, vector<16x16xf32> -> vector<16x16xf32>
    %10 = arith.addf %4, %9 : vector<16x16xf32>
    %c0_10 = arith.constant 0 : index
    %c8 = arith.constant 8 : index
    %c0_11 = arith.constant 0 : index
    %11 = vector.load %arg2[%c0_10, %c8, %c0_11] : memref<1x24x96xbf16, #tpu.memory_space<vmem>>, vector<1x16x96xbf16>
    %12 = vector.shape_cast %11 : vector<1x16x96xbf16> to vector<16x96xbf16>
    %c2 = arith.constant 2 : index
    %c0_12 = arith.constant 0 : index
    %c0_13 = arith.constant 0 : index
    %13 = vector.load %arg3[%c2, %c0_12, %c0_13] : memref<3x96x16xbf16, #tpu.memory_space<vmem>>, vector<1x96x16xbf16>
    %14 = vector.shape_cast %13 : vector<1x96x16xbf16> to vector<96x16xbf16>
    %cst_14 = arith.constant dense<0.000000e+00> : vector<16x16xf32>
    %15 = tpu.matmul %12, %14, %cst_14 {dimension_numbers = #tpu.dot_dimension_numbers<[1], [0], [0], [1], [0, 0, 1, 1], [], []>} : vector<16x96xbf16>, vector<96x16xbf16>, vector<16x16xf32> -> vector<16x16xf32>
    %16 = arith.addf %10, %15 : vector<16x16xf32>
    %cst_15 = arith.constant dense<0.000000e+00> : vector<16xf32>
    %17 = vector.multi_reduction <add>, %16, %cst_15 [0] : vector<16x16xf32> to vector<16xf32>
    %18 = vector.shape_cast %17 : vector<16xf32> to vector<1x16xf32>
    %cst_16 = arith.constant 6.250000e-02 : f32
    %19 = vector.broadcast %cst_16 : f32 to vector<1x16xf32>
    %20 = arith.mulf %18, %19 : vector<1x16xf32>
    %21 = vector.broadcast %20 : vector<1x16xf32> to vector<16x16xf32>
    %22 = arith.subf %16, %21 : vector<16x16xf32>
    %23 = arith.mulf %22, %22 : vector<16x16xf32>
    %cst_17 = arith.constant dense<0.000000e+00> : vector<16xf32>
    %24 = vector.multi_reduction <add>, %23, %cst_17 [0] : vector<16x16xf32> to vector<16xf32>
    %25 = vector.shape_cast %24 : vector<16xf32> to vector<1x16xf32>
    %cst_18 = arith.constant 6.250000e-02 : f32
    %26 = vector.broadcast %cst_18 : f32 to vector<1x16xf32>
    %27 = arith.mulf %25, %26 : vector<1x16xf32>
    %cst_19 = arith.constant 9.99999974E-6 : f32
    %28 = vector.broadcast %cst_19 : f32 to vector<1x16xf32>
    %29 = arith.addf %27, %28 : vector<1x16xf32>
    %30 = math.rsqrt %29 : vector<1x16xf32>
    %31 = vector.broadcast %30 : vector<1x16xf32> to vector<16x16xf32>
    %32 = arith.mulf %22, %31 : vector<16x16xf32>
    %cst_20 = arith.constant 0.000000e+00 : f32
    %33 = vector.broadcast %cst_20 : f32 to vector<16x16xf32>
    %34 = arith.maximumf %32, %33 : vector<16x16xf32>
    %35 = arith.truncf %34 : vector<16x16xf32> to vector<16x16xbf16>
    %c0_21 = arith.constant 0 : index
    %c0_22 = arith.constant 0 : index
    %c0_23 = arith.constant 0 : index
    %36 = vector.load %arg4[%c0_21, %c0_22, %c0_23] : memref<1x16x16xbf16, #tpu.memory_space<vmem>>, vector<1x16x16xbf16>
    %37 = vector.shape_cast %36 : vector<1x16x16xbf16> to vector<16x16xbf16>
    %38 = vector.shape_cast %35 : vector<16x16xbf16> to vector<1x16x16xbf16>
    tpu.vector_store %arg4[%c0_21, %c0_22, %c0_23], %38 {strides = array<i32>} : memref<1x16x16xbf16, #tpu.memory_space<vmem>>, vector<1x16x16xbf16>,
    return
  }
  func.func @transform_0(%arg0: i32, %arg1: i32) -> (i32, i32, i32) {
    %c0_i32 = arith.constant 0 : i32
    %c0_i32_0 = arith.constant 0 : i32
    %c0_i32_1 = arith.constant 0 : i32
    return %arg0, %c0_i32, %c0_i32_0 : i32, i32, i32
  }
  func.func @transform_1(%arg0: i32, %arg1: i32) -> (i32, i32, i32) {
    %c0_i32 = arith.constant 0 : i32
    %c0_i32_0 = arith.constant 0 : i32
    %c0_i32_1 = arith.constant 0 : i32
    return %c0_i32, %c0_i32_0, %arg1 : i32, i32, i32
  }
  func.func @transform_2(%arg0: i32, %arg1: i32) -> (i32, i32, i32) {
    %c0_i32 = arith.constant 0 : i32
    %c0_i32_0 = arith.constant 0 : i32
    return %arg0, %c0_i32, %arg1 : i32, i32, i32
  }
}

module attributes {stable_mosaic.version = 11 : i64} {
  func.func @_fused_conv_kernel(%arg0: i32, %arg1: i32, %arg2: memref<1x80x48xbf16, #tpu.memory_space<vmem>>, %arg3: memref<3x48x8xbf16, #tpu.memory_space<vmem>>, %arg4: memref<1x64x8xbf16, #tpu.memory_space<vmem>>) attributes {dimension_semantics = [#tpu.dimension_semantics<parallel>, #tpu.dimension_semantics<parallel>], iteration_bounds = array<i64: 2, 1>, scalar_prefetch = 0 : i64, scratch_operands = 0 : i64, tpu.core_type = #tpu.core_type<tc>, window_params = [{transform_indices = @transform_0, window_bounds = array<i64: 1, 80, 48>}, {transform_indices = @transform_1, window_bounds = array<i64: 3, 48, 8>}, {transform_indices = @transform_2, window_bounds = array<i64: 1, 64, 8>}]} {
    %c0 = arith.constant 0 : index
    %c0_0 = arith.constant 0 : index
    %c0_1 = arith.constant 0 : index
    %0 = vector.load %arg2[%c0, %c0_0, %c0_1] : memref<1x80x48xbf16, #tpu.memory_space<vmem>>, vector<1x64x48xbf16>
    %1 = vector.shape_cast %0 : vector<1x64x48xbf16> to vector<64x48xbf16>
    %c0_2 = arith.constant 0 : index
    %c0_3 = arith.constant 0 : index
    %c0_4 = arith.constant 0 : index
    %2 = vector.load %arg3[%c0_2, %c0_3, %c0_4] : memref<3x48x8xbf16, #tpu.memory_space<vmem>>, vector<1x48x8xbf16>
    %3 = vector.shape_cast %2 : vector<1x48x8xbf16> to vector<48x8xbf16>
    %cst = arith.constant dense<0.000000e+00> : vector<64x8xf32>
    %4 = tpu.matmul %1, %3, %cst {dimension_numbers = #tpu.dot_dimension_numbers<[1], [0], [0], [1], [0, 0, 1, 1], [], []>} : vector<64x48xbf16>, vector<48x8xbf16>, vector<64x8xf32> -> vector<64x8xf32>
    %c0_5 = arith.constant 0 : index
    %c8 = arith.constant 8 : index
    %c0_6 = arith.constant 0 : index
    %5 = vector.load %arg2[%c0_5, %c8, %c0_6] : memref<1x80x48xbf16, #tpu.memory_space<vmem>>, vector<1x64x48xbf16>
    %6 = vector.shape_cast %5 : vector<1x64x48xbf16> to vector<64x48xbf16>
    %c1 = arith.constant 1 : index
    %c0_7 = arith.constant 0 : index
    %c0_8 = arith.constant 0 : index
    %7 = vector.load %arg3[%c1, %c0_7, %c0_8] : memref<3x48x8xbf16, #tpu.memory_space<vmem>>, vector<1x48x8xbf16>
    %8 = vector.shape_cast %7 : vector<1x48x8xbf16> to vector<48x8xbf16>
    %cst_9 = arith.constant dense<0.000000e+00> : vector<64x8xf32>
    %9 = tpu.matmul %6, %8, %cst_9 {dimension_numbers = #tpu.dot_dimension_numbers<[1], [0], [0], [1], [0, 0, 1, 1], [], []>} : vector<64x48xbf16>, vector<48x8xbf16>, vector<64x8xf32> -> vector<64x8xf32>
    %10 = arith.addf %4, %9 : vector<64x8xf32>
    %c0_10 = arith.constant 0 : index
    %c16 = arith.constant 16 : index
    %c0_11 = arith.constant 0 : index
    %11 = vector.load %arg2[%c0_10, %c16, %c0_11] : memref<1x80x48xbf16, #tpu.memory_space<vmem>>, vector<1x64x48xbf16>
    %12 = vector.shape_cast %11 : vector<1x64x48xbf16> to vector<64x48xbf16>
    %c2 = arith.constant 2 : index
    %c0_12 = arith.constant 0 : index
    %c0_13 = arith.constant 0 : index
    %13 = vector.load %arg3[%c2, %c0_12, %c0_13] : memref<3x48x8xbf16, #tpu.memory_space<vmem>>, vector<1x48x8xbf16>
    %14 = vector.shape_cast %13 : vector<1x48x8xbf16> to vector<48x8xbf16>
    %cst_14 = arith.constant dense<0.000000e+00> : vector<64x8xf32>
    %15 = tpu.matmul %12, %14, %cst_14 {dimension_numbers = #tpu.dot_dimension_numbers<[1], [0], [0], [1], [0, 0, 1, 1], [], []>} : vector<64x48xbf16>, vector<48x8xbf16>, vector<64x8xf32> -> vector<64x8xf32>
    %16 = arith.addf %10, %15 : vector<64x8xf32>
    %cst_15 = arith.constant dense<0.000000e+00> : vector<8xf32>
    %17 = vector.multi_reduction <add>, %16, %cst_15 [0] : vector<64x8xf32> to vector<8xf32>
    %18 = vector.shape_cast %17 : vector<8xf32> to vector<1x8xf32>
    %cst_16 = arith.constant 1.562500e-02 : f32
    %19 = vector.broadcast %cst_16 : f32 to vector<1x8xf32>
    %20 = arith.mulf %18, %19 : vector<1x8xf32>
    %21 = vector.broadcast %20 : vector<1x8xf32> to vector<64x8xf32>
    %22 = arith.subf %16, %21 : vector<64x8xf32>
    %23 = arith.mulf %22, %22 : vector<64x8xf32>
    %cst_17 = arith.constant dense<0.000000e+00> : vector<8xf32>
    %24 = vector.multi_reduction <add>, %23, %cst_17 [0] : vector<64x8xf32> to vector<8xf32>
    %25 = vector.shape_cast %24 : vector<8xf32> to vector<1x8xf32>
    %cst_18 = arith.constant 1.562500e-02 : f32
    %26 = vector.broadcast %cst_18 : f32 to vector<1x8xf32>
    %27 = arith.mulf %25, %26 : vector<1x8xf32>
    %cst_19 = arith.constant 9.99999974E-6 : f32
    %28 = vector.broadcast %cst_19 : f32 to vector<1x8xf32>
    %29 = arith.addf %27, %28 : vector<1x8xf32>
    %30 = math.rsqrt %29 : vector<1x8xf32>
    %31 = vector.broadcast %30 : vector<1x8xf32> to vector<64x8xf32>
    %32 = arith.mulf %22, %31 : vector<64x8xf32>
    %cst_20 = arith.constant 0.000000e+00 : f32
    %33 = vector.broadcast %cst_20 : f32 to vector<64x8xf32>
    %34 = arith.maximumf %32, %33 : vector<64x8xf32>
    %35 = arith.truncf %34 : vector<64x8xf32> to vector<64x8xbf16>
    %c0_21 = arith.constant 0 : index
    %c0_22 = arith.constant 0 : index
    %c0_23 = arith.constant 0 : index
    %36 = vector.load %arg4[%c0_21, %c0_22, %c0_23] : memref<1x64x8xbf16, #tpu.memory_space<vmem>>, vector<1x64x8xbf16>
    %37 = vector.shape_cast %36 : vector<1x64x8xbf16> to vector<64x8xbf16>
    %38 = vector.shape_cast %35 : vector<64x8xbf16> to vector<1x64x8xbf16>
    tpu.vector_store %arg4[%c0_21, %c0_22, %c0_23], %38 {strides = array<i32>} : memref<1x64x8xbf16, #tpu.memory_space<vmem>>, vector<1x64x8xbf16>,
    return
  }
  func.func @transform_0(%arg0: i32, %arg1: i32) -> (i32, i32, i32) {
    %c0_i32 = arith.constant 0 : i32
    %c0_i32_0 = arith.constant 0 : i32
    %c0_i32_1 = arith.constant 0 : i32
    return %arg0, %c0_i32, %c0_i32_0 : i32, i32, i32
  }
  func.func @transform_1(%arg0: i32, %arg1: i32) -> (i32, i32, i32) {
    %c0_i32 = arith.constant 0 : i32
    %c0_i32_0 = arith.constant 0 : i32
    %c0_i32_1 = arith.constant 0 : i32
    return %c0_i32, %c0_i32_0, %arg1 : i32, i32, i32
  }
  func.func @transform_2(%arg0: i32, %arg1: i32) -> (i32, i32, i32) {
    %c0_i32 = arith.constant 0 : i32
    %c0_i32_0 = arith.constant 0 : i32
    return %arg0, %c0_i32, %arg1 : i32, i32, i32
  }
}

module attributes {stable_mosaic.version = 11 : i64} {
  func.func @_fused_conv_kernel(%arg0: i32, %arg1: i32, %arg2: memref<1x80x24xbf16, #tpu.memory_space<vmem>>, %arg3: memref<3x24x8xbf16, #tpu.memory_space<vmem>>, %arg4: memref<1x80x24xbf16, #tpu.memory_space<vmem>>, %arg5: memref<3x24x8xbf16, #tpu.memory_space<vmem>>, %arg6: memref<1x64x8xbf16, #tpu.memory_space<vmem>>) attributes {dimension_semantics = [#tpu.dimension_semantics<parallel>, #tpu.dimension_semantics<parallel>], iteration_bounds = array<i64: 2, 1>, scalar_prefetch = 0 : i64, scratch_operands = 0 : i64, tpu.core_type = #tpu.core_type<tc>, window_params = [{transform_indices = @transform_0, window_bounds = array<i64: 1, 80, 24>}, {transform_indices = @transform_1, window_bounds = array<i64: 3, 24, 8>}, {transform_indices = @transform_2, window_bounds = array<i64: 1, 80, 24>}, {transform_indices = @transform_3, window_bounds = array<i64: 3, 24, 8>}, {transform_indices = @transform_4, window_bounds = array<i64: 1, 64, 8>}]} {
    %c0 = arith.constant 0 : index
    %c0_0 = arith.constant 0 : index
    %c0_1 = arith.constant 0 : index
    %0 = vector.load %arg2[%c0, %c0_0, %c0_1] : memref<1x80x24xbf16, #tpu.memory_space<vmem>>, vector<1x64x24xbf16>
    %1 = vector.shape_cast %0 : vector<1x64x24xbf16> to vector<64x24xbf16>
    %c0_2 = arith.constant 0 : index
    %c0_3 = arith.constant 0 : index
    %c0_4 = arith.constant 0 : index
    %2 = vector.load %arg3[%c0_2, %c0_3, %c0_4] : memref<3x24x8xbf16, #tpu.memory_space<vmem>>, vector<1x24x8xbf16>
    %3 = vector.shape_cast %2 : vector<1x24x8xbf16> to vector<24x8xbf16>
    %cst = arith.constant dense<0.000000e+00> : vector<64x8xf32>
    %4 = tpu.matmul %1, %3, %cst {dimension_numbers = #tpu.dot_dimension_numbers<[1], [0], [0], [1], [0, 0, 1, 1], [], []>} : vector<64x24xbf16>, vector<24x8xbf16>, vector<64x8xf32> -> vector<64x8xf32>
    %c0_5 = arith.constant 0 : index
    %c8 = arith.constant 8 : index
    %c0_6 = arith.constant 0 : index
    %5 = vector.load %arg2[%c0_5, %c8, %c0_6] : memref<1x80x24xbf16, #tpu.memory_space<vmem>>, vector<1x64x24xbf16>
    %6 = vector.shape_cast %5 : vector<1x64x24xbf16> to vector<64x24xbf16>
    %c1 = arith.constant 1 : index
    %c0_7 = arith.constant 0 : index
    %c0_8 = arith.constant 0 : index
    %7 = vector.load %arg3[%c1, %c0_7, %c0_8] : memref<3x24x8xbf16, #tpu.memory_space<vmem>>, vector<1x24x8xbf16>
    %8 = vector.shape_cast %7 : vector<1x24x8xbf16> to vector<24x8xbf16>
    %cst_9 = arith.constant dense<0.000000e+00> : vector<64x8xf32>
    %9 = tpu.matmul %6, %8, %cst_9 {dimension_numbers = #tpu.dot_dimension_numbers<[1], [0], [0], [1], [0, 0, 1, 1], [], []>} : vector<64x24xbf16>, vector<24x8xbf16>, vector<64x8xf32> -> vector<64x8xf32>
    %10 = arith.addf %4, %9 : vector<64x8xf32>
    %c0_10 = arith.constant 0 : index
    %c16 = arith.constant 16 : index
    %c0_11 = arith.constant 0 : index
    %11 = vector.load %arg2[%c0_10, %c16, %c0_11] : memref<1x80x24xbf16, #tpu.memory_space<vmem>>, vector<1x64x24xbf16>
    %12 = vector.shape_cast %11 : vector<1x64x24xbf16> to vector<64x24xbf16>
    %c2 = arith.constant 2 : index
    %c0_12 = arith.constant 0 : index
    %c0_13 = arith.constant 0 : index
    %13 = vector.load %arg3[%c2, %c0_12, %c0_13] : memref<3x24x8xbf16, #tpu.memory_space<vmem>>, vector<1x24x8xbf16>
    %14 = vector.shape_cast %13 : vector<1x24x8xbf16> to vector<24x8xbf16>
    %cst_14 = arith.constant dense<0.000000e+00> : vector<64x8xf32>
    %15 = tpu.matmul %12, %14, %cst_14 {dimension_numbers = #tpu.dot_dimension_numbers<[1], [0], [0], [1], [0, 0, 1, 1], [], []>} : vector<64x24xbf16>, vector<24x8xbf16>, vector<64x8xf32> -> vector<64x8xf32>
    %16 = arith.addf %10, %15 : vector<64x8xf32>
    %c0_15 = arith.constant 0 : index
    %c0_16 = arith.constant 0 : index
    %c0_17 = arith.constant 0 : index
    %17 = vector.load %arg4[%c0_15, %c0_16, %c0_17] : memref<1x80x24xbf16, #tpu.memory_space<vmem>>, vector<1x64x24xbf16>
    %18 = vector.shape_cast %17 : vector<1x64x24xbf16> to vector<64x24xbf16>
    %c0_18 = arith.constant 0 : index
    %c0_19 = arith.constant 0 : index
    %c0_20 = arith.constant 0 : index
    %19 = vector.load %arg5[%c0_18, %c0_19, %c0_20] : memref<3x24x8xbf16, #tpu.memory_space<vmem>>, vector<1x24x8xbf16>
    %20 = vector.shape_cast %19 : vector<1x24x8xbf16> to vector<24x8xbf16>
    %cst_21 = arith.constant dense<0.000000e+00> : vector<64x8xf32>
    %21 = tpu.matmul %18, %20, %cst_21 {dimension_numbers = #tpu.dot_dimension_numbers<[1], [0], [0], [1], [0, 0, 1, 1], [], []>} : vector<64x24xbf16>, vector<24x8xbf16>, vector<64x8xf32> -> vector<64x8xf32>
    %22 = arith.addf %16, %21 : vector<64x8xf32>
    %c0_22 = arith.constant 0 : index
    %c8_23 = arith.constant 8 : index
    %c0_24 = arith.constant 0 : index
    %23 = vector.load %arg4[%c0_22, %c8_23, %c0_24] : memref<1x80x24xbf16, #tpu.memory_space<vmem>>, vector<1x64x24xbf16>
    %24 = vector.shape_cast %23 : vector<1x64x24xbf16> to vector<64x24xbf16>
    %c1_25 = arith.constant 1 : index
    %c0_26 = arith.constant 0 : index
    %c0_27 = arith.constant 0 : index
    %25 = vector.load %arg5[%c1_25, %c0_26, %c0_27] : memref<3x24x8xbf16, #tpu.memory_space<vmem>>, vector<1x24x8xbf16>
    %26 = vector.shape_cast %25 : vector<1x24x8xbf16> to vector<24x8xbf16>
    %cst_28 = arith.constant dense<0.000000e+00> : vector<64x8xf32>
    %27 = tpu.matmul %24, %26, %cst_28 {dimension_numbers = #tpu.dot_dimension_numbers<[1], [0], [0], [1], [0, 0, 1, 1], [], []>} : vector<64x24xbf16>, vector<24x8xbf16>, vector<64x8xf32> -> vector<64x8xf32>
    %28 = arith.addf %22, %27 : vector<64x8xf32>
    %c0_29 = arith.constant 0 : index
    %c16_30 = arith.constant 16 : index
    %c0_31 = arith.constant 0 : index
    %29 = vector.load %arg4[%c0_29, %c16_30, %c0_31] : memref<1x80x24xbf16, #tpu.memory_space<vmem>>, vector<1x64x24xbf16>
    %30 = vector.shape_cast %29 : vector<1x64x24xbf16> to vector<64x24xbf16>
    %c2_32 = arith.constant 2 : index
    %c0_33 = arith.constant 0 : index
    %c0_34 = arith.constant 0 : index
    %31 = vector.load %arg5[%c2_32, %c0_33, %c0_34] : memref<3x24x8xbf16, #tpu.memory_space<vmem>>, vector<1x24x8xbf16>
    %32 = vector.shape_cast %31 : vector<1x24x8xbf16> to vector<24x8xbf16>
    %cst_35 = arith.constant dense<0.000000e+00> : vector<64x8xf32>
    %33 = tpu.matmul %30, %32, %cst_35 {dimension_numbers = #tpu.dot_dimension_numbers<[1], [0], [0], [1], [0, 0, 1, 1], [], []>} : vector<64x24xbf16>, vector<24x8xbf16>, vector<64x8xf32> -> vector<64x8xf32>
    %34 = arith.addf %28, %33 : vector<64x8xf32>
    %cst_36 = arith.constant dense<0.000000e+00> : vector<8xf32>
    %35 = vector.multi_reduction <add>, %34, %cst_36 [0] : vector<64x8xf32> to vector<8xf32>
    %36 = vector.shape_cast %35 : vector<8xf32> to vector<1x8xf32>
    %cst_37 = arith.constant 1.562500e-02 : f32
    %37 = vector.broadcast %cst_37 : f32 to vector<1x8xf32>
    %38 = arith.mulf %36, %37 : vector<1x8xf32>
    %39 = vector.broadcast %38 : vector<1x8xf32> to vector<64x8xf32>
    %40 = arith.subf %34, %39 : vector<64x8xf32>
    %41 = arith.mulf %40, %40 : vector<64x8xf32>
    %cst_38 = arith.constant dense<0.000000e+00> : vector<8xf32>
    %42 = vector.multi_reduction <add>, %41, %cst_38 [0] : vector<64x8xf32> to vector<8xf32>
    %43 = vector.shape_cast %42 : vector<8xf32> to vector<1x8xf32>
    %cst_39 = arith.constant 1.562500e-02 : f32
    %44 = vector.broadcast %cst_39 : f32 to vector<1x8xf32>
    %45 = arith.mulf %43, %44 : vector<1x8xf32>
    %cst_40 = arith.constant 9.99999974E-6 : f32
    %46 = vector.broadcast %cst_40 : f32 to vector<1x8xf32>
    %47 = arith.addf %45, %46 : vector<1x8xf32>
    %48 = math.rsqrt %47 : vector<1x8xf32>
    %49 = vector.broadcast %48 : vector<1x8xf32> to vector<64x8xf32>
    %50 = arith.mulf %40, %49 : vector<64x8xf32>
    %cst_41 = arith.constant 0.000000e+00 : f32
    %51 = vector.broadcast %cst_41 : f32 to vector<64x8xf32>
    %52 = arith.cmpf ogt, %50, %51 : vector<64x8xf32>
    %cst_42 = arith.constant 2.000000e-01 : f32
    %53 = vector.broadcast %cst_42 : f32 to vector<64x8xf32>
    %54 = arith.mulf %53, %50 : vector<64x8xf32>
    %55 = arith.select %52, %50, %54 : vector<64x8xi1>, vector<64x8xf32>
    %56 = arith.truncf %55 : vector<64x8xf32> to vector<64x8xbf16>
    %c0_43 = arith.constant 0 : index
    %c0_44 = arith.constant 0 : index
    %c0_45 = arith.constant 0 : index
    %57 = vector.load %arg6[%c0_43, %c0_44, %c0_45] : memref<1x64x8xbf16, #tpu.memory_space<vmem>>, vector<1x64x8xbf16>
    %58 = vector.shape_cast %57 : vector<1x64x8xbf16> to vector<64x8xbf16>
    %59 = vector.shape_cast %56 : vector<64x8xbf16> to vector<1x64x8xbf16>
    tpu.vector_store %arg6[%c0_43, %c0_44, %c0_45], %59 {strides = array<i32>} : memref<1x64x8xbf16, #tpu.memory_space<vmem>>, vector<1x64x8xbf16>,
    return
  }
  func.func @transform_0(%arg0: i32, %arg1: i32) -> (i32, i32, i32) {
    %c0_i32 = arith.constant 0 : i32
    %c0_i32_0 = arith.constant 0 : i32
    %c0_i32_1 = arith.constant 0 : i32
    return %arg0, %c0_i32, %c0_i32_0 : i32, i32, i32
  }
  func.func @transform_1(%arg0: i32, %arg1: i32) -> (i32, i32, i32) {
    %c0_i32 = arith.constant 0 : i32
    %c0_i32_0 = arith.constant 0 : i32
    %c0_i32_1 = arith.constant 0 : i32
    return %c0_i32, %c0_i32_0, %arg1 : i32, i32, i32
  }
  func.func @transform_2(%arg0: i32, %arg1: i32) -> (i32, i32, i32) {
    %c0_i32 = arith.constant 0 : i32
    %c0_i32_0 = arith.constant 0 : i32
    %c0_i32_1 = arith.constant 0 : i32
    return %arg0, %c0_i32, %c0_i32_0 : i32, i32, i32
  }
  func.func @transform_3(%arg0: i32, %arg1: i32) -> (i32, i32, i32) {
    %c0_i32 = arith.constant 0 : i32
    %c0_i32_0 = arith.constant 0 : i32
    %c0_i32_1 = arith.constant 0 : i32
    return %c0_i32, %c0_i32_0, %arg1 : i32, i32, i32
  }
  func.func @transform_4(%arg0: i32, %arg1: i32) -> (i32, i32, i32) {
    %c0_i32 = arith.constant 0 : i32
    %c0_i32_0 = arith.constant 0 : i32
    return %arg0, %c0_i32, %arg1 : i32, i32, i32
  }
}

module attributes {stable_mosaic.version = 11 : i64} {
  func.func @_fused_conv_kernel(%arg0: i32, %arg1: i32, %arg2: memref<1x288x24xbf16, #tpu.memory_space<vmem>>, %arg3: memref<3x24x4xbf16, #tpu.memory_space<vmem>>, %arg4: memref<1x256x4xbf16, #tpu.memory_space<vmem>>) attributes {dimension_semantics = [#tpu.dimension_semantics<parallel>, #tpu.dimension_semantics<parallel>], iteration_bounds = array<i64: 2, 1>, scalar_prefetch = 0 : i64, scratch_operands = 0 : i64, tpu.core_type = #tpu.core_type<tc>, window_params = [{transform_indices = @transform_0, window_bounds = array<i64: 1, 288, 24>}, {transform_indices = @transform_1, window_bounds = array<i64: 3, 24, 4>}, {transform_indices = @transform_2, window_bounds = array<i64: 1, 256, 4>}]} {
    %c0 = arith.constant 0 : index
    %c0_0 = arith.constant 0 : index
    %c0_1 = arith.constant 0 : index
    %0 = vector.load %arg2[%c0, %c0_0, %c0_1] : memref<1x288x24xbf16, #tpu.memory_space<vmem>>, vector<1x256x24xbf16>
    %1 = vector.shape_cast %0 : vector<1x256x24xbf16> to vector<256x24xbf16>
    %c0_2 = arith.constant 0 : index
    %c0_3 = arith.constant 0 : index
    %c0_4 = arith.constant 0 : index
    %2 = vector.load %arg3[%c0_2, %c0_3, %c0_4] : memref<3x24x4xbf16, #tpu.memory_space<vmem>>, vector<1x24x4xbf16>
    %3 = vector.shape_cast %2 : vector<1x24x4xbf16> to vector<24x4xbf16>
    %cst = arith.constant dense<0.000000e+00> : vector<256x4xf32>
    %4 = tpu.matmul %1, %3, %cst {dimension_numbers = #tpu.dot_dimension_numbers<[1], [0], [0], [1], [0, 0, 1, 1], [], []>} : vector<256x24xbf16>, vector<24x4xbf16>, vector<256x4xf32> -> vector<256x4xf32>
    %c0_5 = arith.constant 0 : index
    %c16 = arith.constant 16 : index
    %c0_6 = arith.constant 0 : index
    %5 = vector.load %arg2[%c0_5, %c16, %c0_6] : memref<1x288x24xbf16, #tpu.memory_space<vmem>>, vector<1x256x24xbf16>
    %6 = vector.shape_cast %5 : vector<1x256x24xbf16> to vector<256x24xbf16>
    %c1 = arith.constant 1 : index
    %c0_7 = arith.constant 0 : index
    %c0_8 = arith.constant 0 : index
    %7 = vector.load %arg3[%c1, %c0_7, %c0_8] : memref<3x24x4xbf16, #tpu.memory_space<vmem>>, vector<1x24x4xbf16>
    %8 = vector.shape_cast %7 : vector<1x24x4xbf16> to vector<24x4xbf16>
    %cst_9 = arith.constant dense<0.000000e+00> : vector<256x4xf32>
    %9 = tpu.matmul %6, %8, %cst_9 {dimension_numbers = #tpu.dot_dimension_numbers<[1], [0], [0], [1], [0, 0, 1, 1], [], []>} : vector<256x24xbf16>, vector<24x4xbf16>, vector<256x4xf32> -> vector<256x4xf32>
    %10 = arith.addf %4, %9 : vector<256x4xf32>
    %c0_10 = arith.constant 0 : index
    %c32 = arith.constant 32 : index
    %c0_11 = arith.constant 0 : index
    %11 = vector.load %arg2[%c0_10, %c32, %c0_11] : memref<1x288x24xbf16, #tpu.memory_space<vmem>>, vector<1x256x24xbf16>
    %12 = vector.shape_cast %11 : vector<1x256x24xbf16> to vector<256x24xbf16>
    %c2 = arith.constant 2 : index
    %c0_12 = arith.constant 0 : index
    %c0_13 = arith.constant 0 : index
    %13 = vector.load %arg3[%c2, %c0_12, %c0_13] : memref<3x24x4xbf16, #tpu.memory_space<vmem>>, vector<1x24x4xbf16>
    %14 = vector.shape_cast %13 : vector<1x24x4xbf16> to vector<24x4xbf16>
    %cst_14 = arith.constant dense<0.000000e+00> : vector<256x4xf32>
    %15 = tpu.matmul %12, %14, %cst_14 {dimension_numbers = #tpu.dot_dimension_numbers<[1], [0], [0], [1], [0, 0, 1, 1], [], []>} : vector<256x24xbf16>, vector<24x4xbf16>, vector<256x4xf32> -> vector<256x4xf32>
    %16 = arith.addf %10, %15 : vector<256x4xf32>
    %cst_15 = arith.constant dense<0.000000e+00> : vector<4xf32>
    %17 = vector.multi_reduction <add>, %16, %cst_15 [0] : vector<256x4xf32> to vector<4xf32>
    %18 = vector.shape_cast %17 : vector<4xf32> to vector<1x4xf32>
    %cst_16 = arith.constant 3.906250e-03 : f32
    %19 = vector.broadcast %cst_16 : f32 to vector<1x4xf32>
    %20 = arith.mulf %18, %19 : vector<1x4xf32>
    %21 = vector.broadcast %20 : vector<1x4xf32> to vector<256x4xf32>
    %22 = arith.subf %16, %21 : vector<256x4xf32>
    %23 = arith.mulf %22, %22 : vector<256x4xf32>
    %cst_17 = arith.constant dense<0.000000e+00> : vector<4xf32>
    %24 = vector.multi_reduction <add>, %23, %cst_17 [0] : vector<256x4xf32> to vector<4xf32>
    %25 = vector.shape_cast %24 : vector<4xf32> to vector<1x4xf32>
    %cst_18 = arith.constant 3.906250e-03 : f32
    %26 = vector.broadcast %cst_18 : f32 to vector<1x4xf32>
    %27 = arith.mulf %25, %26 : vector<1x4xf32>
    %cst_19 = arith.constant 9.99999974E-6 : f32
    %28 = vector.broadcast %cst_19 : f32 to vector<1x4xf32>
    %29 = arith.addf %27, %28 : vector<1x4xf32>
    %30 = math.rsqrt %29 : vector<1x4xf32>
    %31 = vector.broadcast %30 : vector<1x4xf32> to vector<256x4xf32>
    %32 = arith.mulf %22, %31 : vector<256x4xf32>
    %cst_20 = arith.constant 0.000000e+00 : f32
    %33 = vector.broadcast %cst_20 : f32 to vector<256x4xf32>
    %34 = arith.maximumf %32, %33 : vector<256x4xf32>
    %35 = arith.truncf %34 : vector<256x4xf32> to vector<256x4xbf16>
    %c0_21 = arith.constant 0 : index
    %c0_22 = arith.constant 0 : index
    %c0_23 = arith.constant 0 : index
    %36 = vector.load %arg4[%c0_21, %c0_22, %c0_23] : memref<1x256x4xbf16, #tpu.memory_space<vmem>>, vector<1x256x4xbf16>
    %37 = vector.shape_cast %36 : vector<1x256x4xbf16> to vector<256x4xbf16>
    %38 = vector.shape_cast %35 : vector<256x4xbf16> to vector<1x256x4xbf16>
    tpu.vector_store %arg4[%c0_21, %c0_22, %c0_23], %38 {strides = array<i32>} : memref<1x256x4xbf16, #tpu.memory_space<vmem>>, vector<1x256x4xbf16>,
    return
  }
  func.func @transform_0(%arg0: i32, %arg1: i32) -> (i32, i32, i32) {
    %c0_i32 = arith.constant 0 : i32
    %c0_i32_0 = arith.constant 0 : i32
    %c0_i32_1 = arith.constant 0 : i32
    return %arg0, %c0_i32, %c0_i32_0 : i32, i32, i32
  }
  func.func @transform_1(%arg0: i32, %arg1: i32) -> (i32, i32, i32) {
    %c0_i32 = arith.constant 0 : i32
    %c0_i32_0 = arith.constant 0 : i32
    %c0_i32_1 = arith.constant 0 : i32
    return %c0_i32, %c0_i32_0, %arg1 : i32, i32, i32
  }
  func.func @transform_2(%arg0: i32, %arg1: i32) -> (i32, i32, i32) {
    %c0_i32 = arith.constant 0 : i32
    %c0_i32_0 = arith.constant 0 : i32
    return %arg0, %c0_i32, %arg1 : i32, i32, i32
  }
}

module attributes {stable_mosaic.version = 11 : i64} {
  func.func @_fused_conv_kernel(%arg0: i32, %arg1: i32, %arg2: memref<1x288x12xbf16, #tpu.memory_space<vmem>>, %arg3: memref<3x12x4xbf16, #tpu.memory_space<vmem>>, %arg4: memref<1x288x12xbf16, #tpu.memory_space<vmem>>, %arg5: memref<3x12x4xbf16, #tpu.memory_space<vmem>>, %arg6: memref<1x256x4xbf16, #tpu.memory_space<vmem>>) attributes {dimension_semantics = [#tpu.dimension_semantics<parallel>, #tpu.dimension_semantics<parallel>], iteration_bounds = array<i64: 2, 1>, scalar_prefetch = 0 : i64, scratch_operands = 0 : i64, tpu.core_type = #tpu.core_type<tc>, window_params = [{transform_indices = @transform_0, window_bounds = array<i64: 1, 288, 12>}, {transform_indices = @transform_1, window_bounds = array<i64: 3, 12, 4>}, {transform_indices = @transform_2, window_bounds = array<i64: 1, 288, 12>}, {transform_indices = @transform_3, window_bounds = array<i64: 3, 12, 4>}, {transform_indices = @transform_4, window_bounds = array<i64: 1, 256, 4>}]} {
    %c0 = arith.constant 0 : index
    %c0_0 = arith.constant 0 : index
    %c0_1 = arith.constant 0 : index
    %0 = vector.load %arg2[%c0, %c0_0, %c0_1] : memref<1x288x12xbf16, #tpu.memory_space<vmem>>, vector<1x256x12xbf16>
    %1 = vector.shape_cast %0 : vector<1x256x12xbf16> to vector<256x12xbf16>
    %c0_2 = arith.constant 0 : index
    %c0_3 = arith.constant 0 : index
    %c0_4 = arith.constant 0 : index
    %2 = vector.load %arg3[%c0_2, %c0_3, %c0_4] : memref<3x12x4xbf16, #tpu.memory_space<vmem>>, vector<1x12x4xbf16>
    %3 = vector.shape_cast %2 : vector<1x12x4xbf16> to vector<12x4xbf16>
    %cst = arith.constant dense<0.000000e+00> : vector<256x4xf32>
    %4 = tpu.matmul %1, %3, %cst {dimension_numbers = #tpu.dot_dimension_numbers<[1], [0], [0], [1], [0, 0, 1, 1], [], []>} : vector<256x12xbf16>, vector<12x4xbf16>, vector<256x4xf32> -> vector<256x4xf32>
    %c0_5 = arith.constant 0 : index
    %c16 = arith.constant 16 : index
    %c0_6 = arith.constant 0 : index
    %5 = vector.load %arg2[%c0_5, %c16, %c0_6] : memref<1x288x12xbf16, #tpu.memory_space<vmem>>, vector<1x256x12xbf16>
    %6 = vector.shape_cast %5 : vector<1x256x12xbf16> to vector<256x12xbf16>
    %c1 = arith.constant 1 : index
    %c0_7 = arith.constant 0 : index
    %c0_8 = arith.constant 0 : index
    %7 = vector.load %arg3[%c1, %c0_7, %c0_8] : memref<3x12x4xbf16, #tpu.memory_space<vmem>>, vector<1x12x4xbf16>
    %8 = vector.shape_cast %7 : vector<1x12x4xbf16> to vector<12x4xbf16>
    %cst_9 = arith.constant dense<0.000000e+00> : vector<256x4xf32>
    %9 = tpu.matmul %6, %8, %cst_9 {dimension_numbers = #tpu.dot_dimension_numbers<[1], [0], [0], [1], [0, 0, 1, 1], [], []>} : vector<256x12xbf16>, vector<12x4xbf16>, vector<256x4xf32> -> vector<256x4xf32>
    %10 = arith.addf %4, %9 : vector<256x4xf32>
    %c0_10 = arith.constant 0 : index
    %c32 = arith.constant 32 : index
    %c0_11 = arith.constant 0 : index
    %11 = vector.load %arg2[%c0_10, %c32, %c0_11] : memref<1x288x12xbf16, #tpu.memory_space<vmem>>, vector<1x256x12xbf16>
    %12 = vector.shape_cast %11 : vector<1x256x12xbf16> to vector<256x12xbf16>
    %c2 = arith.constant 2 : index
    %c0_12 = arith.constant 0 : index
    %c0_13 = arith.constant 0 : index
    %13 = vector.load %arg3[%c2, %c0_12, %c0_13] : memref<3x12x4xbf16, #tpu.memory_space<vmem>>, vector<1x12x4xbf16>
    %14 = vector.shape_cast %13 : vector<1x12x4xbf16> to vector<12x4xbf16>
    %cst_14 = arith.constant dense<0.000000e+00> : vector<256x4xf32>
    %15 = tpu.matmul %12, %14, %cst_14 {dimension_numbers = #tpu.dot_dimension_numbers<[1], [0], [0], [1], [0, 0, 1, 1], [], []>} : vector<256x12xbf16>, vector<12x4xbf16>, vector<256x4xf32> -> vector<256x4xf32>
    %16 = arith.addf %10, %15 : vector<256x4xf32>
    %c0_15 = arith.constant 0 : index
    %c0_16 = arith.constant 0 : index
    %c0_17 = arith.constant 0 : index
    %17 = vector.load %arg4[%c0_15, %c0_16, %c0_17] : memref<1x288x12xbf16, #tpu.memory_space<vmem>>, vector<1x256x12xbf16>
    %18 = vector.shape_cast %17 : vector<1x256x12xbf16> to vector<256x12xbf16>
    %c0_18 = arith.constant 0 : index
    %c0_19 = arith.constant 0 : index
    %c0_20 = arith.constant 0 : index
    %19 = vector.load %arg5[%c0_18, %c0_19, %c0_20] : memref<3x12x4xbf16, #tpu.memory_space<vmem>>, vector<1x12x4xbf16>
    %20 = vector.shape_cast %19 : vector<1x12x4xbf16> to vector<12x4xbf16>
    %cst_21 = arith.constant dense<0.000000e+00> : vector<256x4xf32>
    %21 = tpu.matmul %18, %20, %cst_21 {dimension_numbers = #tpu.dot_dimension_numbers<[1], [0], [0], [1], [0, 0, 1, 1], [], []>} : vector<256x12xbf16>, vector<12x4xbf16>, vector<256x4xf32> -> vector<256x4xf32>
    %22 = arith.addf %16, %21 : vector<256x4xf32>
    %c0_22 = arith.constant 0 : index
    %c16_23 = arith.constant 16 : index
    %c0_24 = arith.constant 0 : index
    %23 = vector.load %arg4[%c0_22, %c16_23, %c0_24] : memref<1x288x12xbf16, #tpu.memory_space<vmem>>, vector<1x256x12xbf16>
    %24 = vector.shape_cast %23 : vector<1x256x12xbf16> to vector<256x12xbf16>
    %c1_25 = arith.constant 1 : index
    %c0_26 = arith.constant 0 : index
    %c0_27 = arith.constant 0 : index
    %25 = vector.load %arg5[%c1_25, %c0_26, %c0_27] : memref<3x12x4xbf16, #tpu.memory_space<vmem>>, vector<1x12x4xbf16>
    %26 = vector.shape_cast %25 : vector<1x12x4xbf16> to vector<12x4xbf16>
    %cst_28 = arith.constant dense<0.000000e+00> : vector<256x4xf32>
    %27 = tpu.matmul %24, %26, %cst_28 {dimension_numbers = #tpu.dot_dimension_numbers<[1], [0], [0], [1], [0, 0, 1, 1], [], []>} : vector<256x12xbf16>, vector<12x4xbf16>, vector<256x4xf32> -> vector<256x4xf32>
    %28 = arith.addf %22, %27 : vector<256x4xf32>
    %c0_29 = arith.constant 0 : index
    %c32_30 = arith.constant 32 : index
    %c0_31 = arith.constant 0 : index
    %29 = vector.load %arg4[%c0_29, %c32_30, %c0_31] : memref<1x288x12xbf16, #tpu.memory_space<vmem>>, vector<1x256x12xbf16>
    %30 = vector.shape_cast %29 : vector<1x256x12xbf16> to vector<256x12xbf16>
    %c2_32 = arith.constant 2 : index
    %c0_33 = arith.constant 0 : index
    %c0_34 = arith.constant 0 : index
    %31 = vector.load %arg5[%c2_32, %c0_33, %c0_34] : memref<3x12x4xbf16, #tpu.memory_space<vmem>>, vector<1x12x4xbf16>
    %32 = vector.shape_cast %31 : vector<1x12x4xbf16> to vector<12x4xbf16>
    %cst_35 = arith.constant dense<0.000000e+00> : vector<256x4xf32>
    %33 = tpu.matmul %30, %32, %cst_35 {dimension_numbers = #tpu.dot_dimension_numbers<[1], [0], [0], [1], [0, 0, 1, 1], [], []>} : vector<256x12xbf16>, vector<12x4xbf16>, vector<256x4xf32> -> vector<256x4xf32>
    %34 = arith.addf %28, %33 : vector<256x4xf32>
    %cst_36 = arith.constant dense<0.000000e+00> : vector<4xf32>
    %35 = vector.multi_reduction <add>, %34, %cst_36 [0] : vector<256x4xf32> to vector<4xf32>
    %36 = vector.shape_cast %35 : vector<4xf32> to vector<1x4xf32>
    %cst_37 = arith.constant 3.906250e-03 : f32
    %37 = vector.broadcast %cst_37 : f32 to vector<1x4xf32>
    %38 = arith.mulf %36, %37 : vector<1x4xf32>
    %39 = vector.broadcast %38 : vector<1x4xf32> to vector<256x4xf32>
    %40 = arith.subf %34, %39 : vector<256x4xf32>
    %41 = arith.mulf %40, %40 : vector<256x4xf32>
    %cst_38 = arith.constant dense<0.000000e+00> : vector<4xf32>
    %42 = vector.multi_reduction <add>, %41, %cst_38 [0] : vector<256x4xf32> to vector<4xf32>
    %43 = vector.shape_cast %42 : vector<4xf32> to vector<1x4xf32>
    %cst_39 = arith.constant 3.906250e-03 : f32
    %44 = vector.broadcast %cst_39 : f32 to vector<1x4xf32>
    %45 = arith.mulf %43, %44 : vector<1x4xf32>
    %cst_40 = arith.constant 9.99999974E-6 : f32
    %46 = vector.broadcast %cst_40 : f32 to vector<1x4xf32>
    %47 = arith.addf %45, %46 : vector<1x4xf32>
    %48 = math.rsqrt %47 : vector<1x4xf32>
    %49 = vector.broadcast %48 : vector<1x4xf32> to vector<256x4xf32>
    %50 = arith.mulf %40, %49 : vector<256x4xf32>
    %cst_41 = arith.constant 0.000000e+00 : f32
    %51 = vector.broadcast %cst_41 : f32 to vector<256x4xf32>
    %52 = arith.cmpf ogt, %50, %51 : vector<256x4xf32>
    %cst_42 = arith.constant 2.000000e-01 : f32
    %53 = vector.broadcast %cst_42 : f32 to vector<256x4xf32>
    %54 = arith.mulf %53, %50 : vector<256x4xf32>
    %55 = arith.select %52, %50, %54 : vector<256x4xi1>, vector<256x4xf32>
    %56 = arith.truncf %55 : vector<256x4xf32> to vector<256x4xbf16>
    %c0_43 = arith.constant 0 : index
    %c0_44 = arith.constant 0 : index
    %c0_45 = arith.constant 0 : index
    %57 = vector.load %arg6[%c0_43, %c0_44, %c0_45] : memref<1x256x4xbf16, #tpu.memory_space<vmem>>, vector<1x256x4xbf16>
    %58 = vector.shape_cast %57 : vector<1x256x4xbf16> to vector<256x4xbf16>
    %59 = vector.shape_cast %56 : vector<256x4xbf16> to vector<1x256x4xbf16>
    tpu.vector_store %arg6[%c0_43, %c0_44, %c0_45], %59 {strides = array<i32>} : memref<1x256x4xbf16, #tpu.memory_space<vmem>>, vector<1x256x4xbf16>,
    return
  }
  func.func @transform_0(%arg0: i32, %arg1: i32) -> (i32, i32, i32) {
    %c0_i32 = arith.constant 0 : i32
    %c0_i32_0 = arith.constant 0 : i32
    %c0_i32_1 = arith.constant 0 : i32
    return %arg0, %c0_i32, %c0_i32_0 : i32, i32, i32
  }
  func.func @transform_1(%arg0: i32, %arg1: i32) -> (i32, i32, i32) {
    %c0_i32 = arith.constant 0 : i32
    %c0_i32_0 = arith.constant 0 : i32
    %c0_i32_1 = arith.constant 0 : i32
    return %c0_i32, %c0_i32_0, %arg1 : i32, i32, i32
  }
  func.func @transform_2(%arg0: i32, %arg1: i32) -> (i32, i32, i32) {
    %c0_i32 = arith.constant 0 : i32
    %c0_i32_0 = arith.constant 0 : i32
    %c0_i32_1 = arith.constant 0 : i32
    return %arg0, %c0_i32, %c0_i32_0 : i32, i32, i32
  }
  func.func @transform_3(%arg0: i32, %arg1: i32) -> (i32, i32, i32) {
    %c0_i32 = arith.constant 0 : i32
    %c0_i32_0 = arith.constant 0 : i32
    %c0_i32_1 = arith.constant 0 : i32
    return %c0_i32, %c0_i32_0, %arg1 : i32, i32, i32
  }
  func.func @transform_4(%arg0: i32, %arg1: i32) -> (i32, i32, i32) {
    %c0_i32 = arith.constant 0 : i32
    %c0_i32_0 = arith.constant 0 : i32
    return %arg0, %c0_i32, %arg1 : i32, i32, i32
  }
}

module attributes {stable_mosaic.version = 11 : i64} {
  func.func @_fused_conv_kernel(%arg0: i32, %arg1: i32, %arg2: memref<1x288x12xbf16, #tpu.memory_space<vmem>>, %arg3: memref<3x12x2xbf16, #tpu.memory_space<vmem>>, %arg4: memref<1x2xf32, #tpu.memory_space<vmem>>, %arg5: memref<1x256x2xf32, #tpu.memory_space<vmem>>) attributes {dimension_semantics = [#tpu.dimension_semantics<parallel>, #tpu.dimension_semantics<parallel>], iteration_bounds = array<i64: 2, 1>, scalar_prefetch = 0 : i64, scratch_operands = 0 : i64, tpu.core_type = #tpu.core_type<tc>, window_params = [{transform_indices = @transform_0, window_bounds = array<i64: 1, 288, 12>}, {transform_indices = @transform_1, window_bounds = array<i64: 3, 12, 2>}, {transform_indices = @transform_2, window_bounds = array<i64: 1, 2>}, {transform_indices = @transform_3, window_bounds = array<i64: 1, 256, 2>}]} {
    %c0 = arith.constant 0 : index
    %c0_0 = arith.constant 0 : index
    %c0_1 = arith.constant 0 : index
    %0 = vector.load %arg2[%c0, %c0_0, %c0_1] : memref<1x288x12xbf16, #tpu.memory_space<vmem>>, vector<1x256x12xbf16>
    %1 = vector.shape_cast %0 : vector<1x256x12xbf16> to vector<256x12xbf16>
    %c0_2 = arith.constant 0 : index
    %c0_3 = arith.constant 0 : index
    %c0_4 = arith.constant 0 : index
    %2 = vector.load %arg3[%c0_2, %c0_3, %c0_4] : memref<3x12x2xbf16, #tpu.memory_space<vmem>>, vector<1x12x2xbf16>
    %3 = vector.shape_cast %2 : vector<1x12x2xbf16> to vector<12x2xbf16>
    %cst = arith.constant dense<0.000000e+00> : vector<256x2xf32>
    %4 = tpu.matmul %1, %3, %cst {dimension_numbers = #tpu.dot_dimension_numbers<[1], [0], [0], [1], [0, 0, 1, 1], [], []>} : vector<256x12xbf16>, vector<12x2xbf16>, vector<256x2xf32> -> vector<256x2xf32>
    %c0_5 = arith.constant 0 : index
    %c16 = arith.constant 16 : index
    %c0_6 = arith.constant 0 : index
    %5 = vector.load %arg2[%c0_5, %c16, %c0_6] : memref<1x288x12xbf16, #tpu.memory_space<vmem>>, vector<1x256x12xbf16>
    %6 = vector.shape_cast %5 : vector<1x256x12xbf16> to vector<256x12xbf16>
    %c1 = arith.constant 1 : index
    %c0_7 = arith.constant 0 : index
    %c0_8 = arith.constant 0 : index
    %7 = vector.load %arg3[%c1, %c0_7, %c0_8] : memref<3x12x2xbf16, #tpu.memory_space<vmem>>, vector<1x12x2xbf16>
    %8 = vector.shape_cast %7 : vector<1x12x2xbf16> to vector<12x2xbf16>
    %cst_9 = arith.constant dense<0.000000e+00> : vector<256x2xf32>
    %9 = tpu.matmul %6, %8, %cst_9 {dimension_numbers = #tpu.dot_dimension_numbers<[1], [0], [0], [1], [0, 0, 1, 1], [], []>} : vector<256x12xbf16>, vector<12x2xbf16>, vector<256x2xf32> -> vector<256x2xf32>
    %10 = arith.addf %4, %9 : vector<256x2xf32>
    %c0_10 = arith.constant 0 : index
    %c32 = arith.constant 32 : index
    %c0_11 = arith.constant 0 : index
    %11 = vector.load %arg2[%c0_10, %c32, %c0_11] : memref<1x288x12xbf16, #tpu.memory_space<vmem>>, vector<1x256x12xbf16>
    %12 = vector.shape_cast %11 : vector<1x256x12xbf16> to vector<256x12xbf16>
    %c2 = arith.constant 2 : index
    %c0_12 = arith.constant 0 : index
    %c0_13 = arith.constant 0 : index
    %13 = vector.load %arg3[%c2, %c0_12, %c0_13] : memref<3x12x2xbf16, #tpu.memory_space<vmem>>, vector<1x12x2xbf16>
    %14 = vector.shape_cast %13 : vector<1x12x2xbf16> to vector<12x2xbf16>
    %cst_14 = arith.constant dense<0.000000e+00> : vector<256x2xf32>
    %15 = tpu.matmul %12, %14, %cst_14 {dimension_numbers = #tpu.dot_dimension_numbers<[1], [0], [0], [1], [0, 0, 1, 1], [], []>} : vector<256x12xbf16>, vector<12x2xbf16>, vector<256x2xf32> -> vector<256x2xf32>
    %16 = arith.addf %10, %15 : vector<256x2xf32>
    %c0_15 = arith.constant 0 : index
    %c0_16 = arith.constant 0 : index
    %17 = vector.load %arg4[%c0_15, %c0_16] : memref<1x2xf32, #tpu.memory_space<vmem>>, vector<1x2xf32>
    %18 = vector.broadcast %17 : vector<1x2xf32> to vector<256x2xf32>
    %19 = arith.addf %16, %18 : vector<256x2xf32>
    %c0_17 = arith.constant 0 : index
    %c0_18 = arith.constant 0 : index
    %c0_19 = arith.constant 0 : index
    %20 = vector.load %arg5[%c0_17, %c0_18, %c0_19] : memref<1x256x2xf32, #tpu.memory_space<vmem>>, vector<1x256x2xf32>
    %21 = vector.shape_cast %20 : vector<1x256x2xf32> to vector<256x2xf32>
    %22 = vector.shape_cast %19 : vector<256x2xf32> to vector<1x256x2xf32>
    tpu.vector_store %arg5[%c0_17, %c0_18, %c0_19], %22 {strides = array<i32>} : memref<1x256x2xf32, #tpu.memory_space<vmem>>, vector<1x256x2xf32>,
    return
  }
  func.func @transform_0(%arg0: i32, %arg1: i32) -> (i32, i32, i32) {
    %c0_i32 = arith.constant 0 : i32
    %c0_i32_0 = arith.constant 0 : i32
    %c0_i32_1 = arith.constant 0 : i32
    return %arg0, %c0_i32, %c0_i32_0 : i32, i32, i32
  }
  func.func @transform_1(%arg0: i32, %arg1: i32) -> (i32, i32, i32) {
    %c0_i32 = arith.constant 0 : i32
    %c0_i32_0 = arith.constant 0 : i32
    %c0_i32_1 = arith.constant 0 : i32
    return %c0_i32, %c0_i32_0, %arg1 : i32, i32, i32
  }
  func.func @transform_2(%arg0: i32, %arg1: i32) -> (i32, i32) {
    %c0_i32 = arith.constant 0 : i32
    %c0_i32_0 = arith.constant 0 : i32
    return %c0_i32, %arg1 : i32, i32
  }
  func.func @transform_3(%arg0: i32, %arg1: i32) -> (i32, i32, i32) {
    %c0_i32 = arith.constant 0 : i32
    %c0_i32_0 = arith.constant 0 : i32
    return %arg0, %c0_i32, %arg1 : i32, i32, i32
  }
}

</mosaic_0001>

<bundles_post_ra>
// kernel: recnet_forward.17
= control target key start
LH: loop header
LB: loop body
LE: loop exit
PB: predicated region body
PF: predicated region fallthrough
CT: control target
= control target key end

     0   :  { %s954_s9 = smov 0   ;;  %s956_s10 = smov 0   ;;  %s1066_s0 = inlined_call_operand.vmem [shape: bf16[2,80,12], index: 0, kind: input, shape index: {}]   ;;  %s1067_s1 = inlined_call_operand.vmem [shape: bf16[3,12,8], index: 1, kind: input, shape index: {}]   ;;  %s1068_s2 = inlined_call_operand.vmem [shape: bf16[2,64,8], index: 2, kind: output, shape index: {}]  }
   0x1   :  { %s958_s11 = smov 0  }
   0x2 LB: > { %s24_s12 = sadd.s32 1, %s933_s10  ;;  %p752_p0 = scmp.ge.s32.totalorder %s937_s11, 1  ;;  %s937_s11 = sphi %s958_s11, %s12_s11   ;;  %s933_s10 = sphi %s956_s10, %s1070_s10   ;;  %s929_s9 = sphi %s954_s9, %s1069_s9  }
   0x3   : > { %p26_p1 = scmp.ge.s32.totalorder %s24_s12, 2  ;;  %p135_p2 = scmp.lt.s32.totalorder %s937_s11, 3 }
   0x5   : > { %s1072_s12 = smov (%p26_p1, %s24_s12), 0  ;;  %p136_p3 = pnand %p752_p0, %p135_p2 }
   0x6   : > { %v898_v0 = vld [vmem:[%s1067_s1 + $0x8] sm:$0x3f] (!%p136_p3)   ;;  %vm234_vm0 = vcmask (!%p136_p3), 1045504   ;;  %p164_p4 = scmp.lt.s32.totalorder (!%p136_p3), %s929_s9, 1  ;;  %v899_v1 = vld [vmem:[%s1067_s1] sm:$0x3f] (!%p136_p3)  }
   0x7   : > { %139 = sbr.rel (%p136_p3) target bundleno = 341 (0x155), region = 28  ;;  %869 = vmatprep.subr.msk.bf16.mxu1 (!%p136_p3), %vm234_vm0, %v898_v0  ;;  %v236_v2 = vsel (!%p136_p3), %vm234_vm0, %v898_v0, 0  ;;  %v904_v3 = vld [vmem:[%s1067_s1 + $0x10] sm:$0x3f] (!%p136_p3)   ;;  %870 = vmatprep.subr.msk.bf16.mxu0 (!%p136_p3), %vm234_vm0, %v899_v1  ;;  %v327_v4 = vsel (!%p136_p3), %vm234_vm0, %v899_v1, 0  ;;  %vm221_vm1 = vcmask (!%p136_p3), 97280  }
   0x8   : > { %822 = vmatpush3.bf16.msra.mxu1 (!%p136_p3), %v236_v2  ;;  %832 = vmatpush3.bf16.msra.mxu0 (!%p136_p3), %v327_v4  ;;  %v443_v16 = vsel (!%p136_p3), %vm234_vm0, %v904_v3, 0  ;;  %vm518_vm2 = vcmask (!%p136_p3), 64512   ;;  %vm645_vm3 = vcmask (!%p136_p3), 60416  }
   0x9   : > { %871 = vmatprep.subr.msk.bf16.mxu1 (!%p136_p3), %vm234_vm0, %v899_v1  ;;  %872 = vmatprep.subr.msk.bf16.mxu0 (!%p136_p3), %vm234_vm0, %v904_v3 }
   0xe   : > { %s1074_s9 = smov (!%p164_p4, %s929_s9), 1 }
   0xf   : > { %s873_s19 = smul.u32 40, %s1074_s9  ;;  %s797_s23 = sshll.u32 %s1074_s9, 5 }
  0x10   : > { %s180_s26 = scalar_lea.vmem %s1068_s2, %s797_s23 }
  0x11   : > { %s993_s22 = scalar_lea.vmem %s1066_s0, %s873_s19 }
  0x12   : > { %v183_v5 = vld [vmem:[%s993_s22 + $0x4] sm:$0xf]  ;;  %v184_v6 = vld [vmem:[%s993_s22 + $0x8] sm:$0xf]  ;;  %v185_v7 = vld [vmem:[%s993_s22 + $0xc] sm:$0xf] }
  0x13   : > { %v186_v8 = vld [vmem:[%s993_s22 + $0x10] sm:$0xf]  ;;  %v758_v9 = vcombine.low %v183_v5, %v184_v6  ;;  %v768_v10 = vcombine.low %v184_v6, %v185_v7  ;;  %v182_v11 = vld [vmem:[%s993_s22] sm:$0xf]  ;;  %v187_v12 = vld [vmem:[%s993_s22 + $0x14] sm:$0xf] }
  0x14   : > { %v759_v13 = vcombine.low %v185_v7, %v186_v8  ;;  %v767_v14 = vcombine.low %v182_v11, %v183_v5  ;;  %v188_v15 = vld [vmem:[%s993_s22 + $0x18] sm:$0xf]  ;;  %v908_v18 = vld [vmem:[%s993_s22 + $0x8] sm:$0xff]   ;;  %v189_v19 = vld [vmem:[%s993_s22 + $0x1c] sm:$0xf]  ;;  %v769_v22 = vcombine.low %v186_v8, %v187_v12 }
  0x15   : > { %823 = vmatprep.mubr.msk.bf16.mxu1 %vm221_vm1, %v758_v9  ;;  %v760_v17 = vcombine.low %v187_v12, %v188_v15  ;;  %v192_v20 = vld [vmem:[%s993_s22 + $0x20] sm:$0xf]  ;;  %v909_v23 = vld [vmem:[%s993_s22 + $0x10] sm:$0xff]   ;;  %v911_v24 = vld [vmem:[%s993_s22 + $0x18] sm:$0xff]   ;;  %v770_v25 = vcombine.low %v188_v15, %v189_v19 }
  0x16   : > { %833 = vmatprep.mubr.msk.bf16.mxu0 %vm221_vm1, %v767_v14  ;;  %824 = vmatmul.mubr.msk.bf16.vlgmr.msra.gmra.mrb[0].mxu1 %vm221_vm1, %v759_v13  ;;  %v761_v21 = vcombine.low %v189_v19, %v192_v20  ;;  %v912_v26 = vld [vmem:[%s993_s22 + $0x20] sm:$0xff]  }
  0x17   : > { %852 = vmatpush3.bf16.msra.mxu1 %v327_v4  ;;  %834 = vmatmul.mubr.msk.bf16.vlgmr.msra.gmra.mrb[0].mxu0 %vm221_vm1, %v768_v10 }
  0x18   : > { %842 = vmatpush3.bf16.msra.mxu0 %v443_v16  ;;  %827 = vmatprep.mubr.msk.bf16.mxu1 %vm221_vm1, %v760_v17 }
  0x19   : > { %843 = vmatprep.mubr.msk.bf16.mxu0 %vm221_vm1, %v908_v18 }
  0x1e   : > { %828 = vmatmul.mubr.msk.bf16.gmra.mrb[4].mxu1 %vm221_vm1, %v761_v21 }
  0x1f   : > { %837 = vmatprep.mubr.msk.bf16.mxu1 %vm221_vm1, %v769_v22 }
  0x23   : > { %844 = vmatmul.mubr.msk.bf16.vlgmr.msra.gmra.mrb[0].mxu0 %vm221_vm1, %v909_v23 }
  0x24   : > { %847 = vmatprep.mubr.msk.bf16.mxu0 %vm221_vm1, %v911_v24 }
  0x2a   : > { %838 = vmatmul.mubr.msk.bf16.vlgmr.msra.gmra.mrb[4].mxu1 %vm221_vm1, %v770_v25 }
  0x2b   : > { %848 = vmatmul.mubr.msk.bf16.gmra.mrb[4].mxu0 %vm221_vm1, %v912_v26 }
  0xe9   : > { %v825_v27 = vpop.f32.mrb[0].mxu1 }
  0xea   : > { %v272_v28 = vpop.f32.mrb[1].mxu1 }
  0xeb   : > { %v826_v29 = vpop.f32.mrb[2].mxu1 }
  0xec   : > { %v275_v30 = vpop.f32.mrb[3].mxu1 }
  0xf6   : > { %v845_v31 = vpop.f32.mrb[0].mxu0 }
  0xf7   : > { %v853_v32 = vadd.f32 %v845_v31, %v825_v27  ;;  %v479_v33 = vpop.f32.mrb[1].mxu0 }
  0xf8   : > { %v854_v34 = vadd.f32 %v479_v33, %v272_v28  ;;  %v846_v35 = vpop.f32.mrb[2].mxu0 }
  0xf9   : > { %v855_v36 = vadd.f32 %v846_v35, %v826_v29  ;;  %v482_v37 = vpop.f32.mrb[3].mxu0  ;;  %v522_v43 = vsel %vm518_vm2, %v853_v32, 0.0 }
  0xfa   : > { %v856_v38 = vadd.f32 %v482_v37, %v275_v30  ;;  %v519_v39 = vsel %vm518_vm2, %v854_v34, 0.0 }
  0xfb   : > { %v524_v50 = vsel %vm518_vm2, %v855_v36, 0.0 }
  0xfc   : > { %v520_v40 = vsel %vm518_vm2, %v856_v38, 0.0 }
  0xfd   : > { %v521_v41 = vadd.f32 %v520_v40, %v519_v39  ;;  %v839_v42 = vpop.f32.mrb[4].mxu1 }
  0xfe   : > { %v849_v44 = vpop.f32.mrb[4].mxu0  ;;  %v379_v45 = vpop.f32.mrb[5].mxu1 }
  0xff   : > { %v523_v46 = vadd.f32 %v522_v43, %v521_v41  ;;  %v857_v47 = vadd.f32 %v849_v44, %v839_v42  ;;  %v495_v48 = vpop.f32.mrb[5].mxu0  ;;  %v840_v49 = vpop.f32.mrb[6].mxu1 }
 0x100   : > { %v858_v51 = vadd.f32 %v495_v48, %v379_v45  ;;  %v850_v52 = vpop.f32.mrb[6].mxu0  ;;  %v382_v53 = vpop.f32.mrb[7].mxu1 }
 0x101   : > { %v525_v54 = vadd.f32 %v524_v50, %v523_v46  ;;  %v859_v55 = vadd.f32 %v850_v52, %v840_v49  ;;  %v498_v56 = vpop.f32.mrb[7].mxu0  ;;  %v530_v62 = vsel %vm518_vm2, %v857_v47, 0.0 }
 0x102   : > { %v526_v57 = vsel %vm518_vm2, %v858_v51, 0.0  ;;  %v860_v58 = vadd.f32 %v498_v56, %v382_v53 }
 0x103   : > { %v527_v59 = vadd.f32 %v526_v57, %v525_v54  ;;  %v532_v0 = vsel %vm518_vm2, %v859_v55, 0.0 }
 0x104   : > { %v528_v60 = vsel %vm518_vm2, %v860_v58, 0.0 }
 0x105   : > { %v529_v61 = vadd.f32 %v528_v60, %v527_v59 }
 0x107   : > { %v531_v63 = vadd.f32 %v530_v62, %v529_v61 }
 0x109   : > { %v533_v1 = vadd.f32 %v532_v0, %v531_v63 }
 0x10b   : > { %v534_v2 = vrot.slane %v533_v1, 4 }
 0x10d   : > { %v535_v3 = vadd.f32 %v534_v2, %v533_v1 }
 0x10f   : > { %v536_v4 = vrot.slane %v535_v3, 2 }
 0x111   : > { %v537_v5 = vadd.f32 %v536_v4, %v535_v3 }
 0x113   : > { %v538_v6 = vrot.slane %v537_v5, 1 }
 0x115   : > { %v539_v7 = vadd.f32 %v538_v6, %v537_v5 }
 0x117   : > { %v540_v8 = vmul.f32 0.015625, %v539_v7 }
 0x119   : > { %v541_v9 = vsub.f32 %v854_v34, %v540_v8  ;;  %v542_v10 = vsub.f32 %v856_v38, %v540_v8  ;;  %v543_v11 = vsub.f32 %v853_v32, %v540_v8  ;;  %v544_v12 = vsub.f32 %v855_v36, %v540_v8 }
 0x11a   : > { %v545_v13 = vsub.f32 %v858_v51, %v540_v8  ;;  %v546_v14 = vsub.f32 %v860_v58, %v540_v8  ;;  %v547_v15 = vsub.f32 %v857_v47, %v540_v8  ;;  %v548_v16 = vsub.f32 %v859_v55, %v540_v8 }
 0x11b   : > { %v549_v17 = vmul.f32 %v541_v9, %v541_v9  ;;  %v550_v18 = vmul.f32 %v542_v10, %v542_v10  ;;  %v551_v19 = vmul.f32 %v543_v11, %v543_v11  ;;  %v552_v20 = vmul.f32 %v544_v12, %v544_v12 }
 0x11c   : > { %v553_v24 = vmul.f32 %v545_v13, %v545_v13  ;;  %v554_v27 = vmul.f32 %v546_v14, %v546_v14  ;;  %v555_v30 = vmul.f32 %v547_v15, %v547_v15  ;;  %v556_v33 = vmul.f32 %v548_v16, %v548_v16 }
 0x11d   : > { %v557_v21 = vsel %vm518_vm2, %v549_v17, 0.0  ;;  %v558_v22 = vsel %vm518_vm2, %v550_v18, 0.0  ;;  %v560_v25 = vsel %vm518_vm2, %v551_v19, 0.0  ;;  %v562_v28 = vsel %vm518_vm2, %v552_v20, 0.0 }
 0x11e   : > { %v559_v23 = vadd.f32 %v558_v22, %v557_v21  ;;  %v564_v31 = vsel %vm518_vm2, %v553_v24, 0.0  ;;  %v566_v34 = vsel %vm518_vm2, %v554_v27, 0.0  ;;  %v568_v36 = vsel %vm518_vm2, %v555_v30, 0.0 }
 0x11f   : > { %v570_v38 = vsel %vm518_vm2, %v556_v33, 0.0 }
 0x120   : > { %v561_v26 = vadd.f32 %v560_v25, %v559_v23 }
 0x122   : > { %v563_v29 = vadd.f32 %v562_v28, %v561_v26 }
 0x124   : > { %v565_v32 = vadd.f32 %v564_v31, %v563_v29 }
 0x126   : > { %v567_v35 = vadd.f32 %v566_v34, %v565_v32 }
 0x128   : > { %v569_v37 = vadd.f32 %v568_v36, %v567_v35 }
 0x12a   : > { %v571_v39 = vadd.f32 %v570_v38, %v569_v37 }
 0x12c   : > { %v572_v40 = vrot.slane %v571_v39, 4 }
 0x12e   : > { %v573_v41 = vadd.f32 %v572_v40, %v571_v39 }
 0x130   : > { %v574_v42 = vrot.slane %v573_v41, 2 }
 0x132   : > { %v575_v43 = vadd.f32 %v574_v42, %v573_v41 }
 0x134   : > { %v576_v44 = vrot.slane %v575_v43, 1 }
 0x136   : > { %v577_v45 = vadd.f32 %v576_v44, %v575_v43 }
 0x138   : > { %v578_v46 = vmul.f32 0.015625, %v577_v45 }
 0x13a   : > { %v579_v47 = vadd.f32 1e-05, %v578_v46 }
 0x13c   : > { %913 = vrsqrt.f32 %v579_v47 }
 0x146   : > { %v914_v48 = vpop.eup %913 }
 0x147   : > { %v581_v49 = vmul.f32 %v914_v48, %v541_v9  ;;  %v582_v50 = vmul.f32 %v914_v48, %v542_v10  ;;  %v583_v51 = vmul.f32 %v914_v48, %v543_v11  ;;  %v584_v52 = vmul.f32 %v914_v48, %v544_v12 }
 0x148   : > { %v585_v53 = vmul.f32 %v914_v48, %v545_v13  ;;  %v586_v54 = vmul.f32 %v914_v48, %v546_v14  ;;  %v587_v55 = vmul.f32 %v914_v48, %v547_v15  ;;  %v588_v56 = vmul.f32 %v914_v48, %v548_v16 }
 0x149   : > { %vm589_vm4 = vcmp.gt.f32.partialorder %v581_v49, 0.0  ;;  %vm590_vm5 = vcmp.gt.f32.partialorder %v582_v50, 0.0  ;;  %vm591_vm6 = vcmp.gt.f32.partialorder %v583_v51, 0.0  ;;  %vm592_vm7 = vcmp.gt.f32.partialorder %v584_v52, 0.0 }
 0x14a   : > { %vm593_vm8 = vcmp.gt.f32.partialorder %v585_v53, 0.0  ;;  %vm594_vm9 = vcmp.gt.f32.partialorder %v586_v54, 0.0  ;;  %vm595_vm10 = vcmp.gt.f32.partialorder %v587_v55, 0.0  ;;  %vm596_vm11 = vcmp.gt.f32.partialorder %v588_v56, 0.0 }
 0x14b   : > { %v597_v57 = vmul.f32 0.2, %v581_v49  ;;  %v598_v58 = vmul.f32 0.2, %v582_v50  ;;  %v599_v59 = vmul.f32 0.2, %v583_v51 }
 0x14c   : > { %v600_v60 = vmul.f32 0.2, %v584_v52  ;;  %v601_v61 = vmul.f32 0.2, %v585_v53  ;;  %v602_v62 = vmul.f32 0.2, %v586_v54 }
 0x14d   : > { %v603_v63 = vmul.f32 0.2, %v587_v55  ;;  %v604_v0 = vmul.f32 0.2, %v588_v56  ;;  %v605_v1 = vsel %vm589_vm4, %v581_v49, %v597_v57  ;;  %v606_v2 = vsel %vm590_vm5, %v582_v50, %v598_v58 }
 0x14e   : > { %v607_v3 = vsel %vm591_vm6, %v583_v51, %v599_v59  ;;  %v608_v4 = vsel %vm592_vm7, %v584_v52, %v600_v60  ;;  %v609_v5 = vsel %vm593_vm8, %v585_v53, %v601_v61  ;;  %v610_v6 = vsel %vm594_vm9, %v586_v54, %v602_v62 }
 0x14f   : > { %v611_v7 = vsel %vm595_vm10, %v587_v55, %v603_v63  ;;  %v612_v8 = vsel %vm596_vm11, %v588_v56, %v604_v0  ;;  %v798_v9 = vpack.c.bf16 %v605_v1, %v605_v1  ;;  %v799_v10 = vpack.c.bf16 %v606_v2, %v606_v2 }
 0x150   : > { %v800_v11 = vpack.c.bf16 %v607_v3, %v607_v3  ;;  %v801_v12 = vpack.c.bf16 %v608_v4, %v608_v4  ;;  %v802_v13 = vpack.c.bf16 %v609_v5, %v609_v5  ;;  %v803_v14 = vpack.c.bf16 %v610_v6, %v610_v6 }
 0x151   : > { %v804_v15 = vpack.c.bf16 %v611_v7, %v611_v7  ;;  %v805_v16 = vpack.c.bf16 %v612_v8, %v612_v8  ;;  %646 = vst.msk [vmem:[%s180_s26] sm:$0xf] %vm645_vm3, %v798_v9  ;;  %647 = vst.msk [vmem:[%s180_s26 + $0x4] sm:$0xf] %vm645_vm3, %v799_v10 }
 0x152   : > { %648 = vst.msk [vmem:[%s180_s26 + $0x8] sm:$0xf] %vm645_vm3, %v800_v11  ;;  %649 = vst.msk [vmem:[%s180_s26 + $0xc] sm:$0xf] %vm645_vm3, %v801_v12 }
 0x153   : > { %650 = vst.msk [vmem:[%s180_s26 + $0x10] sm:$0xf] %vm645_vm3, %v802_v13  ;;  %651 = vst.msk [vmem:[%s180_s26 + $0x14] sm:$0xf] %vm645_vm3, %v803_v14 }
 0x154   : > { %652 = vst.msk [vmem:[%s180_s26 + $0x18] sm:$0xf] %vm645_vm3, %v804_v15  ;;  %653 = vst.msk [vmem:[%s180_s26 + $0x1c] sm:$0xf] %vm645_vm3, %v805_v16 }
 0x155 PF: > { %s12_s11 = sadd.s32 1, %s937_s11   ;;  %s1069_s9 = smov %s933_s10 }
 0x156   : > { %p9_p5 = scmp.ge.s32.totalorder %s12_s11, 4   ;;  %s1070_s10 = smov %s1072_s12 }
 0x158   :  { %11 = sbr.rel (!%p9_p5) target bundleno = 2 (0x2), region = 63 }

// kernel: recnet_forward.16
= control target key start
LH: loop header
LB: loop body
LE: loop exit
PB: predicated region body
PF: predicated region fallthrough
CT: control target
= control target key end

     0   :  { %s2113_s9 = smov 0   ;;  %s2115_s10 = smov 0   ;;  %s2923_s0 = inlined_call_operand.vmem [shape: bf16[2,288,6], index: 0, kind: input, shape index: {}]   ;;  %s2924_s1 = inlined_call_operand.vmem [shape: bf16[3,6,4], index: 1, kind: input, shape index: {}]   ;;  %s2925_s2 = inlined_call_operand.vmem [shape: bf16[2,256,4], index: 2, kind: output, shape index: {}]  }
   0x1   :  { %s2117_s11 = smov 0  }
   0x2 LB: > { %s24_s12 = sadd.s32 1, %s2092_s10  ;;  %p1637_p0 = scmp.ge.s32.totalorder %s2096_s11, 1  ;;  %s2096_s11 = sphi %s2117_s11, %s12_s11   ;;  %s2092_s10 = sphi %s2115_s10, %s2941_s10   ;;  %s2088_s9 = sphi %s2113_s9, %s2940_s9  }
   0x3   : > { %p26_p1 = scmp.ge.s32.totalorder %s24_s12, 2  ;;  %p135_p2 = scmp.lt.s32.totalorder %s2096_s11, 3 }
   0x5   : > { %s2943_s12 = smov (%p26_p1, %s24_s12), 0  ;;  %p136_p3 = pnand %p1637_p0, %p135_p2 }
   0x6   : > { %v1641_v0 = vld [vmem:[%s2924_s1 + $0x4] sm:$0x7] (!%p136_p3)  ;;  %vm348_vm0 = vcmask (!%p136_p3), 1042432   ;;  %v214_v1 = vld [vmem:[%s2924_s1] sm:$0x7] (!%p136_p3)  ;;  %p164_p4 = scmp.lt.s32.totalorder (!%p136_p3), %s2088_s9, 1 }
   0x7   : > { %139 = sbr.rel (%p136_p3) target bundleno = 496 (0x1f0), region = 28  ;;  %2010 = vmatprep.subr.msk.bf16.mxu1 (!%p136_p3), %vm348_vm0, %v1641_v0  ;;  %2011 = vmatprep.subr.msk.bf16.mxu0 (!%p136_p3), %vm348_vm0, %v214_v1  ;;  %v350_v2 = vsel (!%p136_p3), %vm348_vm0, %v1641_v0, 0  ;;  %v522_v3 = vsel (!%p136_p3), %vm348_vm0, %v214_v1, 0  ;;  %v1691_v4 = vld [vmem:[%s2924_s1 + $0x8] sm:$0x7] (!%p136_p3)  ;;  %vm299_vm1 = vcmask (!%p136_p3), 48128  }
   0x8   : > { %1843 = vmatpush3.bf16.msra.mxu1 (!%p136_p3), %v350_v2  ;;  %1877 = vmatpush3.bf16.msra.mxu0 (!%p136_p3), %v522_v3  ;;  %v848_v8 = vsel (!%p136_p3), %vm348_vm0, %v1691_v4, 0  ;;  %vm1043_vm2 = vcmask (!%p136_p3), 31744  }
   0x9   : > { %2012 = vmatprep.subr.msk.bf16.mxu1 (!%p136_p3), %vm348_vm0, %v214_v1  ;;  %2013 = vmatprep.subr.msk.bf16.mxu0 (!%p136_p3), %vm348_vm0, %v1691_v4 }
   0xe   : > { %s2945_s9 = smov (!%p164_p4, %s2088_s9), 1 }
   0xf   : > { %s2014_s19 = smul.u32 144, %s2945_s9  ;;  %s1758_s23 = sshll.u32 %s2945_s9, 7 }
  0x10   : > { %s2782_s26 = scalar_lea.vmem %s2925_s2, %s1758_s23 }
  0x11   : > { %s2152_s22 = scalar_lea.vmem %s2923_s0, %s2014_s19 }
  0x12   : > { %v2039_v5 = vld [vmem:[%s2152_s22 + $0x8] sm:$0xff]   ;;  %v2040_v6 = vld [vmem:[%s2152_s22] sm:$0xff]   ;;  %v2041_v7 = vld [vmem:[%s2152_s22 + $0x10] sm:$0xff]  }
  0x13   : > { %1844 = vmatprep.mubr.msk.bf16.mxu1 %vm299_vm1, %v2039_v5  ;;  %1878 = vmatprep.mubr.msk.bf16.mxu0 %vm299_vm1, %v2040_v6  ;;  %v2042_v9 = vld [vmem:[%s2152_s22 + $0x18] sm:$0xff]   ;;  %v2043_v10 = vld [vmem:[%s2152_s22 + $0x20] sm:$0xff]   ;;  %v2044_v11 = vld [vmem:[%s2152_s22 + $0x28] sm:$0xff]  }
  0x14   : > { %1845 = vmatmul.mubr.msk.bf16.vlgmr.msra.gmra.mrb[0].mxu1 %vm299_vm1, %v2041_v7  ;;  %1879 = vmatmul.mubr.msk.bf16.vlgmr.msra.gmra.mrb[0].mxu0 %vm299_vm1, %v2039_v5  ;;  %v2045_v12 = vld [vmem:[%s2152_s22 + $0x30] sm:$0xff]   ;;  %v2046_v13 = vld [vmem:[%s2152_s22 + $0x38] sm:$0xff]   ;;  %v2047_v14 = vld [vmem:[%s2152_s22 + $0x40] sm:$0xff]  }
  0x15   : > { %1945 = vmatpush3.bf16.msra.mxu1 %v522_v3  ;;  %1911 = vmatpush3.bf16.msra.mxu0 %v848_v8  ;;  %v2048_v15 = vld [vmem:[%s2152_s22 + $0x48] sm:$0xff]   ;;  %v2049_v16 = vld [vmem:[%s2152_s22 + $0x10] sm:$0xff]   ;;  %v2051_v18 = vld [vmem:[%s2152_s22 + $0x18] sm:$0xff]  }
  0x16   : > { %1848 = vmatprep.mubr.msk.bf16.mxu1 %vm299_vm1, %v2042_v9  ;;  %1882 = vmatprep.mubr.msk.bf16.mxu0 %vm299_vm1, %v2041_v7  ;;  %v2050_v17 = vld [vmem:[%s2152_s22 + $0x50] sm:$0xff]   ;;  %v2052_v19 = vld [vmem:[%s2152_s22 + $0x58] sm:$0xff]   ;;  %v2053_v20 = vld [vmem:[%s2152_s22 + $0x20] sm:$0xff]  }
  0x17   : > { %v2054_v21 = vld [vmem:[%s2152_s22 + $0x60] sm:$0xff]   ;;  %v2055_v22 = vld [vmem:[%s2152_s22 + $0x28] sm:$0xff]   ;;  %v2057_v24 = vld [vmem:[%s2152_s22 + $0x30] sm:$0xff]  }
  0x18   : > { %v2056_v23 = vld [vmem:[%s2152_s22 + $0x68] sm:$0xff]   ;;  %v2058_v25 = vld [vmem:[%s2152_s22 + $0x70] sm:$0xff]   ;;  %v2059_v26 = vld [vmem:[%s2152_s22 + $0x38] sm:$0xff]  }
  0x19   : > { %v2060_v27 = vld [vmem:[%s2152_s22 + $0x78] sm:$0xff]   ;;  %v2061_v28 = vld [vmem:[%s2152_s22 + $0x40] sm:$0xff]   ;;  %v2063_v30 = vld [vmem:[%s2152_s22 + $0x48] sm:$0xff]  }
  0x1a   : > { %v2062_v29 = vld [vmem:[%s2152_s22 + $0x80] sm:$0xff]   ;;  %v2064_v31 = vld [vmem:[%s2152_s22 + $0x50] sm:$0xff]   ;;  %v2065_v32 = vld [vmem:[%s2152_s22 + $0x58] sm:$0xff]  }
  0x1b   : > { %v2066_v33 = vld [vmem:[%s2152_s22 + $0x60] sm:$0xff]   ;;  %v2067_v34 = vld [vmem:[%s2152_s22 + $0x68] sm:$0xff]   ;;  %v2068_v35 = vld [vmem:[%s2152_s22 + $0x70] sm:$0xff]  }
  0x1c   : > { %1849 = vmatmul.mubr.msk.bf16.gmra.mrb[4].mxu1 %vm299_vm1, %v2043_v10  ;;  %1883 = vmatmul.mubr.msk.bf16.gmra.mrb[4].mxu0 %vm299_vm1, %v2042_v9  ;;  %v2069_v36 = vld [vmem:[%s2152_s22 + $0x78] sm:$0xff]   ;;  %v2070_v37 = vld [vmem:[%s2152_s22 + $0x80] sm:$0xff]   ;;  %v2071_v38 = vld [vmem:[%s2152_s22 + $0x88] sm:$0xff]  }
  0x1d   : > { %1852 = vmatprep.mubr.msk.bf16.mxu1 %vm299_vm1, %v2044_v11  ;;  %1886 = vmatprep.mubr.msk.bf16.mxu0 %vm299_vm1, %v2043_v10 }
  0x24   : > { %1853 = vmatmul.mubr.msk.bf16.gmra.mrb[8].mxu1 %vm299_vm1, %v2045_v12  ;;  %1887 = vmatmul.mubr.msk.bf16.gmra.mrb[8].mxu0 %vm299_vm1, %v2044_v11 }
  0x25   : > { %1856 = vmatprep.mubr.msk.bf16.mxu1 %vm299_vm1, %v2046_v13  ;;  %1890 = vmatprep.mubr.msk.bf16.mxu0 %vm299_vm1, %v2045_v12 }
  0x2c   : > { %1857 = vmatmul.mubr.msk.bf16.gmra.mrb[12].mxu1 %vm299_vm1, %v2047_v14  ;;  %1891 = vmatmul.mubr.msk.bf16.gmra.mrb[12].mxu0 %vm299_vm1, %v2046_v13 }
  0x2d   : > { %1860 = vmatprep.mubr.msk.bf16.mxu1 %vm299_vm1, %v2048_v15  ;;  %1912 = vmatprep.mubr.msk.bf16.mxu0 %vm299_vm1, %v2049_v16 }
  0x34   : > { %1861 = vmatmul.mubr.msk.bf16.gmra.mrb[16].mxu1 %vm299_vm1, %v2050_v17  ;;  %1913 = vmatmul.mubr.msk.bf16.vlgmr.msra.gmra.mrb[0].mxu0 %vm299_vm1, %v2051_v18 }
  0x35   : > { %1864 = vmatprep.mubr.msk.bf16.mxu1 %vm299_vm1, %v2052_v19  ;;  %1916 = vmatprep.mubr.msk.bf16.mxu0 %vm299_vm1, %v2053_v20 }
  0x3c   : > { %1865 = vmatmul.mubr.msk.bf16.gmra.mrb[20].mxu1 %vm299_vm1, %v2054_v21  ;;  %1917 = vmatmul.mubr.msk.bf16.gmra.mrb[4].mxu0 %vm299_vm1, %v2055_v22 }
  0x3d   : > { %1868 = vmatprep.mubr.msk.bf16.mxu1 %vm299_vm1, %v2056_v23  ;;  %1920 = vmatprep.mubr.msk.bf16.mxu0 %vm299_vm1, %v2057_v24 }
  0x44   : > { %1869 = vmatmul.mubr.msk.bf16.gmra.mrb[24].mxu1 %vm299_vm1, %v2058_v25  ;;  %1921 = vmatmul.mubr.msk.bf16.gmra.mrb[8].mxu0 %vm299_vm1, %v2059_v26 }
  0x45   : > { %1872 = vmatprep.mubr.msk.bf16.mxu1 %vm299_vm1, %v2060_v27  ;;  %1924 = vmatprep.mubr.msk.bf16.mxu0 %vm299_vm1, %v2061_v28 }
  0x4c   : > { %1873 = vmatmul.mubr.msk.bf16.gmra.mrb[28].mxu1 %vm299_vm1, %v2062_v29  ;;  %1925 = vmatmul.mubr.msk.bf16.gmra.mrb[12].mxu0 %vm299_vm1, %v2063_v30 }
  0x4d   : > { %1894 = vmatprep.mubr.msk.bf16.mxu1 %vm299_vm1, %v2047_v14  ;;  %1928 = vmatprep.mubr.msk.bf16.mxu0 %vm299_vm1, %v2064_v31 }
  0x54   : > { %1895 = vmatmul.mubr.msk.bf16.vlgmr.msra.gmra.mrb[16].mxu1 %vm299_vm1, %v2048_v15  ;;  %1929 = vmatmul.mubr.msk.bf16.gmra.mrb[16].mxu0 %vm299_vm1, %v2065_v32 }
  0x55   : > { %1898 = vmatprep.mubr.msk.bf16.mxu1 %vm299_vm1, %v2050_v17  ;;  %1932 = vmatprep.mubr.msk.bf16.mxu0 %vm299_vm1, %v2066_v33 }
  0x5c   : > { %1899 = vmatmul.mubr.msk.bf16.gmra.mrb[20].mxu1 %vm299_vm1, %v2052_v19  ;;  %1933 = vmatmul.mubr.msk.bf16.gmra.mrb[20].mxu0 %vm299_vm1, %v2067_v34 }
  0x5d   : > { %1902 = vmatprep.mubr.msk.bf16.mxu1 %vm299_vm1, %v2054_v21  ;;  %1936 = vmatprep.mubr.msk.bf16.mxu0 %vm299_vm1, %v2068_v35 }
  0x64   : > { %1903 = vmatmul.mubr.msk.bf16.gmra.mrb[24].mxu1 %vm299_vm1, %v2056_v23  ;;  %1937 = vmatmul.mubr.msk.bf16.gmra.mrb[24].mxu0 %vm299_vm1, %v2069_v36 }
  0x65   : > { %1906 = vmatprep.mubr.msk.bf16.mxu1 %vm299_vm1, %v2058_v25  ;;  %1940 = vmatprep.mubr.msk.bf16.mxu0 %vm299_vm1, %v2070_v37 }
  0x6c   : > { %1907 = vmatmul.mubr.msk.bf16.gmra.mrb[28].mxu1 %vm299_vm1, %v2060_v27  ;;  %1941 = vmatmul.mubr.msk.bf16.gmra.mrb[28].mxu0 %vm299_vm1, %v2071_v38 }
  0xe7   : > { %v1846_v39 = vpop.f32.mrb[0].mxu1 }
  0xe8   : > { %v386_v40 = vpop.f32.mrb[1].mxu1 }
  0xe9   : > { %v1847_v41 = vpop.f32.mrb[2].mxu1 }
  0xea   : > { %v389_v42 = vpop.f32.mrb[3].mxu1 }
  0xef   : > { %v1850_v43 = vpop.f32.mrb[4].mxu1 }
  0xf0   : > { %v402_v44 = vpop.f32.mrb[5].mxu1 }
  0xf1   : > { %v1851_v45 = vpop.f32.mrb[6].mxu1 }
  0xf2   : > { %v405_v46 = vpop.f32.mrb[7].mxu1 }
  0xf7   : > { %v1854_v47 = vpop.f32.mrb[8].mxu1 }
  0xf8   : > { %v418_v48 = vpop.f32.mrb[9].mxu1 }
  0xf9   : > { %v1855_v49 = vpop.f32.mrb[10].mxu1 }
  0xfa   : > { %v421_v50 = vpop.f32.mrb[11].mxu1 }
  0xff   : > { %v1858_v51 = vpop.f32.mrb[12].mxu1 }
 0x100   : > { %v434_v52 = vpop.f32.mrb[13].mxu1 }
 0x101   : > { %v1859_v53 = vpop.f32.mrb[14].mxu1 }
 0x102   : > { %v437_v54 = vpop.f32.mrb[15].mxu1 }
 0x107   : > { %v1914_v55 = vpop.f32.mrb[0].mxu0 }
 0x108   : > { %v2236_v56 = vadd.f32 %v1914_v55, %v1846_v39  ;;  %v884_v57 = vpop.f32.mrb[1].mxu0 }
 0x109   : > { %v2238_v58 = vadd.f32 %v884_v57, %v386_v40  ;;  %v1915_v59 = vpop.f32.mrb[2].mxu0 }
 0x10a   : > { %v2240_v60 = vadd.f32 %v1915_v59, %v1847_v41  ;;  %v887_v61 = vpop.f32.mrb[3].mxu0  ;;  %v1047_v2 = vsel %vm1043_vm2, %v2236_v56, 0.0 }
 0x10b   : > { %v2242_v62 = vadd.f32 %v887_v61, %v389_v42  ;;  %v1044_v63 = vsel %vm1043_vm2, %v2238_v58, 0.0 }
 0x10c   : > { %v1049_v7 = vsel %vm1043_vm2, %v2240_v60, 0.0 }
 0x10d   : > { %v1045_v0 = vsel %vm1043_vm2, %v2242_v62, 0.0 }
 0x10e   : > { %v1046_v1 = vadd.f32 %v1045_v0, %v1044_v63 }
 0x10f   : > { %v1918_v3 = vpop.f32.mrb[4].mxu0 }
 0x110   : > { %v1048_v4 = vadd.f32 %v1047_v2, %v1046_v1  ;;  %v2250_v5 = vadd.f32 %v1918_v3, %v1850_v43  ;;  %v900_v6 = vpop.f32.mrb[5].mxu0 }
 0x111   : > { %v2254_v8 = vadd.f32 %v900_v6, %v402_v44  ;;  %v1919_v9 = vpop.f32.mrb[6].mxu0 }
 0x112   : > { %v1050_v10 = vadd.f32 %v1049_v7, %v1048_v4  ;;  %v2256_v11 = vadd.f32 %v1919_v9, %v1851_v45  ;;  %v903_v12 = vpop.f32.mrb[7].mxu0  ;;  %v1055_v18 = vsel %vm1043_vm2, %v2250_v5, 0.0 }
 0x113   : > { %v1051_v13 = vsel %vm1043_vm2, %v2254_v8, 0.0  ;;  %v2260_v14 = vadd.f32 %v903_v12, %v405_v46 }
 0x114   : > { %v1052_v15 = vadd.f32 %v1051_v13, %v1050_v10  ;;  %v1057_v23 = vsel %vm1043_vm2, %v2256_v11, 0.0 }
 0x115   : > { %v1053_v16 = vsel %vm1043_vm2, %v2260_v14, 0.0 }
 0x116   : > { %v1054_v17 = vadd.f32 %v1053_v16, %v1052_v15 }
 0x117   : > { %v1922_v19 = vpop.f32.mrb[8].mxu0 }
 0x118   : > { %v1056_v20 = vadd.f32 %v1055_v18, %v1054_v17  ;;  %v2266_v21 = vadd.f32 %v1922_v19, %v1854_v47  ;;  %v916_v22 = vpop.f32.mrb[9].mxu0 }
 0x119   : > { %v2270_v24 = vadd.f32 %v916_v22, %v418_v48  ;;  %v1923_v25 = vpop.f32.mrb[10].mxu0 }
 0x11a   : > { %v1058_v26 = vadd.f32 %v1057_v23, %v1056_v20  ;;  %v2272_v27 = vadd.f32 %v1923_v25, %v1855_v49  ;;  %v919_v28 = vpop.f32.mrb[11].mxu0  ;;  %v1063_v34 = vsel %vm1043_vm2, %v2266_v21, 0.0 }
 0x11b   : > { %v1059_v29 = vsel %vm1043_vm2, %v2270_v24, 0.0  ;;  %v2276_v30 = vadd.f32 %v919_v28, %v421_v50 }
 0x11c   : > { %v1060_v31 = vadd.f32 %v1059_v29, %v1058_v26  ;;  %v1065_v39 = vsel %vm1043_vm2, %v2272_v27, 0.0 }
 0x11d   : > { %v1061_v32 = vsel %vm1043_vm2, %v2276_v30, 0.0 }
 0x11e   : > { %v1062_v33 = vadd.f32 %v1061_v32, %v1060_v31 }
 0x11f   : > { %v1926_v35 = vpop.f32.mrb[12].mxu0 }
 0x120   : > { %v1064_v36 = vadd.f32 %v1063_v34, %v1062_v33  ;;  %v2282_v37 = vadd.f32 %v1926_v35, %v1858_v51  ;;  %v932_v38 = vpop.f32.mrb[13].mxu0 }
 0x121   : > { %v2286_v40 = vadd.f32 %v932_v38, %v434_v52  ;;  %v1927_v41 = vpop.f32.mrb[14].mxu0 }
 0x122   : > { %v1066_v42 = vadd.f32 %v1065_v39, %v1064_v36  ;;  %v2288_v43 = vadd.f32 %v1927_v41, %v1859_v53  ;;  %v935_v44 = vpop.f32.mrb[15].mxu0  ;;  %v1071_v50 = vsel %vm1043_vm2, %v2282_v37, 0.0 }
 0x123   : > { %v1067_v45 = vsel %vm1043_vm2, %v2286_v40, 0.0  ;;  %v2292_v46 = vadd.f32 %v935_v44, %v437_v54 }
 0x124   : > { %v1068_v47 = vadd.f32 %v1067_v45, %v1066_v42  ;;  %v1073_v61 = vsel %vm1043_vm2, %v2288_v43, 0.0 }
 0x125   : > { %v1069_v48 = vsel %vm1043_vm2, %v2292_v46, 0.0 }
 0x126   : > { %v1070_v49 = vadd.f32 %v1069_v48, %v1068_v47 }
 0x127   : > { %v1896_v51 = vpop.f32.mrb[16].mxu1  ;;  %v1930_v52 = vpop.f32.mrb[16].mxu0 }
 0x128   : > { %v1072_v55 = vadd.f32 %v1071_v50, %v1070_v49  ;;  %v2298_v57 = vadd.f32 %v1930_v52, %v1896_v51  ;;  %v622_v53 = vpop.f32.mrb[17].mxu1  ;;  %v948_v59 = vpop.f32.mrb[17].mxu0 }
 0x129   : > { %v2302_v54 = vadd.f32 %v948_v59, %v622_v53  ;;  %v1897_v63 = vpop.f32.mrb[18].mxu1  ;;  %v1931_v0 = vpop.f32.mrb[18].mxu0 }
 0x12a   : > { %v1074_v1 = vadd.f32 %v1073_v61, %v1072_v55  ;;  %v2304_v2 = vadd.f32 %v1931_v0, %v1897_v63  ;;  %v625_v3 = vpop.f32.mrb[19].mxu1  ;;  %v951_v4 = vpop.f32.mrb[19].mxu0  ;;  %v1079_v13 = vsel %vm1043_vm2, %v2298_v57, 0.0 }
 0x12b   : > { %v1075_v6 = vsel %vm1043_vm2, %v2302_v54, 0.0  ;;  %v2308_v7 = vadd.f32 %v951_v4, %v625_v3 }
 0x12c   : > { %v1076_v9 = vadd.f32 %v1075_v6, %v1074_v1  ;;  %v1081_v22 = vsel %vm1043_vm2, %v2304_v2, 0.0 }
 0x12d   : > { %v1077_v10 = vsel %vm1043_vm2, %v2308_v7, 0.0 }
 0x12e   : > { %v1078_v12 = vadd.f32 %v1077_v10, %v1076_v9 }
 0x12f   : > { %v1900_v15 = vpop.f32.mrb[20].mxu1  ;;  %v1934_v16 = vpop.f32.mrb[20].mxu0 }
 0x130   : > { %v1080_v17 = vadd.f32 %v1079_v13, %v1078_v12  ;;  %v2314_v18 = vadd.f32 %v1934_v16, %v1900_v15  ;;  %v638_v19 = vpop.f32.mrb[21].mxu1  ;;  %v964_v20 = vpop.f32.mrb[21].mxu0 }
 0x131   : > { %v2318_v23 = vadd.f32 %v964_v20, %v638_v19  ;;  %v1901_v25 = vpop.f32.mrb[22].mxu1  ;;  %v1935_v26 = vpop.f32.mrb[22].mxu0 }
 0x132   : > { %v1082_v28 = vadd.f32 %v1081_v22, %v1080_v17  ;;  %v2320_v29 = vadd.f32 %v1935_v26, %v1901_v25  ;;  %v641_v31 = vpop.f32.mrb[23].mxu1  ;;  %v967_v32 = vpop.f32.mrb[23].mxu0  ;;  %v1087_v39 = vsel %vm1043_vm2, %v2314_v18, 0.0 }
 0x133   : > { %v1083_v33 = vsel %vm1043_vm2, %v2318_v23, 0.0  ;;  %v2324_v34 = vadd.f32 %v967_v32, %v641_v31 }
 0x134   : > { %v1084_v35 = vadd.f32 %v1083_v33, %v1082_v28  ;;  %v1089_v49 = vsel %vm1043_vm2, %v2320_v29, 0.0 }
 0x135   : > { %v1085_v36 = vsel %vm1043_vm2, %v2324_v34, 0.0 }
 0x136   : > { %v1086_v38 = vadd.f32 %v1085_v36, %v1084_v35 }
 0x137   : > { %v1904_v41 = vpop.f32.mrb[24].mxu1  ;;  %v1938_v42 = vpop.f32.mrb[24].mxu0 }
 0x138   : > { %v1088_v44 = vadd.f32 %v1087_v39, %v1086_v38  ;;  %v2330_v45 = vadd.f32 %v1938_v42, %v1904_v41  ;;  %v654_v47 = vpop.f32.mrb[25].mxu1  ;;  %v980_v48 = vpop.f32.mrb[25].mxu0 }
 0x139   : > { %v1971_v50 = vadd.f32 %v980_v48, %v654_v47  ;;  %v1905_v51 = vpop.f32.mrb[26].mxu1  ;;  %v1939_v52 = vpop.f32.mrb[26].mxu0 }
 0x13a   : > { %v1090_v55 = vadd.f32 %v1089_v49, %v1088_v44  ;;  %v1972_v53 = vadd.f32 %v1939_v52, %v1905_v51  ;;  %v657_v59 = vpop.f32.mrb[27].mxu1  ;;  %v983_v61 = vpop.f32.mrb[27].mxu0  ;;  %v1095_v6 = vsel %vm1043_vm2, %v2330_v45, 0.0 }
 0x13b   : > { %v1091_v63 = vsel %vm1043_vm2, %v1971_v50, 0.0  ;;  %v1973_v0 = vadd.f32 %v983_v61, %v657_v59 }
 0x13c   : > { %v1092_v1 = vadd.f32 %v1091_v63, %v1090_v55  ;;  %v1097_v17 = vsel %vm1043_vm2, %v1972_v53, 0.0 }
 0x13d   : > { %v1093_v3 = vsel %vm1043_vm2, %v1973_v0, 0.0 }
 0x13e   : > { %v1094_v4 = vadd.f32 %v1093_v3, %v1092_v1 }
 0x13f   : > { %v1908_v9 = vpop.f32.mrb[28].mxu1  ;;  %v1942_v10 = vpop.f32.mrb[28].mxu0 }
 0x140   : > { %v1096_v12 = vadd.f32 %v1095_v6, %v1094_v4  ;;  %v1974_v13 = vadd.f32 %v1942_v10, %v1908_v9  ;;  %v670_v15 = vpop.f32.mrb[29].mxu1  ;;  %v996_v16 = vpop.f32.mrb[29].mxu0 }
 0x141   : > { %v1975_v19 = vadd.f32 %v996_v16, %v670_v15  ;;  %v1909_v20 = vpop.f32.mrb[30].mxu1  ;;  %v1943_v22 = vpop.f32.mrb[30].mxu0 }
 0x142   : > { %v1098_v25 = vadd.f32 %v1097_v17, %v1096_v12  ;;  %v1976_v26 = vadd.f32 %v1943_v22, %v1909_v20  ;;  %v673_v28 = vpop.f32.mrb[31].mxu1  ;;  %v999_v31 = vpop.f32.mrb[31].mxu0  ;;  %v1103_v39 = vsel %vm1043_vm2, %v1974_v13, 0.0 }
 0x143   : > { %v1099_v32 = vsel %vm1043_vm2, %v1975_v19, 0.0  ;;  %v1977_v33 = vadd.f32 %v999_v31, %v673_v28 }
 0x144   : > { %v1100_v35 = vadd.f32 %v1099_v32, %v1098_v25  ;;  %v1105_v42 = vsel %vm1043_vm2, %v1976_v26, 0.0 }
 0x145   : > { %v1101_v36 = vsel %vm1043_vm2, %v1977_v33, 0.0 }
 0x146   : > { %v1102_v38 = vadd.f32 %v1101_v36, %v1100_v35 }
 0x148   : > { %v1104_v41 = vadd.f32 %v1103_v39, %v1102_v38 }
 0x14a   : > { %v1106_v44 = vadd.f32 %v1105_v42, %v1104_v41 }
 0x14c   : > { %v1107_v47 = vrot.slane %v1106_v44, 4 }
 0x14e   : > { %v1108_v48 = vadd.f32 %v1107_v47, %v1106_v44 }
 0x150   : > { %v1109_v49 = vrot.slane %v1108_v48, 2 }
 0x152   : > { %v1110_v51 = vadd.f32 %v1109_v49, %v1108_v48 }
 0x154   : > { %v1111_v52 = vrot.slane %v1110_v51, 1 }
 0x156   : > { %v1112_v55 = vadd.f32 %v1111_v52, %v1110_v51 }
 0x158   : > { %v1113_v59 = vmul.f32 0.00390625, %v1112_v55 }
 0x15a   : > { %v2344_v61 = vsub.f32 %v2276_v30, %v1113_v59  ;;  %v2347_v63 = vsub.f32 %v2272_v27, %v1113_v59  ;;  %v2350_v1 = vsub.f32 %v2286_v40, %v1113_v59  ;;  %v2353_v3 = vsub.f32 %v2292_v46, %v1113_v59 }
 0x15b   : > { %v2356_v4 = vsub.f32 %v2282_v37, %v1113_v59  ;;  %v2359_v6 = vsub.f32 %v2288_v43, %v1113_v59  ;;  %v2362_v9 = vsub.f32 %v2302_v54, %v1113_v59  ;;  %v2365_v30 = vsub.f32 %v2308_v7, %v1113_v59 }
 0x15c   : > { %v2368_v27 = vsub.f32 %v2298_v57, %v1113_v59  ;;  %v2371_v40 = vsub.f32 %v2304_v2, %v1113_v59  ;;  %v2374_v46 = vsub.f32 %v2318_v23, %v1113_v59  ;;  %v2377_v37 = vsub.f32 %v2324_v34, %v1113_v59 }
 0x15d   : > { %v2380_v43 = vsub.f32 %v2314_v18, %v1113_v59  ;;  %v2383_v54 = vsub.f32 %v2320_v29, %v1113_v59  ;;  %v2385_v7 = vsub.f32 %v1971_v50, %v1113_v59  ;;  %v2387_v10 = vsub.f32 %v1973_v0, %v1113_v59 }
 0x15e   : > { %v2390_v57 = vsub.f32 %v2330_v45, %v1113_v59  ;;  %v2392_v2 = vsub.f32 %v1972_v53, %v1113_v59  ;;  %v2394_v23 = vsub.f32 %v1975_v19, %v1113_v59  ;;  %v2396_v12 = vsub.f32 %v1977_v33, %v1113_v59 }
 0x15f   : > { %v2398_v34 = vsub.f32 %v1974_v13, %v1113_v59  ;;  %v2400_v18 = vsub.f32 %v1976_v26, %v1113_v59  ;;  %v2403_v29 = vsub.f32 %v2238_v58, %v1113_v59  ;;  %v2406_v50 = vsub.f32 %v2242_v62, %v1113_v59 }
 0x160   : > { %v2409_v0 = vsub.f32 %v2236_v56, %v1113_v59  ;;  %v2412_v45 = vsub.f32 %v2240_v60, %v1113_v59  ;;  %v2419_v15 = vsub.f32 %v2254_v8, %v1113_v59  ;;  %v2424_v62 = vsub.f32 %v2260_v14, %v1113_v59 }
 0x161   : > { %v1146_v53 = vmul.f32 %v2403_v29, %v2403_v29  ;;  %v1147_v13 = vmul.f32 %v2406_v50, %v2406_v50  ;;  %v2431_v19 = vsub.f32 %v2250_v5, %v1113_v59  ;;  %v2437_v14 = vsub.f32 %v2256_v11, %v1113_v59 }
 0x162   : > { %v1148_v58 = vmul.f32 %v2409_v0, %v2409_v0  ;;  %v1149_v56 = vmul.f32 %v2412_v45, %v2412_v45  ;;  %v1150_v8 = vmul.f32 %v2419_v15, %v2419_v15  ;;  %v1151_v25 = vmul.f32 %v2424_v62, %v2424_v62 }
 0x163   : > { %v1178_v60 = vsel %vm1043_vm2, %v1146_v53, 0.0  ;;  %v1179_v16 = vsel %vm1043_vm2, %v1147_v13, 0.0  ;;  %v2443_v31 = vsub.f32 %v2270_v24, %v1113_v59  ;;  %v1152_v5 = vmul.f32 %v2431_v19, %v2431_v19 }
 0x164   : > { %v1180_v17 = vadd.f32 %v1179_v16, %v1178_v60  ;;  %v1181_v20 = vsel %vm1043_vm2, %v1148_v58, 0.0  ;;  %v1183_v26 = vsel %vm1043_vm2, %v1149_v56, 0.0  ;;  %v1185_v32 = vsel %vm1043_vm2, %v1150_v8, 0.0 }
 0x165   : > { %v1153_v35 = vmul.f32 %v2437_v14, %v2437_v14  ;;  %v1187_v11 = vsel %vm1043_vm2, %v1151_v25, 0.0  ;;  %v2452_v38 = vsub.f32 %v2266_v21, %v1113_v59  ;;  %v1154_v39 = vmul.f32 %v2443_v31, %v2443_v31 }
 0x166   : > { %v1182_v22 = vadd.f32 %v1181_v20, %v1180_v17  ;;  %v1189_v24 = vsel %vm1043_vm2, %v1152_v5, 0.0  ;;  %v1155_v42 = vmul.f32 %v2344_v61, %v2344_v61  ;;  %v1157_v21 = vmul.f32 %v2347_v63, %v2347_v63 }
 0x167   : > { %v1191_v44 = vsel %vm1043_vm2, %v1153_v35, 0.0  ;;  %v1156_v48 = vmul.f32 %v2452_v38, %v2452_v38  ;;  %v1193_v49 = vsel %vm1043_vm2, %v1154_v39, 0.0  ;;  %v1158_v59 = vmul.f32 %v2350_v1, %v2350_v1 }
 0x168   : > { %v1184_v28 = vadd.f32 %v1183_v26, %v1182_v22  ;;  %v1195_v52 = vsel %vm1043_vm2, %v1155_v42, 0.0  ;;  %v1159_v58 = vmul.f32 %v2353_v3, %v2353_v3  ;;  %v1199_v56 = vsel %vm1043_vm2, %v1157_v21, 0.0 }
 0x169   : > { %v1197_v53 = vsel %vm1043_vm2, %v1156_v48, 0.0  ;;  %v1160_v16 = vmul.f32 %v2356_v4, %v2356_v4  ;;  %v1201_v17 = vsel %vm1043_vm2, %v1158_v59, 0.0  ;;  %v1161_v20 = vmul.f32 %v2359_v6, %v2359_v6 }
 0x16a   : > { %v1186_v33 = vadd.f32 %v1185_v32, %v1184_v28  ;;  %v1203_v22 = vsel %vm1043_vm2, %v1159_v58, 0.0  ;;  %v1162_v26 = vmul.f32 %v2362_v9, %v2362_v9  ;;  %v1163_v32 = vmul.f32 %v2365_v30, %v2365_v30 }
 0x16b   : > { %v1205_v28 = vsel %vm1043_vm2, %v1160_v16, 0.0 }
 0x16c   : > { %v1188_v36 = vadd.f32 %v1187_v11, %v1186_v33  ;;  %v1207_v33 = vsel %vm1043_vm2, %v1161_v20, 0.0  ;;  %v1164_v11 = vmul.f32 %v2368_v27, %v2368_v27 }
 0x16e   : > { %v1190_v41 = vadd.f32 %v1189_v24, %v1188_v36  ;;  %v1209_v36 = vsel %vm1043_vm2, %v1162_v26, 0.0  ;;  %v1165_v24 = vmul.f32 %v2371_v40, %v2371_v40 }
 0x170   : > { %v1192_v47 = vadd.f32 %v1191_v44, %v1190_v41  ;;  %v1211_v41 = vsel %vm1043_vm2, %v1163_v32, 0.0  ;;  %v1166_v44 = vmul.f32 %v2374_v46, %v2374_v46 }
 0x172   : > { %v1194_v51 = vadd.f32 %v1193_v49, %v1192_v47  ;;  %v1213_v47 = vsel %vm1043_vm2, %v1164_v11, 0.0  ;;  %v1167_v49 = vmul.f32 %v2377_v37, %v2377_v37 }
 0x174   : > { %v1196_v55 = vadd.f32 %v1195_v52, %v1194_v51  ;;  %v1215_v51 = vsel %vm1043_vm2, %v1165_v24, 0.0  ;;  %v1168_v52 = vmul.f32 %v2380_v43, %v2380_v43 }
 0x176   : > { %v1198_v13 = vadd.f32 %v1197_v53, %v1196_v55  ;;  %v1217_v55 = vsel %vm1043_vm2, %v1166_v44, 0.0  ;;  %v1169_v53 = vmul.f32 %v2383_v54, %v2383_v54 }
 0x178   : > { %v1200_v60 = vadd.f32 %v1199_v56, %v1198_v13  ;;  %v1219_v13 = vsel %vm1043_vm2, %v1167_v49, 0.0  ;;  %v1170_v56 = vmul.f32 %v2385_v7, %v2385_v7 }
 0x17a   : > { %v1202_v8 = vadd.f32 %v1201_v17, %v1200_v60  ;;  %v1221_v60 = vsel %vm1043_vm2, %v1168_v52, 0.0  ;;  %v1171_v17 = vmul.f32 %v2387_v10, %v2387_v10 }
 0x17c   : > { %v1204_v25 = vadd.f32 %v1203_v22, %v1202_v8  ;;  %v1223_v8 = vsel %vm1043_vm2, %v1169_v53, 0.0  ;;  %v1172_v22 = vmul.f32 %v2390_v57, %v2390_v57 }
 0x17e   : > { %v1206_v5 = vadd.f32 %v1205_v28, %v1204_v25  ;;  %v1225_v25 = vsel %vm1043_vm2, %v1170_v56, 0.0  ;;  %v1173_v28 = vmul.f32 %v2392_v2, %v2392_v2 }
 0x180   : > { %v1208_v35 = vadd.f32 %v1207_v33, %v1206_v5  ;;  %v1227_v5 = vsel %vm1043_vm2, %v1171_v17, 0.0  ;;  %v1174_v33 = vmul.f32 %v2394_v23, %v2394_v23 }
 0x182   : > { %v1210_v39 = vadd.f32 %v1209_v36, %v1208_v35  ;;  %v1229_v35 = vsel %vm1043_vm2, %v1172_v22, 0.0  ;;  %v1175_v36 = vmul.f32 %v2396_v12, %v2396_v12 }
 0x184   : > { %v1212_v42 = vadd.f32 %v1211_v41, %v1210_v39  ;;  %v1231_v39 = vsel %vm1043_vm2, %v1173_v28, 0.0  ;;  %v1176_v41 = vmul.f32 %v2398_v34, %v2398_v34 }
 0x186   : > { %v1214_v48 = vadd.f32 %v1213_v47, %v1212_v42  ;;  %v1233_v42 = vsel %vm1043_vm2, %v1174_v33, 0.0  ;;  %v1177_v47 = vmul.f32 %v2400_v18, %v2400_v18 }
 0x188   : > { %v1216_v21 = vadd.f32 %v1215_v51, %v1214_v48  ;;  %v1235_v48 = vsel %vm1043_vm2, %v1175_v36, 0.0  ;;  %v1237_v51 = vsel %vm1043_vm2, %v1176_v41, 0.0  ;;  %v1239_v52 = vsel %vm1043_vm2, %v1177_v47, 0.0 }
 0x18a   : > { %v1218_v59 = vadd.f32 %v1217_v55, %v1216_v21 }
 0x18c   : > { %v1220_v58 = vadd.f32 %v1219_v13, %v1218_v59 }
 0x18e   : > { %v1222_v16 = vadd.f32 %v1221_v60, %v1220_v58 }
 0x190   : > { %v1224_v20 = vadd.f32 %v1223_v8, %v1222_v16 }
 0x192   : > { %v1226_v26 = vadd.f32 %v1225_v25, %v1224_v20 }
 0x194   : > { %v1228_v32 = vadd.f32 %v1227_v5, %v1226_v26 }
 0x196   : > { %v1230_v11 = vadd.f32 %v1229_v35, %v1228_v32 }
 0x198   : > { %v1232_v24 = vadd.f32 %v1231_v39, %v1230_v11 }
 0x19a   : > { %v1234_v44 = vadd.f32 %v1233_v42, %v1232_v24 }
 0x19c   : > { %v1236_v49 = vadd.f32 %v1235_v48, %v1234_v44 }
 0x19e   : > { %v1238_v21 = vadd.f32 %v1237_v51, %v1236_v49 }
 0x1a0   : > { %v1240_v55 = vadd.f32 %v1239_v52, %v1238_v21 }
 0x1a2   : > { %v1241_v59 = vrot.slane %v1240_v55, 4 }
 0x1a4   : > { %v1242_v53 = vadd.f32 %v1241_v59, %v1240_v55 }
 0x1a6   : > { %v1243_v13 = vrot.slane %v1242_v53, 2 }
 0x1a8   : > { %v1244_v58 = vadd.f32 %v1243_v13, %v1242_v53 }
 0x1aa   : > { %v1245_v56 = vrot.slane %v1244_v58, 1 }
 0x1ac   : > { %v1246_v60 = vadd.f32 %v1245_v56, %v1244_v58 }
 0x1ae   : > { %v1247_v16 = vmul.f32 0.00390625, %v1246_v60 }
 0x1b0   : > { %v1248_v17 = vadd.f32 1e-05, %v1247_v16 }
 0x1b2   : > { %2072 = vrsqrt.f32 %v1248_v17 }
 0x1bc   : > { %v2073_v8 = vpop.eup %2072 }
 0x1bd   : > { %v2529_v20 = vmul.f32 %v2073_v8, %v2365_v30  ;;  %v2532_v22 = vmul.f32 %v2073_v8, %v2368_v27  ;;  %v2535_v25 = vmul.f32 %v2073_v8, %v2371_v40  ;;  %v2538_v26 = vmul.f32 %v2073_v8, %v2374_v46 }
 0x1be   : > { %v2541_v28 = vmul.f32 %v2073_v8, %v2377_v37  ;;  %v2544_v5 = vmul.f32 %v2073_v8, %v2380_v43  ;;  %v2547_v32 = vmul.f32 %v2073_v8, %v2383_v54  ;;  %v2550_v30 = vmul.f32 %v2073_v8, %v2385_v7 }
 0x1bf   : > { %v2553_v27 = vmul.f32 %v2073_v8, %v2387_v10  ;;  %v2556_v40 = vmul.f32 %v2073_v8, %v2390_v57  ;;  %v2559_v46 = vmul.f32 %v2073_v8, %v2392_v2  ;;  %v2562_v37 = vmul.f32 %v2073_v8, %v2394_v23 }
 0x1c0   : > { %v2565_v43 = vmul.f32 %v2073_v8, %v2396_v12  ;;  %v2568_v54 = vmul.f32 %v2073_v8, %v2398_v34  ;;  %v2571_v7 = vmul.f32 %v2073_v8, %v2400_v18  ;;  %v1250_v10 = vmul.f32 %v2073_v8, %v2403_v29 }
 0x1c1   : > { %v1251_v57 = vmul.f32 %v2073_v8, %v2406_v50  ;;  %v2576_v33 = vmul.f32 %v2073_v8, %v2409_v0  ;;  %v2579_v2 = vmul.f32 %v2073_v8, %v2412_v45  ;;  %v2582_v23 = vmul.f32 %v2073_v8, %v2419_v15 }
 0x1c2   : > { %v2585_v12 = vmul.f32 %v2073_v8, %v2424_v62  ;;  %v2588_v34 = vmul.f32 %v2073_v8, %v2431_v19  ;;  %v2591_v18 = vmul.f32 %v2073_v8, %v2437_v14  ;;  %v2594_v29 = vmul.f32 %v2073_v8, %v2443_v31 }
 0x1c3   : > { %v2597_v50 = vmul.f32 %v2073_v8, %v2344_v61  ;;  %v2600_v0 = vmul.f32 %v2073_v8, %v2452_v38  ;;  %v2603_v45 = vmul.f32 %v2073_v8, %v2347_v63  ;;  %v2606_v15 = vmul.f32 %v2073_v8, %v2350_v1 }
 0x1c4   : > { %v2609_v62 = vmul.f32 %v2073_v8, %v2353_v3  ;;  %v2612_v19 = vmul.f32 %v2073_v8, %v2356_v4  ;;  %v2615_v14 = vmul.f32 %v2073_v8, %v2359_v6  ;;  %v2618_v61 = vmul.f32 %v2073_v8, %v2362_v9 }
 0x1c5   : > { %vm1282_vm3 = vcmp.gt.f32.partialorder %v1250_v10, 0.0  ;;  %vm1283_vm4 = vcmp.gt.f32.partialorder %v1251_v57, 0.0  ;;  %vm1284_vm5 = vcmp.gt.f32.partialorder %v2576_v33, 0.0  ;;  %vm1285_vm6 = vcmp.gt.f32.partialorder %v2579_v2, 0.0 }
 0x1c6   : > { %vm1286_vm7 = vcmp.gt.f32.partialorder %v2582_v23, 0.0  ;;  %vm1287_vm8 = vcmp.gt.f32.partialorder %v2585_v12, 0.0  ;;  %vm1288_vm9 = vcmp.gt.f32.partialorder %v2588_v34, 0.0  ;;  %vm1289_vm10 = vcmp.gt.f32.partialorder %v2591_v18, 0.0 }
 0x1c7   : > { %vm1292_vm13 = vcmp.gt.f32.partialorder %v2600_v0, 0.0  ;;  %v1314_v63 = vmul.f32 0.2, %v1250_v10  ;;  %v1315_v1 = vmul.f32 0.2, %v1251_v57  ;;  %vm1297_vm2 = vcmp.gt.f32.partialorder %v2615_v14, 0.0 }
 0x1c8   : > { %v1316_v3 = vmul.f32 0.2, %v2576_v33  ;;  %v1317_v4 = vmul.f32 0.2, %v2579_v2  ;;  %v1318_v6 = vmul.f32 0.2, %v2582_v23 }
 0x1c9   : > { %v1319_v9 = vmul.f32 0.2, %v2585_v12  ;;  %vm1302_vm14 = vcmp.gt.f32.partialorder %v2538_v26, 0.0  ;;  %v1320_v31 = vmul.f32 0.2, %v2588_v34  ;;  %v2648_v11 = vsel %vm1282_vm3, %v1250_v10, %v1314_v63 }
 0x1ca   : > { %v1321_v38 = vmul.f32 0.2, %v2591_v18  ;;  %v1322_v35 = vmul.f32 0.2, %v2594_v29  ;;  %vm1306_vm0 = vcmp.gt.f32.partialorder %v2550_v30, 0.0  ;;  %vm1307_vm15 = vcmp.gt.f32.partialorder %v2553_v27, 0.0 }
 0x1cb   : > { %v1323_v36 = vmul.f32 0.2, %v2597_v50  ;;  %v1324_v39 = vmul.f32 0.2, %v2600_v0  ;;  %v1325_v24 = vmul.f32 0.2, %v2603_v45  ;;  %v2658_v41 = vsel %vm1283_vm4, %v1251_v57, %v1315_v1 }
 0x1cc   : > { %vm1309_vm1 = vcmp.gt.f32.partialorder %v2559_v46, 0.0  ;;  %vm1310_vm12 = vcmp.gt.f32.partialorder %v2562_v37, 0.0  ;;  %vm1311_vm11 = vcmp.gt.f32.partialorder %v2565_v43, 0.0  ;;  %v1326_v42 = vmul.f32 0.2, %v2606_v15 }
 0x1cd   : > { %v1327_v44 = vmul.f32 0.2, %v2609_v62  ;;  %v1328_v47 = vmul.f32 0.2, %v2612_v19  ;;  %v2670_v48 = vsel %vm1284_vm5, %v2576_v33, %v1316_v3  ;;  %vm1312_vm4 = vcmp.gt.f32.partialorder %v2568_v54, 0.0 }
 0x1ce   : > { %vm1313_vm3 = vcmp.gt.f32.partialorder %v2571_v7, 0.0  ;;  %v1329_v49 = vmul.f32 0.2, %v2615_v14  ;;  %v1330_v51 = vmul.f32 0.2, %v2618_v61  ;;  %v2680_v52 = vsel %vm1285_vm6, %v2579_v2, %v1317_v4 }
 0x1cf   : > { %v1331_v21 = vmul.f32 0.2, %v2529_v20  ;;  %v1332_v55 = vmul.f32 0.2, %v2532_v22  ;;  %v1333_v59 = vmul.f32 0.2, %v2535_v25  ;;  %v1350_v13 = vsel %vm1286_vm7, %v2582_v23, %v1318_v6 }
 0x1d0   : > { %v1334_v53 = vmul.f32 0.2, %v2538_v26  ;;  %v1335_v58 = vmul.f32 0.2, %v2541_v28  ;;  %v1336_v56 = vmul.f32 0.2, %v2544_v5  ;;  %v1351_v16 = vsel %vm1287_vm8, %v2585_v12, %v1319_v9 }
 0x1d1   : > { %v1337_v60 = vmul.f32 0.2, %v2547_v32  ;;  %vm1506_vm5 = vcmask 27648   ;;  %v1338_v17 = vmul.f32 0.2, %v2550_v30  ;;  %v1352_v57 = vsel %vm1288_vm9, %v2588_v34, %v1320_v31 }
 0x1d2   : > { %v1339_v8 = vmul.f32 0.2, %v2553_v27  ;;  %v1340_v10 = vmul.f32 0.2, %v2556_v40  ;;  %v1341_v33 = vmul.f32 0.2, %v2559_v46  ;;  %v1353_v12 = vsel %vm1289_vm10, %v2591_v18, %v1321_v38 }
 0x1d3   : > { %v1342_v2 = vmul.f32 0.2, %v2562_v37  ;;  %v1343_v23 = vmul.f32 0.2, %v2565_v43  ;;  %v1344_v63 = vmul.f32 0.2, %v2568_v54  ;;  %v1356_v4 = vsel %vm1292_vm13, %v2600_v0, %v1324_v39 }
 0x1d4   : > { %v1345_v1 = vmul.f32 0.2, %v2571_v7  ;;  %vm2926_vm6 = vcmp.gt.f32.partialorder %v2594_v29, 0.0  ;;  %vm2927_vm7 = vcmp.gt.f32.partialorder %v2597_v50, 0.0  ;;  %vm2928_vm8 = vcmp.gt.f32.partialorder %v2603_v45, 0.0 }
 0x1d5   : > { %v1354_v3 = vsel %vm2926_vm6, %v2594_v29, %v1322_v35  ;;  %v1355_v34 = vsel %vm2927_vm7, %v2597_v50, %v1323_v36  ;;  %v1357_v18 = vsel %vm2928_vm8, %v2603_v45, %v1325_v24  ;;  %vm2929_vm9 = vcmp.gt.f32.partialorder %v2606_v15, 0.0 }
 0x1d6   : > { %v1358_v6 = vsel %vm2929_vm9, %v2606_v15, %v1326_v42  ;;  %vm2930_vm10 = vcmp.gt.f32.partialorder %v2609_v62, 0.0  ;;  %vm2931_vm6 = vcmp.gt.f32.partialorder %v2612_v19, 0.0  ;;  %v1361_v0 = vsel %vm1297_vm2, %v2615_v14, %v1329_v49 }
 0x1d7   : > { %v1359_v29 = vsel %vm2930_vm10, %v2609_v62, %v1327_v44  ;;  %v1360_v50 = vsel %vm2931_vm6, %v2612_v19, %v1328_v47  ;;  %vm2932_vm13 = vcmp.gt.f32.partialorder %v2618_v61, 0.0  ;;  %vm2933_vm7 = vcmp.gt.f32.partialorder %v2529_v20, 0.0 }
 0x1d8   : > { %v1362_v45 = vsel %vm2932_vm13, %v2618_v61, %v1330_v51  ;;  %v1363_v15 = vsel %vm2933_vm7, %v2529_v20, %v1331_v21  ;;  %vm2934_vm8 = vcmp.gt.f32.partialorder %v2532_v22, 0.0  ;;  %vm2935_vm9 = vcmp.gt.f32.partialorder %v2535_v25, 0.0 }
 0x1d9   : > { %v2742_v62 = vsel %vm2934_vm8, %v2532_v22, %v1332_v55  ;;  %v2747_v19 = vsel %vm2935_vm9, %v2535_v25, %v1333_v59  ;;  %v2752_v14 = vsel %vm1302_vm14, %v2538_v26, %v1334_v53  ;;  %vm2936_vm2 = vcmp.gt.f32.partialorder %v2541_v28, 0.0 }
 0x1da   : > { %v2757_v61 = vsel %vm2936_vm2, %v2541_v28, %v1335_v58  ;;  %vm2937_vm10 = vcmp.gt.f32.partialorder %v2544_v5, 0.0  ;;  %vm2938_vm6 = vcmp.gt.f32.partialorder %v2547_v32, 0.0  ;;  %v2772_v25 = vsel %vm1306_vm0, %v2550_v30, %v1338_v17 }
 0x1db   : > { %v2762_v20 = vsel %vm2937_vm10, %v2544_v5, %v1336_v56  ;;  %v2767_v22 = vsel %vm2938_vm6, %v2547_v32, %v1337_v60  ;;  %v2777_v26 = vsel %vm1307_vm15, %v2553_v27, %v1339_v8  ;;  %vm2939_vm14 = vcmp.gt.f32.partialorder %v2556_v40, 0.0 }
 0x1dc   : > { %v2787_v28 = vsel %vm2939_vm14, %v2556_v40, %v1340_v10  ;;  %v2792_v5 = vsel %vm1309_vm1, %v2559_v46, %v1341_v33  ;;  %v2797_v32 = vsel %vm1310_vm12, %v2562_v37, %v1342_v2  ;;  %v2802_v30 = vsel %vm1311_vm11, %v2565_v43, %v1343_v23 }
 0x1dd   : > { %v2807_v27 = vsel %vm1312_vm4, %v2568_v54, %v1344_v63  ;;  %v2812_v40 = vsel %vm1313_vm3, %v2571_v7, %v1345_v1  ;;  %v1759_v46 = vpack.c.bf16 %v2648_v11, %v2648_v11  ;;  %v1760_v37 = vpack.c.bf16 %v2658_v41, %v2658_v41 }
 0x1de   : > { %v1761_v43 = vpack.c.bf16 %v2670_v48, %v2670_v48  ;;  %v1762_v54 = vpack.c.bf16 %v2680_v52, %v2680_v52  ;;  %v1763_v9 = vpack.c.bf16 %v1350_v13, %v1350_v13  ;;  %v1764_v31 = vpack.c.bf16 %v1351_v16, %v1351_v16 }
 0x1df   : > { %v1765_v7 = vpack.c.bf16 %v1352_v57, %v1352_v57  ;;  %v1766_v38 = vpack.c.bf16 %v1353_v12, %v1353_v12  ;;  %v1767_v35 = vpack.c.bf16 %v1354_v3, %v1354_v3  ;;  %v1768_v11 = vpack.c.bf16 %v1355_v34, %v1355_v34  ;;  %1507 = vst.msk [vmem:[%s2782_s26] sm:$0xf] %vm1506_vm5, %v1759_v46 }
 0x1e0   : > { %1508 = vst.msk [vmem:[%s2782_s26 + $0x4] sm:$0xf] %vm1506_vm5, %v1760_v37  ;;  %v1769_v36 = vpack.c.bf16 %v1356_v4, %v1356_v4  ;;  %v1770_v39 = vpack.c.bf16 %v1357_v18, %v1357_v18  ;;  %v1771_v24 = vpack.c.bf16 %v1358_v6, %v1358_v6  ;;  %v1772_v41 = vpack.c.bf16 %v1359_v29, %v1359_v29 }
 0x1e1   : > { %1509 = vst.msk [vmem:[%s2782_s26 + $0x8] sm:$0xf] %vm1506_vm5, %v1761_v43  ;;  %1510 = vst.msk [vmem:[%s2782_s26 + $0xc] sm:$0xf] %vm1506_vm5, %v1762_v54  ;;  %v1773_v42 = vpack.c.bf16 %v1360_v50, %v1360_v50  ;;  %v1774_v44 = vpack.c.bf16 %v1361_v0, %v1361_v0  ;;  %v1775_v47 = vpack.c.bf16 %v1362_v45, %v1362_v45 }
 0x1e2   : > { %1511 = vst.msk [vmem:[%s2782_s26 + $0x10] sm:$0xf] %vm1506_vm5, %v1763_v9  ;;  %1512 = vst.msk [vmem:[%s2782_s26 + $0x14] sm:$0xf] %vm1506_vm5, %v1764_v31  ;;  %v1776_v48 = vpack.c.bf16 %v1363_v15, %v1363_v15  ;;  %v1777_v49 = vpack.c.bf16 %v2742_v62, %v2742_v62  ;;  %v1778_v51 = vpack.c.bf16 %v2747_v19, %v2747_v19 }
 0x1e3   : > { %1513 = vst.msk [vmem:[%s2782_s26 + $0x18] sm:$0xf] %vm1506_vm5, %v1765_v7  ;;  %1514 = vst.msk [vmem:[%s2782_s26 + $0x1c] sm:$0xf] %vm1506_vm5, %v1766_v38  ;;  %v1779_v21 = vpack.c.bf16 %v2752_v14, %v2752_v14  ;;  %v1780_v52 = vpack.c.bf16 %v2757_v61, %v2757_v61  ;;  %v1781_v55 = vpack.c.bf16 %v2762_v20, %v2762_v20 }
 0x1e4   : > { %1515 = vst.msk [vmem:[%s2782_s26 + $0x20] sm:$0xf] %vm1506_vm5, %v1767_v35  ;;  %1516 = vst.msk [vmem:[%s2782_s26 + $0x24] sm:$0xf] %vm1506_vm5, %v1768_v11  ;;  %v1782_v59 = vpack.c.bf16 %v2767_v22, %v2767_v22  ;;  %v1783_v53 = vpack.c.bf16 %v2772_v25, %v2772_v25  ;;  %v1784_v13 = vpack.c.bf16 %v2777_v26, %v2777_v26 }
 0x1e5   : > { %1517 = vst.msk [vmem:[%s2782_s26 + $0x28] sm:$0xf] %vm1506_vm5, %v1769_v36  ;;  %1518 = vst.msk [vmem:[%s2782_s26 + $0x2c] sm:$0xf] %vm1506_vm5, %v1770_v39  ;;  %v1785_v58 = vpack.c.bf16 %v2787_v28, %v2787_v28  ;;  %v1786_v56 = vpack.c.bf16 %v2792_v5, %v2792_v5  ;;  %v1787_v60 = vpack.c.bf16 %v2797_v32, %v2797_v32 }
 0x1e6   : > { %1519 = vst.msk [vmem:[%s2782_s26 + $0x30] sm:$0xf] %vm1506_vm5, %v1771_v24  ;;  %1520 = vst.msk [vmem:[%s2782_s26 + $0x34] sm:$0xf] %vm1506_vm5, %v1772_v41  ;;  %v1788_v16 = vpack.c.bf16 %v2802_v30, %v2802_v30  ;;  %v1789_v17 = vpack.c.bf16 %v2807_v27, %v2807_v27  ;;  %v1790_v8 = vpack.c.bf16 %v2812_v40, %v2812_v40 }
 0x1e7   : > { %1521 = vst.msk [vmem:[%s2782_s26 + $0x38] sm:$0xf] %vm1506_vm5, %v1773_v42  ;;  %1522 = vst.msk [vmem:[%s2782_s26 + $0x3c] sm:$0xf] %vm1506_vm5, %v1774_v44 }
 0x1e8   : > { %1523 = vst.msk [vmem:[%s2782_s26 + $0x40] sm:$0xf] %vm1506_vm5, %v1775_v47  ;;  %1524 = vst.msk [vmem:[%s2782_s26 + $0x44] sm:$0xf] %vm1506_vm5, %v1776_v48 }
 0x1e9   : > { %1525 = vst.msk [vmem:[%s2782_s26 + $0x48] sm:$0xf] %vm1506_vm5, %v1777_v49  ;;  %1526 = vst.msk [vmem:[%s2782_s26 + $0x4c] sm:$0xf] %vm1506_vm5, %v1778_v51 }
 0x1ea   : > { %1527 = vst.msk [vmem:[%s2782_s26 + $0x50] sm:$0xf] %vm1506_vm5, %v1779_v21  ;;  %1528 = vst.msk [vmem:[%s2782_s26 + $0x54] sm:$0xf] %vm1506_vm5, %v1780_v52 }
 0x1eb   : > { %1529 = vst.msk [vmem:[%s2782_s26 + $0x58] sm:$0xf] %vm1506_vm5, %v1781_v55  ;;  %1530 = vst.msk [vmem:[%s2782_s26 + $0x5c] sm:$0xf] %vm1506_vm5, %v1782_v59 }
 0x1ec   : > { %1531 = vst.msk [vmem:[%s2782_s26 + $0x60] sm:$0xf] %vm1506_vm5, %v1783_v53  ;;  %1532 = vst.msk [vmem:[%s2782_s26 + $0x64] sm:$0xf] %vm1506_vm5, %v1784_v13 }
 0x1ed   : > { %1533 = vst.msk [vmem:[%s2782_s26 + $0x68] sm:$0xf] %vm1506_vm5, %v1785_v58  ;;  %1534 = vst.msk [vmem:[%s2782_s26 + $0x6c] sm:$0xf] %vm1506_vm5, %v1786_v56 }
 0x1ee   : > { %1535 = vst.msk [vmem:[%s2782_s26 + $0x70] sm:$0xf] %vm1506_vm5, %v1787_v60  ;;  %1536 = vst.msk [vmem:[%s2782_s26 + $0x74] sm:$0xf] %vm1506_vm5, %v1788_v16 }
 0x1ef   : > { %1537 = vst.msk [vmem:[%s2782_s26 + $0x78] sm:$0xf] %vm1506_vm5, %v1789_v17  ;;  %1538 = vst.msk [vmem:[%s2782_s26 + $0x7c] sm:$0xf] %vm1506_vm5, %v1790_v8 }
 0x1f0 PF: > { %s12_s11 = sadd.s32 1, %s2096_s11   ;;  %s2940_s9 = smov %s2092_s10 }
 0x1f1   : > { %p9_p5 = scmp.ge.s32.totalorder %s12_s11, 4   ;;  %s2941_s10 = smov %s2943_s12 }
 0x1f3   :  { %11 = sbr.rel (!%p9_p5) target bundleno = 2 (0x2), region = 63 }

// kernel: recnet_forward.18
= control target key start
LH: loop header
LB: loop body
LE: loop exit
PB: predicated region body
PF: predicated region fallthrough
CT: control target
= control target key end

     0   :  { %s681_s9 = smov 0   ;;  %s683_s10 = smov 0   ;;  %s749_s0 = inlined_call_operand.vmem [shape: bf16[2,24,24], index: 0, kind: input, shape index: {}]   ;;  %s750_s1 = inlined_call_operand.vmem [shape: bf16[3,24,16], index: 1, kind: input, shape index: {}]   ;;  %s751_s2 = inlined_call_operand.vmem [shape: bf16[2,16,16], index: 2, kind: output, shape index: {}]  }
   0x1   :  { %s685_s11 = smov 0  }
   0x2 LB: > { %s24_s12 = sadd.s32 1, %s658_s10  ;;  %p532_p0 = scmp.ge.s32.totalorder %s662_s11, 1  ;;  %s662_s11 = sphi %s685_s11, %s12_s11   ;;  %s658_s10 = sphi %s683_s10, %s753_s10   ;;  %s654_s9 = sphi %s681_s9, %s752_s9  }
   0x3   : > { %p26_p1 = scmp.ge.s32.totalorder %s24_s12, 2  ;;  %p135_p2 = scmp.lt.s32.totalorder %s662_s11, 3 }
   0x5   : > { %s755_s12 = smov (%p26_p1, %s24_s12), 0  ;;  %p136_p3 = pnand %p532_p0, %p135_p2 }
   0x6   : > { %v628_v0 = vld [vmem:[%s750_s1] sm:$0xff] (!%p136_p3)   ;;  %v664_v1 = vmov (!%p136_p3), 0.0   ;;  %vm218_vm0 = vcmask (!%p136_p3), 1043456   ;;  %v629_v2 = vld [vmem:[%s750_s1 + $0x8] ss:$0 sps:$4 sm:$0xff] (!%p136_p3)   ;;  %vm665_vm1 = vmmov (!%p136_p3), 0  }
   0x7   : > { %139 = sbr.rel (%p136_p3) target bundleno = 308 (0x134), region = 28  ;;  %579 = vmatprep.subr.bf16.mxu0 (!%p136_p3), %v664_v1  ;;  %571 = vmatprep.subr.bf16.mxu1 (!%p136_p3), %v664_v1  ;;  %p164_p4 = scmp.lt.s32.totalorder (!%p136_p3), %s654_s9, 1  ;;  %v279_v3 = vsel (!%p136_p3), %vm218_vm0, %v629_v2, 0  ;;  %v632_v4 = vld [vmem:[%s750_s1 + $0xc] sm:$0xff] (!%p136_p3)   ;;  %v633_v5 = vld [vmem:[%s750_s1 + $0x14] ss:$0 sps:$4 sm:$0xff] (!%p136_p3)  }
   0x8   : > { %580 = vmatpush3.bf16.msra.mxu0 (!%p136_p3), %v628_v0  ;;  %583 = vmatprep.mubr.msk.bf16.mxu0 (!%p136_p3), %vm665_vm1, %v664_v1  ;;  %v220_v6 = vsel (!%p136_p3), %vm218_vm0, %v633_v5, 0  ;;  %vm214_vm2 = vcmask (!%p136_p3), 195584   ;;  %v631_v7 = vld [vmem:[%s750_s1 + $0x18] sm:$0xff] (!%p136_p3)   ;;  %v634_v8 = vld [vmem:[%s750_s1 + $0x20] ss:$0 sps:$4 sm:$0xff] (!%p136_p3)   ;;  %vm201_vm3 = vcmask (!%p136_p3), 1045504  }
   0x9   : > { %581 = vmatprep.subr.bf16.mxu0 (!%p136_p3), %v664_v1  ;;  %575 = vmatprep.mubr.msk.bf16.mxu1 (!%p136_p3), %vm665_vm1, %v664_v1  ;;  %v343_v17 = vsel (!%p136_p3), %vm218_vm0, %v634_v8, 0  ;;  %vm388_vm4 = vcmask (!%p136_p3), 130048   ;;  %vm431_vm7 = vcmask (!%p136_p3), 125952  }
   0xa   : > { %572 = vmatpush3.bf16.msra.mxu1 (!%p136_p3), %v632_v4 }
   0xb   : > { %573 = vmatprep.subr.bf16.mxu1 (!%p136_p3), %v664_v1 }
   0xc   : > { %582 = vmatpush3.bf16.msra.mxu0 (!%p136_p3), %v279_v3 }
   0xd   : > { %587 = vmatprep.subr.bf16.mxu0 (!%p136_p3), %v664_v1 }
   0xe   : > { %s757_s9 = smov (!%p164_p4, %s654_s9), 1  ;;  %574 = vmatpush3.bf16.msra.mxu1 %v220_v6 }
   0xf   : > { %s601_s21 = smul.u32 12, %s757_s9  ;;  %s559_s29 = sshll.u32 %s757_s9, 3 }
  0x10   : > { %s180_s4 = scalar_lea.vmem %s751_s2, %s559_s29 }
  0x11   : > { %s168_s24 = scalar_lea.vmem %s749_s0, %s601_s21 }
  0x12   : > { %v182_v9 = vld [vmem:[%s168_s24] sm:$0xf]  ;;  %v183_v10 = vld [vmem:[%s168_s24 + $0x4] sm:$0xf]  ;;  %v322_v19 = vld [vmem:[%s168_s24 + $0x8] sm:$0xf] }
  0x13   : > { %v187_v11 = vld [vmem:[%s168_s24] sm:$0xc]  ;;  %v544_v12 = vcombine.low %v182_v9, %v183_v10  ;;  %v636_v14 = vld [vmem:[%s168_s24 + $0x8] ss:$0 sps:$4 sm:$0x33]   ;;  %v551_v20 = vcombine.low %v183_v10, %v322_v19 }
  0x14   : > { %v539_v13 = vcombine.low %v187_v11, %v183_v10  ;;  %v203_v16 = vrot.slane %v636_v14, 2 }
  0x15   : > { %584 = vmatmul.mubr.msk.bf16.vlgmr.msra.gmra.mrb[0].mxu0 %vm214_vm2, %v544_v12 }
  0x16   : > { %v202_v15 = vrot.slane %v539_v13, 2  ;;  %588 = vmatpush3.bf16.msra.mxu0 %v631_v7  ;;  %591 = vmatprep.mubr.msk.bf16.mxu0 %vm665_vm1, %v664_v1 }
  0x17   : > { %589 = vmatprep.subr.bf16.mxu0 %v664_v1 }
  0x18   : > { %v204_v18 = vsel %vm201_vm3, %v202_v15, %v203_v16 }
  0x19   : > { %576 = vmatmul.mubr.msk.bf16.vlgmr.msra.gmra.mrb[0].mxu1 %vm214_vm2, %v204_v18 }
  0x1a   : > { %590 = vmatpush3.bf16.msra.mxu0 %v343_v17 }
  0x21   : > { %592 = vmatmul.mubr.msk.bf16.vlgmr.msra.gmra.mrb[0].mxu0 %vm214_vm2, %v551_v20 }
  0xec   : > { %v256_v21 = vpop.f32.mrb[0].mxu1 }
  0xed   : > { %v577_v22 = vpop.f32.mrb[1].mxu1 }
  0xee   : > { %v259_v23 = vpop.f32.mrb[2].mxu1 }
  0xef   : > { %v578_v24 = vpop.f32.mrb[3].mxu1 }
  0xf4   : > { %v379_v25 = vpop.f32.mrb[0].mxu0 }
  0xf5   : > { %v595_v26 = vadd.f32 %v379_v25, %v256_v21  ;;  %v593_v27 = vpop.f32.mrb[1].mxu0 }
  0xf6   : > { %v382_v28 = vpop.f32.mrb[2].mxu0 }
  0xf7   : > { %v596_v29 = vadd.f32 %v382_v28, %v259_v23  ;;  %v594_v30 = vpop.f32.mrb[3].mxu0  ;;  %v389_v31 = vsel %vm388_vm4, %v595_v26, 0.0 }
  0xf9   : > { %v390_v32 = vsel %vm388_vm4, %v596_v29, 0.0 }
  0xfa   : > { %v391_v33 = vadd.f32 %v390_v32, %v389_v31 }
  0xfc   : > { %v392_v34 = vrot.slane %v391_v33, 4 }
  0xfe   : > { %v393_v35 = vadd.f32 %v392_v34, %v391_v33 }
 0x100   : > { %v394_v36 = vrot.slane %v393_v35, 2 }
 0x102   : > { %v395_v37 = vadd.f32 %v394_v36, %v393_v35 }
 0x104   : > { %v396_v38 = vrot.slane %v395_v37, 1 }
 0x106   : > { %v397_v39 = vadd.f32 %v396_v38, %v395_v37 }
 0x108   : > { %v398_v40 = vmul.f32 0.0625, %v397_v39 }
 0x10a   : > { %v399_v41 = vsub.f32 %v595_v26, %v398_v40  ;;  %v400_v42 = vsub.f32 %v596_v29, %v398_v40 }
 0x10c   : > { %v401_v43 = vmul.f32 %v399_v41, %v399_v41  ;;  %v402_v44 = vmul.f32 %v400_v42, %v400_v42 }
 0x10e   : > { %v403_v45 = vsel %vm388_vm4, %v401_v43, 0.0  ;;  %v404_v46 = vsel %vm388_vm4, %v402_v44, 0.0 }
 0x10f   : > { %v405_v47 = vadd.f32 %v404_v46, %v403_v45 }
 0x111   : > { %v406_v48 = vrot.slane %v405_v47, 4 }
 0x113   : > { %v407_v49 = vadd.f32 %v406_v48, %v405_v47 }
 0x115   : > { %v408_v50 = vrot.slane %v407_v49, 2 }
 0x117   : > { %v409_v51 = vadd.f32 %v408_v50, %v407_v49 }
 0x119   : > { %v410_v52 = vrot.slane %v409_v51, 1 }
 0x11b   : > { %v411_v53 = vadd.f32 %v410_v52, %v409_v51 }
 0x11d   : > { %v412_v54 = vmul.f32 0.0625, %v411_v53 }
 0x11f   : > { %v413_v55 = vadd.f32 1e-05, %v412_v54 }
 0x121   : > { %638 = vrsqrt.f32 %v413_v55 }
 0x12b   : > { %v639_v56 = vpop.eup %638 }
 0x12c   : > { %v415_v57 = vmul.f32 %v639_v56, %v399_v41  ;;  %v416_v58 = vmul.f32 %v639_v56, %v400_v42 }
 0x12e   : > { %vm417_vm5 = vcmp.gt.f32.partialorder %v415_v57, 0.0  ;;  %vm418_vm6 = vcmp.gt.f32.partialorder %v416_v58, 0.0  ;;  %v419_v59 = vmul.f32 0.2, %v415_v57  ;;  %v420_v60 = vmul.f32 0.2, %v416_v58 }
 0x130   : > { %v421_v61 = vsel %vm417_vm5, %v415_v57, %v419_v59  ;;  %v422_v62 = vsel %vm418_vm6, %v416_v58, %v420_v60 }
 0x131   : > { %v560_v63 = vpack.c.bf16 %v421_v61, %v421_v61  ;;  %v561_v0 = vpack.c.bf16 %v422_v62, %v422_v62 }
 0x133   : > { %432 = vst.msk [vmem:[%s180_s4] sm:$0xf] %vm431_vm7, %v560_v63  ;;  %433 = vst.msk [vmem:[%s180_s4 + $0x4] sm:$0xf] %vm431_vm7, %v561_v0 }
 0x134 PF: > { %s12_s11 = sadd.s32 1, %s662_s11   ;;  %s752_s9 = smov %s658_s10 }
 0x135   : > { %p9_p5 = scmp.ge.s32.totalorder %s12_s11, 4   ;;  %s753_s10 = smov %s755_s12 }
 0x137   :  { %11 = sbr.rel (!%p9_p5) target bundleno = 2 (0x2), region = 63 }

// kernel: recnet_forward.19
= control target key start
LH: loop header
LB: loop body
LE: loop exit
PB: predicated region body
PF: predicated region fallthrough
CT: control target
= control target key end

     0   :  { %s671_s9 = smov 0   ;;  %s673_s10 = smov 0   ;;  %s741_s0 = inlined_call_operand.vmem [shape: bf16[2,8,48], index: 0, kind: input, shape index: {}]   ;;  %s742_s1 = inlined_call_operand.vmem [shape: bf16[3,48,32], index: 1, kind: input, shape index: {}]   ;;  %s743_s2 = inlined_call_operand.vmem [shape: bf16[2,4,32], index: 2, kind: output, shape index: {}]  }
   0x1   :  { %s675_s11 = smov 0  }
   0x2 LB: > { %s24_s12 = sadd.s32 1, %s648_s10  ;;  %p513_p0 = scmp.ge.s32.totalorder %s652_s11, 1  ;;  %s652_s11 = sphi %s675_s11, %s12_s11   ;;  %s648_s10 = sphi %s673_s10, %s745_s10   ;;  %s644_s9 = sphi %s671_s9, %s744_s9  }
   0x3   : > { %p26_p1 = scmp.ge.s32.totalorder %s24_s12, 2  ;;  %p134_p2 = scmp.lt.s32.totalorder %s652_s11, 3 }
   0x5   : > { %s747_s12 = smov (%p26_p1, %s24_s12), 0  ;;  %p135_p3 = pnand %p513_p0, %p134_p2 }
   0x6   : > { %v617_v0 = vld [vmem:[%s742_s1] sm:$0xff] (!%p135_p3)   ;;  %v654_v1 = vmov (!%p135_p3), 0.0   ;;  %v618_v2 = vld [vmem:[%s742_s1 + $0x8] sm:$0xff] (!%p135_p3)   ;;  %vm655_vm0 = vmmov (!%p135_p3), 0   ;;  %p161_p4 = scmp.lt.s32.totalorder (!%p135_p3), %s644_s9, 1  ;;  %v620_v3 = vld [vmem:[%s742_s1 + $0x18] sm:$0xff] (!%p135_p3)  }
   0x7   : > { %138 = sbr.rel (%p135_p3) target bundleno = 300 (0x12c), region = 28  ;;  %566 = vmatprep.subr.bf16.mxu0 (!%p135_p3), %v654_v1  ;;  %556 = vmatprep.subr.bf16.mxu1 (!%p135_p3), %v654_v1  ;;  %v623_v4 = vld [vmem:[%s742_s1 + $0x20] sm:$0xff] (!%p135_p3)   ;;  %v619_v5 = vld [vmem:[%s742_s1 + $0x10] sm:$0xff] (!%p135_p3)   ;;  %vm214_vm1 = vcmask (!%p135_p3), 392192   ;;  %v625_v7 = vld [vmem:[%s742_s1 + $0x28] sm:$0xff] (!%p135_p3)   ;;  %vm393_vm2 = vcmask (!%p135_p3), 257024  }
   0x8   : > { %567 = vmatpush3.bf16.msra.mxu0 (!%p135_p3), %v617_v0  ;;  %572 = vmatprep.mubr.msk.bf16.mxu0 (!%p135_p3), %vm655_vm0, %v654_v1  ;;  %v622_v8 = vld [vmem:[%s742_s1 + $0x30] sm:$0xff] (!%p135_p3)   ;;  %v624_v11 = vld [vmem:[%s742_s1 + $0x38] sm:$0xff] (!%p135_p3)   ;;  %v626_v13 = vld [vmem:[%s742_s1 + $0x40] sm:$0xff] (!%p135_p3)   ;;  %vm419_vm4 = vcmask (!%p135_p3), 254976  }
   0x9   : > { %568 = vmatprep.subr.bf16.mxu0 (!%p135_p3), %v654_v1  ;;  %562 = vmatprep.mubr.msk.bf16.mxu1 (!%p135_p3), %vm655_vm0, %v654_v1 }
   0xa   : > { %557 = vmatpush3.bf16.msra.mxu1 (!%p135_p3), %v620_v3 }
   0xb   : > { %558 = vmatprep.subr.bf16.mxu1 (!%p135_p3), %v654_v1 }
   0xc   : > { %569 = vmatpush3.bf16.msra.mxu0 (!%p135_p3), %v618_v2 }
   0xd   : > { %570 = vmatprep.subr.bf16.mxu0 (!%p135_p3), %v654_v1 }
   0xe   : > { %s749_s9 = smov (!%p161_p4, %s644_s9), 1  ;;  %559 = vmatpush3.bf16.msra.mxu1 %v623_v4 }
   0xf   : > { %s514_s23 = sshll.u32 %s749_s9, 2  ;;  %560 = vmatprep.subr.bf16.mxu1 %v654_v1  ;;  %s515_s7 = sshll.u32 %s749_s9, 1 }
  0x10   : > { %s164_s26 = scalar_lea.vmem %s741_s0, %s514_s23  ;;  %571 = vmatpush3.bf16.msra.mxu0 %v619_v5  ;;  %s175_s14 = scalar_lea.vmem %s743_s2, %s515_s7 }
  0x11   : > { %v177_v6 = vld [vmem:[%s164_s26] sm:$0x3]  ;;  %576 = vmatprep.subr.bf16.mxu0 %v654_v1 }
  0x12   : > { %v627_v9 = vld [vmem:[%s164_s26] ss:$0 sps:$4 sm:$0x66]   ;;  %561 = vmatpush3.bf16.msra.mxu1 %v625_v7 }
  0x13   : > { %v195_v10 = vrot.slane %v627_v9, 1  ;;  %573 = vmatmul.mubr.msk.bf16.vlgmr.msra.gmra.mrb[0].mxu0 %vm214_vm1, %v177_v6  ;;  %v621_v12 = vld [vmem:[%s164_s26] ss:$0 sps:$4 sm:$0xcc]  }
  0x14   : > { %577 = vmatpush3.bf16.msra.mxu0 %v622_v8  ;;  %582 = vmatprep.mubr.msk.bf16.mxu0 %vm655_vm0, %v654_v1  ;;  %v330_v14 = vrot.slane %v621_v12, 2 }
  0x15   : > { %578 = vmatprep.subr.bf16.mxu0 %v654_v1  ;;  %563 = vmatmul.mubr.msk.bf16.vlgmr.msra.gmra.mrb[0].mxu1 %vm214_vm1, %v195_v10 }
  0x18   : > { %579 = vmatpush3.bf16.msra.mxu0 %v624_v11 }
  0x19   : > { %580 = vmatprep.subr.bf16.mxu0 %v654_v1 }
  0x1c   : > { %581 = vmatpush3.bf16.msra.mxu0 %v626_v13 }
  0x1f   : > { %583 = vmatmul.mubr.msk.bf16.vlgmr.msra.gmra.mrb[0].mxu0 %vm214_vm1, %v330_v14 }
  0xe8   : > { %v252_v15 = vpop.f32.mrb[0].mxu1 }
  0xe9   : > { %v564_v16 = vpop.f32.mrb[1].mxu1 }
  0xea   : > { %v255_v17 = vpop.f32.mrb[2].mxu1 }
  0xeb   : > { %v565_v18 = vpop.f32.mrb[3].mxu1 }
  0xf2   : > { %v386_v19 = vpop.f32.mrb[0].mxu0 }
  0xf3   : > { %v586_v20 = vadd.f32 %v386_v19, %v252_v15  ;;  %v584_v21 = vpop.f32.mrb[1].mxu0 }
  0xf4   : > { %v389_v22 = vpop.f32.mrb[2].mxu0 }
  0xf5   : > { %v394_v23 = vsel %vm393_vm2, %v586_v20, 0.0  ;;  %v585_v24 = vpop.f32.mrb[3].mxu0 }
  0xf6   : > { %v395_v25 = vrot.slane %v394_v23, 4 }
  0xf8   : > { %v396_v26 = vadd.f32 %v395_v25, %v394_v23 }
  0xfa   : > { %v397_v27 = vrot.slane %v396_v26, 2 }
  0xfc   : > { %v398_v28 = vadd.f32 %v397_v27, %v396_v26 }
  0xfe   : > { %v399_v29 = vrot.slane %v398_v28, 1 }
 0x100   : > { %v400_v30 = vadd.f32 %v399_v29, %v398_v28 }
 0x102   : > { %v401_v31 = vmul.f32 0.25, %v400_v30 }
 0x104   : > { %v402_v32 = vsub.f32 %v586_v20, %v401_v31 }
 0x106   : > { %v403_v33 = vmul.f32 %v402_v32, %v402_v32 }
 0x108   : > { %v404_v34 = vsel %vm393_vm2, %v403_v33, 0.0 }
 0x109   : > { %v405_v35 = vrot.slane %v404_v34, 4 }
 0x10b   : > { %v406_v36 = vadd.f32 %v405_v35, %v404_v34 }
 0x10d   : > { %v407_v37 = vrot.slane %v406_v36, 2 }
 0x10f   : > { %v408_v38 = vadd.f32 %v407_v37, %v406_v36 }
 0x111   : > { %v409_v39 = vrot.slane %v408_v38, 1 }
 0x113   : > { %v410_v40 = vadd.f32 %v409_v39, %v408_v38 }
 0x115   : > { %v411_v41 = vmul.f32 0.25, %v410_v40 }
 0x117   : > { %v412_v42 = vadd.f32 1e-05, %v411_v41 }
 0x119   : > { %628 = vrsqrt.f32 %v412_v42 }
 0x123   : > { %v629_v43 = vpop.eup %628 }
 0x124   : > { %v414_v44 = vmul.f32 %v629_v43, %v402_v32 }
 0x126   : > { %vm415_vm3 = vcmp.gt.f32.partialorder %v414_v44, 0.0  ;;  %v416_v45 = vmul.f32 0.2, %v414_v44 }
 0x128   : > { %v417_v46 = vsel %vm415_vm3, %v414_v44, %v416_v45 }
 0x129   : > { %v418_v47 = vpack.c.bf16 %v417_v46, %v417_v46 }
 0x12b   : > { %420 = vst.msk [vmem:[%s175_s14] sm:$0x3] %vm419_vm4, %v418_v47 }
 0x12c PF: > { %s12_s11 = sadd.s32 1, %s652_s11   ;;  %s744_s9 = smov %s648_s10 }
 0x12d   : > { %p9_p5 = scmp.ge.s32.totalorder %s12_s11, 4   ;;  %s745_s10 = smov %s747_s12 }
 0x12f   :  { %11 = sbr.rel (!%p9_p5) target bundleno = 2 (0x2), region = 63 }

// kernel: recnet_forward.22
= control target key start
LH: loop header
LB: loop body
LE: loop exit
PB: predicated region body
PF: predicated region fallthrough
CT: control target
= control target key end

     0   :  { %s469_s12 = smov 0   ;;  %s471_s13 = smov 0   ;;  %s511_s0 = inlined_call_operand.vmem [shape: bf16[2,1,32], index: 0, kind: input, shape index: {}]   ;;  %s512_s1 = inlined_call_operand.vmem [shape: bf16[1,32,64], index: 1, kind: input, shape index: {}]   ;;  %s513_s2 = inlined_call_operand.vmem [shape: f32[1,64], index: 2, kind: input, shape index: {}]   ;;  %s514_s3 = inlined_call_operand.vmem [shape: bf16[2,1,64], index: 3, kind: output, shape index: {}]  }
   0x1   :  { %s473_s14 = smov 0  }
   0x2 LB: > { %s25_s15 = sadd.s32 1, %s441_s13  ;;  %p378_p0 = scmp.ge.s32.totalorder %s445_s14, 1  ;;  %s445_s14 = sphi %s473_s14, %s13_s14   ;;  %s441_s13 = sphi %s471_s13, %s516_s13   ;;  %s437_s12 = sphi %s469_s12, %s515_s12  }
   0x3   : > { %p27_p1 = scmp.ge.s32.totalorder %s25_s15, 2  ;;  %p166_p2 = scmp.lt.s32.totalorder %s445_s14, 3 }
   0x5   : > { %s518_s15 = smov (%p27_p1, %s25_s15), 0  ;;  %p167_p3 = pnand %p378_p0, %p166_p2 }
   0x6   : > { %v421_v0 = vld [vmem:[%s512_s1] sm:$0xff] (!%p167_p3)   ;;  %v447_v1 = vmov (!%p167_p3), 0.0   ;;  %v422_v2 = vld [vmem:[%s512_s1 + $0x8] sm:$0xff] (!%p167_p3)   ;;  %vm448_vm0 = vmmov (!%p167_p3), 0   ;;  %p196_p4 = scmp.lt.s32.totalorder (!%p167_p3), %s437_s12, 1  ;;  %vm231_vm1 = vcmask (!%p167_p3), 261120  }
   0x7   : > { %170 = sbr.rel (%p167_p3) target bundleno = 235 (0xeb), region = 32  ;;  %387 = vmatprep.subr.bf16.mxu0 (!%p167_p3), %v447_v1  ;;  %391 = vmatprep.mubr.msk.bf16.mxu0 (!%p167_p3), %vm448_vm0, %v447_v1  ;;  %v218_v4 = vld [vmem:[%s513_s2] sm:$0x1] (!%p167_p3)  ;;  %vm276_vm2 = vcmask (!%p167_p3), 516096   ;;  %vm277_vm3 = vsmask.f32 (!%p167_p3), 256 }
   0x8   : > { %388 = vmatpush3.bf16.msra.mxu0 (!%p167_p3), %v421_v0  ;;  %vm278_vm4 = vmand (!%p167_p3), %vm276_vm2, %vm277_vm3 }
   0x9   : > { %389 = vmatprep.subr.bf16.mxu0 (!%p167_p3), %v447_v1 }
   0xc   : > { %390 = vmatpush3.bf16.msra.mxu0 (!%p167_p3), %v422_v2 }
   0xe   : > { %s520_s12 = smov (!%p196_p4, %s437_s12), 1 }
   0xf   : > { %s198_s22 = scalar_lea.vmem %s511_s0, %s520_s12  ;;  %s211_s27 = scalar_lea.vmem %s514_s3, %s520_s12 }
  0x10   : > { %v213_v3 = vld [vmem:[%s198_s22] sm:$0x1] }
  0x11   : > { %392 = vmatmul.mubr.msk.bf16.vlgmr.msra.gmra.mrb[0].mxu0 %vm231_vm1, %v213_v3  ;;  %v279_v8 = vld [vmem:[%s211_s27] sm:$0x1] }
  0xe4   : > { %v269_v5 = vpop.f32.mrb[0].mxu0 }
  0xe5   : > { %v270_v6 = vadd.f32 %v269_v5, %v218_v4  ;;  %v393_v7 = vpop.f32.mrb[1].mxu0 }
  0xe6   : > { %v272_v9 = vpop.f32.mrb[2].mxu0 }
  0xe7   : > { %v275_v10 = vpack.c.bf16 %v270_v6, %v270_v6  ;;  %v394_v11 = vpop.f32.mrb[3].mxu0 }
  0xe9   : > { %v280_v12 = vsel %vm278_vm4, %v275_v10, %v279_v8 }
  0xea   : > { %281 = vst [vmem:[%s211_s27] sm:$0x1] %v280_v12 }
  0xeb PF: > { %s13_s14 = sadd.s32 1, %s445_s14   ;;  %s515_s12 = smov %s441_s13 }
  0xec   : > { %p10_p5 = scmp.ge.s32.totalorder %s13_s14, 4   ;;  %s516_s13 = smov %s518_s15 }
  0xee   :  { %12 = sbr.rel (!%p10_p5) target bundleno = 2 (0x2), region = 68 }

// kernel: recnet_forward.20
= control target key start
LH: loop header
LB: loop body
LE: loop exit
PB: predicated region body
PF: predicated region fallthrough
CT: control target
= control target key end

     0   :  { %s790_s9 = smov 0   ;;  %s792_s10 = smov 0   ;;  %s916_s0 = inlined_call_operand.vmem [shape: bf16[2,3,96], index: 0, kind: input, shape index: {}]   ;;  %s917_s1 = inlined_call_operand.vmem [shape: bf16[3,96,64], index: 1, kind: input, shape index: {}]   ;;  %s918_s2 = inlined_call_operand.vmem [shape: bf16[2,1,64], index: 2, kind: output, shape index: {}]  }
   0x1   :  { %s794_s11 = smov 0  }
   0x2 LB: > { %s24_s12 = sadd.s32 1, %s766_s10  ;;  %p577_p0 = scmp.ge.s32.totalorder %s770_s11, 1  ;;  %s770_s11 = sphi %s794_s11, %s12_s11   ;;  %s766_s10 = sphi %s792_s10, %s920_s10   ;;  %s762_s9 = sphi %s790_s9, %s919_s9  }
   0x3   : > { %p26_p1 = scmp.ge.s32.totalorder %s24_s12, 2  ;;  %p134_p2 = scmp.lt.s32.totalorder %s770_s11, 3 }
   0x5   : > { %s922_s12 = smov (%p26_p1, %s24_s12), 0  ;;  %p135_p3 = pnand %p577_p0, %p134_p2 }
   0x6   : > { %v728_v0 = vld [vmem:[%s917_s1] sm:$0xff] (!%p135_p3)   ;;  %v772_v1 = vmov (!%p135_p3), 0.0   ;;  %v729_v2 = vld [vmem:[%s917_s1 + $0x8] sm:$0xff] (!%p135_p3)   ;;  %vm773_vm0 = vmmov (!%p135_p3), 0   ;;  %v730_v3 = vld [vmem:[%s917_s1 + $0x10] sm:$0xff] (!%p135_p3)   ;;  %p160_p4 = scmp.lt.s32.totalorder (!%p135_p3), %s762_s9, 1  ;;  %v205_v9 = vlaneseq (!%p135_p3) }
   0x7   : > { %138 = sbr.rel (%p135_p3) target bundleno = 295 (0x127), region = 28  ;;  %664 = vmatprep.subr.bf16.mxu0 (!%p135_p3), %v772_v1  ;;  %648 = vmatprep.subr.bf16.mxu1 (!%p135_p3), %v772_v1  ;;  %v734_v4 = vld [vmem:[%s917_s1 + $0x30] sm:$0xff] (!%p135_p3)   ;;  %v731_v5 = vld [vmem:[%s917_s1 + $0x18] sm:$0xff] (!%p135_p3)   ;;  %v774_v7 = vmov (!%p135_p3), 1983009808   ;;  %v738_v10 = vld [vmem:[%s917_s1 + $0x40] sm:$0xff] (!%p135_p3)  }
   0x8   : > { %665 = vmatpush3.bf16.msra.mxu0 (!%p135_p3), %v728_v0  ;;  %676 = vmatprep.mubr.msk.bf16.mxu0 (!%p135_p3), %vm773_vm0, %v772_v1  ;;  %v736_v6 = vld [vmem:[%s917_s1 + $0x38] sm:$0xff] (!%p135_p3)   ;;  %v203_v8 = vunpack.c.l.s4 (!%p135_p3), %v774_v7  ;;  %v732_v11 = vld [vmem:[%s917_s1 + $0x20] sm:$0xff] (!%p135_p3)   ;;  %v206_v13 = vshrl.u32 (!%p135_p3), %v205_v9, 7  ;;  %v740_v14 = vld [vmem:[%s917_s1 + $0x48] sm:$0xff] (!%p135_p3)   ;;  %vm248_vm1 = vcmask (!%p135_p3), 785408   ;;  %vm485_vm2 = vcmask (!%p135_p3), 516096  }
   0x9   : > { %666 = vmatprep.subr.bf16.mxu0 (!%p135_p3), %v772_v1  ;;  %660 = vmatprep.mubr.msk.bf16.mxu1 (!%p135_p3), %vm773_vm0, %v772_v1  ;;  %v733_v15 = vld [vmem:[%s917_s1 + $0x28] sm:$0xff] (!%p135_p3)   ;;  %v742_v17 = vld [vmem:[%s917_s1 + $0x50] sm:$0xff] (!%p135_p3)   ;;  %v735_v19 = vld [vmem:[%s917_s1 + $0x60] sm:$0xff] (!%p135_p3)   ;;  %vm486_vm3 = vsmask.f32 (!%p135_p3), 256 }
   0xa   : > { %649 = vmatpush3.bf16.msra.mxu1 (!%p135_p3), %v734_v4  ;;  %v204_v12 = vunpack.c.0.s8 (!%p135_p3), %v203_v8  ;;  %v744_v21 = vld [vmem:[%s917_s1 + $0x58] sm:$0xff] (!%p135_p3)   ;;  %v737_v22 = vld [vmem:[%s917_s1 + $0x68] sm:$0xff] (!%p135_p3)   ;;  %v739_v24 = vld [vmem:[%s917_s1 + $0x70] sm:$0xff] (!%p135_p3)  }
   0xb   : > { %650 = vmatprep.subr.bf16.mxu1 (!%p135_p3), %v772_v1  ;;  %v741_v25 = vld [vmem:[%s917_s1 + $0x78] sm:$0xff] (!%p135_p3)   ;;  %v743_v26 = vld [vmem:[%s917_s1 + $0x80] sm:$0xff] (!%p135_p3)   ;;  %v745_v28 = vld [vmem:[%s917_s1 + $0x88] sm:$0xff] (!%p135_p3)  }
   0xc   : > { %667 = vmatpush3.bf16.msra.mxu0 (!%p135_p3), %v729_v2  ;;  %v207_v16 = vsub.s32 (!%p135_p3), %v204_v12, %v206_v13  ;;  %vm487_vm5 = vmand (!%p135_p3), %vm485_vm2, %vm486_vm3 }
   0xd   : > { %668 = vmatprep.subr.bf16.mxu0 (!%p135_p3), %v772_v1 }
   0xe   : > { %s924_s9 = smov (!%p160_p4, %s762_s9), 1  ;;  %651 = vmatpush3.bf16.msra.mxu1 %v736_v6 }
   0xf   : > { %652 = vmatprep.subr.bf16.mxu1 %v772_v1  ;;  %s578_s29 = sshll.u32 %s924_s9, 1  ;;  %s173_s3 = scalar_lea.vmem %s918_s2, %s924_s9 }
  0x10   : > { %669 = vmatpush3.bf16.msra.mxu0 %v730_v3  ;;  %s862_s8 = scalar_lea.vmem %s916_s0, %s578_s29  ;;  %v488_v45 = vld [vmem:[%s173_s3] sm:$0x1] }
  0x11   : > { %670 = vmatprep.subr.bf16.mxu0 %v772_v1  ;;  %v175_v18 = vld [vmem:[%s862_s8] sm:$0x1]  ;;  %v617_v27 = vld.sshfl [vmem:[%s862_s8] sm:$0x2 pattern:$0x76325410] }
  0x12   : > { %653 = vmatpush3.bf16.msra.mxu1 %v738_v10  ;;  %v208_v20 = vrot.slane %v175_v18, %v207_v16  ;;  %v393_v29 = vrot.slane %v617_v27, 1 }
  0x13   : > { %654 = vmatprep.subr.bf16.mxu1 %v772_v1 }
  0x14   : > { %671 = vmatpush3.bf16.msra.mxu0 %v731_v5  ;;  %v210_v23 = vshrl.u32 %v208_v20, 16 }
  0x15   : > { %672 = vmatprep.subr.bf16.mxu0 %v772_v1 }
  0x16   : > { %655 = vmatpush3.bf16.msra.mxu1 %v740_v14 }
  0x17   : > { %656 = vmatprep.subr.bf16.mxu1 %v772_v1 }
  0x18   : > { %673 = vmatpush3.bf16.msra.mxu0 %v732_v11 }
  0x19   : > { %674 = vmatprep.subr.bf16.mxu0 %v772_v1 }
  0x1a   : > { %657 = vmatpush3.bf16.msra.mxu1 %v742_v17 }
  0x1b   : > { %658 = vmatprep.subr.bf16.mxu1 %v772_v1 }
  0x1c   : > { %675 = vmatpush3.bf16.msra.mxu0 %v733_v15 }
  0x1d   : > { %680 = vmatprep.subr.bf16.mxu0 %v772_v1 }
  0x1e   : > { %659 = vmatpush3.bf16.msra.mxu1 %v744_v21 }
  0x1f   : > { %677 = vmatmul.mubr.msk.bf16.vlgmr.msra.gmra.mrb[0].mxu0 %vm248_vm1, %v175_v18 }
  0x20   : > { %681 = vmatpush3.bf16.msra.mxu0 %v735_v19  ;;  %692 = vmatprep.mubr.msk.bf16.mxu0 %vm773_vm0, %v772_v1 }
  0x21   : > { %682 = vmatprep.subr.bf16.mxu0 %v772_v1  ;;  %661 = vmatmul.mubr.msk.bf16.vlgmr.msra.gmra.mrb[0].mxu1 %vm248_vm1, %v210_v23 }
  0x24   : > { %683 = vmatpush3.bf16.msra.mxu0 %v737_v22 }
  0x25   : > { %684 = vmatprep.subr.bf16.mxu0 %v772_v1 }
  0x28   : > { %685 = vmatpush3.bf16.msra.mxu0 %v739_v24 }
  0x29   : > { %686 = vmatprep.subr.bf16.mxu0 %v772_v1 }
  0x2c   : > { %687 = vmatpush3.bf16.msra.mxu0 %v741_v25 }
  0x2d   : > { %688 = vmatprep.subr.bf16.mxu0 %v772_v1 }
  0x30   : > { %689 = vmatpush3.bf16.msra.mxu0 %v743_v26 }
  0x31   : > { %690 = vmatprep.subr.bf16.mxu0 %v772_v1 }
  0x34   : > { %691 = vmatpush3.bf16.msra.mxu0 %v745_v28 }
  0x37   : > { %693 = vmatmul.mubr.msk.bf16.vlgmr.msra.gmra.mrb[0].mxu0 %vm248_vm1, %v393_v29 }
  0xf4   : > { %v286_v30 = vpop.f32.mrb[0].mxu1 }
  0xf5   : > { %v662_v31 = vpop.f32.mrb[1].mxu1 }
  0xf6   : > { %v289_v32 = vpop.f32.mrb[2].mxu1 }
  0xf7   : > { %v663_v33 = vpop.f32.mrb[3].mxu1 }
 0x10a   : > { %v467_v34 = vpop.f32.mrb[0].mxu0 }
 0x10b   : > { %v696_v35 = vadd.f32 %v467_v34, %v286_v30  ;;  %v694_v36 = vpop.f32.mrb[1].mxu0 }
 0x10c   : > { %v470_v37 = vpop.f32.mrb[2].mxu0 }
 0x10d   : > { %v475_v38 = vsub.f32 %v696_v35, %v696_v35  ;;  %v695_v39 = vpop.f32.mrb[3].mxu0 }
 0x10f   : > { %v476_v40 = vmul.f32 %v475_v38, %v475_v38 }
 0x111   : > { %v478_v41 = vadd.f32 1e-05, %v476_v40 }
 0x113   : > { %746 = vrsqrt.f32 %v478_v41 }
 0x11d   : > { %v747_v42 = vpop.eup %746 }
 0x11e   : > { %v480_v43 = vmul.f32 %v747_v42, %v475_v38 }
 0x120   : > { %vm481_vm4 = vcmp.gt.f32.partialorder %v480_v43, 0.0  ;;  %v482_v44 = vmul.f32 0.2, %v480_v43 }
 0x122   : > { %v483_v46 = vsel %vm481_vm4, %v480_v43, %v482_v44 }
 0x123   : > { %v484_v47 = vpack.c.bf16 %v483_v46, %v483_v46 }
 0x125   : > { %v489_v48 = vsel %vm487_vm5, %v484_v47, %v488_v45 }
 0x126   : > { %490 = vst [vmem:[%s173_s3] sm:$0x1] %v489_v48 }
 0x127 PF: > { %s12_s11 = sadd.s32 1, %s770_s11   ;;  %s919_s9 = smov %s766_s10 }
 0x128   : > { %p9_p5 = scmp.ge.s32.totalorder %s12_s11, 4   ;;  %s920_s10 = smov %s922_s12 }
 0x12a   :  { %11 = sbr.rel (!%p9_p5) target bundleno = 2 (0x2), region = 63 }

// kernel: recnet_forward.21
= control target key start
LH: loop header
LB: loop body
LE: loop exit
PB: predicated region body
PF: predicated region fallthrough
CT: control target
= control target key end

     0   :  { %s935_s9 = smov 0   ;;  %s937_s10 = smov 0   ;;  %s1129_s0 = inlined_call_operand.vmem [shape: bf16[2,3,192], index: 0, kind: input, shape index: {}]   ;;  %s1130_s1 = inlined_call_operand.vmem [shape: bf16[3,192,64], index: 1, kind: input, shape index: {}]   ;;  %s1131_s2 = inlined_call_operand.vmem [shape: bf16[2,1,64], index: 2, kind: output, shape index: {}]  }
   0x1   :  { %s939_s11 = smov 0  }
   0x2 LB: > { %s24_s12 = sadd.s32 1, %s913_s10  ;;  %p732_p0 = scmp.ge.s32.totalorder %s917_s11, 1  ;;  %s917_s11 = sphi %s939_s11, %s12_s11   ;;  %s913_s10 = sphi %s937_s10, %s1133_s10   ;;  %s909_s9 = sphi %s935_s9, %s1132_s9  }
   0x3   : > { %p26_p1 = scmp.ge.s32.totalorder %s24_s12, 2  ;;  %p135_p2 = scmp.lt.s32.totalorder %s917_s11, 3 }
   0x5   : > { %s1135_s12 = smov (%p26_p1, %s24_s12), 0  ;;  %p136_p3 = pnand %p732_p0, %p135_p2 }
   0x6   : > { %v857_v0 = vld [vmem:[%s1130_s1] sm:$0xff] (!%p136_p3)   ;;  %v919_v1 = vmov (!%p136_p3), 0   ;;  %p162_p4 = scmp.lt.s32.totalorder (!%p136_p3), %s909_s9, 1  ;;  %v858_v2 = vld [vmem:[%s1130_s1 + $0x8] sm:$0xff] (!%p136_p3)   ;;  %v859_v3 = vld [vmem:[%s1130_s1 + $0x10] sm:$0xff] (!%p136_p3)   ;;  %vm316_vm0 = vcmask (!%p136_p3), 523264  }
   0x7   : > { %139 = sbr.rel (%p136_p3) target bundleno = 343 (0x157), region = 28  ;;  %435 = vmatprep.subr.bf16.mxu0 (!%p136_p3), %v919_v1  ;;  %320 = vmatprep.subr.bf16.mxu1 (!%p136_p3), %v919_v1  ;;  %v860_v4 = vld [vmem:[%s1130_s1 + $0x18] sm:$0xff] (!%p136_p3)   ;;  %v869_v5 = vld [vmem:[%s1130_s1 + $0x60] sm:$0xff] (!%p136_p3)   ;;  %v871_v9 = vld [vmem:[%s1130_s1 + $0x68] sm:$0xff] (!%p136_p3)   ;;  %vm640_vm1 = vcmask (!%p136_p3), 516096  }
   0x8   : > { %436 = vmatpush1.bf16.msra.mxu0 (!%p136_p3), %v857_v0  ;;  %v861_v7 = vld [vmem:[%s1130_s1 + $0x20] sm:$0xff] (!%p136_p3)   ;;  %321 = vmatpush1.bf16.msra.mxu1 (!%p136_p3), %v869_v5  ;;  %v862_v11 = vld [vmem:[%s1130_s1 + $0x28] sm:$0xff] (!%p136_p3)   ;;  %v873_v12 = vld [vmem:[%s1130_s1 + $0x70] sm:$0xff] (!%p136_p3)   ;;  %vm641_vm2 = vsmask.f32 (!%p136_p3), 256 }
   0x9   : > { %437 = vmatprep.subr.bf16.mxu0 (!%p136_p3), %v919_v1  ;;  %322 = vmatprep.subr.bf16.mxu1 (!%p136_p3), %v919_v1  ;;  %v863_v13 = vld [vmem:[%s1130_s1 + $0x30] sm:$0xff] (!%p136_p3)   ;;  %v875_v14 = vld [vmem:[%s1130_s1 + $0x78] sm:$0xff] (!%p136_p3)   ;;  %v877_v16 = vld [vmem:[%s1130_s1 + $0x80] sm:$0xff] (!%p136_p3)  }
   0xa   : > { %v864_v15 = vld [vmem:[%s1130_s1 + $0x38] sm:$0xff] (!%p136_p3)   ;;  %v865_v17 = vld [vmem:[%s1130_s1 + $0x40] sm:$0xff] (!%p136_p3)   ;;  %v879_v18 = vld [vmem:[%s1130_s1 + $0x88] sm:$0xff] (!%p136_p3)  }
   0xb   : > { %v866_v19 = vld [vmem:[%s1130_s1 + $0x48] sm:$0xff] (!%p136_p3)   ;;  %v881_v20 = vld [vmem:[%s1130_s1 + $0x90] sm:$0xff] (!%p136_p3)   ;;  %v883_v22 = vld [vmem:[%s1130_s1 + $0x98] sm:$0xff] (!%p136_p3)  }
   0xc   : > { %438 = vmatpush1.bf16.msra.mxu0 (!%p136_p3), %v858_v2  ;;  %323 = vmatpush1.bf16.msra.mxu1 (!%p136_p3), %v871_v9  ;;  %v867_v21 = vld [vmem:[%s1130_s1 + $0x50] sm:$0xff] (!%p136_p3)   ;;  %v868_v24 = vld [vmem:[%s1130_s1 + $0x58] sm:$0xff] (!%p136_p3)   ;;  %v885_v25 = vld [vmem:[%s1130_s1 + $0xa0] sm:$0xff] (!%p136_p3)  }
   0xd   : > { %439 = vmatprep.subr.bf16.mxu0 (!%p136_p3), %v919_v1  ;;  %324 = vmatprep.subr.bf16.mxu1 (!%p136_p3), %v919_v1  ;;  %v870_v27 = vld [vmem:[%s1130_s1 + $0xc0] sm:$0xff] (!%p136_p3)   ;;  %v887_v28 = vld [vmem:[%s1130_s1 + $0xa8] sm:$0xff] (!%p136_p3)   ;;  %v889_v31 = vld [vmem:[%s1130_s1 + $0xb0] sm:$0xff] (!%p136_p3)  }
   0xe   : > { %s1137_s9 = smov (!%p162_p4, %s909_s9), 1  ;;  %v872_v30 = vld [vmem:[%s1130_s1 + $0xc8] sm:$0xff]   ;;  %v874_v32 = vld [vmem:[%s1130_s1 + $0xd0] sm:$0xff]   ;;  %v891_v33 = vld [vmem:[%s1130_s1 + $0xb8] sm:$0xff]  }
   0xf   : > { %s826_s19 = sshll.u32 %s1137_s9, 2  ;;  %v876_v35 = vld [vmem:[%s1130_s1 + $0xd8] sm:$0xff]   ;;  %v878_v36 = vld [vmem:[%s1130_s1 + $0xe0] sm:$0xff]   ;;  %v880_v37 = vld [vmem:[%s1130_s1 + $0xe8] sm:$0xff]  }
  0x10   : > { %440 = vmatpush1.bf16.msra.mxu0 %v859_v3  ;;  %s975_s24 = scalar_lea.vmem %s1129_s0, %s826_s19  ;;  %325 = vmatpush1.bf16.msra.mxu1 %v873_v12  ;;  %v882_v38 = vld [vmem:[%s1130_s1 + $0xf0] sm:$0xff]   ;;  %v884_v39 = vld [vmem:[%s1130_s1 + $0xf8] sm:$0xff]   ;;  %v886_v40 = vld [vmem:[%s1130_s1 + $0x100] sm:$0xff]   ;;  %s176_s19 = scalar_lea.vmem %s1131_s2, %s1137_s9 }
  0x11   : > { %441 = vmatprep.subr.bf16.mxu0 %v919_v1  ;;  %v982_v6 = vld.sshfl [vmem:[%s975_s24] sm:$0x11 pattern:$0x76325410]  ;;  %326 = vmatprep.subr.bf16.mxu1 %v919_v1  ;;  %v888_v41 = vld [vmem:[%s1130_s1 + $0x108] sm:$0xff]   ;;  %v890_v42 = vld [vmem:[%s1130_s1 + $0x110] sm:$0xff]  }
  0x12   : > { %v236_v8 = vcombine.high %v982_v6, %v982_v6  ;;  %v810_v23 = vld.sshfl [vmem:[%s975_s24] sm:$0x22 pattern:$0x76325410]  ;;  %v238_v34 = vshrl.u32 %v982_v6, 16  ;;  %v892_v43 = vld [vmem:[%s1130_s1 + $0x118] sm:$0xff]   ;;  %vm642_vm4 = vmand %vm640_vm1, %vm641_vm2 }
  0x13   : > { %v509_v26 = vcombine.high %v810_v23, %v810_v23  ;;  %v510_v44 = vrot.slane %v810_v23, 1  ;;  %v643_v60 = vld [vmem:[%s176_s19] sm:$0x1] }
  0x14   : > { %442 = vmatpush1.bf16.msra.mxu0 %v860_v4  ;;  %785 = vmatprep.mubr.msk.bf16.mxu0 %vm316_vm0, %v236_v8  ;;  %v241_v10 = vshrl.u32 %v236_v8, 16 }
  0x15   : > { %443 = vmatprep.subr.bf16.mxu0 %v919_v1  ;;  %327 = vmatpush1.bf16.msra.mxu1 %v875_v14  ;;  %v511_v29 = vrot.slane %v509_v26, 1 }
  0x16   : > { %772 = vmatprep.mubr.msk.bf16.mxu1 %vm316_vm0, %v241_v10  ;;  %328 = vmatprep.subr.bf16.mxu1 %v919_v1 }
  0x18   : > { %444 = vmatpush1.bf16.msra.mxu0 %v861_v7 }
  0x19   : > { %445 = vmatprep.subr.bf16.mxu0 %v919_v1  ;;  %329 = vmatpush1.bf16.msra.mxu1 %v877_v16 }
  0x1a   : > { %330 = vmatprep.subr.bf16.mxu1 %v919_v1 }
  0x1c   : > { %446 = vmatpush1.bf16.msra.mxu0 %v862_v11 }
  0x1d   : > { %447 = vmatprep.subr.bf16.mxu0 %v919_v1  ;;  %331 = vmatpush1.bf16.msra.mxu1 %v879_v18 }
  0x1e   : > { %332 = vmatprep.subr.bf16.mxu1 %v919_v1 }
  0x20   : > { %448 = vmatpush1.bf16.msra.mxu0 %v863_v13 }
  0x21   : > { %449 = vmatprep.subr.bf16.mxu0 %v919_v1  ;;  %333 = vmatpush1.bf16.msra.mxu1 %v881_v20 }
  0x22   : > { %334 = vmatprep.subr.bf16.mxu1 %v919_v1 }
  0x24   : > { %450 = vmatpush1.bf16.msra.mxu0 %v864_v15 }
  0x25   : > { %451 = vmatprep.subr.bf16.mxu0 %v919_v1  ;;  %335 = vmatpush1.bf16.msra.mxu1 %v883_v22 }
  0x26   : > { %336 = vmatprep.subr.bf16.mxu1 %v919_v1 }
  0x28   : > { %452 = vmatpush1.bf16.msra.mxu0 %v865_v17 }
  0x29   : > { %453 = vmatprep.subr.bf16.mxu0 %v919_v1  ;;  %337 = vmatpush1.bf16.msra.mxu1 %v885_v25 }
  0x2a   : > { %338 = vmatprep.subr.bf16.mxu1 %v919_v1 }
  0x2c   : > { %454 = vmatpush1.bf16.msra.mxu0 %v866_v19 }
  0x2d   : > { %455 = vmatprep.subr.bf16.mxu0 %v919_v1  ;;  %339 = vmatpush1.bf16.msra.mxu1 %v887_v28 }
  0x2e   : > { %340 = vmatprep.subr.bf16.mxu1 %v919_v1 }
  0x30   : > { %456 = vmatpush1.bf16.msra.mxu0 %v867_v21 }
  0x31   : > { %457 = vmatprep.subr.bf16.mxu0 %v919_v1  ;;  %341 = vmatpush1.bf16.msra.mxu1 %v889_v31 }
  0x32   : > { %342 = vmatprep.subr.bf16.mxu1 %v919_v1 }
  0x34   : > { %458 = vmatpush1.bf16.msra.mxu0 %v868_v24 }
  0x35   : > { %588 = vmatprep.subr.bf16.mxu0 %v919_v1  ;;  %343 = vmatpush1.bf16.msra.mxu1 %v891_v33 }
  0x37   : > { %468 = vmatmul.mubr.bf16.vlgmr.msra.gmra.mrb[0].mxu0 %v982_v6 }
  0x38   : > { %589 = vmatpush1.bf16.msra.mxu0 %v870_v27  ;;  %823 = vmatprep.mubr.msk.bf16.mxu0 %vm316_vm0, %v511_v29 }
  0x39   : > { %590 = vmatprep.subr.bf16.mxu0 %v919_v1  ;;  %353 = vmatmul.mubr.bf16.vlgmr.msra.gmra.mrb[0].mxu1 %v238_v34 }
  0x3c   : > { %591 = vmatpush1.bf16.msra.mxu0 %v872_v30 }
  0x3d   : > { %592 = vmatprep.subr.bf16.mxu0 %v919_v1 }
  0x40   : > { %593 = vmatpush1.bf16.msra.mxu0 %v874_v32 }
  0x41   : > { %594 = vmatprep.subr.bf16.mxu0 %v919_v1 }
  0x44   : > { %595 = vmatpush1.bf16.msra.mxu0 %v876_v35 }
  0x45   : > { %596 = vmatprep.subr.bf16.mxu0 %v919_v1 }
  0x48   : > { %597 = vmatpush1.bf16.msra.mxu0 %v878_v36 }
  0x49   : > { %598 = vmatprep.subr.bf16.mxu0 %v919_v1 }
  0x4c   : > { %599 = vmatpush1.bf16.msra.mxu0 %v880_v37 }
  0x4d   : > { %600 = vmatprep.subr.bf16.mxu0 %v919_v1 }
  0x50   : > { %601 = vmatpush1.bf16.msra.mxu0 %v882_v38 }
  0x51   : > { %602 = vmatprep.subr.bf16.mxu0 %v919_v1 }
  0x54   : > { %603 = vmatpush1.bf16.msra.mxu0 %v884_v39 }
  0x55   : > { %604 = vmatprep.subr.bf16.mxu0 %v919_v1 }
  0x58   : > { %605 = vmatpush1.bf16.msra.mxu0 %v886_v40 }
  0x59   : > { %606 = vmatprep.subr.bf16.mxu0 %v919_v1 }
  0x5c   : > { %607 = vmatpush1.bf16.msra.mxu0 %v888_v41 }
  0x5d   : > { %608 = vmatprep.subr.bf16.mxu0 %v919_v1 }
  0x60   : > { %609 = vmatpush1.bf16.msra.mxu0 %v890_v42 }
  0x61   : > { %610 = vmatprep.subr.bf16.mxu0 %v919_v1 }
  0x64   : > { %611 = vmatpush1.bf16.msra.mxu0 %v892_v43 }
  0x67   : > { %621 = vmatmul.mubr.bf16.vlgmr.msra.gmra.mrb[0].mxu0 %v510_v44 }
 0x10c   : > { %v354_v45 = vpop.f32.mrb[0].mxu1 }
 0x10d   : > { %v356_v46 = vpop.f32.mrb[1].mxu1 }
 0x10e   : > { %v357_v47 = vpop.f32.mrb[2].mxu1 }
 0x10f   : > { %v358_v48 = vpop.f32.mrb[3].mxu1 }
 0x13a   : > { %v622_v49 = vpop.f32.mrb[0].mxu0 }
 0x13b   : > { %v827_v50 = vadd.f32 %v622_v49, %v354_v45  ;;  %v624_v51 = vpop.f32.mrb[1].mxu0 }
 0x13c   : > { %v625_v52 = vpop.f32.mrb[2].mxu0 }
 0x13d   : > { %v630_v53 = vsub.f32 %v827_v50, %v827_v50  ;;  %v626_v54 = vpop.f32.mrb[3].mxu0 }
 0x13f   : > { %v631_v55 = vmul.f32 %v630_v53, %v630_v53 }
 0x141   : > { %v633_v56 = vadd.f32 1e-05, %v631_v55 }
 0x143   : > { %893 = vrsqrt.f32 %v633_v56 }
 0x14d   : > { %v894_v57 = vpop.eup %893 }
 0x14e   : > { %v635_v58 = vmul.f32 %v894_v57, %v630_v53 }
 0x150   : > { %vm636_vm3 = vcmp.gt.f32.partialorder %v635_v58, 0.0  ;;  %v637_v59 = vmul.f32 0.2, %v635_v58 }
 0x152   : > { %v638_v61 = vsel %vm636_vm3, %v635_v58, %v637_v59 }
 0x153   : > { %v639_v62 = vpack.c.bf16 %v638_v61, %v638_v61 }
 0x155   : > { %v644_v63 = vsel %vm642_vm4, %v639_v62, %v643_v60 }
 0x156   : > { %645 = vst [vmem:[%s176_s19] sm:$0x1] %v644_v63 }
 0x157 PF: > { %s12_s11 = sadd.s32 1, %s917_s11   ;;  %s1132_s9 = smov %s913_s10 }
 0x158   : > { %p9_p5 = scmp.ge.s32.totalorder %s12_s11, 4   ;;  %s1133_s10 = smov %s1135_s12 }
 0x15a   :  { %11 = sbr.rel (!%p9_p5) target bundleno = 2 (0x2), region = 63 }

// kernel: recnet_forward.23
= control target key start
LH: loop header
LB: loop body
LE: loop exit
PB: predicated region body
PF: predicated region fallthrough
CT: control target
= control target key end

     0   :  { %s958_s9 = smov 0   ;;  %s960_s10 = smov 0   ;;  %s1153_s0 = inlined_call_operand.vmem [shape: bf16[2,8,192], index: 0, kind: input, shape index: {}]   ;;  %s1154_s1 = inlined_call_operand.vmem [shape: bf16[3,192,32], index: 1, kind: input, shape index: {}]   ;;  %s1155_s2 = inlined_call_operand.vmem [shape: bf16[2,4,32], index: 2, kind: output, shape index: {}]  }
   0x1   :  { %s962_s11 = smov 0  }
   0x2 LB: > { %s24_s12 = sadd.s32 1, %s936_s10  ;;  %p744_p0 = scmp.ge.s32.totalorder %s940_s11, 1  ;;  %s940_s11 = sphi %s962_s11, %s12_s11   ;;  %s936_s10 = sphi %s960_s10, %s1157_s10   ;;  %s932_s9 = sphi %s958_s9, %s1156_s9  }
   0x3   : > { %p26_p1 = scmp.ge.s32.totalorder %s24_s12, 2  ;;  %p135_p2 = scmp.lt.s32.totalorder %s940_s11, 3 }
   0x5   : > { %s1159_s12 = smov (%p26_p1, %s24_s12), 0  ;;  %p136_p3 = pnand %p744_p0, %p135_p2 }
   0x6   : > { %v874_v0 = vld [vmem:[%s1154_s1] sm:$0xff] (!%p136_p3)   ;;  %v942_v1 = vmov (!%p136_p3), 0   ;;  %p163_p4 = scmp.lt.s32.totalorder (!%p136_p3), %s932_s9, 1  ;;  %v875_v2 = vld [vmem:[%s1154_s1 + $0x8] sm:$0xff] (!%p136_p3)   ;;  %v876_v3 = vld [vmem:[%s1154_s1 + $0x10] sm:$0xff] (!%p136_p3)   ;;  %vm311_vm0 = vcmask (!%p136_p3), 523264  }
   0x7   : > { %139 = sbr.rel (%p136_p3) target bundleno = 371 (0x173), region = 28  ;;  %436 = vmatprep.subr.bf16.mxu0 (!%p136_p3), %v942_v1  ;;  %315 = vmatprep.subr.bf16.mxu1 (!%p136_p3), %v942_v1  ;;  %v877_v4 = vld [vmem:[%s1154_s1 + $0x18] sm:$0xff] (!%p136_p3)   ;;  %v886_v5 = vld [vmem:[%s1154_s1 + $0x60] sm:$0xff] (!%p136_p3)   ;;  %v890_v9 = vld [vmem:[%s1154_s1 + $0x68] sm:$0xff] (!%p136_p3)   ;;  %vm626_vm1 = vcmask (!%p136_p3), 257024   ;;  %vm650_vm2 = vcmask (!%p136_p3), 254976  }
   0x8   : > { %437 = vmatpush1.bf16.msra.mxu0 (!%p136_p3), %v874_v0  ;;  %v878_v7 = vld [vmem:[%s1154_s1 + $0x20] sm:$0xff] (!%p136_p3)   ;;  %316 = vmatpush1.bf16.msra.mxu1 (!%p136_p3), %v886_v5  ;;  %v879_v10 = vld [vmem:[%s1154_s1 + $0x28] sm:$0xff] (!%p136_p3)   ;;  %v892_v11 = vld [vmem:[%s1154_s1 + $0x70] sm:$0xff] (!%p136_p3)  }
   0x9   : > { %438 = vmatprep.subr.bf16.mxu0 (!%p136_p3), %v942_v1  ;;  %317 = vmatprep.subr.bf16.mxu1 (!%p136_p3), %v942_v1  ;;  %v880_v12 = vld [vmem:[%s1154_s1 + $0x30] sm:$0xff] (!%p136_p3)   ;;  %v894_v13 = vld [vmem:[%s1154_s1 + $0x78] sm:$0xff] (!%p136_p3)   ;;  %v896_v15 = vld [vmem:[%s1154_s1 + $0x80] sm:$0xff] (!%p136_p3)  }
   0xa   : > { %v881_v14 = vld [vmem:[%s1154_s1 + $0x38] sm:$0xff] (!%p136_p3)   ;;  %v882_v16 = vld [vmem:[%s1154_s1 + $0x40] sm:$0xff] (!%p136_p3)   ;;  %v898_v17 = vld [vmem:[%s1154_s1 + $0x88] sm:$0xff] (!%p136_p3)  }
   0xb   : > { %v883_v18 = vld [vmem:[%s1154_s1 + $0x48] sm:$0xff] (!%p136_p3)   ;;  %v900_v19 = vld [vmem:[%s1154_s1 + $0x90] sm:$0xff] (!%p136_p3)   ;;  %v902_v23 = vld [vmem:[%s1154_s1 + $0x98] sm:$0xff] (!%p136_p3)  }
   0xc   : > { %439 = vmatpush1.bf16.msra.mxu0 (!%p136_p3), %v875_v2  ;;  %318 = vmatpush1.bf16.msra.mxu1 (!%p136_p3), %v890_v9  ;;  %v884_v22 = vld [vmem:[%s1154_s1 + $0x50] sm:$0xff] (!%p136_p3)   ;;  %v885_v26 = vld [vmem:[%s1154_s1 + $0x58] sm:$0xff] (!%p136_p3)   ;;  %v904_v27 = vld [vmem:[%s1154_s1 + $0xa0] sm:$0xff] (!%p136_p3)  }
   0xd   : > { %440 = vmatprep.subr.bf16.mxu0 (!%p136_p3), %v942_v1  ;;  %319 = vmatprep.subr.bf16.mxu1 (!%p136_p3), %v942_v1  ;;  %v889_v30 = vld [vmem:[%s1154_s1 + $0xc0] sm:$0xff] (!%p136_p3)   ;;  %v906_v31 = vld [vmem:[%s1154_s1 + $0xa8] sm:$0xff] (!%p136_p3)   ;;  %v908_v34 = vld [vmem:[%s1154_s1 + $0xb0] sm:$0xff] (!%p136_p3)  }
   0xe   : > { %s1161_s9 = smov (!%p163_p4, %s932_s9), 1  ;;  %v891_v33 = vld [vmem:[%s1154_s1 + $0xc8] sm:$0xff]   ;;  %v893_v36 = vld [vmem:[%s1154_s1 + $0xd0] sm:$0xff]   ;;  %v910_v37 = vld [vmem:[%s1154_s1 + $0xb8] sm:$0xff]  }
   0xf   : > { %s843_s19 = sshll.u32 %s1161_s9, 3  ;;  %v895_v39 = vld [vmem:[%s1154_s1 + $0xd8] sm:$0xff]   ;;  %v897_v40 = vld [vmem:[%s1154_s1 + $0xe0] sm:$0xff]   ;;  %v899_v41 = vld [vmem:[%s1154_s1 + $0xe8] sm:$0xff]   ;;  %s747_s17 = sshll.u32 %s1161_s9, 1 }
  0x10   : > { %441 = vmatpush1.bf16.msra.mxu0 %v876_v3  ;;  %s998_s24 = scalar_lea.vmem %s1153_s0, %s843_s19  ;;  %320 = vmatpush1.bf16.msra.mxu1 %v892_v11  ;;  %v901_v42 = vld [vmem:[%s1154_s1 + $0xf0] sm:$0xff]   ;;  %v903_v43 = vld [vmem:[%s1154_s1 + $0xf8] sm:$0xff]   ;;  %v905_v44 = vld [vmem:[%s1154_s1 + $0x100] sm:$0xff]   ;;  %s178_s20 = scalar_lea.vmem %s1155_s2, %s747_s17 }
  0x11   : > { %442 = vmatprep.subr.bf16.mxu0 %v942_v1  ;;  %v1005_v6 = vld [vmem:[%s998_s24] sm:$0x33]  ;;  %321 = vmatprep.subr.bf16.mxu1 %v942_v1  ;;  %v476_v25 = vld [vmem:[%s998_s24] sm:$0xcc]  ;;  %v907_v45 = vld [vmem:[%s1154_s1 + $0x108] sm:$0xff]  }
  0x12   : > { %v788_v8 = vcombine.high %v1005_v6, %v1005_v6  ;;  %v205_v20 = vld [vmem:[%s998_s24] sm:$0x66]  ;;  %v827_v28 = vcombine.high %v476_v25, %v476_v25  ;;  %v787_v29 = vcombine.low %v1005_v6, %v1005_v6  ;;  %v909_v46 = vld [vmem:[%s1154_s1 + $0x110] sm:$0xff]   ;;  %v826_v47 = vcombine.low %v476_v25, %v476_v25  ;;  %v913_v48 = vld [vmem:[%s1154_s1 + $0x118] sm:$0xff]  }
  0x13   : > { %v773_v21 = vcombine.high %v205_v20, %v205_v20  ;;  %v772_v35 = vcombine.low %v205_v20, %v205_v20 }
  0x14   : > { %443 = vmatpush1.bf16.msra.mxu0 %v877_v4  ;;  %801 = vmatprep.mubr.msk.bf16.mxu0 %vm311_vm0, %v788_v8  ;;  %v508_v32 = vrot.slane %v827_v28, 2  ;;  %v507_v49 = vrot.slane %v826_v47, 2 }
  0x15   : > { %444 = vmatprep.subr.bf16.mxu0 %v942_v1  ;;  %322 = vmatpush1.bf16.msra.mxu1 %v894_v13  ;;  %v237_v24 = vrot.slane %v773_v21, 1  ;;  %v236_v38 = vrot.slane %v772_v35, 1 }
  0x16   : > { %323 = vmatprep.subr.bf16.mxu1 %v942_v1 }
  0x17   : > { %786 = vmatprep.mubr.msk.bf16.mxu1 %vm311_vm0, %v237_v24 }
  0x18   : > { %445 = vmatpush1.bf16.msra.mxu0 %v878_v7 }
  0x19   : > { %446 = vmatprep.subr.bf16.mxu0 %v942_v1  ;;  %324 = vmatpush1.bf16.msra.mxu1 %v896_v15 }
  0x1a   : > { %325 = vmatprep.subr.bf16.mxu1 %v942_v1 }
  0x1c   : > { %447 = vmatpush1.bf16.msra.mxu0 %v879_v10 }
  0x1d   : > { %448 = vmatprep.subr.bf16.mxu0 %v942_v1  ;;  %326 = vmatpush1.bf16.msra.mxu1 %v898_v17 }
  0x1e   : > { %327 = vmatprep.subr.bf16.mxu1 %v942_v1 }
  0x20   : > { %449 = vmatpush1.bf16.msra.mxu0 %v880_v12 }
  0x21   : > { %450 = vmatprep.subr.bf16.mxu0 %v942_v1  ;;  %328 = vmatpush1.bf16.msra.mxu1 %v900_v19 }
  0x22   : > { %329 = vmatprep.subr.bf16.mxu1 %v942_v1 }
  0x24   : > { %451 = vmatpush1.bf16.msra.mxu0 %v881_v14 }
  0x25   : > { %452 = vmatprep.subr.bf16.mxu0 %v942_v1  ;;  %330 = vmatpush1.bf16.msra.mxu1 %v902_v23 }
  0x26   : > { %331 = vmatprep.subr.bf16.mxu1 %v942_v1 }
  0x28   : > { %453 = vmatpush1.bf16.msra.mxu0 %v882_v16 }
  0x29   : > { %454 = vmatprep.subr.bf16.mxu0 %v942_v1  ;;  %332 = vmatpush1.bf16.msra.mxu1 %v904_v27 }
  0x2a   : > { %333 = vmatprep.subr.bf16.mxu1 %v942_v1 }
  0x2c   : > { %455 = vmatpush1.bf16.msra.mxu0 %v883_v18 }
  0x2d   : > { %456 = vmatprep.subr.bf16.mxu0 %v942_v1  ;;  %334 = vmatpush1.bf16.msra.mxu1 %v906_v31 }
  0x2e   : > { %335 = vmatprep.subr.bf16.mxu1 %v942_v1 }
  0x30   : > { %457 = vmatpush1.bf16.msra.mxu0 %v884_v22 }
  0x31   : > { %458 = vmatprep.subr.bf16.mxu0 %v942_v1  ;;  %336 = vmatpush1.bf16.msra.mxu1 %v908_v34 }
  0x32   : > { %337 = vmatprep.subr.bf16.mxu1 %v942_v1 }
  0x34   : > { %459 = vmatpush1.bf16.msra.mxu0 %v885_v26 }
  0x35   : > { %585 = vmatprep.subr.bf16.mxu0 %v942_v1  ;;  %338 = vmatpush1.bf16.msra.mxu1 %v910_v37 }
  0x37   : > { %469 = vmatmul.mubr.bf16.vlgmr.msra.gmra.mrb[0].mxu0 %v787_v29 }
  0x38   : > { %586 = vmatpush1.bf16.msra.mxu0 %v889_v30  ;;  %840 = vmatprep.mubr.msk.bf16.mxu0 %vm311_vm0, %v508_v32 }
  0x39   : > { %587 = vmatprep.subr.bf16.mxu0 %v942_v1  ;;  %348 = vmatmul.mubr.bf16.vlgmr.msra.gmra.mrb[0].mxu1 %v236_v38 }
  0x3c   : > { %588 = vmatpush1.bf16.msra.mxu0 %v891_v33 }
  0x3d   : > { %589 = vmatprep.subr.bf16.mxu0 %v942_v1 }
  0x40   : > { %590 = vmatpush1.bf16.msra.mxu0 %v893_v36 }
  0x41   : > { %591 = vmatprep.subr.bf16.mxu0 %v942_v1 }
  0x44   : > { %592 = vmatpush1.bf16.msra.mxu0 %v895_v39 }
  0x45   : > { %593 = vmatprep.subr.bf16.mxu0 %v942_v1 }
  0x48   : > { %594 = vmatpush1.bf16.msra.mxu0 %v897_v40 }
  0x49   : > { %595 = vmatprep.subr.bf16.mxu0 %v942_v1 }
  0x4c   : > { %596 = vmatpush1.bf16.msra.mxu0 %v899_v41 }
  0x4d   : > { %597 = vmatprep.subr.bf16.mxu0 %v942_v1 }
  0x50   : > { %598 = vmatpush1.bf16.msra.mxu0 %v901_v42 }
  0x51   : > { %599 = vmatprep.subr.bf16.mxu0 %v942_v1 }
  0x54   : > { %600 = vmatpush1.bf16.msra.mxu0 %v903_v43 }
  0x55   : > { %601 = vmatprep.subr.bf16.mxu0 %v942_v1 }
  0x58   : > { %602 = vmatpush1.bf16.msra.mxu0 %v905_v44 }
  0x59   : > { %603 = vmatprep.subr.bf16.mxu0 %v942_v1 }
  0x5c   : > { %604 = vmatpush1.bf16.msra.mxu0 %v907_v45 }
  0x5d   : > { %605 = vmatprep.subr.bf16.mxu0 %v942_v1 }
  0x60   : > { %606 = vmatpush1.bf16.msra.mxu0 %v909_v46 }
  0x61   : > { %607 = vmatprep.subr.bf16.mxu0 %v942_v1 }
  0x64   : > { %608 = vmatpush1.bf16.msra.mxu0 %v913_v48 }
  0x67   : > { %618 = vmatmul.mubr.bf16.vlgmr.msra.gmra.mrb[0].mxu0 %v507_v49 }
 0x10c   : > { %v349_v50 = vpop.f32.mrb[0].mxu1 }
 0x10d   : > { %v351_v51 = vpop.f32.mrb[1].mxu1 }
 0x10e   : > { %v352_v52 = vpop.f32.mrb[2].mxu1 }
 0x10f   : > { %v353_v53 = vpop.f32.mrb[3].mxu1 }
 0x13a   : > { %v619_v54 = vpop.f32.mrb[0].mxu0 }
 0x13b   : > { %v844_v55 = vadd.f32 %v619_v54, %v349_v50  ;;  %v621_v56 = vpop.f32.mrb[1].mxu0 }
 0x13c   : > { %v622_v57 = vpop.f32.mrb[2].mxu0 }
 0x13d   : > { %v627_v58 = vsel %vm626_vm1, %v844_v55, 0.0  ;;  %v623_v59 = vpop.f32.mrb[3].mxu0 }
 0x13e   : > { %v628_v60 = vrot.slane %v627_v58, 4 }
 0x140   : > { %v629_v61 = vadd.f32 %v628_v60, %v627_v58 }
 0x142   : > { %v630_v62 = vrot.slane %v629_v61, 2 }
 0x144   : > { %v631_v63 = vadd.f32 %v630_v62, %v629_v61 }
 0x146   : > { %v632_v0 = vrot.slane %v631_v63, 1 }
 0x148   : > { %v633_v1 = vadd.f32 %v632_v0, %v631_v63 }
 0x14a   : > { %v634_v2 = vmul.f32 0.25, %v633_v1 }
 0x14c   : > { %v635_v3 = vsub.f32 %v844_v55, %v634_v2 }
 0x14e   : > { %v636_v4 = vmul.f32 %v635_v3, %v635_v3 }
 0x150   : > { %v637_v5 = vsel %vm626_vm1, %v636_v4, 0.0 }
 0x151   : > { %v638_v6 = vrot.slane %v637_v5, 4 }
 0x153   : > { %v639_v7 = vadd.f32 %v638_v6, %v637_v5 }
 0x155   : > { %v640_v8 = vrot.slane %v639_v7, 2 }
 0x157   : > { %v641_v9 = vadd.f32 %v640_v8, %v639_v7 }
 0x159   : > { %v642_v10 = vrot.slane %v641_v9, 1 }
 0x15b   : > { %v643_v11 = vadd.f32 %v642_v10, %v641_v9 }
 0x15d   : > { %v644_v12 = vmul.f32 0.25, %v643_v11 }
 0x15f   : > { %v645_v13 = vadd.f32 1e-05, %v644_v12 }
 0x161   : > { %916 = vrsqrt.f32 %v645_v13 }
 0x16b   : > { %v917_v14 = vpop.eup %916 }
 0x16c   : > { %v647_v15 = vmul.f32 %v917_v14, %v635_v3 }
 0x16e   : > { %v648_v16 = vmax.f32 %v647_v15, 0.0 }
 0x170   : > { %v649_v17 = vpack.c.bf16 %v648_v16, %v648_v16 }
 0x172   : > { %651 = vst.msk [vmem:[%s178_s20] sm:$0x3] %vm650_vm2, %v649_v17 }
 0x173 PF: > { %s12_s11 = sadd.s32 1, %s940_s11   ;;  %s1156_s9 = smov %s936_s10 }
 0x174   : > { %p9_p5 = scmp.ge.s32.totalorder %s12_s11, 4   ;;  %s1157_s10 = smov %s1159_s12 }
 0x176   :  { %11 = sbr.rel (!%p9_p5) target bundleno = 2 (0x2), region = 63 }

// kernel: recnet_forward.24
= control target key start
LH: loop header
LB: loop body
LE: loop exit
PB: predicated region body
PF: predicated region fallthrough
CT: control target
= control target key end

     0   :  { %s1364_s15 = smov 0   ;;  %s1366_s16 = smov 0   ;;  %s1578_s0 = inlined_call_operand.vmem [shape: bf16[2,8,96], index: 0, kind: input, shape index: {}]   ;;  %s1579_s1 = inlined_call_operand.vmem [shape: bf16[3,96,32], index: 1, kind: input, shape index: {}]   ;;  %s1580_s2 = inlined_call_operand.vmem [shape: bf16[2,8,96], index: 2, kind: input, shape index: {}]   ;;  %s1581_s3 = inlined_call_operand.vmem [shape: bf16[3,96,32], index: 3, kind: input, shape index: {}]   ;;  %s1582_s4 = inlined_call_operand.vmem [shape: bf16[2,4,32], index: 4, kind: output, shape index: {}]  }
   0x1   :  { %s1368_s17 = smov 0  }
   0x2 LB: > { %s26_s18 = sadd.s32 1, %s1331_s16  ;;  %p990_p0 = scmp.ge.s32.totalorder %s1335_s17, 1  ;;  %s1335_s17 = sphi %s1368_s17, %s14_s17   ;;  %s1331_s16 = sphi %s1366_s16, %s1584_s16   ;;  %s1327_s15 = sphi %s1364_s15, %s1583_s15  }
   0x3   : > { %p28_p1 = scmp.ge.s32.totalorder %s26_s18, 2  ;;  %p202_p2 = scmp.lt.s32.totalorder %s1335_s17, 3 }
   0x5   : > { %s1586_s18 = smov (%p28_p1, %s26_s18), 0  ;;  %p203_p3 = pnand %p990_p0, %p202_p2 }
   0x6   : > { %v1271_v0 = vld [vmem:[%s1579_s1 + $0x30] sm:$0xff] (!%p203_p3)   ;;  %v1337_v1 = vmov (!%p203_p3), 0.0   ;;  %v1272_v2 = vld [vmem:[%s1581_s3] sm:$0xff] (!%p203_p3)   ;;  %v1273_v3 = vld [vmem:[%s1579_s1 + $0x38] sm:$0xff] (!%p203_p3)   ;;  %vm1338_vm0 = vmmov (!%p203_p3), 0   ;;  %p241_p4 = scmp.lt.s32.totalorder (!%p203_p3), %s1327_s15, 1 }
   0x7   : > { %206 = sbr.rel (%p203_p3) target bundleno = 349 (0x15d), region = 36  ;;  %1132 = vmatprep.subr.bf16.mxu1 (!%p203_p3), %v1337_v1  ;;  %1180 = vmatprep.subr.bf16.mxu0 (!%p203_p3), %v1337_v1  ;;  %v1274_v4 = vld [vmem:[%s1581_s3 + $0x8] sm:$0xff] (!%p203_p3)   ;;  %v1275_v5 = vld [vmem:[%s1579_s1 + $0x40] sm:$0xff] (!%p203_p3)   ;;  %v1276_v6 = vld [vmem:[%s1581_s3 + $0x10] sm:$0xff] (!%p203_p3)   ;;  %vm332_vm1 = vcmask (!%p203_p3), 785408   ;;  %vm842_vm2 = vcmask (!%p203_p3), 257024  }
   0x8   : > { %1133 = vmatpush3.bf16.msra.mxu1 (!%p203_p3), %v1271_v0  ;;  %1144 = vmatprep.mubr.msk.bf16.mxu1 (!%p203_p3), %vm1338_vm0, %v1337_v1  ;;  %v1277_v7 = vld [vmem:[%s1579_s1 + $0x48] sm:$0xff] (!%p203_p3)   ;;  %v1278_v8 = vld [vmem:[%s1581_s3 + $0x18] sm:$0xff] (!%p203_p3)   ;;  %v1279_v9 = vld [vmem:[%s1579_s1 + $0x50] sm:$0xff] (!%p203_p3)   ;;  %vm868_vm4 = vcmask (!%p203_p3), 254976  }
   0x9   : > { %1181 = vmatpush3.bf16.msra.mxu0 (!%p203_p3), %v1272_v2  ;;  %1134 = vmatprep.subr.bf16.mxu1 (!%p203_p3), %v1337_v1  ;;  %v1280_v10 = vld [vmem:[%s1581_s3 + $0x20] sm:$0xff] (!%p203_p3)   ;;  %v1281_v12 = vld [vmem:[%s1579_s1 + $0x58] sm:$0xff] (!%p203_p3)   ;;  %v1282_v13 = vld [vmem:[%s1581_s3 + $0x28] sm:$0xff] (!%p203_p3)  }
   0xa   : > { %1182 = vmatprep.subr.bf16.mxu0 (!%p203_p3), %v1337_v1  ;;  %1192 = vmatprep.mubr.msk.bf16.mxu0 (!%p203_p3), %vm1338_vm0, %v1337_v1  ;;  %v1284_v15 = vld [vmem:[%s1579_s1] sm:$0xff] (!%p203_p3)   ;;  %v1287_v17 = vld [vmem:[%s1581_s3 + $0x30] sm:$0xff] (!%p203_p3)   ;;  %v1288_v18 = vld [vmem:[%s1579_s1 + $0x8] sm:$0xff] (!%p203_p3)  }
   0xb   : > { %v1289_v19 = vld [vmem:[%s1581_s3 + $0x38] sm:$0xff] (!%p203_p3)   ;;  %v1290_v20 = vld [vmem:[%s1579_s1 + $0x10] sm:$0xff] (!%p203_p3)   ;;  %v1291_v21 = vld [vmem:[%s1581_s3 + $0x40] sm:$0xff] (!%p203_p3)  }
   0xc   : > { %1135 = vmatpush3.bf16.msra.mxu1 (!%p203_p3), %v1273_v3  ;;  %v1292_v22 = vld [vmem:[%s1579_s1 + $0x18] sm:$0xff] (!%p203_p3)   ;;  %v1293_v23 = vld [vmem:[%s1581_s3 + $0x48] sm:$0xff] (!%p203_p3)   ;;  %v1294_v24 = vld [vmem:[%s1579_s1 + $0x20] sm:$0xff] (!%p203_p3)  }
   0xd   : > { %1183 = vmatpush3.bf16.msra.mxu0 (!%p203_p3), %v1274_v4  ;;  %1136 = vmatprep.subr.bf16.mxu1 (!%p203_p3), %v1337_v1  ;;  %v1295_v25 = vld [vmem:[%s1581_s3 + $0x50] sm:$0xff] (!%p203_p3)   ;;  %v1296_v27 = vld [vmem:[%s1579_s1 + $0x28] sm:$0xff] (!%p203_p3)   ;;  %v1297_v28 = vld [vmem:[%s1581_s3 + $0x58] sm:$0xff] (!%p203_p3)  }
   0xe   : > { %s1588_s15 = smov (!%p241_p4, %s1327_s15), 1  ;;  %1184 = vmatprep.subr.bf16.mxu0 %v1337_v1  ;;  %v1298_v31 = vld [vmem:[%s1579_s1 + $0x60] sm:$0xff]   ;;  %v1300_v33 = vld [vmem:[%s1579_s1 + $0x68] sm:$0xff]   ;;  %v1302_v35 = vld [vmem:[%s1579_s1 + $0x70] sm:$0xff]  }
   0xf   : > { %s991_s5 = sshll.u32 %s1588_s15, 2  ;;  %v1299_v32 = vld [vmem:[%s1581_s3 + $0x60] sm:$0xff]   ;;  %v1301_v34 = vld [vmem:[%s1581_s3 + $0x68] sm:$0xff]   ;;  %v1303_v36 = vld [vmem:[%s1581_s3 + $0x70] sm:$0xff]  }
  0x10   : > { %1137 = vmatpush3.bf16.msra.mxu1 %v1275_v5  ;;  %s1423_s12 = scalar_lea.vmem %s1578_s0, %s991_s5  ;;  %s1429_s19 = scalar_lea.vmem %s1580_s2, %s991_s5  ;;  %v1304_v37 = vld [vmem:[%s1579_s1 + $0x78] sm:$0xff]   ;;  %v1306_v39 = vld [vmem:[%s1579_s1 + $0x80] sm:$0xff]   ;;  %v1308_v43 = vld [vmem:[%s1579_s1 + $0x88] sm:$0xff]  }
  0x11   : > { %1185 = vmatpush3.bf16.msra.mxu0 %v1276_v6  ;;  %1138 = vmatprep.subr.bf16.mxu1 %v1337_v1  ;;  %v1283_v11 = vld [vmem:[%s1423_s12] ss:$0 sps:$4 sm:$0x66]   ;;  %v1305_v38 = vld [vmem:[%s1581_s3 + $0x78] sm:$0xff]   ;;  %v1309_v44 = vld [vmem:[%s1581_s3 + $0x88] sm:$0xff]  }
  0x12   : > { %1186 = vmatprep.subr.bf16.mxu0 %v1337_v1  ;;  %v295_v14 = vrot.slane %v1283_v11, 1  ;;  %v553_v16 = vld [vmem:[%s1429_s19] sm:$0x3] }
  0x13   : > { %v1285_v26 = vld [vmem:[%s1429_s19] ss:$0 sps:$4 sm:$0x66]  }
  0x14   : > { %1139 = vmatpush3.bf16.msra.mxu1 %v1277_v7  ;;  %v663_v29 = vrot.slane %v1285_v26, 1  ;;  %v265_v30 = vld [vmem:[%s1423_s12] sm:$0x3] }
  0x15   : > { %1187 = vmatpush3.bf16.msra.mxu0 %v1278_v8  ;;  %1140 = vmatprep.subr.bf16.mxu1 %v1337_v1  ;;  %v1307_v40 = vld [vmem:[%s1581_s3 + $0x80] sm:$0xff]  }
  0x16   : > { %1188 = vmatprep.subr.bf16.mxu0 %v1337_v1  ;;  %v1310_v41 = vld [vmem:[%s1423_s12] ss:$0 sps:$4 sm:$0xcc]   ;;  %s993_s12 = sshll.u32 %s1588_s15, 1 }
  0x17   : > { %v1286_v42 = vld [vmem:[%s1429_s19] ss:$0 sps:$4 sm:$0xcc]   ;;  %v472_v45 = vrot.slane %v1310_v41, 2  ;;  %s263_s11 = scalar_lea.vmem %s1582_s4, %s993_s12 }
  0x18   : > { %1141 = vmatpush3.bf16.msra.mxu1 %v1279_v9  ;;  %v761_v46 = vrot.slane %v1286_v42, 2 }
  0x19   : > { %1189 = vmatpush3.bf16.msra.mxu0 %v1280_v10  ;;  %1142 = vmatprep.subr.bf16.mxu1 %v1337_v1 }
  0x1a   : > { %1190 = vmatprep.subr.bf16.mxu0 %v1337_v1 }
  0x1c   : > { %1143 = vmatpush3.bf16.msra.mxu1 %v1281_v12 }
  0x1d   : > { %1191 = vmatpush3.bf16.msra.mxu0 %v1282_v13  ;;  %1148 = vmatprep.subr.bf16.mxu1 %v1337_v1 }
  0x1e   : > { %1196 = vmatprep.subr.bf16.mxu0 %v1337_v1 }
  0x1f   : > { %1145 = vmatmul.mubr.msk.bf16.vlgmr.msra.gmra.mrb[0].mxu1 %vm332_vm1, %v295_v14 }
  0x20   : > { %1149 = vmatpush3.bf16.msra.mxu1 %v1284_v15  ;;  %1193 = vmatmul.mubr.msk.bf16.vlgmr.msra.gmra.mrb[0].mxu0 %vm332_vm1, %v553_v16 }
  0x21   : > { %1197 = vmatpush3.bf16.msra.mxu0 %v1287_v17  ;;  %1150 = vmatprep.subr.bf16.mxu1 %v1337_v1 }
  0x22   : > { %1198 = vmatprep.subr.bf16.mxu0 %v1337_v1  ;;  %1160 = vmatprep.mubr.msk.bf16.mxu1 %vm1338_vm0, %v1337_v1 }
  0x23   : > { %1208 = vmatprep.mubr.msk.bf16.mxu0 %vm1338_vm0, %v1337_v1 }
  0x24   : > { %1151 = vmatpush3.bf16.msra.mxu1 %v1288_v18 }
  0x25   : > { %1199 = vmatpush3.bf16.msra.mxu0 %v1289_v19  ;;  %1152 = vmatprep.subr.bf16.mxu1 %v1337_v1 }
  0x26   : > { %1200 = vmatprep.subr.bf16.mxu0 %v1337_v1 }
  0x28   : > { %1153 = vmatpush3.bf16.msra.mxu1 %v1290_v20 }
  0x29   : > { %1201 = vmatpush3.bf16.msra.mxu0 %v1291_v21  ;;  %1154 = vmatprep.subr.bf16.mxu1 %v1337_v1 }
  0x2a   : > { %1202 = vmatprep.subr.bf16.mxu0 %v1337_v1 }
  0x2c   : > { %1155 = vmatpush3.bf16.msra.mxu1 %v1292_v22 }
  0x2d   : > { %1203 = vmatpush3.bf16.msra.mxu0 %v1293_v23  ;;  %1156 = vmatprep.subr.bf16.mxu1 %v1337_v1 }
  0x2e   : > { %1204 = vmatprep.subr.bf16.mxu0 %v1337_v1 }
  0x30   : > { %1157 = vmatpush3.bf16.msra.mxu1 %v1294_v24 }
  0x31   : > { %1205 = vmatpush3.bf16.msra.mxu0 %v1295_v25  ;;  %1158 = vmatprep.subr.bf16.mxu1 %v1337_v1 }
  0x32   : > { %1206 = vmatprep.subr.bf16.mxu0 %v1337_v1 }
  0x34   : > { %1159 = vmatpush3.bf16.msra.mxu1 %v1296_v27 }
  0x35   : > { %1207 = vmatpush3.bf16.msra.mxu0 %v1297_v28  ;;  %1164 = vmatprep.subr.bf16.mxu1 %v1337_v1 }
  0x36   : > { %1212 = vmatprep.subr.bf16.mxu0 %v1337_v1 }
  0x37   : > { %1161 = vmatmul.mubr.msk.bf16.vlgmr.msra.gmra.mrb[0].mxu1 %vm332_vm1, %v265_v30 }
  0x38   : > { %1165 = vmatpush3.bf16.msra.mxu1 %v1298_v31  ;;  %1209 = vmatmul.mubr.msk.bf16.vlgmr.msra.gmra.mrb[0].mxu0 %vm332_vm1, %v663_v29 }
  0x39   : > { %1213 = vmatpush3.bf16.msra.mxu0 %v1299_v32  ;;  %1166 = vmatprep.subr.bf16.mxu1 %v1337_v1 }
  0x3a   : > { %1214 = vmatprep.subr.bf16.mxu0 %v1337_v1  ;;  %1176 = vmatprep.mubr.msk.bf16.mxu1 %vm1338_vm0, %v1337_v1 }
  0x3b   : > { %1224 = vmatprep.mubr.msk.bf16.mxu0 %vm1338_vm0, %v1337_v1 }
  0x3c   : > { %1167 = vmatpush3.bf16.msra.mxu1 %v1300_v33 }
  0x3d   : > { %1215 = vmatpush3.bf16.msra.mxu0 %v1301_v34  ;;  %1168 = vmatprep.subr.bf16.mxu1 %v1337_v1 }
  0x3e   : > { %1216 = vmatprep.subr.bf16.mxu0 %v1337_v1 }
  0x40   : > { %1169 = vmatpush3.bf16.msra.mxu1 %v1302_v35 }
  0x41   : > { %1217 = vmatpush3.bf16.msra.mxu0 %v1303_v36  ;;  %1170 = vmatprep.subr.bf16.mxu1 %v1337_v1 }
  0x42   : > { %1218 = vmatprep.subr.bf16.mxu0 %v1337_v1 }
  0x44   : > { %1171 = vmatpush3.bf16.msra.mxu1 %v1304_v37 }
  0x45   : > { %1219 = vmatpush3.bf16.msra.mxu0 %v1305_v38  ;;  %1172 = vmatprep.subr.bf16.mxu1 %v1337_v1 }
  0x46   : > { %1220 = vmatprep.subr.bf16.mxu0 %v1337_v1 }
  0x48   : > { %1173 = vmatpush3.bf16.msra.mxu1 %v1306_v39 }
  0x49   : > { %1221 = vmatpush3.bf16.msra.mxu0 %v1307_v40  ;;  %1174 = vmatprep.subr.bf16.mxu1 %v1337_v1 }
  0x4a   : > { %1222 = vmatprep.subr.bf16.mxu0 %v1337_v1 }
  0x4c   : > { %1175 = vmatpush3.bf16.msra.mxu1 %v1308_v43 }
  0x4d   : > { %1223 = vmatpush3.bf16.msra.mxu0 %v1309_v44 }
  0x4f   : > { %1177 = vmatmul.mubr.msk.bf16.vlgmr.msra.gmra.mrb[0].mxu1 %vm332_vm1, %v472_v45 }
  0x50   : > { %1225 = vmatmul.mubr.msk.bf16.vlgmr.msra.gmra.mrb[0].mxu0 %vm332_vm1, %v761_v46 }
 0x122   : > { %v546_v47 = vpop.f32.mrb[0].mxu1 }
 0x123   : > { %v835_v48 = vpop.f32.mrb[0].mxu0  ;;  %v1178_v49 = vpop.f32.mrb[1].mxu1 }
 0x124   : > { %v1228_v50 = vadd.f32 %v835_v48, %v546_v47  ;;  %v1226_v51 = vpop.f32.mrb[1].mxu0  ;;  %v549_v52 = vpop.f32.mrb[2].mxu1 }
 0x125   : > { %v838_v53 = vpop.f32.mrb[2].mxu0  ;;  %v1179_v54 = vpop.f32.mrb[3].mxu1 }
 0x126   : > { %v843_v55 = vsel %vm842_vm2, %v1228_v50, 0.0  ;;  %v1227_v56 = vpop.f32.mrb[3].mxu0 }
 0x127   : > { %v844_v57 = vrot.slane %v843_v55, 4 }
 0x129   : > { %v845_v58 = vadd.f32 %v844_v57, %v843_v55 }
 0x12b   : > { %v846_v59 = vrot.slane %v845_v58, 2 }
 0x12d   : > { %v847_v60 = vadd.f32 %v846_v59, %v845_v58 }
 0x12f   : > { %v848_v61 = vrot.slane %v847_v60, 1 }
 0x131   : > { %v849_v62 = vadd.f32 %v848_v61, %v847_v60 }
 0x133   : > { %v850_v63 = vmul.f32 0.25, %v849_v62 }
 0x135   : > { %v851_v0 = vsub.f32 %v1228_v50, %v850_v63 }
 0x137   : > { %v852_v1 = vmul.f32 %v851_v0, %v851_v0 }
 0x139   : > { %v853_v2 = vsel %vm842_vm2, %v852_v1, 0.0 }
 0x13a   : > { %v854_v3 = vrot.slane %v853_v2, 4 }
 0x13c   : > { %v855_v4 = vadd.f32 %v854_v3, %v853_v2 }
 0x13e   : > { %v856_v5 = vrot.slane %v855_v4, 2 }
 0x140   : > { %v857_v6 = vadd.f32 %v856_v5, %v855_v4 }
 0x142   : > { %v858_v7 = vrot.slane %v857_v6, 1 }
 0x144   : > { %v859_v8 = vadd.f32 %v858_v7, %v857_v6 }
 0x146   : > { %v860_v9 = vmul.f32 0.25, %v859_v8 }
 0x148   : > { %v861_v10 = vadd.f32 1e-05, %v860_v9 }
 0x14a   : > { %1311 = vrsqrt.f32 %v861_v10 }
 0x154   : > { %v1312_v11 = vpop.eup %1311 }
 0x155   : > { %v863_v12 = vmul.f32 %v1312_v11, %v851_v0 }
 0x157   : > { %vm864_vm3 = vcmp.gt.f32.partialorder %v863_v12, 0.0  ;;  %v865_v13 = vmul.f32 0.2, %v863_v12 }
 0x159   : > { %v866_v14 = vsel %vm864_vm3, %v863_v12, %v865_v13 }
 0x15a   : > { %v867_v15 = vpack.c.bf16 %v866_v14, %v866_v14 }
 0x15c   : > { %869 = vst.msk [vmem:[%s263_s11] sm:$0x3] %vm868_vm4, %v867_v15 }
 0x15d PF: > { %s14_s17 = sadd.s32 1, %s1335_s17   ;;  %s1583_s15 = smov %s1331_s16 }
 0x15e   : > { %p11_p5 = scmp.ge.s32.totalorder %s14_s17, 4   ;;  %s1584_s16 = smov %s1586_s18 }
 0x160   :  { %13 = sbr.rel (!%p11_p5) target bundleno = 2 (0x2), region = 79 }

// kernel: recnet_forward.25
= control target key start
LH: loop header
LB: loop body
LE: loop exit
PB: predicated region body
PF: predicated region fallthrough
CT: control target
= control target key end

     0   :  { %s853_s9 = smov 0   ;;  %s855_s10 = smov 0   ;;  %s982_s0 = inlined_call_operand.vmem [shape: bf16[2,24,96], index: 0, kind: input, shape index: {}]   ;;  %s983_s1 = inlined_call_operand.vmem [shape: bf16[3,96,16], index: 1, kind: input, shape index: {}]   ;;  %s984_s2 = inlined_call_operand.vmem [shape: bf16[2,16,16], index: 2, kind: output, shape index: {}]  }
   0x1   :  { %s857_s11 = smov 0  }
   0x2 LB: > { %s24_s12 = sadd.s32 1, %s830_s10  ;;  %p626_p0 = scmp.ge.s32.totalorder %s834_s11, 1  ;;  %s834_s11 = sphi %s857_s11, %s12_s11   ;;  %s830_s10 = sphi %s855_s10, %s986_s10   ;;  %s826_s9 = sphi %s853_s9, %s985_s9  }
   0x3   : > { %p26_p1 = scmp.ge.s32.totalorder %s24_s12, 2  ;;  %p135_p2 = scmp.lt.s32.totalorder %s834_s11, 3 }
   0x5   : > { %s988_s12 = smov (%p26_p1, %s24_s12), 0  ;;  %p136_p3 = pnand %p626_p0, %p135_p2 }
   0x6   : > { %v788_v0 = vld [vmem:[%s983_s1] sm:$0xff] (!%p136_p3)   ;;  %v836_v1 = vmov (!%p136_p3), 0.0   ;;  %v789_v2 = vld [vmem:[%s983_s1 + $0x8] sm:$0xff] (!%p136_p3)   ;;  %vm837_vm0 = vmmov (!%p136_p3), 0   ;;  %p164_p4 = scmp.lt.s32.totalorder (!%p136_p3), %s826_s9, 1  ;;  %v790_v3 = vld [vmem:[%s983_s1 + $0x10] sm:$0xff] (!%p136_p3)  }
   0x7   : > { %139 = sbr.rel (%p136_p3) target bundleno = 329 (0x149), region = 28  ;;  %723 = vmatprep.subr.bf16.mxu0 (!%p136_p3), %v836_v1  ;;  %707 = vmatprep.subr.bf16.mxu1 (!%p136_p3), %v836_v1  ;;  %v794_v4 = vld [vmem:[%s983_s1 + $0x30] sm:$0xff] (!%p136_p3)   ;;  %v797_v5 = vld [vmem:[%s983_s1 + $0x38] sm:$0xff] (!%p136_p3)   ;;  %v799_v7 = vld [vmem:[%s983_s1 + $0x40] sm:$0xff] (!%p136_p3)   ;;  %vm259_vm1 = vcmask (!%p136_p3), 785408   ;;  %vm219_vm2 = vcmask (!%p136_p3), 1045504  }
   0x8   : > { %724 = vmatpush3.bf16.msra.mxu0 (!%p136_p3), %v788_v0  ;;  %735 = vmatprep.mubr.msk.bf16.mxu0 (!%p136_p3), %vm837_vm0, %v836_v1  ;;  %v791_v6 = vld [vmem:[%s983_s1 + $0x18] sm:$0xff] (!%p136_p3)   ;;  %v792_v8 = vld [vmem:[%s983_s1 + $0x20] sm:$0xff] (!%p136_p3)   ;;  %v801_v9 = vld [vmem:[%s983_s1 + $0x48] sm:$0xff] (!%p136_p3)   ;;  %vm486_vm3 = vcmask (!%p136_p3), 130048   ;;  %vm525_vm4 = vcmask (!%p136_p3), 125952  }
   0x9   : > { %725 = vmatprep.subr.bf16.mxu0 (!%p136_p3), %v836_v1  ;;  %719 = vmatprep.mubr.msk.bf16.mxu1 (!%p136_p3), %vm837_vm0, %v836_v1  ;;  %v793_v10 = vld [vmem:[%s983_s1 + $0x28] sm:$0xff] (!%p136_p3)   ;;  %v803_v14 = vld [vmem:[%s983_s1 + $0x50] sm:$0xff] (!%p136_p3)   ;;  %v796_v18 = vld [vmem:[%s983_s1 + $0x60] sm:$0xff] (!%p136_p3)  }
   0xa   : > { %708 = vmatpush3.bf16.msra.mxu1 (!%p136_p3), %v794_v4  ;;  %v805_v19 = vld [vmem:[%s983_s1 + $0x58] sm:$0xff] (!%p136_p3)   ;;  %v798_v22 = vld [vmem:[%s983_s1 + $0x68] sm:$0xff] (!%p136_p3)   ;;  %v800_v24 = vld [vmem:[%s983_s1 + $0x70] sm:$0xff] (!%p136_p3)  }
   0xb   : > { %709 = vmatprep.subr.bf16.mxu1 (!%p136_p3), %v836_v1  ;;  %v802_v25 = vld [vmem:[%s983_s1 + $0x78] sm:$0xff] (!%p136_p3)   ;;  %v804_v26 = vld [vmem:[%s983_s1 + $0x80] sm:$0xff] (!%p136_p3)   ;;  %v808_v27 = vld [vmem:[%s983_s1 + $0x88] sm:$0xff] (!%p136_p3)  }
   0xc   : > { %726 = vmatpush3.bf16.msra.mxu0 (!%p136_p3), %v789_v2 }
   0xd   : > { %727 = vmatprep.subr.bf16.mxu0 (!%p136_p3), %v836_v1 }
   0xe   : > { %s990_s9 = smov (!%p164_p4, %s826_s9), 1  ;;  %710 = vmatpush3.bf16.msra.mxu1 %v797_v5 }
   0xf   : > { %s761_s25 = smul.u32 12, %s990_s9  ;;  %711 = vmatprep.subr.bf16.mxu1 %v836_v1  ;;  %s683_s29 = sshll.u32 %s990_s9, 3 }
  0x10   : > { %728 = vmatpush3.bf16.msra.mxu0 %v790_v3 }
  0x11   : > { %729 = vmatprep.subr.bf16.mxu0 %v836_v1  ;;  %s913_s4 = scalar_lea.vmem %s982_s0, %s761_s25 }
  0x12   : > { %712 = vmatpush3.bf16.msra.mxu1 %v799_v7  ;;  %v196_v11 = vld [vmem:[%s913_s4] sm:$0xc]  ;;  %v183_v13 = vld [vmem:[%s913_s4 + $0x4] sm:$0xf]  ;;  %v387_v28 = vld [vmem:[%s913_s4 + $0x8] sm:$0xf] }
  0x13   : > { %713 = vmatprep.subr.bf16.mxu1 %v836_v1  ;;  %v182_v12 = vld [vmem:[%s913_s4] sm:$0xf]  ;;  %v642_v15 = vcombine.low %v196_v11, %v183_v13  ;;  %v807_v16 = vld [vmem:[%s913_s4 + $0x8] ss:$0 sps:$4 sm:$0x33]   ;;  %v671_v29 = vcombine.low %v183_v13, %v387_v28  ;;  %s180_s4 = scalar_lea.vmem %s984_s2, %s683_s29 }
  0x14   : > { %730 = vmatpush3.bf16.msra.mxu0 %v791_v6  ;;  %v651_v17 = vcombine.low %v182_v12, %v183_v13  ;;  %v221_v21 = vrot.slane %v807_v16, 2 }
  0x15   : > { %731 = vmatprep.subr.bf16.mxu0 %v836_v1  ;;  %v220_v20 = vrot.slane %v642_v15, 2 }
  0x16   : > { %714 = vmatpush3.bf16.msra.mxu1 %v801_v9 }
  0x17   : > { %715 = vmatprep.subr.bf16.mxu1 %v836_v1  ;;  %v222_v23 = vsel %vm219_vm2, %v220_v20, %v221_v21 }
  0x18   : > { %732 = vmatpush3.bf16.msra.mxu0 %v792_v8 }
  0x19   : > { %733 = vmatprep.subr.bf16.mxu0 %v836_v1 }
  0x1a   : > { %716 = vmatpush3.bf16.msra.mxu1 %v803_v14 }
  0x1b   : > { %717 = vmatprep.subr.bf16.mxu1 %v836_v1 }
  0x1c   : > { %734 = vmatpush3.bf16.msra.mxu0 %v793_v10 }
  0x1d   : > { %739 = vmatprep.subr.bf16.mxu0 %v836_v1 }
  0x1e   : > { %718 = vmatpush3.bf16.msra.mxu1 %v805_v19 }
  0x1f   : > { %736 = vmatmul.mubr.msk.bf16.vlgmr.msra.gmra.mrb[0].mxu0 %vm259_vm1, %v651_v17 }
  0x20   : > { %740 = vmatpush3.bf16.msra.mxu0 %v796_v18  ;;  %751 = vmatprep.mubr.msk.bf16.mxu0 %vm837_vm0, %v836_v1 }
  0x21   : > { %741 = vmatprep.subr.bf16.mxu0 %v836_v1  ;;  %720 = vmatmul.mubr.msk.bf16.vlgmr.msra.gmra.mrb[0].mxu1 %vm259_vm1, %v222_v23 }
  0x24   : > { %742 = vmatpush3.bf16.msra.mxu0 %v798_v22 }
  0x25   : > { %743 = vmatprep.subr.bf16.mxu0 %v836_v1 }
  0x28   : > { %744 = vmatpush3.bf16.msra.mxu0 %v800_v24 }
  0x29   : > { %745 = vmatprep.subr.bf16.mxu0 %v836_v1 }
  0x2c   : > { %746 = vmatpush3.bf16.msra.mxu0 %v802_v25 }
  0x2d   : > { %747 = vmatprep.subr.bf16.mxu0 %v836_v1 }
  0x30   : > { %748 = vmatpush3.bf16.msra.mxu0 %v804_v26 }
  0x31   : > { %749 = vmatprep.subr.bf16.mxu0 %v836_v1 }
  0x34   : > { %750 = vmatpush3.bf16.msra.mxu0 %v808_v27 }
  0x37   : > { %752 = vmatmul.mubr.msk.bf16.vlgmr.msra.gmra.mrb[0].mxu0 %vm259_vm1, %v671_v29 }
  0xf4   : > { %v297_v30 = vpop.f32.mrb[0].mxu1 }
  0xf5   : > { %v721_v31 = vpop.f32.mrb[1].mxu1 }
  0xf6   : > { %v300_v32 = vpop.f32.mrb[2].mxu1 }
  0xf7   : > { %v722_v33 = vpop.f32.mrb[3].mxu1 }
 0x10a   : > { %v477_v34 = vpop.f32.mrb[0].mxu0 }
 0x10b   : > { %v755_v35 = vadd.f32 %v477_v34, %v297_v30  ;;  %v753_v36 = vpop.f32.mrb[1].mxu0 }
 0x10c   : > { %v480_v37 = vpop.f32.mrb[2].mxu0 }
 0x10d   : > { %v756_v38 = vadd.f32 %v480_v37, %v300_v32  ;;  %v754_v39 = vpop.f32.mrb[3].mxu0  ;;  %v487_v40 = vsel %vm486_vm3, %v755_v35, 0.0 }
 0x10f   : > { %v488_v41 = vsel %vm486_vm3, %v756_v38, 0.0 }
 0x110   : > { %v489_v42 = vadd.f32 %v488_v41, %v487_v40 }
 0x112   : > { %v490_v43 = vrot.slane %v489_v42, 4 }
 0x114   : > { %v491_v44 = vadd.f32 %v490_v43, %v489_v42 }
 0x116   : > { %v492_v45 = vrot.slane %v491_v44, 2 }
 0x118   : > { %v493_v46 = vadd.f32 %v492_v45, %v491_v44 }
 0x11a   : > { %v494_v47 = vrot.slane %v493_v46, 1 }
 0x11c   : > { %v495_v48 = vadd.f32 %v494_v47, %v493_v46 }
 0x11e   : > { %v496_v49 = vmul.f32 0.0625, %v495_v48 }
 0x120   : > { %v497_v50 = vsub.f32 %v755_v35, %v496_v49  ;;  %v498_v51 = vsub.f32 %v756_v38, %v496_v49 }
 0x122   : > { %v499_v52 = vmul.f32 %v497_v50, %v497_v50  ;;  %v500_v53 = vmul.f32 %v498_v51, %v498_v51 }
 0x124   : > { %v501_v54 = vsel %vm486_vm3, %v499_v52, 0.0  ;;  %v502_v55 = vsel %vm486_vm3, %v500_v53, 0.0 }
 0x125   : > { %v503_v56 = vadd.f32 %v502_v55, %v501_v54 }
 0x127   : > { %v504_v57 = vrot.slane %v503_v56, 4 }
 0x129   : > { %v505_v58 = vadd.f32 %v504_v57, %v503_v56 }
 0x12b   : > { %v506_v59 = vrot.slane %v505_v58, 2 }
 0x12d   : > { %v507_v60 = vadd.f32 %v506_v59, %v505_v58 }
 0x12f   : > { %v508_v61 = vrot.slane %v507_v60, 1 }
 0x131   : > { %v509_v62 = vadd.f32 %v508_v61, %v507_v60 }
 0x133   : > { %v510_v63 = vmul.f32 0.0625, %v509_v62 }
 0x135   : > { %v511_v0 = vadd.f32 1e-05, %v510_v63 }
 0x137   : > { %810 = vrsqrt.f32 %v511_v0 }
 0x141   : > { %v811_v1 = vpop.eup %810 }
 0x142   : > { %v513_v2 = vmul.f32 %v811_v1, %v497_v50  ;;  %v514_v3 = vmul.f32 %v811_v1, %v498_v51 }
 0x144   : > { %v515_v4 = vmax.f32 %v513_v2, 0.0  ;;  %v516_v5 = vmax.f32 %v514_v3, 0.0 }
 0x146   : > { %v684_v6 = vpack.c.bf16 %v515_v4, %v515_v4  ;;  %v685_v7 = vpack.c.bf16 %v516_v5, %v516_v5 }
 0x148   : > { %526 = vst.msk [vmem:[%s180_s4] sm:$0xf] %vm525_vm4, %v684_v6  ;;  %527 = vst.msk [vmem:[%s180_s4 + $0x4] sm:$0xf] %vm525_vm4, %v685_v7 }
 0x149 PF: > { %s12_s11 = sadd.s32 1, %s834_s11   ;;  %s985_s9 = smov %s830_s10 }
 0x14a   : > { %p9_p5 = scmp.ge.s32.totalorder %s12_s11, 4   ;;  %s986_s10 = smov %s988_s12 }
 0x14c   :  { %11 = sbr.rel (!%p9_p5) target bundleno = 2 (0x2), region = 63 }

// kernel: recnet_forward.26
= control target key start
LH: loop header
LB: loop body
LE: loop exit
PB: predicated region body
PF: predicated region fallthrough
CT: control target
= control target key end

     0   :  { %s1190_s15 = smov 0   ;;  %s1192_s16 = smov 0   ;;  %s1345_s0 = inlined_call_operand.vmem [shape: bf16[2,24,48], index: 0, kind: input, shape index: {}]   ;;  %s1346_s1 = inlined_call_operand.vmem [shape: bf16[3,48,16], index: 1, kind: input, shape index: {}]   ;;  %s1347_s2 = inlined_call_operand.vmem [shape: bf16[2,24,48], index: 2, kind: input, shape index: {}]   ;;  %s1348_s3 = inlined_call_operand.vmem [shape: bf16[3,48,16], index: 3, kind: input, shape index: {}]   ;;  %s1349_s4 = inlined_call_operand.vmem [shape: bf16[2,16,16], index: 4, kind: output, shape index: {}]  }
   0x1   :  { %s1194_s17 = smov 0  }
   0x2 LB: > { %s26_s18 = sadd.s32 1, %s1157_s16  ;;  %p914_p0 = scmp.ge.s32.totalorder %s1161_s17, 1  ;;  %s1161_s17 = sphi %s1194_s17, %s14_s17   ;;  %s1157_s16 = sphi %s1192_s16, %s1351_s16   ;;  %s1153_s15 = sphi %s1190_s15, %s1350_s15  }
   0x3   : > { %p28_p1 = scmp.ge.s32.totalorder %s26_s18, 2  ;;  %p204_p2 = scmp.lt.s32.totalorder %s1161_s17, 3 }
   0x5   : > { %s1353_s18 = smov (%p28_p1, %s26_s18), 0  ;;  %p205_p3 = pnand %p914_p0, %p204_p2 }
   0x6   : > { %v1111_v0 = vld [vmem:[%s1346_s1 + $0x18] sm:$0xff] (!%p205_p3)   ;;  %v1163_v1 = vmov (!%p205_p3), 0.0   ;;  %v1112_v2 = vld [vmem:[%s1348_s3] sm:$0xff] (!%p205_p3)   ;;  %vm1164_vm0 = vmmov (!%p205_p3), 0   ;;  %p246_p4 = scmp.lt.s32.totalorder (!%p205_p3), %s1153_s15, 1  ;;  %v1114_v4 = vld [vmem:[%s1348_s3 + $0x8] sm:$0xff] (!%p205_p3)  }
   0x7   : > { %208 = sbr.rel (%p205_p3) target bundleno = 323 (0x143), region = 36  ;;  %1006 = vmatprep.subr.bf16.mxu1 (!%p205_p3), %v1163_v1  ;;  %1036 = vmatprep.subr.bf16.mxu0 (!%p205_p3), %v1163_v1  ;;  %v1113_v3 = vld [vmem:[%s1346_s1 + $0x20] sm:$0xff] (!%p205_p3)   ;;  %v1115_v5 = vld [vmem:[%s1346_s1 + $0x28] sm:$0xff] (!%p205_p3)   ;;  %v1116_v6 = vld [vmem:[%s1348_s3 + $0x10] sm:$0xff] (!%p205_p3)   ;;  %vm298_vm1 = vcmask (!%p205_p3), 1045504   ;;  %vm320_vm2 = vcmask (!%p205_p3), 392192  }
   0x8   : > { %1007 = vmatpush3.bf16.msra.mxu1 (!%p205_p3), %v1111_v0  ;;  %1012 = vmatprep.mubr.msk.bf16.mxu1 (!%p205_p3), %vm1164_vm0, %v1163_v1  ;;  %v1121_v9 = vld [vmem:[%s1348_s3 + $0x18] sm:$0xff] (!%p205_p3)   ;;  %v1120_v15 = vld [vmem:[%s1346_s1] sm:$0xff] (!%p205_p3)   ;;  %v1122_v20 = vld [vmem:[%s1346_s1 + $0x8] sm:$0xff] (!%p205_p3)   ;;  %vm742_vm3 = vcmask (!%p205_p3), 130048   ;;  %vm785_vm6 = vcmask (!%p205_p3), 125952  }
   0x9   : > { %1037 = vmatpush3.bf16.msra.mxu0 (!%p205_p3), %v1112_v2  ;;  %1008 = vmatprep.subr.bf16.mxu1 (!%p205_p3), %v1163_v1  ;;  %v1123_v17 = vld [vmem:[%s1348_s3 + $0x20] sm:$0xff] (!%p205_p3)   ;;  %v1124_v23 = vld [vmem:[%s1346_s1 + $0x10] sm:$0xff] (!%p205_p3)   ;;  %v1125_v24 = vld [vmem:[%s1348_s3 + $0x28] sm:$0xff] (!%p205_p3)  }
   0xa   : > { %1038 = vmatprep.subr.bf16.mxu0 (!%p205_p3), %v1163_v1  ;;  %1042 = vmatprep.mubr.msk.bf16.mxu0 (!%p205_p3), %vm1164_vm0, %v1163_v1  ;;  %v1130_v30 = vld [vmem:[%s1348_s3 + $0x30] sm:$0xff] (!%p205_p3)   ;;  %v1132_v32 = vld [vmem:[%s1348_s3 + $0x38] sm:$0xff] (!%p205_p3)   ;;  %v1134_v34 = vld [vmem:[%s1348_s3 + $0x40] sm:$0xff] (!%p205_p3)  }
   0xb   : > { %v1129_v31 = vld [vmem:[%s1346_s1 + $0x30] sm:$0xff] (!%p205_p3)   ;;  %v1131_v33 = vld [vmem:[%s1346_s1 + $0x38] sm:$0xff] (!%p205_p3)   ;;  %v1133_v36 = vld [vmem:[%s1346_s1 + $0x40] sm:$0xff] (!%p205_p3)  }
   0xc   : > { %1009 = vmatpush3.bf16.msra.mxu1 (!%p205_p3), %v1113_v3 }
   0xd   : > { %1039 = vmatpush3.bf16.msra.mxu0 (!%p205_p3), %v1114_v4  ;;  %1010 = vmatprep.subr.bf16.mxu1 (!%p205_p3), %v1163_v1 }
   0xe   : > { %s1355_s15 = smov (!%p246_p4, %s1153_s15), 1  ;;  %1040 = vmatprep.subr.bf16.mxu0 %v1163_v1 }
   0xf   : > { %s1084_s29 = smul.u32 12, %s1355_s15 }
  0x10   : > { %1011 = vmatpush3.bf16.msra.mxu1 %v1115_v5 }
  0x11   : > { %s1242_s8 = scalar_lea.vmem %s1345_s0, %s1084_s29  ;;  %s1247_s11 = scalar_lea.vmem %s1347_s2, %s1084_s29  ;;  %1041 = vmatpush3.bf16.msra.mxu0 %v1116_v6  ;;  %1016 = vmatprep.subr.bf16.mxu1 %v1163_v1 }
  0x12   : > { %v1250_v7 = vld [vmem:[%s1242_s8 + $0x4] sm:$0xf]  ;;  %v281_v8 = vld [vmem:[%s1242_s8] sm:$0xc]  ;;  %1046 = vmatprep.subr.bf16.mxu0 %v1163_v1  ;;  %v667_v35 = vld [vmem:[%s1247_s11 + $0x8] sm:$0xf] }
  0x13   : > { %v925_v10 = vcombine.low %v281_v8, %v1250_v7  ;;  %v1118_v11 = vld [vmem:[%s1242_s8 + $0x8] ss:$0 sps:$4 sm:$0x33]   ;;  %v1119_v12 = vld [vmem:[%s1247_s11] sm:$0xff]  }
  0x14   : > { %v300_v14 = vrot.slane %v1118_v11, 2  ;;  %1043 = vmatmul.mubr.msk.bf16.vlgmr.msra.gmra.mrb[0].mxu0 %vm320_vm2, %v1119_v12  ;;  %v582_v18 = vld [vmem:[%s1247_s11] sm:$0xc]  ;;  %v583_v19 = vld [vmem:[%s1247_s11 + $0x4] sm:$0xf] }
  0x15   : > { %v299_v13 = vrot.slane %v925_v10, 2  ;;  %1047 = vmatpush3.bf16.msra.mxu0 %v1121_v9  ;;  %v958_v21 = vcombine.low %v582_v18, %v583_v19  ;;  %v1128_v22 = vld [vmem:[%s1247_s11 + $0x8] ss:$0 sps:$4 sm:$0x33]   ;;  %1052 = vmatprep.mubr.msk.bf16.mxu0 %vm1164_vm0, %v1163_v1  ;;  %v273_v27 = vld [vmem:[%s1242_s8] sm:$0xf]  ;;  %v970_v38 = vcombine.low %v583_v19, %v667_v35 }
  0x16   : > { %1048 = vmatprep.subr.bf16.mxu0 %v1163_v1  ;;  %v601_v26 = vrot.slane %v1128_v22, 2  ;;  %v931_v28 = vcombine.low %v273_v27, %v1250_v7  ;;  %v430_v37 = vld [vmem:[%s1242_s8 + $0x8] sm:$0xf]  ;;  %s979_s8 = sshll.u32 %s1355_s15, 3 }
  0x17   : > { %v301_v16 = vsel %vm298_vm1, %v299_v13, %v300_v14  ;;  %v600_v25 = vrot.slane %v958_v21, 2  ;;  %v942_v39 = vcombine.low %v1250_v7, %v430_v37  ;;  %s271_s21 = scalar_lea.vmem %s1349_s4, %s979_s8 }
  0x18   : > { %1013 = vmatmul.mubr.msk.bf16.vlgmr.msra.gmra.mrb[0].mxu1 %vm320_vm2, %v301_v16 }
  0x19   : > { %1017 = vmatpush3.bf16.msra.mxu1 %v1120_v15  ;;  %1022 = vmatprep.mubr.msk.bf16.mxu1 %vm1164_vm0, %v1163_v1  ;;  %v602_v29 = vsel %vm298_vm1, %v600_v25, %v601_v26 }
  0x1a   : > { %1018 = vmatprep.subr.bf16.mxu1 %v1163_v1  ;;  %1049 = vmatpush3.bf16.msra.mxu0 %v1123_v17 }
  0x1b   : > { %1050 = vmatprep.subr.bf16.mxu0 %v1163_v1 }
  0x1d   : > { %1019 = vmatpush3.bf16.msra.mxu1 %v1122_v20 }
  0x1e   : > { %1020 = vmatprep.subr.bf16.mxu1 %v1163_v1  ;;  %1051 = vmatpush3.bf16.msra.mxu0 %v1125_v24 }
  0x1f   : > { %1056 = vmatprep.subr.bf16.mxu0 %v1163_v1 }
  0x21   : > { %1021 = vmatpush3.bf16.msra.mxu1 %v1124_v23  ;;  %1053 = vmatmul.mubr.msk.bf16.vlgmr.msra.gmra.mrb[0].mxu0 %vm320_vm2, %v602_v29 }
  0x22   : > { %1026 = vmatprep.subr.bf16.mxu1 %v1163_v1  ;;  %1057 = vmatpush3.bf16.msra.mxu0 %v1130_v30 }
  0x23   : > { %1058 = vmatprep.subr.bf16.mxu0 %v1163_v1  ;;  %1062 = vmatprep.mubr.msk.bf16.mxu0 %vm1164_vm0, %v1163_v1 }
  0x24   : > { %1023 = vmatmul.mubr.msk.bf16.vlgmr.msra.gmra.mrb[0].mxu1 %vm320_vm2, %v931_v28 }
  0x25   : > { %1027 = vmatpush3.bf16.msra.mxu1 %v1129_v31  ;;  %1032 = vmatprep.mubr.msk.bf16.mxu1 %vm1164_vm0, %v1163_v1 }
  0x26   : > { %1028 = vmatprep.subr.bf16.mxu1 %v1163_v1  ;;  %1059 = vmatpush3.bf16.msra.mxu0 %v1132_v32 }
  0x27   : > { %1060 = vmatprep.subr.bf16.mxu0 %v1163_v1 }
  0x29   : > { %1029 = vmatpush3.bf16.msra.mxu1 %v1131_v33 }
  0x2a   : > { %1030 = vmatprep.subr.bf16.mxu1 %v1163_v1  ;;  %1061 = vmatpush3.bf16.msra.mxu0 %v1134_v34 }
  0x2d   : > { %1031 = vmatpush3.bf16.msra.mxu1 %v1133_v36  ;;  %1063 = vmatmul.mubr.msk.bf16.vlgmr.msra.gmra.mrb[0].mxu0 %vm320_vm2, %v970_v38 }
  0x30   : > { %1033 = vmatmul.mubr.msk.bf16.vlgmr.msra.gmra.mrb[0].mxu1 %vm320_vm2, %v942_v39 }
 0x100   : > { %v733_v40 = vpop.f32.mrb[0].mxu0 }
 0x101   : > { %v1064_v42 = vpop.f32.mrb[1].mxu0 }
 0x102   : > { %v736_v45 = vpop.f32.mrb[2].mxu0 }
 0x103   : > { %v496_v41 = vpop.f32.mrb[0].mxu1  ;;  %v1065_v47 = vpop.f32.mrb[3].mxu0 }
 0x104   : > { %v1066_v43 = vadd.f32 %v733_v40, %v496_v41  ;;  %v1034_v44 = vpop.f32.mrb[1].mxu1 }
 0x105   : > { %v499_v46 = vpop.f32.mrb[2].mxu1 }
 0x106   : > { %v1067_v48 = vadd.f32 %v736_v45, %v499_v46  ;;  %v1035_v49 = vpop.f32.mrb[3].mxu1  ;;  %v743_v50 = vsel %vm742_vm3, %v1066_v43, 0.0 }
 0x108   : > { %v744_v51 = vsel %vm742_vm3, %v1067_v48, 0.0 }
 0x109   : > { %v745_v52 = vadd.f32 %v744_v51, %v743_v50 }
 0x10b   : > { %v746_v53 = vrot.slane %v745_v52, 4 }
 0x10d   : > { %v747_v54 = vadd.f32 %v746_v53, %v745_v52 }
 0x10f   : > { %v748_v55 = vrot.slane %v747_v54, 2 }
 0x111   : > { %v749_v56 = vadd.f32 %v748_v55, %v747_v54 }
 0x113   : > { %v750_v57 = vrot.slane %v749_v56, 1 }
 0x115   : > { %v751_v58 = vadd.f32 %v750_v57, %v749_v56 }
 0x117   : > { %v752_v59 = vmul.f32 0.0625, %v751_v58 }
 0x119   : > { %v753_v60 = vsub.f32 %v1066_v43, %v752_v59  ;;  %v754_v61 = vsub.f32 %v1067_v48, %v752_v59 }
 0x11b   : > { %v755_v62 = vmul.f32 %v753_v60, %v753_v60  ;;  %v756_v63 = vmul.f32 %v754_v61, %v754_v61 }
 0x11d   : > { %v757_v0 = vsel %vm742_vm3, %v755_v62, 0.0  ;;  %v758_v1 = vsel %vm742_vm3, %v756_v63, 0.0 }
 0x11e   : > { %v759_v2 = vadd.f32 %v758_v1, %v757_v0 }
 0x120   : > { %v760_v3 = vrot.slane %v759_v2, 4 }
 0x122   : > { %v761_v4 = vadd.f32 %v760_v3, %v759_v2 }
 0x124   : > { %v762_v5 = vrot.slane %v761_v4, 2 }
 0x126   : > { %v763_v6 = vadd.f32 %v762_v5, %v761_v4 }
 0x128   : > { %v764_v7 = vrot.slane %v763_v6, 1 }
 0x12a   : > { %v765_v8 = vadd.f32 %v764_v7, %v763_v6 }
 0x12c   : > { %v766_v9 = vmul.f32 0.0625, %v765_v8 }
 0x12e   : > { %v767_v10 = vadd.f32 1e-05, %v766_v9 }
 0x130   : > { %1137 = vrsqrt.f32 %v767_v10 }
 0x13a   : > { %v1138_v11 = vpop.eup %1137 }
 0x13b   : > { %v769_v12 = vmul.f32 %v1138_v11, %v753_v60  ;;  %v770_v13 = vmul.f32 %v1138_v11, %v754_v61 }
 0x13d   : > { %vm771_vm4 = vcmp.gt.f32.partialorder %v769_v12, 0.0  ;;  %vm772_vm5 = vcmp.gt.f32.partialorder %v770_v13, 0.0  ;;  %v773_v14 = vmul.f32 0.2, %v769_v12  ;;  %v774_v15 = vmul.f32 0.2, %v770_v13 }
 0x13f   : > { %v775_v16 = vsel %vm771_vm4, %v769_v12, %v773_v14  ;;  %v776_v17 = vsel %vm772_vm5, %v770_v13, %v774_v15 }
 0x140   : > { %v980_v18 = vpack.c.bf16 %v775_v16, %v775_v16  ;;  %v981_v19 = vpack.c.bf16 %v776_v17, %v776_v17 }
 0x142   : > { %786 = vst.msk [vmem:[%s271_s21] sm:$0xf] %vm785_vm6, %v980_v18  ;;  %787 = vst.msk [vmem:[%s271_s21 + $0x4] sm:$0xf] %vm785_vm6, %v981_v19 }
 0x143 PF: > { %s14_s17 = sadd.s32 1, %s1161_s17   ;;  %s1350_s15 = smov %s1157_s16 }
 0x144   : > { %p11_p5 = scmp.ge.s32.totalorder %s14_s17, 4   ;;  %s1351_s16 = smov %s1353_s18 }
 0x146   :  { %13 = sbr.rel (!%p11_p5) target bundleno = 2 (0x2), region = 79 }

// kernel: recnet_forward.27
= control target key start
LH: loop header
LB: loop body
LE: loop exit
PB: predicated region body
PF: predicated region fallthrough
CT: control target
= control target key end

     0   :  { %s1017_s9 = smov 0   ;;  %s1019_s10 = smov 0   ;;  %s1132_s0 = inlined_call_operand.vmem [shape: bf16[2,80,48], index: 0, kind: input, shape index: {}]   ;;  %s1133_s1 = inlined_call_operand.vmem [shape: bf16[3,48,8], index: 1, kind: input, shape index: {}]   ;;  %s1134_s2 = inlined_call_operand.vmem [shape: bf16[2,64,8], index: 2, kind: output, shape index: {}]  }
   0x1   :  { %s1021_s11 = smov 0  }
   0x2 LB: > { %s24_s12 = sadd.s32 1, %s996_s10  ;;  %p777_p0 = scmp.ge.s32.totalorder %s1000_s11, 1  ;;  %s1000_s11 = sphi %s1021_s11, %s12_s11   ;;  %s996_s10 = sphi %s1019_s10, %s1136_s10   ;;  %s992_s9 = sphi %s1017_s9, %s1135_s9  }
   0x3   : > { %p26_p1 = scmp.ge.s32.totalorder %s24_s12, 2  ;;  %p135_p2 = scmp.lt.s32.totalorder %s1000_s11, 3 }
   0x5   : > { %s1138_s12 = smov (%p26_p1, %s24_s12), 0  ;;  %p136_p3 = pnand %p777_p0, %p135_p2 }
   0x6   : > { %v955_v0 = vld [vmem:[%s1133_s1 + $0x18] sm:$0xff] (!%p136_p3)   ;;  %p164_p4 = scmp.lt.s32.totalorder (!%p136_p3), %s992_s9, 1  ;;  %v956_v1 = vld [vmem:[%s1133_s1] sm:$0xff] (!%p136_p3)   ;;  %v958_v3 = vld [vmem:[%s1133_s1 + $0x8] sm:$0xff] (!%p136_p3)   ;;  %vm242_vm0 = vcmask (!%p136_p3), 392192   ;;  %vm559_vm1 = vcmask (!%p136_p3), 64512  }
   0x7   : > { %139 = sbr.rel (%p136_p3) target bundleno = 341 (0x155), region = 28  ;;  %866 = vmatprep.subr.bf16.mxu1 (!%p136_p3), %v955_v0  ;;  %v957_v2 = vld [vmem:[%s1133_s1 + $0x20] sm:$0xff] (!%p136_p3)   ;;  %880 = vmatprep.subr.bf16.mxu0 (!%p136_p3), %v956_v1  ;;  %v959_v4 = vld [vmem:[%s1133_s1 + $0x28] sm:$0xff] (!%p136_p3)   ;;  %v960_v5 = vld [vmem:[%s1133_s1 + $0x10] sm:$0xff] (!%p136_p3)   ;;  %vm670_vm2 = vcmask (!%p136_p3), 60416  }
   0x8   : > { %867 = vmatpush3.bf16.msra.mxu1 (!%p136_p3), %v955_v0  ;;  %881 = vmatpush3.bf16.msra.mxu0 (!%p136_p3), %v956_v1  ;;  %v965_v6 = vld [vmem:[%s1133_s1 + $0x30] sm:$0xff] (!%p136_p3)   ;;  %v966_v19 = vld [vmem:[%s1133_s1 + $0x38] sm:$0xff] (!%p136_p3)   ;;  %v971_v23 = vld [vmem:[%s1133_s1 + $0x40] sm:$0xff] (!%p136_p3)  }
   0x9   : > { %868 = vmatprep.subr.bf16.mxu1 (!%p136_p3), %v957_v2  ;;  %882 = vmatprep.subr.bf16.mxu0 (!%p136_p3), %v958_v3 }
   0xc   : > { %869 = vmatpush3.bf16.msra.mxu1 (!%p136_p3), %v957_v2  ;;  %883 = vmatpush3.bf16.msra.mxu0 (!%p136_p3), %v958_v3 }
   0xd   : > { %870 = vmatprep.subr.bf16.mxu1 (!%p136_p3), %v959_v4  ;;  %884 = vmatprep.subr.bf16.mxu0 (!%p136_p3), %v960_v5 }
   0xe   : > { %s1140_s9 = smov (!%p164_p4, %s992_s9), 1 }
   0xf   : > { %s930_s23 = smul.u32 40, %s1140_s9  ;;  %s836_s7 = sshll.u32 %s1140_s9, 5 }
  0x10   : > { %871 = vmatpush3.bf16.msra.mxu1 %v959_v4  ;;  %885 = vmatpush3.bf16.msra.mxu0 %v960_v5  ;;  %s180_s14 = scalar_lea.vmem %s1134_s2, %s836_s7 }
  0x11   : > { %s1059_s28 = scalar_lea.vmem %s1132_s0, %s930_s23  ;;  %908 = vmatprep.subr.bf16.mxu1 %v965_v6  ;;  %894 = vmatprep.subr.bf16.mxu0 %v965_v6 }
  0x12   : > { %v183_v7 = vld [vmem:[%s1059_s28 + $0x4] sm:$0xf]  ;;  %v184_v8 = vld [vmem:[%s1059_s28 + $0x8] sm:$0xf]  ;;  %v185_v9 = vld [vmem:[%s1059_s28 + $0xc] sm:$0xf] }
  0x13   : > { %v186_v10 = vld [vmem:[%s1059_s28 + $0x10] sm:$0xf]  ;;  %v787_v11 = vcombine.low %v183_v7, %v184_v8  ;;  %v182_v12 = vld [vmem:[%s1059_s28] sm:$0xf]  ;;  %v187_v14 = vld [vmem:[%s1059_s28 + $0x14] sm:$0xf]  ;;  %v799_v17 = vcombine.low %v184_v8, %v185_v9 }
  0x14   : > { %v798_v13 = vcombine.low %v182_v12, %v183_v7  ;;  %v788_v15 = vcombine.low %v185_v9, %v186_v10  ;;  %v188_v16 = vld [vmem:[%s1059_s28 + $0x18] sm:$0xf]  ;;  %v800_v20 = vcombine.low %v186_v10, %v187_v14  ;;  %v189_v21 = vld [vmem:[%s1059_s28 + $0x1c] sm:$0xf]  ;;  %v196_v22 = vld [vmem:[%s1059_s28 + $0x20] sm:$0xf] }
  0x15   : > { %872 = vmatprep.mubr.msk.bf16.mxu1 %vm242_vm0, %v787_v11  ;;  %v789_v18 = vcombine.low %v187_v14, %v188_v16  ;;  %v790_v24 = vcombine.low %v189_v21, %v196_v22  ;;  %v801_v25 = vcombine.low %v188_v16, %v189_v21  ;;  %v972_v26 = vld [vmem:[%s1059_s28 + $0x8] sm:$0xff]   ;;  %v973_v27 = vld [vmem:[%s1059_s28 + $0x18] sm:$0xff]   ;;  %v975_v28 = vld [vmem:[%s1059_s28 + $0x20] sm:$0xff]  }
  0x16   : > { %886 = vmatprep.mubr.msk.bf16.mxu0 %vm242_vm0, %v798_v13  ;;  %873 = vmatmul.mubr.msk.bf16.vlgmr.msra.gmra.mrb[0].mxu1 %vm242_vm0, %v788_v15  ;;  %v974_v29 = vld [vmem:[%s1059_s28 + $0x10] sm:$0xff]  }
  0x17   : > { %887 = vmatmul.mubr.msk.bf16.vlgmr.msra.gmra.mrb[0].mxu0 %vm242_vm0, %v799_v17  ;;  %911 = vmatpush3.bf16.msra.mxu1 %v965_v6 }
  0x18   : > { %895 = vmatpush3.bf16.msra.mxu0 %v965_v6  ;;  %876 = vmatprep.mubr.msk.bf16.mxu1 %vm242_vm0, %v789_v18 }
  0x19   : > { %896 = vmatprep.subr.bf16.mxu0 %v966_v19  ;;  %890 = vmatprep.mubr.msk.bf16.mxu0 %vm242_vm0, %v800_v20 }
  0x1a   : > { %909 = vmatprep.subr.bf16.mxu1 %v966_v19 }
  0x1b   : > { %912 = vmatpush3.bf16.msra.mxu1 %v966_v19 }
  0x1c   : > { %897 = vmatpush3.bf16.msra.mxu0 %v966_v19  ;;  %910 = vmatprep.subr.bf16.mxu1 %v971_v23 }
  0x1d   : > { %898 = vmatprep.subr.bf16.mxu0 %v971_v23 }
  0x1e   : > { %877 = vmatmul.mubr.msk.bf16.gmra.mrb[4].mxu1 %vm242_vm0, %v790_v24 }
  0x1f   : > { %891 = vmatmul.mubr.msk.bf16.gmra.mrb[4].mxu0 %vm242_vm0, %v801_v25  ;;  %913 = vmatpush3.bf16.msra.mxu1 %v971_v23 }
  0x20   : > { %899 = vmatpush3.bf16.msra.mxu0 %v971_v23  ;;  %900 = vmatprep.mubr.msk.bf16.mxu0 %vm242_vm0, %v972_v26 }
  0x21   : > { %904 = vmatprep.mubr.msk.bf16.mxu1 %vm242_vm0, %v973_v27 }
  0x26   : > { %905 = vmatmul.mubr.msk.bf16.vlgmr.msra.gmra.mrb[8].mxu1 %vm242_vm0, %v975_v28 }
  0x27   : > { %901 = vmatmul.mubr.msk.bf16.vlgmr.msra.gmra.mrb[0].mxu0 %vm242_vm0, %v974_v29 }
  0xe9   : > { %v874_v30 = vpop.f32.mrb[0].mxu1 }
  0xea   : > { %v289_v31 = vpop.f32.mrb[1].mxu1 }
  0xeb   : > { %v875_v32 = vpop.f32.mrb[2].mxu1 }
  0xec   : > { %v292_v33 = vpop.f32.mrb[3].mxu1 }
  0xf1   : > { %v878_v34 = vpop.f32.mrb[4].mxu1 }
  0xf2   : > { %v892_v35 = vpop.f32.mrb[4].mxu0  ;;  %v305_v36 = vpop.f32.mrb[5].mxu1 }
  0xf3   : > { %v415_v37 = vadd.f32 %v892_v35, %v878_v34  ;;  %v406_v38 = vpop.f32.mrb[5].mxu0  ;;  %v879_v39 = vpop.f32.mrb[6].mxu1 }
  0xf4   : > { %v407_v40 = vadd.f32 %v406_v38, %v305_v36  ;;  %v893_v41 = vpop.f32.mrb[6].mxu0  ;;  %v308_v42 = vpop.f32.mrb[7].mxu1 }
  0xf5   : > { %v418_v43 = vadd.f32 %v893_v41, %v879_v39  ;;  %v409_v44 = vpop.f32.mrb[7].mxu0 }
  0xf6   : > { %v410_v45 = vadd.f32 %v409_v44, %v308_v42 }
  0xf9   : > { %v906_v46 = vpop.f32.mrb[8].mxu1 }
  0xfa   : > { %v902_v47 = vpop.f32.mrb[0].mxu0  ;;  %v557_v48 = vadd.f32 %v906_v46, %v415_v37  ;;  %v536_v49 = vpop.f32.mrb[9].mxu1 }
  0xfb   : > { %v914_v50 = vadd.f32 %v902_v47, %v874_v30  ;;  %v520_v51 = vpop.f32.mrb[1].mxu0  ;;  %v555_v52 = vadd.f32 %v536_v49, %v407_v40  ;;  %v907_v53 = vpop.f32.mrb[10].mxu1 }
  0xfc   : > { %v915_v54 = vadd.f32 %v520_v51, %v289_v31  ;;  %v903_v55 = vpop.f32.mrb[2].mxu0  ;;  %v558_v56 = vadd.f32 %v907_v53, %v418_v43  ;;  %v539_v57 = vpop.f32.mrb[11].mxu1  ;;  %v571_v9 = vsel %vm559_vm1, %v557_v48, 0.0 }
  0xfd   : > { %v916_v58 = vadd.f32 %v903_v55, %v875_v32  ;;  %v523_v59 = vpop.f32.mrb[3].mxu0  ;;  %v556_v60 = vadd.f32 %v539_v57, %v410_v45  ;;  %v563_v1 = vsel %vm559_vm1, %v914_v50, 0.0  ;;  %v567_v5 = vsel %vm559_vm1, %v555_v52, 0.0 }
  0xfe   : > { %v917_v61 = vadd.f32 %v523_v59, %v292_v33  ;;  %v560_v62 = vsel %vm559_vm1, %v915_v54, 0.0  ;;  %v573_v11 = vsel %vm559_vm1, %v558_v56, 0.0 }
  0xff   : > { %v565_v3 = vsel %vm559_vm1, %v916_v58, 0.0  ;;  %v569_v7 = vsel %vm559_vm1, %v556_v60, 0.0 }
 0x100   : > { %v561_v63 = vsel %vm559_vm1, %v917_v61, 0.0 }
 0x101   : > { %v562_v0 = vadd.f32 %v561_v63, %v560_v62 }
 0x103   : > { %v564_v2 = vadd.f32 %v563_v1, %v562_v0 }
 0x105   : > { %v566_v4 = vadd.f32 %v565_v3, %v564_v2 }
 0x107   : > { %v568_v6 = vadd.f32 %v567_v5, %v566_v4 }
 0x109   : > { %v570_v8 = vadd.f32 %v569_v7, %v568_v6 }
 0x10b   : > { %v572_v10 = vadd.f32 %v571_v9, %v570_v8 }
 0x10d   : > { %v574_v12 = vadd.f32 %v573_v11, %v572_v10 }
 0x10f   : > { %v575_v13 = vrot.slane %v574_v12, 4 }
 0x111   : > { %v576_v14 = vadd.f32 %v575_v13, %v574_v12 }
 0x113   : > { %v577_v15 = vrot.slane %v576_v14, 2 }
 0x115   : > { %v578_v16 = vadd.f32 %v577_v15, %v576_v14 }
 0x117   : > { %v579_v17 = vrot.slane %v578_v16, 1 }
 0x119   : > { %v580_v18 = vadd.f32 %v579_v17, %v578_v16 }
 0x11b   : > { %v581_v19 = vmul.f32 0.015625, %v580_v18 }
 0x11d   : > { %v582_v20 = vsub.f32 %v915_v54, %v581_v19  ;;  %v583_v21 = vsub.f32 %v917_v61, %v581_v19  ;;  %v584_v22 = vsub.f32 %v914_v50, %v581_v19  ;;  %v585_v23 = vsub.f32 %v916_v58, %v581_v19 }
 0x11e   : > { %v586_v24 = vsub.f32 %v555_v52, %v581_v19  ;;  %v587_v25 = vsub.f32 %v556_v60, %v581_v19  ;;  %v588_v26 = vsub.f32 %v557_v48, %v581_v19  ;;  %v589_v27 = vsub.f32 %v558_v56, %v581_v19 }
 0x11f   : > { %v590_v28 = vmul.f32 %v582_v20, %v582_v20  ;;  %v591_v29 = vmul.f32 %v583_v21, %v583_v21  ;;  %v592_v30 = vmul.f32 %v584_v22, %v584_v22  ;;  %v593_v31 = vmul.f32 %v585_v23, %v585_v23 }
 0x120   : > { %v594_v35 = vmul.f32 %v586_v24, %v586_v24  ;;  %v595_v38 = vmul.f32 %v587_v25, %v587_v25  ;;  %v596_v41 = vmul.f32 %v588_v26, %v588_v26  ;;  %v597_v44 = vmul.f32 %v589_v27, %v589_v27 }
 0x121   : > { %v598_v32 = vsel %vm559_vm1, %v590_v28, 0.0  ;;  %v599_v33 = vsel %vm559_vm1, %v591_v29, 0.0  ;;  %v601_v36 = vsel %vm559_vm1, %v592_v30, 0.0  ;;  %v603_v39 = vsel %vm559_vm1, %v593_v31, 0.0 }
 0x122   : > { %v600_v34 = vadd.f32 %v599_v33, %v598_v32  ;;  %v605_v42 = vsel %vm559_vm1, %v594_v35, 0.0  ;;  %v607_v45 = vsel %vm559_vm1, %v595_v38, 0.0  ;;  %v609_v47 = vsel %vm559_vm1, %v596_v41, 0.0 }
 0x123   : > { %v611_v49 = vsel %vm559_vm1, %v597_v44, 0.0 }
 0x124   : > { %v602_v37 = vadd.f32 %v601_v36, %v600_v34 }
 0x126   : > { %v604_v40 = vadd.f32 %v603_v39, %v602_v37 }
 0x128   : > { %v606_v43 = vadd.f32 %v605_v42, %v604_v40 }
 0x12a   : > { %v608_v46 = vadd.f32 %v607_v45, %v606_v43 }
 0x12c   : > { %v610_v48 = vadd.f32 %v609_v47, %v608_v46 }
 0x12e   : > { %v612_v50 = vadd.f32 %v611_v49, %v610_v48 }
 0x130   : > { %v613_v51 = vrot.slane %v612_v50, 4 }
 0x132   : > { %v614_v52 = vadd.f32 %v613_v51, %v612_v50 }
 0x134   : > { %v615_v53 = vrot.slane %v614_v52, 2 }
 0x136   : > { %v616_v54 = vadd.f32 %v615_v53, %v614_v52 }
 0x138   : > { %v617_v55 = vrot.slane %v616_v54, 1 }
 0x13a   : > { %v618_v56 = vadd.f32 %v617_v55, %v616_v54 }
 0x13c   : > { %v619_v57 = vmul.f32 0.015625, %v618_v56 }
 0x13e   : > { %v620_v58 = vadd.f32 1e-05, %v619_v57 }
 0x140   : > { %976 = vrsqrt.f32 %v620_v58 }
 0x14a   : > { %v977_v59 = vpop.eup %976 }
 0x14b   : > { %v622_v60 = vmul.f32 %v977_v59, %v582_v20  ;;  %v623_v61 = vmul.f32 %v977_v59, %v583_v21  ;;  %v624_v62 = vmul.f32 %v977_v59, %v584_v22  ;;  %v625_v63 = vmul.f32 %v977_v59, %v585_v23 }
 0x14c   : > { %v626_v0 = vmul.f32 %v977_v59, %v586_v24  ;;  %v627_v1 = vmul.f32 %v977_v59, %v587_v25  ;;  %v628_v2 = vmul.f32 %v977_v59, %v588_v26  ;;  %v629_v3 = vmul.f32 %v977_v59, %v589_v27 }
 0x14d   : > { %v630_v4 = vmax.f32 %v622_v60, 0.0  ;;  %v631_v5 = vmax.f32 %v623_v61, 0.0  ;;  %v632_v6 = vmax.f32 %v624_v62, 0.0  ;;  %v633_v7 = vmax.f32 %v625_v63, 0.0 }
 0x14e   : > { %v634_v8 = vmax.f32 %v626_v0, 0.0  ;;  %v635_v9 = vmax.f32 %v627_v1, 0.0  ;;  %v636_v10 = vmax.f32 %v628_v2, 0.0  ;;  %v637_v11 = vmax.f32 %v629_v3, 0.0 }
 0x14f   : > { %v837_v12 = vpack.c.bf16 %v630_v4, %v630_v4  ;;  %v838_v13 = vpack.c.bf16 %v631_v5, %v631_v5  ;;  %v839_v14 = vpack.c.bf16 %v632_v6, %v632_v6  ;;  %v840_v15 = vpack.c.bf16 %v633_v7, %v633_v7 }
 0x150   : > { %v841_v16 = vpack.c.bf16 %v634_v8, %v634_v8  ;;  %v842_v17 = vpack.c.bf16 %v635_v9, %v635_v9  ;;  %v843_v18 = vpack.c.bf16 %v636_v10, %v636_v10  ;;  %v844_v19 = vpack.c.bf16 %v637_v11, %v637_v11 }
 0x151   : > { %671 = vst.msk [vmem:[%s180_s14] sm:$0xf] %vm670_vm2, %v837_v12  ;;  %672 = vst.msk [vmem:[%s180_s14 + $0x4] sm:$0xf] %vm670_vm2, %v838_v13 }
 0x152   : > { %673 = vst.msk [vmem:[%s180_s14 + $0x8] sm:$0xf] %vm670_vm2, %v839_v14  ;;  %674 = vst.msk [vmem:[%s180_s14 + $0xc] sm:$0xf] %vm670_vm2, %v840_v15 }
 0x153   : > { %675 = vst.msk [vmem:[%s180_s14 + $0x10] sm:$0xf] %vm670_vm2, %v841_v16  ;;  %676 = vst.msk [vmem:[%s180_s14 + $0x14] sm:$0xf] %vm670_vm2, %v842_v17 }
 0x154   : > { %677 = vst.msk [vmem:[%s180_s14 + $0x18] sm:$0xf] %vm670_vm2, %v843_v18  ;;  %678 = vst.msk [vmem:[%s180_s14 + $0x1c] sm:$0xf] %vm670_vm2, %v844_v19 }
 0x155 PF: > { %s12_s11 = sadd.s32 1, %s1000_s11   ;;  %s1135_s9 = smov %s996_s10 }
 0x156   : > { %p9_p5 = scmp.ge.s32.totalorder %s12_s11, 4   ;;  %s1136_s10 = smov %s1138_s12 }
 0x158   :  { %11 = sbr.rel (!%p9_p5) target bundleno = 2 (0x2), region = 63 }

// kernel: recnet_forward.28
= control target key start
LH: loop header
LB: loop body
LE: loop exit
PB: predicated region body
PF: predicated region fallthrough
CT: control target
= control target key end

     0   :  { %s1634_s15 = smov 0   ;;  %s1636_s16 = smov 0   ;;  %s1807_s0 = inlined_call_operand.vmem [shape: bf16[2,80,24], index: 0, kind: input, shape index: {}]   ;;  %s1808_s1 = inlined_call_operand.vmem [shape: bf16[3,24,8], index: 1, kind: input, shape index: {}]   ;;  %s1809_s2 = inlined_call_operand.vmem [shape: bf16[2,80,24], index: 2, kind: input, shape index: {}]   ;;  %s1810_s3 = inlined_call_operand.vmem [shape: bf16[3,24,8], index: 3, kind: input, shape index: {}]   ;;  %s1811_s4 = inlined_call_operand.vmem [shape: bf16[2,64,8], index: 4, kind: output, shape index: {}]  }
   0x1   :  { %s1638_s17 = smov 0  }
   0x2 LB: > { %s26_s18 = sadd.s32 1, %s1603_s16  ;;  %p1272_p0 = scmp.ge.s32.totalorder %s1607_s17, 1  ;;  %s1607_s17 = sphi %s1638_s17, %s14_s17   ;;  %s1603_s16 = sphi %s1636_s16, %s1813_s16   ;;  %s1599_s15 = sphi %s1634_s15, %s1812_s15  }
   0x3   : > { %p28_p1 = scmp.ge.s32.totalorder %s26_s18, 2  ;;  %p204_p2 = scmp.lt.s32.totalorder %s1607_s17, 3 }
   0x5   : > { %s1815_s18 = smov (%p28_p1, %s26_s18), 0  ;;  %p205_p3 = pnand %p1272_p0, %p204_p2 }
   0x6   : > { %v1547_v0 = vld [vmem:[%s1808_s1 + $0xc] sm:$0xff] (!%p205_p3)   ;;  %vm331_vm0 = vcmask (!%p205_p3), 1043456   ;;  %v1548_v1 = vld [vmem:[%s1810_s3] sm:$0xff] (!%p205_p3)   ;;  %p246_p4 = scmp.lt.s32.totalorder (!%p205_p3), %s1599_s15, 1  ;;  %v1549_v2 = vld [vmem:[%s1808_s1 + $0x14] ss:$0 sps:$4 sm:$0xff] (!%p205_p3)  }
   0x7   : > { %208 = sbr.rel (%p205_p3) target bundleno = 360 (0x168), region = 36  ;;  %1404 = vmatprep.subr.bf16.mxu1 (!%p205_p3), %v1547_v0  ;;  %1440 = vmatprep.subr.bf16.mxu0 (!%p205_p3), %v1548_v1  ;;  %v1550_v3 = vld [vmem:[%s1810_s3 + $0x8] ss:$0 sps:$4 sm:$0xff] (!%p205_p3)   ;;  %v333_v4 = vsel (!%p205_p3), %vm331_vm0, %v1549_v2, 0  ;;  %v1556_v5 = vld [vmem:[%s1808_s1] sm:$0xff] (!%p205_p3)   ;;  %v1558_v7 = vld [vmem:[%s1810_s3 + $0xc] sm:$0xff] (!%p205_p3)  }
   0x8   : > { %1405 = vmatpush3.bf16.msra.mxu1 (!%p205_p3), %v1547_v0  ;;  %1441 = vmatpush3.bf16.msra.mxu0 (!%p205_p3), %v1548_v1  ;;  %v677_v6 = vsel (!%p205_p3), %vm331_vm0, %v1550_v3, 0  ;;  %vm318_vm1 = vcmask (!%p205_p3), 195584   ;;  %v1562_v10 = vld [vmem:[%s1808_s1 + $0x8] ss:$0 sps:$4 sm:$0xff] (!%p205_p3)   ;;  %v1564_v14 = vld [vmem:[%s1810_s3 + $0x14] ss:$0 sps:$4 sm:$0xff] (!%p205_p3)  }
   0x9   : > { %1516 = vmatprep.subr.msk.bf16.mxu1 (!%p205_p3), %vm331_vm0, %v1549_v2  ;;  %1519 = vmatprep.subr.msk.bf16.mxu0 (!%p205_p3), %vm331_vm0, %v1550_v3  ;;  %v428_v25 = vsel (!%p205_p3), %vm331_vm0, %v1562_v10, 0  ;;  %v1566_v26 = vld [vmem:[%s1808_s1 + $0x18] sm:$0xff] (!%p205_p3)   ;;  %v806_v27 = vsel (!%p205_p3), %vm331_vm0, %v1564_v14, 0  ;;  %v1572_v37 = vld [vmem:[%s1808_s1 + $0x20] ss:$0 sps:$4 sm:$0xff] (!%p205_p3)   ;;  %vm1010_vm2 = vcmask (!%p205_p3), 64512  }
   0xa   : > { %v1568_v31 = vld [vmem:[%s1810_s3 + $0x18] sm:$0xff] (!%p205_p3)   ;;  %v1574_v38 = vld [vmem:[%s1810_s3 + $0x20] ss:$0 sps:$4 sm:$0xff] (!%p205_p3)   ;;  %v549_v39 = vsel (!%p205_p3), %vm331_vm0, %v1572_v37, 0  ;;  %vm1137_vm3 = vcmask (!%p205_p3), 60416  }
   0xb   : > { %v935_v40 = vsel (!%p205_p3), %vm331_vm0, %v1574_v38, 0 }
   0xc   : > { %1407 = vmatpush3.bf16.msra.mxu1 (!%p205_p3), %v333_v4  ;;  %1443 = vmatpush3.bf16.msra.mxu0 (!%p205_p3), %v677_v6 }
   0xd   : > { %1416 = vmatprep.subr.bf16.mxu1 (!%p205_p3), %v1556_v5  ;;  %1452 = vmatprep.subr.bf16.mxu0 (!%p205_p3), %v1558_v7 }
   0xe   : > { %s1817_s15 = smov (!%p246_p4, %s1599_s15), 1 }
   0xf   : > { %s1522_s29 = smul.u32 40, %s1817_s15  ;;  %s1359_s28 = sshll.u32 %s1817_s15, 5 }
  0x10   : > { %s271_s15 = scalar_lea.vmem %s1811_s4, %s1359_s28 }
  0x11   : > { %s1680_s8 = scalar_lea.vmem %s1807_s0, %s1522_s29  ;;  %s1685_s11 = scalar_lea.vmem %s1809_s2, %s1522_s29 }
  0x12   : > { %v274_v8 = vld [vmem:[%s1680_s8 + $0x4] sm:$0xf]  ;;  %v275_v9 = vld [vmem:[%s1680_s8 + $0x8] sm:$0xf]  ;;  %v276_v11 = vld [vmem:[%s1680_s8 + $0xc] sm:$0xf] }
  0x13   : > { %v277_v12 = vld [vmem:[%s1680_s8 + $0x10] sm:$0xf]  ;;  %v1280_v13 = vcombine.low %v274_v8, %v275_v9  ;;  %v1555_v16 = vld [vmem:[%s1685_s11] sm:$0xff]   ;;  %v1557_v17 = vld [vmem:[%s1685_s11 + $0x8] sm:$0xff]   ;;  %v1291_v33 = vcombine.low %v275_v9, %v276_v11 }
  0x14   : > { %v1281_v15 = vcombine.low %v276_v11, %v277_v12  ;;  %v278_v18 = vld [vmem:[%s1680_s8 + $0x14] sm:$0xf]  ;;  %v273_v19 = vld [vmem:[%s1680_s8] sm:$0xf]  ;;  %1444 = vmatprep.mubr.msk.bf16.mxu0 %vm318_vm1, %v1555_v16  ;;  %v279_v20 = vld [vmem:[%s1680_s8 + $0x18] sm:$0xf] }
  0x15   : > { %1408 = vmatprep.mubr.msk.bf16.mxu1 %vm318_vm1, %v1280_v13  ;;  %1445 = vmatmul.mubr.msk.bf16.vlgmr.msra.gmra.mrb[0].mxu0 %vm318_vm1, %v1557_v17  ;;  %v1282_v21 = vcombine.low %v278_v18, %v279_v20  ;;  %v1560_v22 = vld [vmem:[%s1685_s11 + $0x10] sm:$0xff]   ;;  %v280_v23 = vld [vmem:[%s1680_s8 + $0x1c] sm:$0xf]  ;;  %v284_v24 = vld [vmem:[%s1680_s8 + $0x20] sm:$0xf]  ;;  %v1290_v30 = vcombine.low %v273_v19, %v274_v8  ;;  %v1292_v36 = vcombine.low %v277_v12, %v278_v18 }
  0x16   : > { %1409 = vmatmul.mubr.msk.bf16.vlgmr.msra.gmra.mrb[0].mxu1 %vm318_vm1, %v1281_v15  ;;  %1453 = vmatpush3.bf16.msra.mxu0 %v1558_v7  ;;  %v1283_v28 = vcombine.low %v280_v23, %v284_v24  ;;  %v1563_v29 = vld [vmem:[%s1685_s11 + $0x18] sm:$0xff]   ;;  %v1565_v32 = vld [vmem:[%s1685_s11 + $0x4] sm:$0xff]   ;;  %v1567_v34 = vld [vmem:[%s1685_s11 + $0xc] sm:$0xff]   ;;  %v1293_v41 = vcombine.low %v279_v20, %v280_v23 }
  0x17   : > { %1417 = vmatpush3.bf16.msra.mxu1 %v1556_v5  ;;  %1412 = vmatprep.mubr.msk.bf16.mxu1 %vm318_vm1, %v1282_v21  ;;  %v1570_v35 = vld [vmem:[%s1685_s11 + $0x14] sm:$0xff]   ;;  %v1573_v42 = vld [vmem:[%s1685_s11 + $0x1c] sm:$0xff]   ;;  %v1575_v43 = vld [vmem:[%s1680_s8 + $0x8] sm:$0xff]  }
  0x18   : > { %1517 = vmatprep.subr.msk.bf16.mxu1 %vm331_vm0, %v1562_v10  ;;  %1448 = vmatprep.mubr.msk.bf16.mxu0 %vm318_vm1, %v1560_v22  ;;  %v1576_v44 = vld [vmem:[%s1685_s11 + $0x8] sm:$0xff]   ;;  %v1577_v45 = vld [vmem:[%s1680_s8 + $0x10] sm:$0xff]   ;;  %v1579_v47 = vld [vmem:[%s1680_s8 + $0x18] sm:$0xff]  }
  0x19   : > { %1520 = vmatprep.subr.msk.bf16.mxu0 %vm331_vm0, %v1564_v14  ;;  %v1578_v46 = vld [vmem:[%s1685_s11 + $0x10] sm:$0xff]   ;;  %v1580_v48 = vld [vmem:[%s1685_s11 + $0x18] sm:$0xff]   ;;  %v1581_v49 = vld [vmem:[%s1680_s8 + $0x20] sm:$0xff]  }
  0x1a   : > { %1455 = vmatpush3.bf16.msra.mxu0 %v806_v27  ;;  %v1582_v50 = vld [vmem:[%s1685_s11 + $0x20] sm:$0xff]  }
  0x1b   : > { %1419 = vmatpush3.bf16.msra.mxu1 %v428_v25  ;;  %1464 = vmatprep.subr.bf16.mxu0 %v1568_v31 }
  0x1c   : > { %1428 = vmatprep.subr.bf16.mxu1 %v1566_v26 }
  0x1d   : > { %1449 = vmatmul.mubr.msk.bf16.gmra.mrb[4].mxu0 %vm318_vm1, %v1563_v29 }
  0x1e   : > { %1413 = vmatmul.mubr.msk.bf16.gmra.mrb[4].mxu1 %vm318_vm1, %v1283_v28  ;;  %1456 = vmatprep.mubr.msk.bf16.mxu0 %vm318_vm1, %v1565_v32 }
  0x1f   : > { %1420 = vmatprep.mubr.msk.bf16.mxu1 %vm318_vm1, %v1290_v30 }
  0x25   : > { %1457 = vmatmul.mubr.msk.bf16.vlgmr.msra.gmra.mrb[0].mxu0 %vm318_vm1, %v1567_v34 }
  0x26   : > { %1421 = vmatmul.mubr.msk.bf16.vlgmr.msra.gmra.mrb[0].mxu1 %vm318_vm1, %v1291_v33  ;;  %1465 = vmatpush3.bf16.msra.mxu0 %v1568_v31 }
  0x27   : > { %1429 = vmatpush3.bf16.msra.mxu1 %v1566_v26  ;;  %1424 = vmatprep.mubr.msk.bf16.mxu1 %vm318_vm1, %v1292_v36 }
  0x28   : > { %1460 = vmatprep.mubr.msk.bf16.mxu0 %vm318_vm1, %v1570_v35  ;;  %1518 = vmatprep.subr.msk.bf16.mxu1 %vm331_vm0, %v1572_v37 }
  0x29   : > { %1521 = vmatprep.subr.msk.bf16.mxu0 %vm331_vm0, %v1574_v38 }
  0x2a   : > { %1467 = vmatpush3.bf16.msra.mxu0 %v935_v40 }
  0x2b   : > { %1431 = vmatpush3.bf16.msra.mxu1 %v549_v39 }
  0x2d   : > { %1461 = vmatmul.mubr.msk.bf16.gmra.mrb[4].mxu0 %vm318_vm1, %v1573_v42 }
  0x2e   : > { %1425 = vmatmul.mubr.msk.bf16.gmra.mrb[4].mxu1 %vm318_vm1, %v1293_v41  ;;  %1468 = vmatprep.mubr.msk.bf16.mxu0 %vm318_vm1, %v1576_v44 }
  0x2f   : > { %1432 = vmatprep.mubr.msk.bf16.mxu1 %vm318_vm1, %v1575_v43 }
  0x35   : > { %1469 = vmatmul.mubr.msk.bf16.vlgmr.msra.gmra.mrb[0].mxu0 %vm318_vm1, %v1578_v46 }
  0x36   : > { %1433 = vmatmul.mubr.msk.bf16.vlgmr.msra.gmra.mrb[0].mxu1 %vm318_vm1, %v1577_v45  ;;  %1472 = vmatprep.mubr.msk.bf16.mxu0 %vm318_vm1, %v1580_v48 }
  0x37   : > { %1436 = vmatprep.mubr.msk.bf16.mxu1 %vm318_vm1, %v1579_v47 }
  0x3d   : > { %1473 = vmatmul.mubr.msk.bf16.gmra.mrb[4].mxu0 %vm318_vm1, %v1582_v50 }
  0x3e   : > { %1437 = vmatmul.mubr.msk.bf16.gmra.mrb[4].mxu1 %vm318_vm1, %v1581_v49 }
 0x108   : > { %v1470_v52 = vpop.f32.mrb[0].mxu0 }
 0x109   : > { %v1434_v51 = vpop.f32.mrb[0].mxu1  ;;  %v971_v55 = vpop.f32.mrb[1].mxu0 }
 0x10a   : > { %v585_v53 = vpop.f32.mrb[1].mxu1  ;;  %v1476_v54 = vadd.f32 %v1470_v52, %v1434_v51  ;;  %v1471_v58 = vpop.f32.mrb[2].mxu0 }
 0x10b   : > { %v1435_v56 = vpop.f32.mrb[2].mxu1  ;;  %v1477_v57 = vadd.f32 %v971_v55, %v585_v53  ;;  %v974_v61 = vpop.f32.mrb[3].mxu0 }
 0x10c   : > { %v588_v59 = vpop.f32.mrb[3].mxu1  ;;  %v1478_v60 = vadd.f32 %v1471_v58, %v1435_v56  ;;  %v1014_v3 = vsel %vm1010_vm2, %v1476_v54, 0.0 }
 0x10d   : > { %v1479_v62 = vadd.f32 %v974_v61, %v588_v59  ;;  %v1011_v63 = vsel %vm1010_vm2, %v1477_v57, 0.0 }
 0x10e   : > { %v1016_v10 = vsel %vm1010_vm2, %v1478_v60, 0.0 }
 0x10f   : > { %v1012_v0 = vsel %vm1010_vm2, %v1479_v62, 0.0 }
 0x110   : > { %v1013_v1 = vadd.f32 %v1012_v0, %v1011_v63  ;;  %v1474_v4 = vpop.f32.mrb[4].mxu0 }
 0x111   : > { %v1438_v2 = vpop.f32.mrb[4].mxu1  ;;  %v987_v8 = vpop.f32.mrb[5].mxu0 }
 0x112   : > { %v601_v5 = vpop.f32.mrb[5].mxu1  ;;  %v1015_v6 = vadd.f32 %v1014_v3, %v1013_v1  ;;  %v1480_v7 = vadd.f32 %v1474_v4, %v1438_v2  ;;  %v1475_v12 = vpop.f32.mrb[6].mxu0 }
 0x113   : > { %v1439_v9 = vpop.f32.mrb[6].mxu1  ;;  %v1481_v11 = vadd.f32 %v987_v8, %v601_v5  ;;  %v990_v16 = vpop.f32.mrb[7].mxu0 }
 0x114   : > { %v604_v13 = vpop.f32.mrb[7].mxu1  ;;  %v1017_v14 = vadd.f32 %v1016_v10, %v1015_v6  ;;  %v1482_v15 = vadd.f32 %v1475_v12, %v1439_v9  ;;  %v1022_v22 = vsel %vm1010_vm2, %v1480_v7, 0.0 }
 0x115   : > { %v1018_v17 = vsel %vm1010_vm2, %v1481_v11, 0.0  ;;  %v1483_v18 = vadd.f32 %v990_v16, %v604_v13 }
 0x116   : > { %v1019_v19 = vadd.f32 %v1018_v17, %v1017_v14  ;;  %v1024_v24 = vsel %vm1010_vm2, %v1482_v15, 0.0 }
 0x117   : > { %v1020_v20 = vsel %vm1010_vm2, %v1483_v18, 0.0 }
 0x118   : > { %v1021_v21 = vadd.f32 %v1020_v20, %v1019_v19 }
 0x11a   : > { %v1023_v23 = vadd.f32 %v1022_v22, %v1021_v21 }
 0x11c   : > { %v1025_v25 = vadd.f32 %v1024_v24, %v1023_v23 }
 0x11e   : > { %v1026_v26 = vrot.slane %v1025_v25, 4 }
 0x120   : > { %v1027_v27 = vadd.f32 %v1026_v26, %v1025_v25 }
 0x122   : > { %v1028_v28 = vrot.slane %v1027_v27, 2 }
 0x124   : > { %v1029_v29 = vadd.f32 %v1028_v28, %v1027_v27 }
 0x126   : > { %v1030_v30 = vrot.slane %v1029_v29, 1 }
 0x128   : > { %v1031_v31 = vadd.f32 %v1030_v30, %v1029_v29 }
 0x12a   : > { %v1032_v32 = vmul.f32 0.015625, %v1031_v31 }
 0x12c   : > { %v1033_v33 = vsub.f32 %v1477_v57, %v1032_v32  ;;  %v1034_v34 = vsub.f32 %v1479_v62, %v1032_v32  ;;  %v1035_v35 = vsub.f32 %v1476_v54, %v1032_v32  ;;  %v1036_v36 = vsub.f32 %v1478_v60, %v1032_v32 }
 0x12d   : > { %v1037_v37 = vsub.f32 %v1481_v11, %v1032_v32  ;;  %v1038_v38 = vsub.f32 %v1483_v18, %v1032_v32  ;;  %v1039_v39 = vsub.f32 %v1480_v7, %v1032_v32  ;;  %v1040_v40 = vsub.f32 %v1482_v15, %v1032_v32 }
 0x12e   : > { %v1041_v41 = vmul.f32 %v1033_v33, %v1033_v33  ;;  %v1042_v42 = vmul.f32 %v1034_v34, %v1034_v34  ;;  %v1043_v43 = vmul.f32 %v1035_v35, %v1035_v35  ;;  %v1044_v44 = vmul.f32 %v1036_v36, %v1036_v36 }
 0x12f   : > { %v1045_v48 = vmul.f32 %v1037_v37, %v1037_v37  ;;  %v1046_v51 = vmul.f32 %v1038_v38, %v1038_v38  ;;  %v1047_v54 = vmul.f32 %v1039_v39, %v1039_v39  ;;  %v1048_v57 = vmul.f32 %v1040_v40, %v1040_v40 }
 0x130   : > { %v1049_v45 = vsel %vm1010_vm2, %v1041_v41, 0.0  ;;  %v1050_v46 = vsel %vm1010_vm2, %v1042_v42, 0.0  ;;  %v1052_v49 = vsel %vm1010_vm2, %v1043_v43, 0.0  ;;  %v1054_v52 = vsel %vm1010_vm2, %v1044_v44, 0.0 }
 0x131   : > { %v1051_v47 = vadd.f32 %v1050_v46, %v1049_v45  ;;  %v1056_v55 = vsel %vm1010_vm2, %v1045_v48, 0.0  ;;  %v1058_v58 = vsel %vm1010_vm2, %v1046_v51, 0.0  ;;  %v1060_v60 = vsel %vm1010_vm2, %v1047_v54, 0.0 }
 0x132   : > { %v1062_v62 = vsel %vm1010_vm2, %v1048_v57, 0.0 }
 0x133   : > { %v1053_v50 = vadd.f32 %v1052_v49, %v1051_v47 }
 0x135   : > { %v1055_v53 = vadd.f32 %v1054_v52, %v1053_v50 }
 0x137   : > { %v1057_v56 = vadd.f32 %v1056_v55, %v1055_v53 }
 0x139   : > { %v1059_v59 = vadd.f32 %v1058_v58, %v1057_v56 }
 0x13b   : > { %v1061_v61 = vadd.f32 %v1060_v60, %v1059_v59 }
 0x13d   : > { %v1063_v63 = vadd.f32 %v1062_v62, %v1061_v61 }
 0x13f   : > { %v1064_v0 = vrot.slane %v1063_v63, 4 }
 0x141   : > { %v1065_v1 = vadd.f32 %v1064_v0, %v1063_v63 }
 0x143   : > { %v1066_v2 = vrot.slane %v1065_v1, 2 }
 0x145   : > { %v1067_v3 = vadd.f32 %v1066_v2, %v1065_v1 }
 0x147   : > { %v1068_v4 = vrot.slane %v1067_v3, 1 }
 0x149   : > { %v1069_v5 = vadd.f32 %v1068_v4, %v1067_v3 }
 0x14b   : > { %v1070_v6 = vmul.f32 0.015625, %v1069_v5 }
 0x14d   : > { %v1071_v7 = vadd.f32 1e-05, %v1070_v6 }
 0x14f   : > { %1583 = vrsqrt.f32 %v1071_v7 }
 0x159   : > { %v1584_v8 = vpop.eup %1583 }
 0x15a   : > { %v1073_v9 = vmul.f32 %v1584_v8, %v1033_v33  ;;  %v1074_v10 = vmul.f32 %v1584_v8, %v1034_v34  ;;  %v1075_v11 = vmul.f32 %v1584_v8, %v1035_v35  ;;  %v1076_v12 = vmul.f32 %v1584_v8, %v1036_v36 }
 0x15b   : > { %v1077_v13 = vmul.f32 %v1584_v8, %v1037_v37  ;;  %v1078_v14 = vmul.f32 %v1584_v8, %v1038_v38  ;;  %v1079_v15 = vmul.f32 %v1584_v8, %v1039_v39  ;;  %v1080_v16 = vmul.f32 %v1584_v8, %v1040_v40 }
 0x15c   : > { %vm1081_vm4 = vcmp.gt.f32.partialorder %v1073_v9, 0.0  ;;  %vm1082_vm5 = vcmp.gt.f32.partialorder %v1074_v10, 0.0  ;;  %vm1083_vm6 = vcmp.gt.f32.partialorder %v1075_v11, 0.0  ;;  %vm1084_vm7 = vcmp.gt.f32.partialorder %v1076_v12, 0.0 }
 0x15d   : > { %vm1085_vm8 = vcmp.gt.f32.partialorder %v1077_v13, 0.0  ;;  %vm1086_vm9 = vcmp.gt.f32.partialorder %v1078_v14, 0.0  ;;  %vm1087_vm10 = vcmp.gt.f32.partialorder %v1079_v15, 0.0  ;;  %vm1088_vm11 = vcmp.gt.f32.partialorder %v1080_v16, 0.0 }
 0x15e   : > { %v1089_v17 = vmul.f32 0.2, %v1073_v9  ;;  %v1090_v18 = vmul.f32 0.2, %v1074_v10  ;;  %v1091_v19 = vmul.f32 0.2, %v1075_v11 }
 0x15f   : > { %v1092_v20 = vmul.f32 0.2, %v1076_v12  ;;  %v1093_v21 = vmul.f32 0.2, %v1077_v13  ;;  %v1094_v22 = vmul.f32 0.2, %v1078_v14 }
 0x160   : > { %v1095_v23 = vmul.f32 0.2, %v1079_v15  ;;  %v1096_v24 = vmul.f32 0.2, %v1080_v16  ;;  %v1097_v25 = vsel %vm1081_vm4, %v1073_v9, %v1089_v17  ;;  %v1098_v26 = vsel %vm1082_vm5, %v1074_v10, %v1090_v18 }
 0x161   : > { %v1099_v27 = vsel %vm1083_vm6, %v1075_v11, %v1091_v19  ;;  %v1100_v28 = vsel %vm1084_vm7, %v1076_v12, %v1092_v20  ;;  %v1101_v29 = vsel %vm1085_vm8, %v1077_v13, %v1093_v21  ;;  %v1102_v30 = vsel %vm1086_vm9, %v1078_v14, %v1094_v22 }
 0x162   : > { %v1103_v31 = vsel %vm1087_vm10, %v1079_v15, %v1095_v23  ;;  %v1104_v32 = vsel %vm1088_vm11, %v1080_v16, %v1096_v24  ;;  %v1360_v33 = vpack.c.bf16 %v1097_v25, %v1097_v25  ;;  %v1361_v34 = vpack.c.bf16 %v1098_v26, %v1098_v26 }
 0x163   : > { %v1362_v35 = vpack.c.bf16 %v1099_v27, %v1099_v27  ;;  %v1363_v36 = vpack.c.bf16 %v1100_v28, %v1100_v28  ;;  %v1364_v37 = vpack.c.bf16 %v1101_v29, %v1101_v29  ;;  %v1365_v38 = vpack.c.bf16 %v1102_v30, %v1102_v30 }
 0x164   : > { %v1366_v39 = vpack.c.bf16 %v1103_v31, %v1103_v31  ;;  %v1367_v40 = vpack.c.bf16 %v1104_v32, %v1104_v32  ;;  %1138 = vst.msk [vmem:[%s271_s15] sm:$0xf] %vm1137_vm3, %v1360_v33  ;;  %1139 = vst.msk [vmem:[%s271_s15 + $0x4] sm:$0xf] %vm1137_vm3, %v1361_v34 }
 0x165   : > { %1140 = vst.msk [vmem:[%s271_s15 + $0x8] sm:$0xf] %vm1137_vm3, %v1362_v35  ;;  %1141 = vst.msk [vmem:[%s271_s15 + $0xc] sm:$0xf] %vm1137_vm3, %v1363_v36 }
 0x166   : > { %1142 = vst.msk [vmem:[%s271_s15 + $0x10] sm:$0xf] %vm1137_vm3, %v1364_v37  ;;  %1143 = vst.msk [vmem:[%s271_s15 + $0x14] sm:$0xf] %vm1137_vm3, %v1365_v38 }
 0x167   : > { %1144 = vst.msk [vmem:[%s271_s15 + $0x18] sm:$0xf] %vm1137_vm3, %v1366_v39  ;;  %1145 = vst.msk [vmem:[%s271_s15 + $0x1c] sm:$0xf] %vm1137_vm3, %v1367_v40 }
 0x168 PF: > { %s14_s17 = sadd.s32 1, %s1607_s17   ;;  %s1812_s15 = smov %s1603_s16 }
 0x169   : > { %p11_p5 = scmp.ge.s32.totalorder %s14_s17, 4   ;;  %s1813_s16 = smov %s1815_s18 }
 0x16b   :  { %13 = sbr.rel (!%p11_p5) target bundleno = 2 (0x2), region = 79 }

// kernel: recnet_forward.29
= control target key start
LH: loop header
LB: loop body
LE: loop exit
PB: predicated region body
PF: predicated region fallthrough
CT: control target
= control target key end

     0   :  { %s2109_s9 = smov 0   ;;  %s2111_s10 = smov 0   ;;  %s2740_s0 = inlined_call_operand.vmem [shape: bf16[2,288,24], index: 0, kind: input, shape index: {}]   ;;  %s2741_s1 = inlined_call_operand.vmem [shape: bf16[3,24,4], index: 1, kind: input, shape index: {}]   ;;  %s2742_s2 = inlined_call_operand.vmem [shape: bf16[2,256,4], index: 2, kind: output, shape index: {}]  }
   0x1   :  { %s2113_s11 = smov 0  }
   0x2 LB: > { %s24_s12 = sadd.s32 1, %s2088_s10  ;;  %p1606_p0 = scmp.ge.s32.totalorder %s2092_s11, 1  ;;  %s2092_s11 = sphi %s2113_s11, %s12_s11   ;;  %s2088_s10 = sphi %s2111_s10, %s2744_s10   ;;  %s2084_s9 = sphi %s2109_s9, %s2743_s9  }
   0x3   : > { %p26_p1 = scmp.ge.s32.totalorder %s24_s12, 2  ;;  %p135_p2 = scmp.lt.s32.totalorder %s2092_s11, 3 }
   0x5   : > { %s2746_s12 = smov (%p26_p1, %s24_s12), 0  ;;  %p136_p3 = pnand %p1606_p0, %p135_p2 }
   0x6   : > { %v2029_v0 = vld [vmem:[%s2741_s1 + $0xc] sm:$0xff] (!%p136_p3)   ;;  %vm361_vm0 = vcmask (!%p136_p3), 1043456   ;;  %v2030_v1 = vld [vmem:[%s2741_s1] sm:$0xff] (!%p136_p3)   ;;  %p164_p4 = scmp.lt.s32.totalorder (!%p136_p3), %s2084_s9, 1  ;;  %v2031_v2 = vld [vmem:[%s2741_s1 + $0x14] ss:$0 sps:$4 sm:$0xff] (!%p136_p3)  }
   0x7   : > { %139 = sbr.rel (%p136_p3) target bundleno = 480 (0x1e0), region = 28  ;;  %1824 = vmatprep.subr.bf16.mxu1 (!%p136_p3), %v2029_v0  ;;  %1860 = vmatprep.subr.bf16.mxu0 (!%p136_p3), %v2030_v1  ;;  %v2032_v3 = vld [vmem:[%s2741_s1 + $0x8] ss:$0 sps:$4 sm:$0xff] (!%p136_p3)   ;;  %v363_v4 = vsel (!%p136_p3), %vm361_vm0, %v2031_v2, 0  ;;  %v2036_v6 = vld [vmem:[%s2741_s1 + $0x18] sm:$0xff] (!%p136_p3)   ;;  %vm312_vm1 = vcmask (!%p136_p3), 195584  }
   0x8   : > { %1825 = vmatpush3.bf16.msra.mxu1 (!%p136_p3), %v2029_v0  ;;  %1861 = vmatpush3.bf16.msra.mxu0 (!%p136_p3), %v2030_v1  ;;  %v544_v5 = vsel (!%p136_p3), %vm361_vm0, %v2032_v3, 0  ;;  %v2041_v8 = vld [vmem:[%s2741_s1 + $0x20] ss:$0 sps:$4 sm:$0xff] (!%p136_p3)   ;;  %vm1076_vm2 = vcmask (!%p136_p3), 31744   ;;  %vm1475_vm3 = vcmask (!%p136_p3), 27648  }
   0x9   : > { %2000 = vmatprep.subr.msk.bf16.mxu1 (!%p136_p3), %vm361_vm0, %v2031_v2  ;;  %2001 = vmatprep.subr.msk.bf16.mxu0 (!%p136_p3), %vm361_vm0, %v2032_v3  ;;  %v881_v12 = vsel (!%p136_p3), %vm361_vm0, %v2041_v8, 0 }
   0xc   : > { %1827 = vmatpush3.bf16.msra.mxu1 (!%p136_p3), %v363_v4  ;;  %1863 = vmatpush3.bf16.msra.mxu0 (!%p136_p3), %v544_v5 }
   0xd   : > { %1932 = vmatprep.subr.bf16.mxu1 (!%p136_p3), %v2030_v1  ;;  %1896 = vmatprep.subr.bf16.mxu0 (!%p136_p3), %v2036_v6 }
   0xe   : > { %s2748_s9 = smov (!%p164_p4, %s2084_s9), 1 }
   0xf   : > { %s2004_s21 = smul.u32 144, %s2748_s9  ;;  %s1737_s29 = sshll.u32 %s2748_s9, 7 }
  0x10   : > { %s2661_s4 = scalar_lea.vmem %s2742_s2, %s1737_s29 }
  0x11   : > { %s2152_s26 = scalar_lea.vmem %s2740_s0, %s2004_s21 }
  0x12   : > { %v2033_v7 = vld [vmem:[%s2152_s26 + $0x8] sm:$0xff]   ;;  %v2034_v9 = vld [vmem:[%s2152_s26] sm:$0xff]   ;;  %v2035_v10 = vld [vmem:[%s2152_s26 + $0x10] sm:$0xff]  }
  0x13   : > { %1828 = vmatprep.mubr.msk.bf16.mxu1 %vm312_vm1, %v2033_v7  ;;  %1864 = vmatprep.mubr.msk.bf16.mxu0 %vm312_vm1, %v2034_v9  ;;  %v2037_v11 = vld [vmem:[%s2152_s26 + $0x18] sm:$0xff]   ;;  %v2038_v13 = vld [vmem:[%s2152_s26 + $0x20] sm:$0xff]   ;;  %v2039_v14 = vld [vmem:[%s2152_s26 + $0x28] sm:$0xff]  }
  0x14   : > { %1829 = vmatmul.mubr.msk.bf16.vlgmr.msra.gmra.mrb[0].mxu1 %vm312_vm1, %v2035_v10  ;;  %1865 = vmatmul.mubr.msk.bf16.vlgmr.msra.gmra.mrb[0].mxu0 %vm312_vm1, %v2033_v7  ;;  %v2040_v15 = vld [vmem:[%s2152_s26 + $0x30] sm:$0xff]   ;;  %v2042_v16 = vld [vmem:[%s2152_s26 + $0x38] sm:$0xff]   ;;  %v2043_v17 = vld [vmem:[%s2152_s26 + $0x40] sm:$0xff]  }
  0x15   : > { %1934 = vmatpush3.bf16.msra.mxu1 %v2030_v1  ;;  %1897 = vmatpush3.bf16.msra.mxu0 %v2036_v6  ;;  %v2044_v18 = vld [vmem:[%s2152_s26 + $0x48] sm:$0xff]   ;;  %v2045_v19 = vld [vmem:[%s2152_s26 + $0x10] sm:$0xff]   ;;  %v2047_v21 = vld [vmem:[%s2152_s26 + $0x18] sm:$0xff]  }
  0x16   : > { %1832 = vmatprep.mubr.msk.bf16.mxu1 %vm312_vm1, %v2037_v11  ;;  %1868 = vmatprep.mubr.msk.bf16.mxu0 %vm312_vm1, %v2035_v10  ;;  %v2046_v20 = vld [vmem:[%s2152_s26 + $0x50] sm:$0xff]   ;;  %v2048_v22 = vld [vmem:[%s2152_s26 + $0x58] sm:$0xff]   ;;  %v2049_v23 = vld [vmem:[%s2152_s26 + $0x20] sm:$0xff]  }
  0x17   : > { %2003 = vmatprep.subr.msk.bf16.mxu0 %vm361_vm0, %v2041_v8  ;;  %2002 = vmatprep.subr.msk.bf16.mxu1 %vm361_vm0, %v2032_v3  ;;  %v2050_v24 = vld [vmem:[%s2152_s26 + $0x60] sm:$0xff]   ;;  %v2051_v25 = vld [vmem:[%s2152_s26 + $0x28] sm:$0xff]   ;;  %v2053_v27 = vld [vmem:[%s2152_s26 + $0x30] sm:$0xff]  }
  0x18   : > { %v2052_v26 = vld [vmem:[%s2152_s26 + $0x68] sm:$0xff]   ;;  %v2054_v28 = vld [vmem:[%s2152_s26 + $0x70] sm:$0xff]   ;;  %v2055_v29 = vld [vmem:[%s2152_s26 + $0x38] sm:$0xff]  }
  0x19   : > { %1899 = vmatpush3.bf16.msra.mxu0 %v881_v12  ;;  %1935 = vmatpush3.bf16.msra.mxu1 %v544_v5  ;;  %v2056_v30 = vld [vmem:[%s2152_s26 + $0x78] sm:$0xff]   ;;  %v2057_v31 = vld [vmem:[%s2152_s26 + $0x40] sm:$0xff]   ;;  %v2059_v33 = vld [vmem:[%s2152_s26 + $0x48] sm:$0xff]  }
  0x1a   : > { %v2058_v32 = vld [vmem:[%s2152_s26 + $0x80] sm:$0xff]   ;;  %v2060_v34 = vld [vmem:[%s2152_s26 + $0x50] sm:$0xff]   ;;  %v2061_v35 = vld [vmem:[%s2152_s26 + $0x58] sm:$0xff]  }
  0x1b   : > { %v2062_v36 = vld [vmem:[%s2152_s26 + $0x60] sm:$0xff]   ;;  %v2063_v37 = vld [vmem:[%s2152_s26 + $0x68] sm:$0xff]   ;;  %v2064_v38 = vld [vmem:[%s2152_s26 + $0x70] sm:$0xff]  }
  0x1c   : > { %1833 = vmatmul.mubr.msk.bf16.gmra.mrb[4].mxu1 %vm312_vm1, %v2038_v13  ;;  %1869 = vmatmul.mubr.msk.bf16.gmra.mrb[4].mxu0 %vm312_vm1, %v2037_v11  ;;  %v2065_v39 = vld [vmem:[%s2152_s26 + $0x78] sm:$0xff]   ;;  %v2066_v40 = vld [vmem:[%s2152_s26 + $0x80] sm:$0xff]   ;;  %v2067_v41 = vld [vmem:[%s2152_s26 + $0x88] sm:$0xff]  }
  0x1d   : > { %1836 = vmatprep.mubr.msk.bf16.mxu1 %vm312_vm1, %v2039_v14  ;;  %1872 = vmatprep.mubr.msk.bf16.mxu0 %vm312_vm1, %v2038_v13 }
  0x24   : > { %1837 = vmatmul.mubr.msk.bf16.gmra.mrb[8].mxu1 %vm312_vm1, %v2040_v15  ;;  %1873 = vmatmul.mubr.msk.bf16.gmra.mrb[8].mxu0 %vm312_vm1, %v2039_v14 }
  0x25   : > { %1840 = vmatprep.mubr.msk.bf16.mxu1 %vm312_vm1, %v2042_v16  ;;  %1876 = vmatprep.mubr.msk.bf16.mxu0 %vm312_vm1, %v2040_v15 }
  0x2c   : > { %1841 = vmatmul.mubr.msk.bf16.gmra.mrb[12].mxu1 %vm312_vm1, %v2043_v17  ;;  %1877 = vmatmul.mubr.msk.bf16.gmra.mrb[12].mxu0 %vm312_vm1, %v2042_v16 }
  0x2d   : > { %1844 = vmatprep.mubr.msk.bf16.mxu1 %vm312_vm1, %v2044_v18  ;;  %1900 = vmatprep.mubr.msk.bf16.mxu0 %vm312_vm1, %v2045_v19 }
  0x34   : > { %1845 = vmatmul.mubr.msk.bf16.gmra.mrb[16].mxu1 %vm312_vm1, %v2046_v20  ;;  %1901 = vmatmul.mubr.msk.bf16.vlgmr.msra.gmra.mrb[0].mxu0 %vm312_vm1, %v2047_v21 }
  0x35   : > { %1848 = vmatprep.mubr.msk.bf16.mxu1 %vm312_vm1, %v2048_v22  ;;  %1904 = vmatprep.mubr.msk.bf16.mxu0 %vm312_vm1, %v2049_v23 }
  0x3c   : > { %1849 = vmatmul.mubr.msk.bf16.gmra.mrb[20].mxu1 %vm312_vm1, %v2050_v24  ;;  %1905 = vmatmul.mubr.msk.bf16.gmra.mrb[4].mxu0 %vm312_vm1, %v2051_v25 }
  0x3d   : > { %1852 = vmatprep.mubr.msk.bf16.mxu1 %vm312_vm1, %v2052_v26  ;;  %1908 = vmatprep.mubr.msk.bf16.mxu0 %vm312_vm1, %v2053_v27 }
  0x44   : > { %1853 = vmatmul.mubr.msk.bf16.gmra.mrb[24].mxu1 %vm312_vm1, %v2054_v28  ;;  %1909 = vmatmul.mubr.msk.bf16.gmra.mrb[8].mxu0 %vm312_vm1, %v2055_v29 }
  0x45   : > { %1856 = vmatprep.mubr.msk.bf16.mxu1 %vm312_vm1, %v2056_v30  ;;  %1912 = vmatprep.mubr.msk.bf16.mxu0 %vm312_vm1, %v2057_v31 }
  0x4c   : > { %1857 = vmatmul.mubr.msk.bf16.gmra.mrb[28].mxu1 %vm312_vm1, %v2058_v32  ;;  %1913 = vmatmul.mubr.msk.bf16.gmra.mrb[12].mxu0 %vm312_vm1, %v2059_v33 }
  0x4d   : > { %1880 = vmatprep.mubr.msk.bf16.mxu1 %vm312_vm1, %v2043_v17  ;;  %1916 = vmatprep.mubr.msk.bf16.mxu0 %vm312_vm1, %v2060_v34 }
  0x54   : > { %1881 = vmatmul.mubr.msk.bf16.vlgmr.msra.gmra.mrb[16].mxu1 %vm312_vm1, %v2044_v18  ;;  %1917 = vmatmul.mubr.msk.bf16.gmra.mrb[16].mxu0 %vm312_vm1, %v2061_v35 }
  0x55   : > { %1884 = vmatprep.mubr.msk.bf16.mxu1 %vm312_vm1, %v2046_v20  ;;  %1920 = vmatprep.mubr.msk.bf16.mxu0 %vm312_vm1, %v2062_v36 }
  0x5c   : > { %1885 = vmatmul.mubr.msk.bf16.gmra.mrb[20].mxu1 %vm312_vm1, %v2048_v22  ;;  %1921 = vmatmul.mubr.msk.bf16.gmra.mrb[20].mxu0 %vm312_vm1, %v2063_v37 }
  0x5d   : > { %1888 = vmatprep.mubr.msk.bf16.mxu1 %vm312_vm1, %v2050_v24  ;;  %1924 = vmatprep.mubr.msk.bf16.mxu0 %vm312_vm1, %v2064_v38 }
  0x64   : > { %1889 = vmatmul.mubr.msk.bf16.gmra.mrb[24].mxu1 %vm312_vm1, %v2052_v26  ;;  %1925 = vmatmul.mubr.msk.bf16.gmra.mrb[24].mxu0 %vm312_vm1, %v2065_v39 }
  0x65   : > { %1892 = vmatprep.mubr.msk.bf16.mxu1 %vm312_vm1, %v2054_v28  ;;  %1928 = vmatprep.mubr.msk.bf16.mxu0 %vm312_vm1, %v2066_v40 }
  0x6c   : > { %1893 = vmatmul.mubr.msk.bf16.gmra.mrb[28].mxu1 %vm312_vm1, %v2056_v30  ;;  %1929 = vmatmul.mubr.msk.bf16.gmra.mrb[28].mxu0 %vm312_vm1, %v2067_v41 }
  0xe7   : > { %v1830_v42 = vpop.f32.mrb[0].mxu1 }
  0xe8   : > { %v399_v43 = vpop.f32.mrb[1].mxu1 }
  0xe9   : > { %v1831_v44 = vpop.f32.mrb[2].mxu1 }
  0xea   : > { %v402_v45 = vpop.f32.mrb[3].mxu1 }
  0xef   : > { %v1834_v46 = vpop.f32.mrb[4].mxu1 }
  0xf0   : > { %v415_v47 = vpop.f32.mrb[5].mxu1 }
  0xf1   : > { %v1835_v48 = vpop.f32.mrb[6].mxu1 }
  0xf2   : > { %v418_v49 = vpop.f32.mrb[7].mxu1 }
  0xf7   : > { %v1838_v50 = vpop.f32.mrb[8].mxu1 }
  0xf8   : > { %v431_v51 = vpop.f32.mrb[9].mxu1 }
  0xf9   : > { %v1839_v52 = vpop.f32.mrb[10].mxu1 }
  0xfa   : > { %v434_v53 = vpop.f32.mrb[11].mxu1 }
  0xff   : > { %v1842_v54 = vpop.f32.mrb[12].mxu1 }
 0x100   : > { %v447_v55 = vpop.f32.mrb[13].mxu1 }
 0x101   : > { %v1843_v56 = vpop.f32.mrb[14].mxu1 }
 0x102   : > { %v450_v57 = vpop.f32.mrb[15].mxu1 }
 0x107   : > { %v1902_v58 = vpop.f32.mrb[0].mxu0 }
 0x108   : > { %v2241_v59 = vadd.f32 %v1902_v58, %v1830_v42  ;;  %v917_v60 = vpop.f32.mrb[1].mxu0 }
 0x109   : > { %v2243_v61 = vadd.f32 %v917_v60, %v399_v43  ;;  %v1903_v62 = vpop.f32.mrb[2].mxu0 }
 0x10a   : > { %v2245_v63 = vadd.f32 %v1903_v62, %v1831_v44  ;;  %v920_v0 = vpop.f32.mrb[3].mxu0  ;;  %v1080_v5 = vsel %vm1076_vm2, %v2241_v59, 0.0 }
 0x10b   : > { %v2247_v1 = vadd.f32 %v920_v0, %v402_v45  ;;  %v1077_v2 = vsel %vm1076_vm2, %v2243_v61, 0.0 }
 0x10c   : > { %v1082_v10 = vsel %vm1076_vm2, %v2245_v63, 0.0 }
 0x10d   : > { %v1078_v3 = vsel %vm1076_vm2, %v2247_v1, 0.0 }
 0x10e   : > { %v1079_v4 = vadd.f32 %v1078_v3, %v1077_v2 }
 0x10f   : > { %v1906_v6 = vpop.f32.mrb[4].mxu0 }
 0x110   : > { %v1081_v7 = vadd.f32 %v1080_v5, %v1079_v4  ;;  %v2255_v8 = vadd.f32 %v1906_v6, %v1834_v46  ;;  %v933_v9 = vpop.f32.mrb[5].mxu0 }
 0x111   : > { %v2259_v11 = vadd.f32 %v933_v9, %v415_v47  ;;  %v1907_v12 = vpop.f32.mrb[6].mxu0 }
 0x112   : > { %v1083_v13 = vadd.f32 %v1082_v10, %v1081_v7  ;;  %v2261_v14 = vadd.f32 %v1907_v12, %v1835_v48  ;;  %v936_v15 = vpop.f32.mrb[7].mxu0  ;;  %v1088_v21 = vsel %vm1076_vm2, %v2255_v8, 0.0 }
 0x113   : > { %v1084_v16 = vsel %vm1076_vm2, %v2259_v11, 0.0  ;;  %v2265_v17 = vadd.f32 %v936_v15, %v418_v49 }
 0x114   : > { %v1085_v18 = vadd.f32 %v1084_v16, %v1083_v13  ;;  %v1090_v26 = vsel %vm1076_vm2, %v2261_v14, 0.0 }
 0x115   : > { %v1086_v19 = vsel %vm1076_vm2, %v2265_v17, 0.0 }
 0x116   : > { %v1087_v20 = vadd.f32 %v1086_v19, %v1085_v18 }
 0x117   : > { %v1910_v22 = vpop.f32.mrb[8].mxu0 }
 0x118   : > { %v1089_v23 = vadd.f32 %v1088_v21, %v1087_v20  ;;  %v2271_v24 = vadd.f32 %v1910_v22, %v1838_v50  ;;  %v949_v25 = vpop.f32.mrb[9].mxu0 }
 0x119   : > { %v2275_v27 = vadd.f32 %v949_v25, %v431_v51  ;;  %v1911_v28 = vpop.f32.mrb[10].mxu0 }
 0x11a   : > { %v1091_v29 = vadd.f32 %v1090_v26, %v1089_v23  ;;  %v2277_v30 = vadd.f32 %v1911_v28, %v1839_v52  ;;  %v952_v31 = vpop.f32.mrb[11].mxu0  ;;  %v1096_v37 = vsel %vm1076_vm2, %v2271_v24, 0.0 }
 0x11b   : > { %v1092_v32 = vsel %vm1076_vm2, %v2275_v27, 0.0  ;;  %v2281_v33 = vadd.f32 %v952_v31, %v434_v53 }
 0x11c   : > { %v1093_v34 = vadd.f32 %v1092_v32, %v1091_v29  ;;  %v1098_v42 = vsel %vm1076_vm2, %v2277_v30, 0.0 }
 0x11d   : > { %v1094_v35 = vsel %vm1076_vm2, %v2281_v33, 0.0 }
 0x11e   : > { %v1095_v36 = vadd.f32 %v1094_v35, %v1093_v34 }
 0x11f   : > { %v1914_v38 = vpop.f32.mrb[12].mxu0 }
 0x120   : > { %v1097_v39 = vadd.f32 %v1096_v37, %v1095_v36  ;;  %v2287_v40 = vadd.f32 %v1914_v38, %v1842_v54  ;;  %v965_v41 = vpop.f32.mrb[13].mxu0 }
 0x121   : > { %v2291_v43 = vadd.f32 %v965_v41, %v447_v55  ;;  %v1915_v44 = vpop.f32.mrb[14].mxu0 }
 0x122   : > { %v1099_v45 = vadd.f32 %v1098_v42, %v1097_v39  ;;  %v2293_v46 = vadd.f32 %v1915_v44, %v1843_v56  ;;  %v968_v47 = vpop.f32.mrb[15].mxu0  ;;  %v1104_v53 = vsel %vm1076_vm2, %v2287_v40, 0.0 }
 0x123   : > { %v1100_v48 = vsel %vm1076_vm2, %v2291_v43, 0.0  ;;  %v2297_v49 = vadd.f32 %v968_v47, %v450_v57 }
 0x124   : > { %v1101_v50 = vadd.f32 %v1100_v48, %v1099_v45  ;;  %v1106_v0 = vsel %vm1076_vm2, %v2293_v46, 0.0 }
 0x125   : > { %v1102_v51 = vsel %vm1076_vm2, %v2297_v49, 0.0 }
 0x126   : > { %v1103_v52 = vadd.f32 %v1102_v51, %v1101_v50 }
 0x127   : > { %v1882_v54 = vpop.f32.mrb[16].mxu1  ;;  %v1918_v55 = vpop.f32.mrb[16].mxu0 }
 0x128   : > { %v1105_v58 = vadd.f32 %v1104_v53, %v1103_v52  ;;  %v2303_v60 = vadd.f32 %v1918_v55, %v1882_v54  ;;  %v644_v56 = vpop.f32.mrb[17].mxu1  ;;  %v981_v62 = vpop.f32.mrb[17].mxu0 }
 0x129   : > { %v2307_v57 = vadd.f32 %v981_v62, %v644_v56  ;;  %v1883_v2 = vpop.f32.mrb[18].mxu1  ;;  %v1919_v3 = vpop.f32.mrb[18].mxu0 }
 0x12a   : > { %v1107_v4 = vadd.f32 %v1106_v0, %v1105_v58  ;;  %v2309_v5 = vadd.f32 %v1919_v3, %v1883_v2  ;;  %v647_v6 = vpop.f32.mrb[19].mxu1  ;;  %v984_v7 = vpop.f32.mrb[19].mxu0  ;;  %v1112_v16 = vsel %vm1076_vm2, %v2303_v60, 0.0 }
 0x12b   : > { %v1108_v9 = vsel %vm1076_vm2, %v2307_v57, 0.0  ;;  %v2313_v10 = vadd.f32 %v984_v7, %v647_v6 }
 0x12c   : > { %v1109_v12 = vadd.f32 %v1108_v9, %v1107_v4  ;;  %v1114_v25 = vsel %vm1076_vm2, %v2309_v5, 0.0 }
 0x12d   : > { %v1110_v13 = vsel %vm1076_vm2, %v2313_v10, 0.0 }
 0x12e   : > { %v1111_v15 = vadd.f32 %v1110_v13, %v1109_v12 }
 0x12f   : > { %v1886_v18 = vpop.f32.mrb[20].mxu1  ;;  %v1922_v19 = vpop.f32.mrb[20].mxu0 }
 0x130   : > { %v1113_v20 = vadd.f32 %v1112_v16, %v1111_v15  ;;  %v2319_v21 = vadd.f32 %v1922_v19, %v1886_v18  ;;  %v660_v22 = vpop.f32.mrb[21].mxu1  ;;  %v997_v23 = vpop.f32.mrb[21].mxu0 }
 0x131   : > { %v2323_v26 = vadd.f32 %v997_v23, %v660_v22  ;;  %v1887_v28 = vpop.f32.mrb[22].mxu1  ;;  %v1923_v29 = vpop.f32.mrb[22].mxu0 }
 0x132   : > { %v1115_v31 = vadd.f32 %v1114_v25, %v1113_v20  ;;  %v2325_v32 = vadd.f32 %v1923_v29, %v1887_v28  ;;  %v663_v34 = vpop.f32.mrb[23].mxu1  ;;  %v1000_v35 = vpop.f32.mrb[23].mxu0  ;;  %v1120_v42 = vsel %vm1076_vm2, %v2319_v21, 0.0 }
 0x133   : > { %v1116_v36 = vsel %vm1076_vm2, %v2323_v26, 0.0  ;;  %v2329_v37 = vadd.f32 %v1000_v35, %v663_v34 }
 0x134   : > { %v1117_v38 = vadd.f32 %v1116_v36, %v1115_v31  ;;  %v1122_v52 = vsel %vm1076_vm2, %v2325_v32, 0.0 }
 0x135   : > { %v1118_v39 = vsel %vm1076_vm2, %v2329_v37, 0.0 }
 0x136   : > { %v1119_v41 = vadd.f32 %v1118_v39, %v1117_v38 }
 0x137   : > { %v1890_v44 = vpop.f32.mrb[24].mxu1  ;;  %v1926_v45 = vpop.f32.mrb[24].mxu0 }
 0x138   : > { %v1121_v47 = vadd.f32 %v1120_v42, %v1119_v41  ;;  %v2335_v48 = vadd.f32 %v1926_v45, %v1890_v44  ;;  %v676_v50 = vpop.f32.mrb[25].mxu1  ;;  %v1013_v51 = vpop.f32.mrb[25].mxu0 }
 0x139   : > { %v1961_v53 = vadd.f32 %v1013_v51, %v676_v50  ;;  %v1891_v54 = vpop.f32.mrb[26].mxu1  ;;  %v1927_v55 = vpop.f32.mrb[26].mxu0 }
 0x13a   : > { %v1123_v58 = vadd.f32 %v1122_v52, %v1121_v47  ;;  %v1962_v56 = vadd.f32 %v1927_v55, %v1891_v54  ;;  %v679_v62 = vpop.f32.mrb[27].mxu1  ;;  %v1016_v0 = vpop.f32.mrb[27].mxu0  ;;  %v1128_v9 = vsel %vm1076_vm2, %v2335_v48, 0.0 }
 0x13b   : > { %v1124_v2 = vsel %vm1076_vm2, %v1961_v53, 0.0  ;;  %v1963_v3 = vadd.f32 %v1016_v0, %v679_v62 }
 0x13c   : > { %v1125_v4 = vadd.f32 %v1124_v2, %v1123_v58  ;;  %v1130_v20 = vsel %vm1076_vm2, %v1962_v56, 0.0 }
 0x13d   : > { %v1126_v6 = vsel %vm1076_vm2, %v1963_v3, 0.0 }
 0x13e   : > { %v1127_v7 = vadd.f32 %v1126_v6, %v1125_v4 }
 0x13f   : > { %v1894_v12 = vpop.f32.mrb[28].mxu1  ;;  %v1930_v13 = vpop.f32.mrb[28].mxu0 }
 0x140   : > { %v1129_v15 = vadd.f32 %v1128_v9, %v1127_v7  ;;  %v1964_v16 = vadd.f32 %v1930_v13, %v1894_v12  ;;  %v692_v18 = vpop.f32.mrb[29].mxu1  ;;  %v1029_v19 = vpop.f32.mrb[29].mxu0 }
 0x141   : > { %v1965_v22 = vadd.f32 %v1029_v19, %v692_v18  ;;  %v1895_v23 = vpop.f32.mrb[30].mxu1  ;;  %v1931_v25 = vpop.f32.mrb[30].mxu0 }
 0x142   : > { %v1131_v28 = vadd.f32 %v1130_v20, %v1129_v15  ;;  %v1966_v29 = vadd.f32 %v1931_v25, %v1895_v23  ;;  %v695_v31 = vpop.f32.mrb[31].mxu1  ;;  %v1032_v34 = vpop.f32.mrb[31].mxu0  ;;  %v1136_v42 = vsel %vm1076_vm2, %v1964_v16, 0.0 }
 0x143   : > { %v1132_v35 = vsel %vm1076_vm2, %v1965_v22, 0.0  ;;  %v1967_v36 = vadd.f32 %v1032_v34, %v695_v31 }
 0x144   : > { %v1133_v38 = vadd.f32 %v1132_v35, %v1131_v28  ;;  %v1138_v45 = vsel %vm1076_vm2, %v1966_v29, 0.0 }
 0x145   : > { %v1134_v39 = vsel %vm1076_vm2, %v1967_v36, 0.0 }
 0x146   : > { %v1135_v41 = vadd.f32 %v1134_v39, %v1133_v38 }
 0x148   : > { %v1137_v44 = vadd.f32 %v1136_v42, %v1135_v41 }
 0x14a   : > { %v1139_v47 = vadd.f32 %v1138_v45, %v1137_v44 }
 0x14c   : > { %v1140_v50 = vrot.slane %v1139_v47, 4 }
 0x14e   : > { %v1141_v51 = vadd.f32 %v1140_v50, %v1139_v47 }
 0x150   : > { %v1142_v52 = vrot.slane %v1141_v51, 2 }
 0x152   : > { %v1143_v54 = vadd.f32 %v1142_v52, %v1141_v51 }
 0x154   : > { %v1144_v55 = vrot.slane %v1143_v54, 1 }
 0x156   : > { %v1145_v58 = vadd.f32 %v1144_v55, %v1143_v54 }
 0x158   : > { %v1146_v62 = vmul.f32 0.00390625, %v1145_v58 }
 0x15a   : > { %v2349_v0 = vsub.f32 %v2281_v33, %v1146_v62  ;;  %v2352_v2 = vsub.f32 %v2277_v30, %v1146_v62  ;;  %v2355_v4 = vsub.f32 %v2291_v43, %v1146_v62  ;;  %v2358_v6 = vsub.f32 %v2297_v49, %v1146_v62 }
 0x15b   : > { %v2361_v7 = vsub.f32 %v2287_v40, %v1146_v62  ;;  %v2364_v9 = vsub.f32 %v2293_v46, %v1146_v62  ;;  %v2367_v12 = vsub.f32 %v2307_v57, %v1146_v62  ;;  %v2370_v33 = vsub.f32 %v2313_v10, %v1146_v62 }
 0x15c   : > { %v2373_v30 = vsub.f32 %v2303_v60, %v1146_v62  ;;  %v2376_v43 = vsub.f32 %v2309_v5, %v1146_v62  ;;  %v2379_v49 = vsub.f32 %v2323_v26, %v1146_v62  ;;  %v2382_v40 = vsub.f32 %v2329_v37, %v1146_v62 }
 0x15d   : > { %v2385_v46 = vsub.f32 %v2319_v21, %v1146_v62  ;;  %v2388_v57 = vsub.f32 %v2325_v32, %v1146_v62  ;;  %v2390_v10 = vsub.f32 %v1961_v53, %v1146_v62  ;;  %v2392_v13 = vsub.f32 %v1963_v3, %v1146_v62 }
 0x15e   : > { %v2395_v60 = vsub.f32 %v2335_v48, %v1146_v62  ;;  %v2397_v5 = vsub.f32 %v1962_v56, %v1146_v62  ;;  %v2399_v26 = vsub.f32 %v1965_v22, %v1146_v62  ;;  %v2401_v15 = vsub.f32 %v1967_v36, %v1146_v62 }
 0x15f   : > { %v2403_v37 = vsub.f32 %v1964_v16, %v1146_v62  ;;  %v2405_v21 = vsub.f32 %v1966_v29, %v1146_v62  ;;  %v2408_v32 = vsub.f32 %v2243_v61, %v1146_v62  ;;  %v2411_v53 = vsub.f32 %v2247_v1, %v1146_v62 }
 0x160   : > { %v2414_v3 = vsub.f32 %v2241_v59, %v1146_v62  ;;  %v2417_v48 = vsub.f32 %v2245_v63, %v1146_v62  ;;  %v2424_v18 = vsub.f32 %v2259_v11, %v1146_v62  ;;  %v2429_v1 = vsub.f32 %v2265_v17, %v1146_v62 }
 0x161   : > { %v1179_v56 = vmul.f32 %v2408_v32, %v2408_v32  ;;  %v1180_v16 = vmul.f32 %v2411_v53, %v2411_v53  ;;  %v2436_v22 = vsub.f32 %v2255_v8, %v1146_v62  ;;  %v2442_v17 = vsub.f32 %v2261_v14, %v1146_v62 }
 0x162   : > { %v1181_v61 = vmul.f32 %v2414_v3, %v2414_v3  ;;  %v1182_v59 = vmul.f32 %v2417_v48, %v2417_v48  ;;  %v1183_v11 = vmul.f32 %v2424_v18, %v2424_v18  ;;  %v1184_v28 = vmul.f32 %v2429_v1, %v2429_v1 }
 0x163   : > { %v1211_v63 = vsel %vm1076_vm2, %v1179_v56, 0.0  ;;  %v1212_v19 = vsel %vm1076_vm2, %v1180_v16, 0.0  ;;  %v2448_v34 = vsub.f32 %v2275_v27, %v1146_v62  ;;  %v1185_v8 = vmul.f32 %v2436_v22, %v2436_v22 }
 0x164   : > { %v1213_v20 = vadd.f32 %v1212_v19, %v1211_v63  ;;  %v1214_v23 = vsel %vm1076_vm2, %v1181_v61, 0.0  ;;  %v1216_v29 = vsel %vm1076_vm2, %v1182_v59, 0.0  ;;  %v1218_v35 = vsel %vm1076_vm2, %v1183_v11, 0.0 }
 0x165   : > { %v1186_v38 = vmul.f32 %v2442_v17, %v2442_v17  ;;  %v1220_v14 = vsel %vm1076_vm2, %v1184_v28, 0.0  ;;  %v2457_v41 = vsub.f32 %v2271_v24, %v1146_v62  ;;  %v1187_v42 = vmul.f32 %v2448_v34, %v2448_v34 }
 0x166   : > { %v1215_v25 = vadd.f32 %v1214_v23, %v1213_v20  ;;  %v1222_v27 = vsel %vm1076_vm2, %v1185_v8, 0.0  ;;  %v1188_v45 = vmul.f32 %v2349_v0, %v2349_v0  ;;  %v1190_v24 = vmul.f32 %v2352_v2, %v2352_v2 }
 0x167   : > { %v1224_v47 = vsel %vm1076_vm2, %v1186_v38, 0.0  ;;  %v1189_v51 = vmul.f32 %v2457_v41, %v2457_v41  ;;  %v1226_v52 = vsel %vm1076_vm2, %v1187_v42, 0.0  ;;  %v1191_v62 = vmul.f32 %v2355_v4, %v2355_v4 }
 0x168   : > { %v1217_v31 = vadd.f32 %v1216_v29, %v1215_v25  ;;  %v1228_v55 = vsel %vm1076_vm2, %v1188_v45, 0.0  ;;  %v1192_v61 = vmul.f32 %v2358_v6, %v2358_v6  ;;  %v1232_v59 = vsel %vm1076_vm2, %v1190_v24, 0.0 }
 0x169   : > { %v1230_v56 = vsel %vm1076_vm2, %v1189_v51, 0.0  ;;  %v1193_v19 = vmul.f32 %v2361_v7, %v2361_v7  ;;  %v1234_v20 = vsel %vm1076_vm2, %v1191_v62, 0.0  ;;  %v1194_v23 = vmul.f32 %v2364_v9, %v2364_v9 }
 0x16a   : > { %v1219_v36 = vadd.f32 %v1218_v35, %v1217_v31  ;;  %v1236_v25 = vsel %vm1076_vm2, %v1192_v61, 0.0  ;;  %v1195_v29 = vmul.f32 %v2367_v12, %v2367_v12  ;;  %v1196_v35 = vmul.f32 %v2370_v33, %v2370_v33 }
 0x16b   : > { %v1238_v31 = vsel %vm1076_vm2, %v1193_v19, 0.0 }
 0x16c   : > { %v1221_v39 = vadd.f32 %v1220_v14, %v1219_v36  ;;  %v1240_v36 = vsel %vm1076_vm2, %v1194_v23, 0.0  ;;  %v1197_v14 = vmul.f32 %v2373_v30, %v2373_v30 }
 0x16e   : > { %v1223_v44 = vadd.f32 %v1222_v27, %v1221_v39  ;;  %v1242_v39 = vsel %vm1076_vm2, %v1195_v29, 0.0  ;;  %v1198_v27 = vmul.f32 %v2376_v43, %v2376_v43 }
 0x170   : > { %v1225_v50 = vadd.f32 %v1224_v47, %v1223_v44  ;;  %v1244_v44 = vsel %vm1076_vm2, %v1196_v35, 0.0  ;;  %v1199_v47 = vmul.f32 %v2379_v49, %v2379_v49 }
 0x172   : > { %v1227_v54 = vadd.f32 %v1226_v52, %v1225_v50  ;;  %v1246_v50 = vsel %vm1076_vm2, %v1197_v14, 0.0  ;;  %v1200_v52 = vmul.f32 %v2382_v40, %v2382_v40 }
 0x174   : > { %v1229_v58 = vadd.f32 %v1228_v55, %v1227_v54  ;;  %v1248_v54 = vsel %vm1076_vm2, %v1198_v27, 0.0  ;;  %v1201_v55 = vmul.f32 %v2385_v46, %v2385_v46 }
 0x176   : > { %v1231_v16 = vadd.f32 %v1230_v56, %v1229_v58  ;;  %v1250_v58 = vsel %vm1076_vm2, %v1199_v47, 0.0  ;;  %v1202_v56 = vmul.f32 %v2388_v57, %v2388_v57 }
 0x178   : > { %v1233_v63 = vadd.f32 %v1232_v59, %v1231_v16  ;;  %v1252_v16 = vsel %vm1076_vm2, %v1200_v52, 0.0  ;;  %v1203_v59 = vmul.f32 %v2390_v10, %v2390_v10 }
 0x17a   : > { %v1235_v11 = vadd.f32 %v1234_v20, %v1233_v63  ;;  %v1254_v63 = vsel %vm1076_vm2, %v1201_v55, 0.0  ;;  %v1204_v20 = vmul.f32 %v2392_v13, %v2392_v13 }
 0x17c   : > { %v1237_v28 = vadd.f32 %v1236_v25, %v1235_v11  ;;  %v1256_v11 = vsel %vm1076_vm2, %v1202_v56, 0.0  ;;  %v1205_v25 = vmul.f32 %v2395_v60, %v2395_v60 }
 0x17e   : > { %v1239_v8 = vadd.f32 %v1238_v31, %v1237_v28  ;;  %v1258_v28 = vsel %vm1076_vm2, %v1203_v59, 0.0  ;;  %v1206_v31 = vmul.f32 %v2397_v5, %v2397_v5 }
 0x180   : > { %v1241_v38 = vadd.f32 %v1240_v36, %v1239_v8  ;;  %v1260_v8 = vsel %vm1076_vm2, %v1204_v20, 0.0  ;;  %v1207_v36 = vmul.f32 %v2399_v26, %v2399_v26 }
 0x182   : > { %v1243_v42 = vadd.f32 %v1242_v39, %v1241_v38  ;;  %v1262_v38 = vsel %vm1076_vm2, %v1205_v25, 0.0  ;;  %v1208_v39 = vmul.f32 %v2401_v15, %v2401_v15 }
 0x184   : > { %v1245_v45 = vadd.f32 %v1244_v44, %v1243_v42  ;;  %v1264_v42 = vsel %vm1076_vm2, %v1206_v31, 0.0  ;;  %v1209_v44 = vmul.f32 %v2403_v37, %v2403_v37 }
 0x186   : > { %v1247_v51 = vadd.f32 %v1246_v50, %v1245_v45  ;;  %v1266_v45 = vsel %vm1076_vm2, %v1207_v36, 0.0  ;;  %v1210_v50 = vmul.f32 %v2405_v21, %v2405_v21 }
 0x188   : > { %v1249_v24 = vadd.f32 %v1248_v54, %v1247_v51  ;;  %v1268_v51 = vsel %vm1076_vm2, %v1208_v39, 0.0  ;;  %v1270_v54 = vsel %vm1076_vm2, %v1209_v44, 0.0  ;;  %v1272_v55 = vsel %vm1076_vm2, %v1210_v50, 0.0 }
 0x18a   : > { %v1251_v62 = vadd.f32 %v1250_v58, %v1249_v24 }
 0x18c   : > { %v1253_v61 = vadd.f32 %v1252_v16, %v1251_v62 }
 0x18e   : > { %v1255_v19 = vadd.f32 %v1254_v63, %v1253_v61 }
 0x190   : > { %v1257_v23 = vadd.f32 %v1256_v11, %v1255_v19 }
 0x192   : > { %v1259_v29 = vadd.f32 %v1258_v28, %v1257_v23 }
 0x194   : > { %v1261_v35 = vadd.f32 %v1260_v8, %v1259_v29 }
 0x196   : > { %v1263_v14 = vadd.f32 %v1262_v38, %v1261_v35 }
 0x198   : > { %v1265_v27 = vadd.f32 %v1264_v42, %v1263_v14 }
 0x19a   : > { %v1267_v47 = vadd.f32 %v1266_v45, %v1265_v27 }
 0x19c   : > { %v1269_v52 = vadd.f32 %v1268_v51, %v1267_v47 }
 0x19e   : > { %v1271_v24 = vadd.f32 %v1270_v54, %v1269_v52 }
 0x1a0   : > { %v1273_v58 = vadd.f32 %v1272_v55, %v1271_v24 }
 0x1a2   : > { %v1274_v62 = vrot.slane %v1273_v58, 4 }
 0x1a4   : > { %v1275_v56 = vadd.f32 %v1274_v62, %v1273_v58 }
 0x1a6   : > { %v1276_v16 = vrot.slane %v1275_v56, 2 }
 0x1a8   : > { %v1277_v61 = vadd.f32 %v1276_v16, %v1275_v56 }
 0x1aa   : > { %v1278_v59 = vrot.slane %v1277_v61, 1 }
 0x1ac   : > { %v1279_v63 = vadd.f32 %v1278_v59, %v1277_v61 }
 0x1ae   : > { %v1280_v19 = vmul.f32 0.00390625, %v1279_v63 }
 0x1b0   : > { %v1281_v20 = vadd.f32 1e-05, %v1280_v19 }
 0x1b2   : > { %2068 = vrsqrt.f32 %v1281_v20 }
 0x1bc   : > { %v2069_v11 = vpop.eup %2068 }
 0x1bd   : > { %v2534_v23 = vmul.f32 %v2069_v11, %v2408_v32  ;;  %v2537_v25 = vmul.f32 %v2069_v11, %v2411_v53  ;;  %v2540_v28 = vmul.f32 %v2069_v11, %v2414_v3  ;;  %v2543_v29 = vmul.f32 %v2069_v11, %v2417_v48 }
 0x1be   : > { %v2546_v31 = vmul.f32 %v2069_v11, %v2424_v18  ;;  %v2549_v8 = vmul.f32 %v2069_v11, %v2429_v1  ;;  %v2552_v35 = vmul.f32 %v2069_v11, %v2436_v22  ;;  %v2555_v32 = vmul.f32 %v2069_v11, %v2442_v17 }
 0x1bf   : > { %v2558_v53 = vmul.f32 %v2069_v11, %v2448_v34  ;;  %v2561_v3 = vmul.f32 %v2069_v11, %v2349_v0  ;;  %v2564_v48 = vmul.f32 %v2069_v11, %v2457_v41  ;;  %v2567_v18 = vmul.f32 %v2069_v11, %v2352_v2 }
 0x1c0   : > { %v2570_v1 = vmul.f32 %v2069_v11, %v2355_v4  ;;  %v2573_v22 = vmul.f32 %v2069_v11, %v2358_v6  ;;  %v2576_v17 = vmul.f32 %v2069_v11, %v2361_v7  ;;  %v2579_v34 = vmul.f32 %v2069_v11, %v2364_v9 }
 0x1c1   : > { %v2582_v0 = vmul.f32 %v2069_v11, %v2367_v12  ;;  %v2585_v41 = vmul.f32 %v2069_v11, %v2370_v33  ;;  %v2588_v2 = vmul.f32 %v2069_v11, %v2373_v30  ;;  %v2591_v4 = vmul.f32 %v2069_v11, %v2376_v43 }
 0x1c2   : > { %v2594_v6 = vmul.f32 %v2069_v11, %v2379_v49  ;;  %v2597_v7 = vmul.f32 %v2069_v11, %v2382_v40  ;;  %v2600_v9 = vmul.f32 %v2069_v11, %v2385_v46  ;;  %v2603_v12 = vmul.f32 %v2069_v11, %v2388_v57 }
 0x1c3   : > { %v2606_v33 = vmul.f32 %v2069_v11, %v2390_v10  ;;  %v2609_v30 = vmul.f32 %v2069_v11, %v2392_v13  ;;  %v2612_v43 = vmul.f32 %v2069_v11, %v2395_v60  ;;  %v2615_v49 = vmul.f32 %v2069_v11, %v2397_v5 }
 0x1c4   : > { %v2618_v40 = vmul.f32 %v2069_v11, %v2399_v26  ;;  %v2621_v46 = vmul.f32 %v2069_v11, %v2401_v15  ;;  %v2624_v57 = vmul.f32 %v2069_v11, %v2403_v37  ;;  %v2627_v10 = vmul.f32 %v2069_v11, %v2405_v21 }
 0x1c5   : > { %v1315_v13 = vmax.f32 %v2534_v23, 0.0  ;;  %v1316_v60 = vmax.f32 %v2537_v25, 0.0  ;;  %v1317_v5 = vmax.f32 %v2540_v28, 0.0  ;;  %v1318_v26 = vmax.f32 %v2543_v29, 0.0 }
 0x1c6   : > { %v1319_v36 = vmax.f32 %v2546_v31, 0.0  ;;  %v1320_v15 = vmax.f32 %v2549_v8, 0.0  ;;  %v1321_v37 = vmax.f32 %v2552_v35, 0.0  ;;  %v1322_v38 = vmax.f32 %v2555_v32, 0.0 }
 0x1c7   : > { %v1323_v21 = vmax.f32 %v2558_v53, 0.0  ;;  %v1324_v14 = vmax.f32 %v2561_v3, 0.0  ;;  %v1325_v39 = vmax.f32 %v2564_v48, 0.0  ;;  %v1326_v42 = vmax.f32 %v2567_v18, 0.0 }
 0x1c8   : > { %v1327_v27 = vmax.f32 %v2570_v1, 0.0  ;;  %v1328_v44 = vmax.f32 %v2573_v22, 0.0  ;;  %v1329_v45 = vmax.f32 %v2576_v17, 0.0  ;;  %v1330_v47 = vmax.f32 %v2579_v34, 0.0 }
 0x1c9   : > { %v1331_v50 = vmax.f32 %v2582_v0, 0.0  ;;  %v1332_v51 = vmax.f32 %v2585_v41, 0.0  ;;  %v1333_v52 = vmax.f32 %v2588_v2, 0.0  ;;  %v1334_v54 = vmax.f32 %v2591_v4, 0.0 }
 0x1ca   : > { %v1335_v24 = vmax.f32 %v2594_v6, 0.0  ;;  %v1336_v55 = vmax.f32 %v2597_v7, 0.0  ;;  %v1337_v58 = vmax.f32 %v2600_v9, 0.0  ;;  %v1338_v62 = vmax.f32 %v2603_v12, 0.0 }
 0x1cb   : > { %v1339_v56 = vmax.f32 %v2606_v33, 0.0  ;;  %v1340_v16 = vmax.f32 %v2609_v30, 0.0  ;;  %v1341_v61 = vmax.f32 %v2612_v43, 0.0  ;;  %v1342_v59 = vmax.f32 %v2615_v49, 0.0 }
 0x1cc   : > { %v1343_v63 = vmax.f32 %v2618_v40, 0.0  ;;  %v1344_v19 = vmax.f32 %v2621_v46, 0.0  ;;  %v1345_v20 = vmax.f32 %v2624_v57, 0.0  ;;  %v1346_v11 = vmax.f32 %v2627_v10, 0.0 }
 0x1cd   : > { %v1738_v23 = vpack.c.bf16 %v1315_v13, %v1315_v13  ;;  %v1739_v25 = vpack.c.bf16 %v1316_v60, %v1316_v60  ;;  %v1740_v28 = vpack.c.bf16 %v1317_v5, %v1317_v5  ;;  %v1741_v29 = vpack.c.bf16 %v1318_v26, %v1318_v26 }
 0x1ce   : > { %v1742_v31 = vpack.c.bf16 %v1319_v36, %v1319_v36  ;;  %v1743_v8 = vpack.c.bf16 %v1320_v15, %v1320_v15  ;;  %v1744_v35 = vpack.c.bf16 %v1321_v37, %v1321_v37  ;;  %v1745_v32 = vpack.c.bf16 %v1322_v38, %v1322_v38 }
 0x1cf   : > { %v1746_v53 = vpack.c.bf16 %v1323_v21, %v1323_v21  ;;  %v1747_v3 = vpack.c.bf16 %v1324_v14, %v1324_v14  ;;  %v1748_v48 = vpack.c.bf16 %v1325_v39, %v1325_v39  ;;  %v1749_v18 = vpack.c.bf16 %v1326_v42, %v1326_v42  ;;  %1476 = vst.msk [vmem:[%s2661_s4] sm:$0xf] %vm1475_vm3, %v1738_v23 }
 0x1d0   : > { %1477 = vst.msk [vmem:[%s2661_s4 + $0x4] sm:$0xf] %vm1475_vm3, %v1739_v25  ;;  %1478 = vst.msk [vmem:[%s2661_s4 + $0x8] sm:$0xf] %vm1475_vm3, %v1740_v28  ;;  %v1750_v1 = vpack.c.bf16 %v1327_v27, %v1327_v27  ;;  %v1751_v22 = vpack.c.bf16 %v1328_v44, %v1328_v44  ;;  %v1752_v17 = vpack.c.bf16 %v1329_v45, %v1329_v45 }
 0x1d1   : > { %1479 = vst.msk [vmem:[%s2661_s4 + $0xc] sm:$0xf] %vm1475_vm3, %v1741_v29  ;;  %v1753_v34 = vpack.c.bf16 %v1330_v47, %v1330_v47  ;;  %1480 = vst.msk [vmem:[%s2661_s4 + $0x10] sm:$0xf] %vm1475_vm3, %v1742_v31  ;;  %v1754_v0 = vpack.c.bf16 %v1331_v50, %v1331_v50  ;;  %v1755_v41 = vpack.c.bf16 %v1332_v51, %v1332_v51 }
 0x1d2   : > { %1481 = vst.msk [vmem:[%s2661_s4 + $0x14] sm:$0xf] %vm1475_vm3, %v1743_v8  ;;  %1482 = vst.msk [vmem:[%s2661_s4 + $0x18] sm:$0xf] %vm1475_vm3, %v1744_v35  ;;  %v1756_v2 = vpack.c.bf16 %v1333_v52, %v1333_v52  ;;  %v1757_v4 = vpack.c.bf16 %v1334_v54, %v1334_v54  ;;  %v1758_v6 = vpack.c.bf16 %v1335_v24, %v1335_v24 }
 0x1d3   : > { %1483 = vst.msk [vmem:[%s2661_s4 + $0x1c] sm:$0xf] %vm1475_vm3, %v1745_v32  ;;  %1484 = vst.msk [vmem:[%s2661_s4 + $0x20] sm:$0xf] %vm1475_vm3, %v1746_v53  ;;  %v1759_v7 = vpack.c.bf16 %v1336_v55, %v1336_v55  ;;  %v1760_v9 = vpack.c.bf16 %v1337_v58, %v1337_v58  ;;  %v1761_v12 = vpack.c.bf16 %v1338_v62, %v1338_v62 }
 0x1d4   : > { %1485 = vst.msk [vmem:[%s2661_s4 + $0x24] sm:$0xf] %vm1475_vm3, %v1747_v3  ;;  %1486 = vst.msk [vmem:[%s2661_s4 + $0x28] sm:$0xf] %vm1475_vm3, %v1748_v48  ;;  %v1762_v33 = vpack.c.bf16 %v1339_v56, %v1339_v56  ;;  %v1763_v30 = vpack.c.bf16 %v1340_v16, %v1340_v16  ;;  %v1764_v43 = vpack.c.bf16 %v1341_v61, %v1341_v61 }
 0x1d5   : > { %1487 = vst.msk [vmem:[%s2661_s4 + $0x2c] sm:$0xf] %vm1475_vm3, %v1749_v18  ;;  %1488 = vst.msk [vmem:[%s2661_s4 + $0x30] sm:$0xf] %vm1475_vm3, %v1750_v1  ;;  %v1765_v49 = vpack.c.bf16 %v1342_v59, %v1342_v59  ;;  %v1766_v40 = vpack.c.bf16 %v1343_v63, %v1343_v63  ;;  %v1767_v46 = vpack.c.bf16 %v1344_v19, %v1344_v19 }
 0x1d6   : > { %1489 = vst.msk [vmem:[%s2661_s4 + $0x34] sm:$0xf] %vm1475_vm3, %v1751_v22  ;;  %1490 = vst.msk [vmem:[%s2661_s4 + $0x38] sm:$0xf] %vm1475_vm3, %v1752_v17  ;;  %v1768_v57 = vpack.c.bf16 %v1345_v20, %v1345_v20  ;;  %v1769_v10 = vpack.c.bf16 %v1346_v11, %v1346_v11 }
 0x1d7   : > { %1491 = vst.msk [vmem:[%s2661_s4 + $0x3c] sm:$0xf] %vm1475_vm3, %v1753_v34  ;;  %1492 = vst.msk [vmem:[%s2661_s4 + $0x40] sm:$0xf] %vm1475_vm3, %v1754_v0 }
 0x1d8   : > { %1493 = vst.msk [vmem:[%s2661_s4 + $0x44] sm:$0xf] %vm1475_vm3, %v1755_v41  ;;  %1494 = vst.msk [vmem:[%s2661_s4 + $0x48] sm:$0xf] %vm1475_vm3, %v1756_v2 }
 0x1d9   : > { %1495 = vst.msk [vmem:[%s2661_s4 + $0x4c] sm:$0xf] %vm1475_vm3, %v1757_v4  ;;  %1496 = vst.msk [vmem:[%s2661_s4 + $0x50] sm:$0xf] %vm1475_vm3, %v1758_v6 }
 0x1da   : > { %1497 = vst.msk [vmem:[%s2661_s4 + $0x54] sm:$0xf] %vm1475_vm3, %v1759_v7  ;;  %1498 = vst.msk [vmem:[%s2661_s4 + $0x58] sm:$0xf] %vm1475_vm3, %v1760_v9 }
 0x1db   : > { %1499 = vst.msk [vmem:[%s2661_s4 + $0x5c] sm:$0xf] %vm1475_vm3, %v1761_v12  ;;  %1500 = vst.msk [vmem:[%s2661_s4 + $0x60] sm:$0xf] %vm1475_vm3, %v1762_v33 }
 0x1dc   : > { %1501 = vst.msk [vmem:[%s2661_s4 + $0x64] sm:$0xf] %vm1475_vm3, %v1763_v30  ;;  %1502 = vst.msk [vmem:[%s2661_s4 + $0x68] sm:$0xf] %vm1475_vm3, %v1764_v43 }
 0x1dd   : > { %1503 = vst.msk [vmem:[%s2661_s4 + $0x6c] sm:$0xf] %vm1475_vm3, %v1765_v49  ;;  %1504 = vst.msk [vmem:[%s2661_s4 + $0x70] sm:$0xf] %vm1475_vm3, %v1766_v40 }
 0x1de   : > { %1505 = vst.msk [vmem:[%s2661_s4 + $0x74] sm:$0xf] %vm1475_vm3, %v1767_v46  ;;  %1506 = vst.msk [vmem:[%s2661_s4 + $0x78] sm:$0xf] %vm1475_vm3, %v1768_v57 }
 0x1df   : > { %1507 = vst.msk [vmem:[%s2661_s4 + $0x7c] sm:$0xf] %vm1475_vm3, %v1769_v10 }
 0x1e0 PF: > { %s12_s11 = sadd.s32 1, %s2092_s11   ;;  %s2743_s9 = smov %s2088_s10 }
 0x1e1   : > { %p9_p5 = scmp.ge.s32.totalorder %s12_s11, 4   ;;  %s2744_s10 = smov %s2746_s12 }
 0x1e3   :  { %11 = sbr.rel (!%p9_p5) target bundleno = 2 (0x2), region = 63 }

// kernel: recnet_forward.31
= control target key start
LH: loop header
LB: loop body
LE: loop exit
PB: predicated region body
PF: predicated region fallthrough
CT: control target
= control target key end

     0   :  { %s1709_s12 = smov 0   ;;  %s1711_s13 = smov 0   ;;  %s1948_s0 = inlined_call_operand.vmem [shape: bf16[2,288,12], index: 0, kind: input, shape index: {}]   ;;  %s1949_s1 = inlined_call_operand.vmem [shape: bf16[3,12,2], index: 1, kind: input, shape index: {}]   ;;  %s1950_s2 = inlined_call_operand.vmem [shape: f32[1,2], index: 2, kind: input, shape index: {}]   ;;  %s1951_s3 = inlined_call_operand.vmem [shape: f32[2,256,2], index: 3, kind: output, shape index: {}]  }
   0x1   :  { %s1713_s14 = smov 0  }
   0x2 LB: > { %s25_s15 = sadd.s32 1, %s1683_s13  ;;  %p1285_p0 = scmp.ge.s32.totalorder %s1687_s14, 1  ;;  %s1687_s14 = sphi %s1713_s14, %s13_s14   ;;  %s1683_s13 = sphi %s1711_s13, %s1953_s13   ;;  %s1679_s12 = sphi %s1709_s12, %s1952_s12  }
   0x3   : > { %p27_p1 = scmp.ge.s32.totalorder %s25_s15, 2  ;;  %p168_p2 = scmp.lt.s32.totalorder %s1687_s14, 3 }
   0x5   : > { %s1955_s15 = smov (%p27_p1, %s25_s15), 0  ;;  %p169_p3 = pnand %p1285_p0, %p168_p2 }
   0x6   : > { %v1629_v0 = vld [vmem:[%s1949_s1 + $0x8] sm:$0x3f] (!%p169_p3)   ;;  %vm396_vm0 = vcmask (!%p169_p3), 1045504   ;;  %p202_p4 = scmp.lt.s32.totalorder (!%p169_p3), %s1679_s12, 1  ;;  %v1630_v1 = vld [vmem:[%s1949_s1] sm:$0x3f] (!%p169_p3)  }
   0x7   : > { %172 = sbr.rel (%p169_p3) target bundleno = 328 (0x148), region = 32  ;;  %1600 = vmatprep.subr.msk.bf16.mxu1 (!%p169_p3), %vm396_vm0, %v1629_v0  ;;  %v398_v2 = vsel (!%p169_p3), %vm396_vm0, %v1629_v0, 0  ;;  %v1633_v3 = vld [vmem:[%s1949_s1 + $0x10] sm:$0x3f] (!%p169_p3)   ;;  %1601 = vmatprep.subr.msk.bf16.mxu0 (!%p169_p3), %vm396_vm0, %v1630_v1  ;;  %v575_v4 = vsel (!%p169_p3), %vm396_vm0, %v1630_v1, 0  ;;  %vm347_vm1 = vcmask (!%p169_p3), 97280  }
   0x8   : > { %1433 = vmatpush3.bf16.msra.mxu1 (!%p169_p3), %v398_v2  ;;  %1467 = vmatpush3.bf16.msra.mxu0 (!%p169_p3), %v575_v4  ;;  %v907_v8 = vsel (!%p169_p3), %vm396_vm0, %v1633_v3, 0  ;;  %v1836_v56 = vld [vmem:[%s1950_s2] ss:$0 sm:$0xff] (!%p169_p3)  ;;  %vm1141_vm2 = vcmask (!%p169_p3), 15360  }
   0x9   : > { %1602 = vmatprep.subr.msk.bf16.mxu1 (!%p169_p3), %vm396_vm0, %v1630_v1  ;;  %1603 = vmatprep.subr.msk.bf16.mxu0 (!%p169_p3), %vm396_vm0, %v1633_v3 }
   0xe   : > { %s1957_s12 = smov (!%p202_p4, %s1679_s12), 1 }
   0xf   : > { %s1604_s22 = smul.u32 144, %s1957_s12  ;;  %s1380_s26 = sshll.u32 %s1957_s12, 8 }
  0x10   : > { %s1841_s4 = scalar_lea.vmem %s1951_s3, %s1380_s26 }
  0x11   : > { %s1748_s25 = scalar_lea.vmem %s1948_s0, %s1604_s22 }
  0x12   : > { %v1631_v5 = vld [vmem:[%s1748_s25 + $0x8] sm:$0xff]   ;;  %v1632_v6 = vld [vmem:[%s1748_s25] sm:$0xff]   ;;  %v1634_v7 = vld [vmem:[%s1748_s25 + $0x10] sm:$0xff]  }
  0x13   : > { %1434 = vmatprep.mubr.msk.bf16.mxu1 %vm347_vm1, %v1631_v5  ;;  %1468 = vmatprep.mubr.msk.bf16.mxu0 %vm347_vm1, %v1632_v6  ;;  %v1635_v9 = vld [vmem:[%s1748_s25 + $0x18] sm:$0xff]   ;;  %v1636_v10 = vld [vmem:[%s1748_s25 + $0x20] sm:$0xff]   ;;  %v1637_v11 = vld [vmem:[%s1748_s25 + $0x28] sm:$0xff]  }
  0x14   : > { %1435 = vmatmul.mubr.msk.bf16.vlgmr.msra.gmra.mrb[0].mxu1 %vm347_vm1, %v1634_v7  ;;  %1469 = vmatmul.mubr.msk.bf16.vlgmr.msra.gmra.mrb[0].mxu0 %vm347_vm1, %v1631_v5  ;;  %v1638_v12 = vld [vmem:[%s1748_s25 + $0x30] sm:$0xff]   ;;  %v1639_v13 = vld [vmem:[%s1748_s25 + $0x38] sm:$0xff]   ;;  %v1640_v14 = vld [vmem:[%s1748_s25 + $0x40] sm:$0xff]  }
  0x15   : > { %1535 = vmatpush3.bf16.msra.mxu1 %v575_v4  ;;  %1501 = vmatpush3.bf16.msra.mxu0 %v907_v8  ;;  %v1641_v15 = vld [vmem:[%s1748_s25 + $0x48] sm:$0xff]   ;;  %v1642_v16 = vld [vmem:[%s1748_s25 + $0x10] sm:$0xff]   ;;  %v1644_v18 = vld [vmem:[%s1748_s25 + $0x18] sm:$0xff]  }
  0x16   : > { %1438 = vmatprep.mubr.msk.bf16.mxu1 %vm347_vm1, %v1635_v9  ;;  %1472 = vmatprep.mubr.msk.bf16.mxu0 %vm347_vm1, %v1634_v7  ;;  %v1643_v17 = vld [vmem:[%s1748_s25 + $0x50] sm:$0xff]   ;;  %v1645_v19 = vld [vmem:[%s1748_s25 + $0x58] sm:$0xff]   ;;  %v1646_v20 = vld [vmem:[%s1748_s25 + $0x20] sm:$0xff]  }
  0x17   : > { %v1647_v21 = vld [vmem:[%s1748_s25 + $0x60] sm:$0xff]   ;;  %v1648_v22 = vld [vmem:[%s1748_s25 + $0x28] sm:$0xff]   ;;  %v1650_v24 = vld [vmem:[%s1748_s25 + $0x30] sm:$0xff]  }
  0x18   : > { %v1649_v23 = vld [vmem:[%s1748_s25 + $0x68] sm:$0xff]   ;;  %v1651_v25 = vld [vmem:[%s1748_s25 + $0x70] sm:$0xff]   ;;  %v1652_v26 = vld [vmem:[%s1748_s25 + $0x38] sm:$0xff]  }
  0x19   : > { %v1653_v27 = vld [vmem:[%s1748_s25 + $0x78] sm:$0xff]   ;;  %v1654_v28 = vld [vmem:[%s1748_s25 + $0x40] sm:$0xff]   ;;  %v1656_v30 = vld [vmem:[%s1748_s25 + $0x48] sm:$0xff]  }
  0x1a   : > { %v1655_v29 = vld [vmem:[%s1748_s25 + $0x80] sm:$0xff]   ;;  %v1657_v31 = vld [vmem:[%s1748_s25 + $0x50] sm:$0xff]   ;;  %v1658_v32 = vld [vmem:[%s1748_s25 + $0x58] sm:$0xff]  }
  0x1b   : > { %v1659_v33 = vld [vmem:[%s1748_s25 + $0x60] sm:$0xff]   ;;  %v1660_v34 = vld [vmem:[%s1748_s25 + $0x68] sm:$0xff]   ;;  %v1661_v35 = vld [vmem:[%s1748_s25 + $0x70] sm:$0xff]  }
  0x1c   : > { %1439 = vmatmul.mubr.msk.bf16.gmra.mrb[4].mxu1 %vm347_vm1, %v1636_v10  ;;  %1473 = vmatmul.mubr.msk.bf16.gmra.mrb[4].mxu0 %vm347_vm1, %v1635_v9  ;;  %v1662_v36 = vld [vmem:[%s1748_s25 + $0x78] sm:$0xff]   ;;  %v1663_v37 = vld [vmem:[%s1748_s25 + $0x80] sm:$0xff]   ;;  %v1664_v38 = vld [vmem:[%s1748_s25 + $0x88] sm:$0xff]  }
  0x1d   : > { %1442 = vmatprep.mubr.msk.bf16.mxu1 %vm347_vm1, %v1637_v11  ;;  %1476 = vmatprep.mubr.msk.bf16.mxu0 %vm347_vm1, %v1636_v10 }
  0x24   : > { %1443 = vmatmul.mubr.msk.bf16.gmra.mrb[8].mxu1 %vm347_vm1, %v1638_v12  ;;  %1477 = vmatmul.mubr.msk.bf16.gmra.mrb[8].mxu0 %vm347_vm1, %v1637_v11 }
  0x25   : > { %1446 = vmatprep.mubr.msk.bf16.mxu1 %vm347_vm1, %v1639_v13  ;;  %1480 = vmatprep.mubr.msk.bf16.mxu0 %vm347_vm1, %v1638_v12 }
  0x2c   : > { %1447 = vmatmul.mubr.msk.bf16.gmra.mrb[12].mxu1 %vm347_vm1, %v1640_v14  ;;  %1481 = vmatmul.mubr.msk.bf16.gmra.mrb[12].mxu0 %vm347_vm1, %v1639_v13 }
  0x2d   : > { %1450 = vmatprep.mubr.msk.bf16.mxu1 %vm347_vm1, %v1641_v15  ;;  %1502 = vmatprep.mubr.msk.bf16.mxu0 %vm347_vm1, %v1642_v16 }
  0x34   : > { %1451 = vmatmul.mubr.msk.bf16.gmra.mrb[16].mxu1 %vm347_vm1, %v1643_v17  ;;  %1503 = vmatmul.mubr.msk.bf16.vlgmr.msra.gmra.mrb[0].mxu0 %vm347_vm1, %v1644_v18 }
  0x35   : > { %1454 = vmatprep.mubr.msk.bf16.mxu1 %vm347_vm1, %v1645_v19  ;;  %1506 = vmatprep.mubr.msk.bf16.mxu0 %vm347_vm1, %v1646_v20 }
  0x3c   : > { %1455 = vmatmul.mubr.msk.bf16.gmra.mrb[20].mxu1 %vm347_vm1, %v1647_v21  ;;  %1507 = vmatmul.mubr.msk.bf16.gmra.mrb[4].mxu0 %vm347_vm1, %v1648_v22 }
  0x3d   : > { %1458 = vmatprep.mubr.msk.bf16.mxu1 %vm347_vm1, %v1649_v23  ;;  %1510 = vmatprep.mubr.msk.bf16.mxu0 %vm347_vm1, %v1650_v24 }
  0x44   : > { %1459 = vmatmul.mubr.msk.bf16.gmra.mrb[24].mxu1 %vm347_vm1, %v1651_v25  ;;  %1511 = vmatmul.mubr.msk.bf16.gmra.mrb[8].mxu0 %vm347_vm1, %v1652_v26 }
  0x45   : > { %1462 = vmatprep.mubr.msk.bf16.mxu1 %vm347_vm1, %v1653_v27  ;;  %1514 = vmatprep.mubr.msk.bf16.mxu0 %vm347_vm1, %v1654_v28 }
  0x4c   : > { %1463 = vmatmul.mubr.msk.bf16.gmra.mrb[28].mxu1 %vm347_vm1, %v1655_v29  ;;  %1515 = vmatmul.mubr.msk.bf16.gmra.mrb[12].mxu0 %vm347_vm1, %v1656_v30 }
  0x4d   : > { %1484 = vmatprep.mubr.msk.bf16.mxu1 %vm347_vm1, %v1640_v14  ;;  %1518 = vmatprep.mubr.msk.bf16.mxu0 %vm347_vm1, %v1657_v31 }
  0x54   : > { %1485 = vmatmul.mubr.msk.bf16.vlgmr.msra.gmra.mrb[16].mxu1 %vm347_vm1, %v1641_v15  ;;  %1519 = vmatmul.mubr.msk.bf16.gmra.mrb[16].mxu0 %vm347_vm1, %v1658_v32 }
  0x55   : > { %1488 = vmatprep.mubr.msk.bf16.mxu1 %vm347_vm1, %v1643_v17  ;;  %1522 = vmatprep.mubr.msk.bf16.mxu0 %vm347_vm1, %v1659_v33 }
  0x5c   : > { %1489 = vmatmul.mubr.msk.bf16.gmra.mrb[20].mxu1 %vm347_vm1, %v1645_v19  ;;  %1523 = vmatmul.mubr.msk.bf16.gmra.mrb[20].mxu0 %vm347_vm1, %v1660_v34 }
  0x5d   : > { %1492 = vmatprep.mubr.msk.bf16.mxu1 %vm347_vm1, %v1647_v21  ;;  %1526 = vmatprep.mubr.msk.bf16.mxu0 %vm347_vm1, %v1661_v35 }
  0x64   : > { %1493 = vmatmul.mubr.msk.bf16.gmra.mrb[24].mxu1 %vm347_vm1, %v1649_v23  ;;  %1527 = vmatmul.mubr.msk.bf16.gmra.mrb[24].mxu0 %vm347_vm1, %v1662_v36 }
  0x65   : > { %1496 = vmatprep.mubr.msk.bf16.mxu1 %vm347_vm1, %v1651_v25  ;;  %1530 = vmatprep.mubr.msk.bf16.mxu0 %vm347_vm1, %v1663_v37 }
  0x6c   : > { %1497 = vmatmul.mubr.msk.bf16.gmra.mrb[28].mxu1 %vm347_vm1, %v1653_v27  ;;  %1531 = vmatmul.mubr.msk.bf16.gmra.mrb[28].mxu0 %vm347_vm1, %v1664_v38 }
  0xe7   : > { %v1436_v39 = vpop.f32.mrb[0].mxu1 }
  0xe8   : > { %v434_v40 = vpop.f32.mrb[1].mxu1 }
  0xe9   : > { %v1437_v41 = vpop.f32.mrb[2].mxu1 }
  0xea   : > { %v437_v42 = vpop.f32.mrb[3].mxu1 }
  0xef   : > { %v1440_v43 = vpop.f32.mrb[4].mxu1 }
  0xf0   : > { %v450_v44 = vpop.f32.mrb[5].mxu1 }
  0xf1   : > { %v1441_v45 = vpop.f32.mrb[6].mxu1 }
  0xf2   : > { %v453_v46 = vpop.f32.mrb[7].mxu1 }
  0xf7   : > { %v1444_v47 = vpop.f32.mrb[8].mxu1 }
  0xf8   : > { %v466_v48 = vpop.f32.mrb[9].mxu1 }
  0xf9   : > { %v1445_v49 = vpop.f32.mrb[10].mxu1 }
  0xfa   : > { %v469_v50 = vpop.f32.mrb[11].mxu1 }
  0xff   : > { %v1448_v51 = vpop.f32.mrb[12].mxu1 }
 0x100   : > { %v482_v52 = vpop.f32.mrb[13].mxu1 }
 0x101   : > { %v1449_v53 = vpop.f32.mrb[14].mxu1 }
 0x102   : > { %v485_v54 = vpop.f32.mrb[15].mxu1 }
 0x107   : > { %v1504_v55 = vpop.f32.mrb[0].mxu0 }
 0x108   : > { %v1536_v57 = vadd.f32 %v1504_v55, %v1436_v39  ;;  %v943_v58 = vpop.f32.mrb[1].mxu0 }
 0x109   : > { %v1537_v59 = vadd.f32 %v943_v58, %v434_v40  ;;  %v1505_v60 = vpop.f32.mrb[2].mxu0 }
 0x10a   : > { %v1111_v61 = vadd.f32 %v1536_v57, %v1836_v56  ;;  %v1538_v62 = vadd.f32 %v1505_v60, %v1437_v41  ;;  %v946_v63 = vpop.f32.mrb[3].mxu0 }
 0x10b   : > { %v1109_v0 = vadd.f32 %v1537_v59, %v1836_v56  ;;  %v1539_v1 = vadd.f32 %v946_v63, %v437_v42 }
 0x10c   : > { %1144 = vst.msk [vmem:[%s1841_s4 + $0x10] sm:$0xff] %vm1141_vm2, %v1111_v61  ;;  %v1112_v2 = vadd.f32 %v1538_v62, %v1836_v56 }
 0x10d   : > { %1142 = vst.msk [vmem:[%s1841_s4] sm:$0xff] %vm1141_vm2, %v1109_v0  ;;  %v1110_v3 = vadd.f32 %v1539_v1, %v1836_v56 }
 0x10e   : > { %1145 = vst.msk [vmem:[%s1841_s4 + $0x18] sm:$0xff] %vm1141_vm2, %v1112_v2 }
 0x10f   : > { %1143 = vst.msk [vmem:[%s1841_s4 + $0x8] sm:$0xff] %vm1141_vm2, %v1110_v3  ;;  %v1508_v4 = vpop.f32.mrb[4].mxu0 }
 0x110   : > { %v1540_v5 = vadd.f32 %v1508_v4, %v1440_v43  ;;  %v959_v6 = vpop.f32.mrb[5].mxu0 }
 0x111   : > { %v1541_v7 = vadd.f32 %v959_v6, %v450_v44  ;;  %v1509_v8 = vpop.f32.mrb[6].mxu0 }
 0x112   : > { %v1115_v9 = vadd.f32 %v1540_v5, %v1836_v56  ;;  %v1542_v10 = vadd.f32 %v1509_v8, %v1441_v45  ;;  %v962_v11 = vpop.f32.mrb[7].mxu0 }
 0x113   : > { %v1113_v12 = vadd.f32 %v1541_v7, %v1836_v56  ;;  %v1543_v13 = vadd.f32 %v962_v11, %v453_v46 }
 0x114   : > { %1148 = vst.msk [vmem:[%s1841_s4 + $0x30] sm:$0xff] %vm1141_vm2, %v1115_v9  ;;  %v1116_v14 = vadd.f32 %v1542_v10, %v1836_v56 }
 0x115   : > { %1146 = vst.msk [vmem:[%s1841_s4 + $0x20] sm:$0xff] %vm1141_vm2, %v1113_v12  ;;  %v1114_v15 = vadd.f32 %v1543_v13, %v1836_v56 }
 0x116   : > { %1149 = vst.msk [vmem:[%s1841_s4 + $0x38] sm:$0xff] %vm1141_vm2, %v1116_v14 }
 0x117   : > { %1147 = vst.msk [vmem:[%s1841_s4 + $0x28] sm:$0xff] %vm1141_vm2, %v1114_v15  ;;  %v1512_v16 = vpop.f32.mrb[8].mxu0 }
 0x118   : > { %v1544_v17 = vadd.f32 %v1512_v16, %v1444_v47  ;;  %v975_v18 = vpop.f32.mrb[9].mxu0 }
 0x119   : > { %v1545_v19 = vadd.f32 %v975_v18, %v466_v48  ;;  %v1513_v20 = vpop.f32.mrb[10].mxu0 }
 0x11a   : > { %v1119_v21 = vadd.f32 %v1544_v17, %v1836_v56  ;;  %v1546_v22 = vadd.f32 %v1513_v20, %v1445_v49  ;;  %v978_v23 = vpop.f32.mrb[11].mxu0 }
 0x11b   : > { %v1117_v24 = vadd.f32 %v1545_v19, %v1836_v56  ;;  %v1547_v25 = vadd.f32 %v978_v23, %v469_v50 }
 0x11c   : > { %1152 = vst.msk [vmem:[%s1841_s4 + $0x50] sm:$0xff] %vm1141_vm2, %v1119_v21  ;;  %v1120_v26 = vadd.f32 %v1546_v22, %v1836_v56 }
 0x11d   : > { %1150 = vst.msk [vmem:[%s1841_s4 + $0x40] sm:$0xff] %vm1141_vm2, %v1117_v24  ;;  %v1118_v27 = vadd.f32 %v1547_v25, %v1836_v56 }
 0x11e   : > { %1153 = vst.msk [vmem:[%s1841_s4 + $0x58] sm:$0xff] %vm1141_vm2, %v1120_v26 }
 0x11f   : > { %1151 = vst.msk [vmem:[%s1841_s4 + $0x48] sm:$0xff] %vm1141_vm2, %v1118_v27  ;;  %v1516_v28 = vpop.f32.mrb[12].mxu0 }
 0x120   : > { %v1548_v29 = vadd.f32 %v1516_v28, %v1448_v51  ;;  %v991_v30 = vpop.f32.mrb[13].mxu0 }
 0x121   : > { %v1549_v31 = vadd.f32 %v991_v30, %v482_v52  ;;  %v1517_v32 = vpop.f32.mrb[14].mxu0 }
 0x122   : > { %v1123_v33 = vadd.f32 %v1548_v29, %v1836_v56  ;;  %v1550_v34 = vadd.f32 %v1517_v32, %v1449_v53  ;;  %v994_v35 = vpop.f32.mrb[15].mxu0 }
 0x123   : > { %v1121_v36 = vadd.f32 %v1549_v31, %v1836_v56  ;;  %v1551_v37 = vadd.f32 %v994_v35, %v485_v54 }
 0x124   : > { %1156 = vst.msk [vmem:[%s1841_s4 + $0x70] sm:$0xff] %vm1141_vm2, %v1123_v33  ;;  %v1124_v38 = vadd.f32 %v1550_v34, %v1836_v56 }
 0x125   : > { %1154 = vst.msk [vmem:[%s1841_s4 + $0x60] sm:$0xff] %vm1141_vm2, %v1121_v36  ;;  %v1122_v39 = vadd.f32 %v1551_v37, %v1836_v56 }
 0x126   : > { %1157 = vst.msk [vmem:[%s1841_s4 + $0x78] sm:$0xff] %vm1141_vm2, %v1124_v38 }
 0x127   : > { %1155 = vst.msk [vmem:[%s1841_s4 + $0x68] sm:$0xff] %vm1141_vm2, %v1122_v39  ;;  %v1486_v40 = vpop.f32.mrb[16].mxu1  ;;  %v1520_v41 = vpop.f32.mrb[16].mxu0 }
 0x128   : > { %v1552_v42 = vadd.f32 %v1520_v41, %v1486_v40  ;;  %v675_v43 = vpop.f32.mrb[17].mxu1  ;;  %v1007_v44 = vpop.f32.mrb[17].mxu0 }
 0x129   : > { %v1553_v45 = vadd.f32 %v1007_v44, %v675_v43  ;;  %v1487_v46 = vpop.f32.mrb[18].mxu1  ;;  %v1521_v47 = vpop.f32.mrb[18].mxu0 }
 0x12a   : > { %v1127_v48 = vadd.f32 %v1552_v42, %v1836_v56  ;;  %v1554_v49 = vadd.f32 %v1521_v47, %v1487_v46  ;;  %v678_v50 = vpop.f32.mrb[19].mxu1  ;;  %v1010_v51 = vpop.f32.mrb[19].mxu0 }
 0x12b   : > { %v1125_v52 = vadd.f32 %v1553_v45, %v1836_v56  ;;  %v1555_v53 = vadd.f32 %v1010_v51, %v678_v50 }
 0x12c   : > { %1160 = vst.msk [vmem:[%s1841_s4 + $0x90] sm:$0xff] %vm1141_vm2, %v1127_v48  ;;  %v1128_v54 = vadd.f32 %v1554_v49, %v1836_v56 }
 0x12d   : > { %1158 = vst.msk [vmem:[%s1841_s4 + $0x80] sm:$0xff] %vm1141_vm2, %v1125_v52  ;;  %v1126_v55 = vadd.f32 %v1555_v53, %v1836_v56 }
 0x12e   : > { %1161 = vst.msk [vmem:[%s1841_s4 + $0x98] sm:$0xff] %vm1141_vm2, %v1128_v54 }
 0x12f   : > { %1159 = vst.msk [vmem:[%s1841_s4 + $0x88] sm:$0xff] %vm1141_vm2, %v1126_v55  ;;  %v1490_v57 = vpop.f32.mrb[20].mxu1  ;;  %v1524_v58 = vpop.f32.mrb[20].mxu0 }
 0x130   : > { %v1556_v59 = vadd.f32 %v1524_v58, %v1490_v57  ;;  %v691_v60 = vpop.f32.mrb[21].mxu1  ;;  %v1023_v61 = vpop.f32.mrb[21].mxu0 }
 0x131   : > { %v1557_v62 = vadd.f32 %v1023_v61, %v691_v60  ;;  %v1491_v63 = vpop.f32.mrb[22].mxu1  ;;  %v1525_v0 = vpop.f32.mrb[22].mxu0 }
 0x132   : > { %v1131_v1 = vadd.f32 %v1556_v59, %v1836_v56  ;;  %v1558_v2 = vadd.f32 %v1525_v0, %v1491_v63  ;;  %v694_v3 = vpop.f32.mrb[23].mxu1  ;;  %v1026_v4 = vpop.f32.mrb[23].mxu0 }
 0x133   : > { %v1129_v5 = vadd.f32 %v1557_v62, %v1836_v56  ;;  %v1559_v6 = vadd.f32 %v1026_v4, %v694_v3 }
 0x134   : > { %1164 = vst.msk [vmem:[%s1841_s4 + $0xb0] sm:$0xff] %vm1141_vm2, %v1131_v1  ;;  %v1132_v7 = vadd.f32 %v1558_v2, %v1836_v56 }
 0x135   : > { %1162 = vst.msk [vmem:[%s1841_s4 + $0xa0] sm:$0xff] %vm1141_vm2, %v1129_v5  ;;  %v1130_v8 = vadd.f32 %v1559_v6, %v1836_v56 }
 0x136   : > { %1165 = vst.msk [vmem:[%s1841_s4 + $0xb8] sm:$0xff] %vm1141_vm2, %v1132_v7 }
 0x137   : > { %1163 = vst.msk [vmem:[%s1841_s4 + $0xa8] sm:$0xff] %vm1141_vm2, %v1130_v8  ;;  %v1494_v9 = vpop.f32.mrb[24].mxu1  ;;  %v1528_v10 = vpop.f32.mrb[24].mxu0 }
 0x138   : > { %v1560_v11 = vadd.f32 %v1528_v10, %v1494_v9  ;;  %v707_v12 = vpop.f32.mrb[25].mxu1  ;;  %v1039_v13 = vpop.f32.mrb[25].mxu0 }
 0x139   : > { %v1561_v14 = vadd.f32 %v1039_v13, %v707_v12  ;;  %v1495_v15 = vpop.f32.mrb[26].mxu1  ;;  %v1529_v16 = vpop.f32.mrb[26].mxu0 }
 0x13a   : > { %v1135_v17 = vadd.f32 %v1560_v11, %v1836_v56  ;;  %v1562_v18 = vadd.f32 %v1529_v16, %v1495_v15  ;;  %v710_v19 = vpop.f32.mrb[27].mxu1  ;;  %v1042_v20 = vpop.f32.mrb[27].mxu0 }
 0x13b   : > { %v1133_v21 = vadd.f32 %v1561_v14, %v1836_v56  ;;  %v1563_v22 = vadd.f32 %v1042_v20, %v710_v19 }
 0x13c   : > { %1168 = vst.msk [vmem:[%s1841_s4 + $0xd0] sm:$0xff] %vm1141_vm2, %v1135_v17  ;;  %v1136_v23 = vadd.f32 %v1562_v18, %v1836_v56 }
 0x13d   : > { %1166 = vst.msk [vmem:[%s1841_s4 + $0xc0] sm:$0xff] %vm1141_vm2, %v1133_v21  ;;  %v1134_v24 = vadd.f32 %v1563_v22, %v1836_v56 }
 0x13e   : > { %1169 = vst.msk [vmem:[%s1841_s4 + $0xd8] sm:$0xff] %vm1141_vm2, %v1136_v23 }
 0x13f   : > { %1167 = vst.msk [vmem:[%s1841_s4 + $0xc8] sm:$0xff] %vm1141_vm2, %v1134_v24  ;;  %v1498_v25 = vpop.f32.mrb[28].mxu1  ;;  %v1532_v26 = vpop.f32.mrb[28].mxu0 }
 0x140   : > { %v1564_v27 = vadd.f32 %v1532_v26, %v1498_v25  ;;  %v723_v28 = vpop.f32.mrb[29].mxu1  ;;  %v1055_v29 = vpop.f32.mrb[29].mxu0 }
 0x141   : > { %v1565_v30 = vadd.f32 %v1055_v29, %v723_v28  ;;  %v1499_v31 = vpop.f32.mrb[30].mxu1  ;;  %v1533_v32 = vpop.f32.mrb[30].mxu0 }
 0x142   : > { %v1139_v33 = vadd.f32 %v1564_v27, %v1836_v56  ;;  %v1566_v34 = vadd.f32 %v1533_v32, %v1499_v31  ;;  %v726_v35 = vpop.f32.mrb[31].mxu1  ;;  %v1058_v36 = vpop.f32.mrb[31].mxu0 }
 0x143   : > { %v1137_v37 = vadd.f32 %v1565_v30, %v1836_v56  ;;  %v1567_v38 = vadd.f32 %v1058_v36, %v726_v35 }
 0x144   : > { %1172 = vst.msk [vmem:[%s1841_s4 + $0xf0] sm:$0xff] %vm1141_vm2, %v1139_v33  ;;  %v1140_v39 = vadd.f32 %v1566_v34, %v1836_v56 }
 0x145   : > { %1170 = vst.msk [vmem:[%s1841_s4 + $0xe0] sm:$0xff] %vm1141_vm2, %v1137_v37  ;;  %v1138_v40 = vadd.f32 %v1567_v38, %v1836_v56 }
 0x146   : > { %1173 = vst.msk [vmem:[%s1841_s4 + $0xf8] sm:$0xff] %vm1141_vm2, %v1140_v39 }
 0x147   : > { %1171 = vst.msk [vmem:[%s1841_s4 + $0xe8] sm:$0xff] %vm1141_vm2, %v1138_v40 }
 0x148 PF: > { %s13_s14 = sadd.s32 1, %s1687_s14   ;;  %s1952_s12 = smov %s1683_s13 }
 0x149   : > { %p10_p5 = scmp.ge.s32.totalorder %s13_s14, 4   ;;  %s1953_s13 = smov %s1955_s15 }
 0x14b   :  { %12 = sbr.rel (!%p10_p5) target bundleno = 2 (0x2), region = 70 }

// kernel: recnet_forward.30
= control target key start
LH: loop header
LB: loop body
LE: loop exit
PB: predicated region body
PF: predicated region fallthrough
CT: control target
= control target key end

     0   :  { %s3763_s15 = smov 0   ;;  %s3765_s16 = smov 0   ;;  %s4744_s0 = inlined_call_operand.vmem [shape: bf16[2,288,12], index: 0, kind: input, shape index: {}]   ;;  %s4745_s1 = inlined_call_operand.vmem [shape: bf16[3,12,4], index: 1, kind: input, shape index: {}]   ;;  %s4746_s2 = inlined_call_operand.vmem [shape: bf16[2,288,12], index: 2, kind: input, shape index: {}]   ;;  %s4747_s3 = inlined_call_operand.vmem [shape: bf16[3,12,4], index: 3, kind: input, shape index: {}]   ;;  %s4748_s4 = inlined_call_operand.vmem [shape: bf16[2,256,4], index: 4, kind: output, shape index: {}]  }
   0x1   :  { %s3767_s17 = smov 0  }
   0x2 LB: > { %s26_s18 = sadd.s32 1, %s3732_s16  ;;  %p2865_p0 = scmp.ge.s32.totalorder %s3736_s17, 1  ;;  %s3736_s17 = sphi %s3767_s17, %s14_s17   ;;  %s3732_s16 = sphi %s3765_s16, %s4764_s16   ;;  %s3728_s15 = sphi %s3763_s15, %s4763_s15  }
   0x3   : > { %p28_p1 = scmp.ge.s32.totalorder %s26_s18, 2  ;;  %p204_p2 = scmp.lt.s32.totalorder %s3736_s17, 3 }
   0x5   : > { %s4766_s18 = smov (%p28_p1, %s26_s18), 0  ;;  %p205_p3 = pnand %p2865_p0, %p204_p2 }
   0x6   : > { %v3625_v0 = vld [vmem:[%s4745_s1 + $0x8] sm:$0x3f] (!%p205_p3)   ;;  %vm446_vm0 = vcmask (!%p205_p3), 1045504   ;;  %p246_p4 = scmp.lt.s32.totalorder (!%p205_p3), %s3728_s15, 1  ;;  %v3626_v1 = vld [vmem:[%s4747_s3] sm:$0x3f] (!%p205_p3)  }
   0x7   : > { %208 = sbr.rel (%p205_p3) target bundleno = 592 (0x250), region = 36  ;;  %3594 = vmatprep.subr.msk.bf16.mxu1 (!%p205_p3), %vm446_vm0, %v3625_v0  ;;  %v448_v2 = vsel (!%p205_p3), %vm446_vm0, %v3625_v0, 0  ;;  %v3628_v3 = vld [vmem:[%s4745_s1] sm:$0x3f] (!%p205_p3)   ;;  %3597 = vmatprep.subr.msk.bf16.mxu0 (!%p205_p3), %vm446_vm0, %v3626_v1  ;;  %v1320_v4 = vsel (!%p205_p3), %vm446_vm0, %v3626_v1, 0  ;;  %vm397_vm1 = vcmask (!%p205_p3), 97280  }
   0x8   : > { %3231 = vmatpush3.bf16.msra.mxu1 (!%p205_p3), %v448_v2  ;;  %3333 = vmatpush3.bf16.msra.mxu0 (!%p205_p3), %v1320_v4  ;;  %v3630_v5 = vld [vmem:[%s4747_s3 + $0x8] sm:$0x3f] (!%p205_p3)   ;;  %v3819_v8 = vld [vmem:[%s4745_s1 + $0x10] sm:$0x3f] (!%p205_p3)   ;;  %v625_v10 = vsel (!%p205_p3), %vm446_vm0, %v3628_v3, 0  ;;  %vm2243_vm2 = vcmask (!%p205_p3), 31744  }
   0x9   : > { %3595 = vmatprep.subr.msk.bf16.mxu1 (!%p205_p3), %vm446_vm0, %v3628_v3  ;;  %3598 = vmatprep.subr.msk.bf16.mxu0 (!%p205_p3), %vm446_vm0, %v3630_v5  ;;  %v3830_v11 = vld [vmem:[%s4747_s3 + $0x10] sm:$0x3f] (!%p205_p3)   ;;  %v1684_v13 = vsel (!%p205_p3), %vm446_vm0, %v3630_v5, 0  ;;  %v957_v45 = vsel (!%p205_p3), %vm446_vm0, %v3819_v8, 0 }
   0xa   : > { %v2048_v46 = vsel (!%p205_p3), %vm446_vm0, %v3830_v11, 0 }
   0xe   : > { %s4768_s15 = smov (!%p246_p4, %s3728_s15), 1 }
   0xf   : > { %s3600_s25 = smul.u32 144, %s4768_s15  ;;  %s3095_s12 = sshll.u32 %s4768_s15, 7 }
  0x10   : > { %s4603_s15 = scalar_lea.vmem %s4748_s4, %s3095_s12 }
  0x11   : > { %s3804_s30 = scalar_lea.vmem %s4744_s0, %s3600_s25  ;;  %s3809_s7 = scalar_lea.vmem %s4746_s2, %s3600_s25 }
  0x12   : > { %v3813_v6 = vld [vmem:[%s3804_s30 + $0x8] sm:$0xff]   ;;  %v3629_v7 = vld [vmem:[%s3809_s7] sm:$0xff]   ;;  %v3824_v9 = vld [vmem:[%s3804_s30 + $0x10] sm:$0xff]  }
  0x13   : > { %3232 = vmatprep.mubr.msk.bf16.mxu1 %vm397_vm1, %v3813_v6  ;;  %3334 = vmatprep.mubr.msk.bf16.mxu0 %vm397_vm1, %v3629_v7  ;;  %v3632_v12 = vld [vmem:[%s3809_s7 + $0x8] sm:$0xff]   ;;  %v3838_v14 = vld [vmem:[%s3804_s30 + $0x18] sm:$0xff]   ;;  %v3634_v15 = vld [vmem:[%s3809_s7 + $0x10] sm:$0xff]  }
  0x14   : > { %3233 = vmatmul.mubr.msk.bf16.vlgmr.msra.gmra.mrb[0].mxu1 %vm397_vm1, %v3824_v9  ;;  %3335 = vmatmul.mubr.msk.bf16.vlgmr.msra.gmra.mrb[0].mxu0 %vm397_vm1, %v3632_v12  ;;  %v3846_v16 = vld [vmem:[%s3804_s30 + $0x20] sm:$0xff]   ;;  %v3636_v17 = vld [vmem:[%s3809_s7 + $0x18] sm:$0xff]   ;;  %v3854_v18 = vld [vmem:[%s3804_s30 + $0x28] sm:$0xff]  }
  0x15   : > { %3265 = vmatpush3.bf16.msra.mxu1 %v625_v10  ;;  %3367 = vmatpush3.bf16.msra.mxu0 %v1684_v13  ;;  %v3638_v19 = vld [vmem:[%s3809_s7 + $0x20] sm:$0xff]   ;;  %v3864_v20 = vld [vmem:[%s3804_s30 + $0x30] sm:$0xff]   ;;  %v3640_v21 = vld [vmem:[%s3809_s7 + $0x28] sm:$0xff]  }
  0x16   : > { %3236 = vmatprep.mubr.msk.bf16.mxu1 %vm397_vm1, %v3838_v14  ;;  %3338 = vmatprep.mubr.msk.bf16.mxu0 %vm397_vm1, %v3634_v15  ;;  %v3868_v22 = vld [vmem:[%s3804_s30 + $0x38] sm:$0xff]   ;;  %v3642_v23 = vld [vmem:[%s3809_s7 + $0x30] sm:$0xff]   ;;  %v3878_v24 = vld [vmem:[%s3804_s30 + $0x40] sm:$0xff]  }
  0x17   : > { %3596 = vmatprep.subr.msk.bf16.mxu1 %vm446_vm0, %v3819_v8  ;;  %3599 = vmatprep.subr.msk.bf16.mxu0 %vm446_vm0, %v3830_v11  ;;  %v3644_v25 = vld [vmem:[%s3809_s7 + $0x38] sm:$0xff]   ;;  %v3882_v26 = vld [vmem:[%s3804_s30 + $0x48] sm:$0xff]   ;;  %v3646_v27 = vld [vmem:[%s3809_s7 + $0x40] sm:$0xff]  }
  0x18   : > { %v3892_v28 = vld [vmem:[%s3804_s30 + $0x50] sm:$0xff]   ;;  %v3648_v29 = vld [vmem:[%s3809_s7 + $0x48] sm:$0xff]   ;;  %v3896_v30 = vld [vmem:[%s3804_s30 + $0x58] sm:$0xff]  }
  0x19   : > { %v3650_v31 = vld [vmem:[%s3809_s7 + $0x50] sm:$0xff]   ;;  %v3651_v32 = vld [vmem:[%s3804_s30 + $0x60] sm:$0xff]   ;;  %v3652_v33 = vld [vmem:[%s3809_s7 + $0x58] sm:$0xff]  }
  0x1a   : > { %v3908_v34 = vld [vmem:[%s3804_s30 + $0x68] sm:$0xff]   ;;  %v3654_v35 = vld [vmem:[%s3809_s7 + $0x60] sm:$0xff]   ;;  %v3655_v36 = vld [vmem:[%s3804_s30 + $0x70] sm:$0xff]  }
  0x1b   : > { %v3656_v37 = vld [vmem:[%s3809_s7 + $0x68] sm:$0xff]   ;;  %v3919_v38 = vld [vmem:[%s3804_s30 + $0x78] sm:$0xff]   ;;  %v3658_v39 = vld [vmem:[%s3809_s7 + $0x70] sm:$0xff]  }
  0x1c   : > { %3237 = vmatmul.mubr.msk.bf16.gmra.mrb[4].mxu1 %vm397_vm1, %v3846_v16  ;;  %3339 = vmatmul.mubr.msk.bf16.gmra.mrb[4].mxu0 %vm397_vm1, %v3636_v17  ;;  %v3659_v40 = vld [vmem:[%s3804_s30 + $0x80] sm:$0xff]   ;;  %v3660_v41 = vld [vmem:[%s3809_s7 + $0x78] sm:$0xff]   ;;  %v3663_v43 = vld [vmem:[%s3809_s7 + $0x8] sm:$0xff]  }
  0x1d   : > { %3240 = vmatprep.mubr.msk.bf16.mxu1 %vm397_vm1, %v3854_v18  ;;  %3342 = vmatprep.mubr.msk.bf16.mxu0 %vm397_vm1, %v3638_v19  ;;  %v3661_v42 = vld [vmem:[%s3804_s30] sm:$0xff]   ;;  %v3665_v44 = vld [vmem:[%s3809_s7 + $0x10] sm:$0xff]   ;;  %v3666_v47 = vld [vmem:[%s3809_s7 + $0x18] sm:$0xff]  }
  0x1e   : > { %v3667_v48 = vld [vmem:[%s3809_s7 + $0x20] sm:$0xff]   ;;  %v3668_v49 = vld [vmem:[%s3809_s7 + $0x28] sm:$0xff]   ;;  %v3669_v50 = vld [vmem:[%s3809_s7 + $0x30] sm:$0xff]  }
  0x1f   : > { %v3670_v51 = vld [vmem:[%s3809_s7 + $0x38] sm:$0xff]   ;;  %v3671_v52 = vld [vmem:[%s3809_s7 + $0x40] sm:$0xff]   ;;  %v3672_v53 = vld [vmem:[%s3809_s7 + $0x48] sm:$0xff]  }
  0x20   : > { %v3673_v54 = vld [vmem:[%s3809_s7 + $0x50] sm:$0xff]   ;;  %v3674_v55 = vld [vmem:[%s3809_s7 + $0x58] sm:$0xff]   ;;  %v3675_v56 = vld [vmem:[%s3809_s7 + $0x60] sm:$0xff]  }
  0x21   : > { %v3676_v57 = vld [vmem:[%s3809_s7 + $0x68] sm:$0xff]   ;;  %v3677_v58 = vld [vmem:[%s3809_s7 + $0x70] sm:$0xff]   ;;  %v3678_v59 = vld [vmem:[%s3809_s7 + $0x78] sm:$0xff]  }
  0x22   : > { %v3679_v60 = vld [vmem:[%s3809_s7 + $0x80] sm:$0xff]   ;;  %v3680_v61 = vld [vmem:[%s3804_s30 + $0x10] sm:$0xff]   ;;  %v3682_v63 = vld [vmem:[%s3804_s30 + $0x18] sm:$0xff]  }
  0x23   : > { %v3681_v62 = vld [vmem:[%s3809_s7 + $0x10] sm:$0xff]   ;;  %v3683_v0 = vld [vmem:[%s3809_s7 + $0x18] sm:$0xff]   ;;  %v3684_v1 = vld [vmem:[%s3804_s30 + $0x20] sm:$0xff]  }
  0x24   : > { %3241 = vmatmul.mubr.msk.bf16.gmra.mrb[8].mxu1 %vm397_vm1, %v3864_v20  ;;  %3343 = vmatmul.mubr.msk.bf16.gmra.mrb[8].mxu0 %vm397_vm1, %v3640_v21  ;;  %v3685_v2 = vld [vmem:[%s3809_s7 + $0x20] sm:$0xff]   ;;  %v3686_v3 = vld [vmem:[%s3804_s30 + $0x28] sm:$0xff]   ;;  %v3688_v5 = vld [vmem:[%s3804_s30 + $0x30] sm:$0xff]  }
  0x25   : > { %3244 = vmatprep.mubr.msk.bf16.mxu1 %vm397_vm1, %v3868_v22  ;;  %3346 = vmatprep.mubr.msk.bf16.mxu0 %vm397_vm1, %v3642_v23  ;;  %v3687_v4 = vld [vmem:[%s3809_s7 + $0x28] sm:$0xff]   ;;  %v3690_v7 = vld [vmem:[%s3804_s30 + $0x38] sm:$0xff]   ;;  %v3693_v10 = vld [vmem:[%s3809_s7 + $0x40] sm:$0xff]  }
  0x26   : > { %v3691_v8 = vld [vmem:[%s3809_s7 + $0x38] sm:$0xff]   ;;  %v3694_v11 = vld [vmem:[%s3804_s30 + $0x48] sm:$0xff]   ;;  %v3696_v13 = vld [vmem:[%s3804_s30 + $0x50] sm:$0xff]  }
  0x27   : > { %v3695_v12 = vld [vmem:[%s3809_s7 + $0x48] sm:$0xff]   ;;  %v3698_v15 = vld [vmem:[%s3804_s30 + $0x58] sm:$0xff]   ;;  %v3700_v17 = vld [vmem:[%s3804_s30 + $0x60] sm:$0xff]  }
  0x28   : > { %v3702_v19 = vld [vmem:[%s3804_s30 + $0x68] sm:$0xff]   ;;  %v3704_v21 = vld [vmem:[%s3804_s30 + $0x70] sm:$0xff]   ;;  %v3706_v23 = vld [vmem:[%s3804_s30 + $0x78] sm:$0xff]  }
  0x2c   : > { %3245 = vmatmul.mubr.msk.bf16.gmra.mrb[12].mxu1 %vm397_vm1, %v3878_v24  ;;  %3347 = vmatmul.mubr.msk.bf16.gmra.mrb[12].mxu0 %vm397_vm1, %v3644_v25  ;;  %v3708_v25 = vld [vmem:[%s3804_s30 + $0x80] sm:$0xff]  }
  0x2d   : > { %3248 = vmatprep.mubr.msk.bf16.mxu1 %vm397_vm1, %v3882_v26  ;;  %3350 = vmatprep.mubr.msk.bf16.mxu0 %vm397_vm1, %v3646_v27  ;;  %v3710_v27 = vld [vmem:[%s3804_s30 + $0x88] sm:$0xff]  }
  0x34   : > { %3249 = vmatmul.mubr.msk.bf16.gmra.mrb[16].mxu1 %vm397_vm1, %v3892_v28  ;;  %3351 = vmatmul.mubr.msk.bf16.gmra.mrb[16].mxu0 %vm397_vm1, %v3648_v29 }
  0x35   : > { %3252 = vmatprep.mubr.msk.bf16.mxu1 %vm397_vm1, %v3896_v30  ;;  %3354 = vmatprep.mubr.msk.bf16.mxu0 %vm397_vm1, %v3650_v31 }
  0x3c   : > { %3253 = vmatmul.mubr.msk.bf16.gmra.mrb[20].mxu1 %vm397_vm1, %v3651_v32  ;;  %3355 = vmatmul.mubr.msk.bf16.gmra.mrb[20].mxu0 %vm397_vm1, %v3652_v33 }
  0x3d   : > { %3256 = vmatprep.mubr.msk.bf16.mxu1 %vm397_vm1, %v3908_v34  ;;  %3358 = vmatprep.mubr.msk.bf16.mxu0 %vm397_vm1, %v3654_v35 }
  0x44   : > { %3257 = vmatmul.mubr.msk.bf16.gmra.mrb[24].mxu1 %vm397_vm1, %v3655_v36  ;;  %3359 = vmatmul.mubr.msk.bf16.gmra.mrb[24].mxu0 %vm397_vm1, %v3656_v37 }
  0x45   : > { %3260 = vmatprep.mubr.msk.bf16.mxu1 %vm397_vm1, %v3919_v38  ;;  %3362 = vmatprep.mubr.msk.bf16.mxu0 %vm397_vm1, %v3658_v39 }
  0x4c   : > { %3261 = vmatmul.mubr.msk.bf16.gmra.mrb[28].mxu1 %vm397_vm1, %v3659_v40  ;;  %3363 = vmatmul.mubr.msk.bf16.gmra.mrb[28].mxu0 %vm397_vm1, %v3660_v41 }
  0x4d   : > { %3266 = vmatprep.mubr.msk.bf16.mxu1 %vm397_vm1, %v3661_v42  ;;  %3368 = vmatprep.mubr.msk.bf16.mxu0 %vm397_vm1, %v3663_v43 }
  0x54   : > { %3267 = vmatmul.mubr.msk.bf16.vlgmr.msra.gmra.mrb[0].mxu1 %vm397_vm1, %v3813_v6  ;;  %3369 = vmatmul.mubr.msk.bf16.vlgmr.msra.gmra.mrb[0].mxu0 %vm397_vm1, %v3665_v44  ;;  %v3689_v6 = vld [vmem:[%s3809_s7 + $0x30] sm:$0xff]  }
  0x55   : > { %3299 = vmatpush3.bf16.msra.mxu1 %v957_v45  ;;  %3401 = vmatpush3.bf16.msra.mxu0 %v2048_v46 }
  0x56   : > { %3270 = vmatprep.mubr.msk.bf16.mxu1 %vm397_vm1, %v3824_v9  ;;  %3372 = vmatprep.mubr.msk.bf16.mxu0 %vm397_vm1, %v3666_v47  ;;  %v3692_v9 = vld [vmem:[%s3804_s30 + $0x40] sm:$0xff]  }
  0x5c   : > { %3271 = vmatmul.mubr.msk.bf16.gmra.mrb[4].mxu1 %vm397_vm1, %v3838_v14  ;;  %3373 = vmatmul.mubr.msk.bf16.gmra.mrb[4].mxu0 %vm397_vm1, %v3667_v48  ;;  %v3697_v14 = vld [vmem:[%s3809_s7 + $0x50] sm:$0xff]  }
  0x5d   : > { %3274 = vmatprep.mubr.msk.bf16.mxu1 %vm397_vm1, %v3846_v16  ;;  %3376 = vmatprep.mubr.msk.bf16.mxu0 %vm397_vm1, %v3668_v49  ;;  %v3699_v16 = vld [vmem:[%s3809_s7 + $0x58] sm:$0xff]  }
  0x64   : > { %3275 = vmatmul.mubr.msk.bf16.gmra.mrb[8].mxu1 %vm397_vm1, %v3854_v18  ;;  %3377 = vmatmul.mubr.msk.bf16.gmra.mrb[8].mxu0 %vm397_vm1, %v3669_v50  ;;  %v3701_v18 = vld [vmem:[%s3809_s7 + $0x60] sm:$0xff]  }
  0x65   : > { %3278 = vmatprep.mubr.msk.bf16.mxu1 %vm397_vm1, %v3864_v20  ;;  %3380 = vmatprep.mubr.msk.bf16.mxu0 %vm397_vm1, %v3670_v51  ;;  %v3703_v20 = vld [vmem:[%s3809_s7 + $0x68] sm:$0xff]  }
  0x6c   : > { %3279 = vmatmul.mubr.msk.bf16.gmra.mrb[12].mxu1 %vm397_vm1, %v3868_v22  ;;  %3381 = vmatmul.mubr.msk.bf16.gmra.mrb[12].mxu0 %vm397_vm1, %v3671_v52  ;;  %v3705_v22 = vld [vmem:[%s3809_s7 + $0x70] sm:$0xff]  }
  0x6d   : > { %3282 = vmatprep.mubr.msk.bf16.mxu1 %vm397_vm1, %v3878_v24  ;;  %3384 = vmatprep.mubr.msk.bf16.mxu0 %vm397_vm1, %v3672_v53  ;;  %v3707_v24 = vld [vmem:[%s3809_s7 + $0x78] sm:$0xff]  }
  0x74   : > { %3283 = vmatmul.mubr.msk.bf16.gmra.mrb[16].mxu1 %vm397_vm1, %v3882_v26  ;;  %3385 = vmatmul.mubr.msk.bf16.gmra.mrb[16].mxu0 %vm397_vm1, %v3673_v54  ;;  %v3709_v26 = vld [vmem:[%s3809_s7 + $0x80] sm:$0xff]  }
  0x75   : > { %3286 = vmatprep.mubr.msk.bf16.mxu1 %vm397_vm1, %v3892_v28  ;;  %3388 = vmatprep.mubr.msk.bf16.mxu0 %vm397_vm1, %v3674_v55  ;;  %v3711_v28 = vld [vmem:[%s3809_s7 + $0x88] sm:$0xff]  }
  0x7c   : > { %3287 = vmatmul.mubr.msk.bf16.gmra.mrb[20].mxu1 %vm397_vm1, %v3896_v30  ;;  %3389 = vmatmul.mubr.msk.bf16.gmra.mrb[20].mxu0 %vm397_vm1, %v3675_v56 }
  0x7d   : > { %3290 = vmatprep.mubr.msk.bf16.mxu1 %vm397_vm1, %v3651_v32  ;;  %3392 = vmatprep.mubr.msk.bf16.mxu0 %vm397_vm1, %v3676_v57 }
  0x84   : > { %3291 = vmatmul.mubr.msk.bf16.gmra.mrb[24].mxu1 %vm397_vm1, %v3908_v34  ;;  %3393 = vmatmul.mubr.msk.bf16.gmra.mrb[24].mxu0 %vm397_vm1, %v3677_v58 }
  0x85   : > { %3294 = vmatprep.mubr.msk.bf16.mxu1 %vm397_vm1, %v3655_v36  ;;  %3396 = vmatprep.mubr.msk.bf16.mxu0 %vm397_vm1, %v3678_v59 }
  0x8c   : > { %3295 = vmatmul.mubr.msk.bf16.gmra.mrb[28].mxu1 %vm397_vm1, %v3919_v38  ;;  %3397 = vmatmul.mubr.msk.bf16.gmra.mrb[28].mxu0 %vm397_vm1, %v3679_v60 }
  0x8d   : > { %3300 = vmatprep.mubr.msk.bf16.mxu1 %vm397_vm1, %v3680_v61  ;;  %3402 = vmatprep.mubr.msk.bf16.mxu0 %vm397_vm1, %v3681_v62 }
  0x94   : > { %3301 = vmatmul.mubr.msk.bf16.vlgmr.msra.gmra.mrb[0].mxu1 %vm397_vm1, %v3682_v63  ;;  %3403 = vmatmul.mubr.msk.bf16.vlgmr.msra.gmra.mrb[0].mxu0 %vm397_vm1, %v3683_v0 }
  0x95   : > { %3304 = vmatprep.mubr.msk.bf16.mxu1 %vm397_vm1, %v3684_v1  ;;  %3406 = vmatprep.mubr.msk.bf16.mxu0 %vm397_vm1, %v3685_v2 }
  0x9c   : > { %3305 = vmatmul.mubr.msk.bf16.gmra.mrb[4].mxu1 %vm397_vm1, %v3686_v3  ;;  %3407 = vmatmul.mubr.msk.bf16.gmra.mrb[4].mxu0 %vm397_vm1, %v3687_v4 }
  0x9d   : > { %3308 = vmatprep.mubr.msk.bf16.mxu1 %vm397_vm1, %v3688_v5  ;;  %3410 = vmatprep.mubr.msk.bf16.mxu0 %vm397_vm1, %v3689_v6 }
  0xa4   : > { %3309 = vmatmul.mubr.msk.bf16.gmra.mrb[8].mxu1 %vm397_vm1, %v3690_v7  ;;  %3411 = vmatmul.mubr.msk.bf16.gmra.mrb[8].mxu0 %vm397_vm1, %v3691_v8 }
  0xa5   : > { %3312 = vmatprep.mubr.msk.bf16.mxu1 %vm397_vm1, %v3692_v9  ;;  %3414 = vmatprep.mubr.msk.bf16.mxu0 %vm397_vm1, %v3693_v10 }
  0xac   : > { %3313 = vmatmul.mubr.msk.bf16.gmra.mrb[12].mxu1 %vm397_vm1, %v3694_v11  ;;  %3415 = vmatmul.mubr.msk.bf16.gmra.mrb[12].mxu0 %vm397_vm1, %v3695_v12 }
  0xad   : > { %3316 = vmatprep.mubr.msk.bf16.mxu1 %vm397_vm1, %v3696_v13  ;;  %3418 = vmatprep.mubr.msk.bf16.mxu0 %vm397_vm1, %v3697_v14 }
  0xb4   : > { %3317 = vmatmul.mubr.msk.bf16.gmra.mrb[16].mxu1 %vm397_vm1, %v3698_v15  ;;  %3419 = vmatmul.mubr.msk.bf16.gmra.mrb[16].mxu0 %vm397_vm1, %v3699_v16 }
  0xb5   : > { %3320 = vmatprep.mubr.msk.bf16.mxu1 %vm397_vm1, %v3700_v17  ;;  %3422 = vmatprep.mubr.msk.bf16.mxu0 %vm397_vm1, %v3701_v18 }
  0xbc   : > { %3321 = vmatmul.mubr.msk.bf16.gmra.mrb[20].mxu1 %vm397_vm1, %v3702_v19  ;;  %3423 = vmatmul.mubr.msk.bf16.gmra.mrb[20].mxu0 %vm397_vm1, %v3703_v20 }
  0xbd   : > { %3324 = vmatprep.mubr.msk.bf16.mxu1 %vm397_vm1, %v3704_v21  ;;  %3426 = vmatprep.mubr.msk.bf16.mxu0 %vm397_vm1, %v3705_v22 }
  0xc4   : > { %3325 = vmatmul.mubr.msk.bf16.gmra.mrb[24].mxu1 %vm397_vm1, %v3706_v23  ;;  %3427 = vmatmul.mubr.msk.bf16.gmra.mrb[24].mxu0 %vm397_vm1, %v3707_v24 }
  0xc5   : > { %3328 = vmatprep.mubr.msk.bf16.mxu1 %vm397_vm1, %v3708_v25  ;;  %3430 = vmatprep.mubr.msk.bf16.mxu0 %vm397_vm1, %v3709_v26 }
  0xcc   : > { %3329 = vmatmul.mubr.msk.bf16.gmra.mrb[28].mxu1 %vm397_vm1, %v3710_v27  ;;  %3431 = vmatmul.mubr.msk.bf16.gmra.mrb[28].mxu0 %vm397_vm1, %v3711_v28 }
 0x167   : > { %v3302_v29 = vpop.f32.mrb[0].mxu1  ;;  %v3404_v30 = vpop.f32.mrb[0].mxu0 }
 0x168   : > { %v993_v31 = vpop.f32.mrb[1].mxu1  ;;  %v4061_v32 = vadd.f32 %v3404_v30, %v3302_v29  ;;  %v2084_v33 = vpop.f32.mrb[1].mxu0 }
 0x169   : > { %v3303_v34 = vpop.f32.mrb[2].mxu1  ;;  %v4063_v35 = vadd.f32 %v2084_v33, %v993_v31  ;;  %v3405_v36 = vpop.f32.mrb[2].mxu0 }
 0x16a   : > { %v996_v37 = vpop.f32.mrb[3].mxu1  ;;  %v4065_v38 = vadd.f32 %v3405_v36, %v3303_v34  ;;  %v2087_v39 = vpop.f32.mrb[3].mxu0  ;;  %v2247_v45 = vsel %vm2243_vm2, %v4061_v32, 0.0 }
 0x16b   : > { %v4067_v40 = vadd.f32 %v2087_v39, %v996_v37  ;;  %v2244_v41 = vsel %vm2243_vm2, %v4063_v35, 0.0 }
 0x16c   : > { %v2249_v52 = vsel %vm2243_vm2, %v4065_v38, 0.0 }
 0x16d   : > { %v2245_v42 = vsel %vm2243_vm2, %v4067_v40, 0.0 }
 0x16e   : > { %v2246_v43 = vadd.f32 %v2245_v42, %v2244_v41 }
 0x16f   : > { %v3306_v44 = vpop.f32.mrb[4].mxu1  ;;  %v3408_v46 = vpop.f32.mrb[4].mxu0 }
 0x170   : > { %v1009_v47 = vpop.f32.mrb[5].mxu1  ;;  %v2248_v48 = vadd.f32 %v2247_v45, %v2246_v43  ;;  %v4075_v49 = vadd.f32 %v3408_v46, %v3306_v44  ;;  %v2100_v50 = vpop.f32.mrb[5].mxu0 }
 0x171   : > { %v3307_v51 = vpop.f32.mrb[6].mxu1  ;;  %v4079_v53 = vadd.f32 %v2100_v50, %v1009_v47  ;;  %v3409_v54 = vpop.f32.mrb[6].mxu0 }
 0x172   : > { %v1012_v55 = vpop.f32.mrb[7].mxu1  ;;  %v2250_v56 = vadd.f32 %v2249_v52, %v2248_v48  ;;  %v4081_v57 = vadd.f32 %v3409_v54, %v3307_v51  ;;  %v2103_v58 = vpop.f32.mrb[7].mxu0  ;;  %v2255_v1 = vsel %vm2243_vm2, %v4075_v49, 0.0 }
 0x173   : > { %v2251_v59 = vsel %vm2243_vm2, %v4079_v53, 0.0  ;;  %v4085_v60 = vadd.f32 %v2103_v58, %v1012_v55 }
 0x174   : > { %v2252_v61 = vadd.f32 %v2251_v59, %v2250_v56  ;;  %v2257_v8 = vsel %vm2243_vm2, %v4081_v57, 0.0 }
 0x175   : > { %v2253_v62 = vsel %vm2243_vm2, %v4085_v60, 0.0 }
 0x176   : > { %v2254_v63 = vadd.f32 %v2253_v62, %v2252_v61 }
 0x177   : > { %v3310_v0 = vpop.f32.mrb[8].mxu1  ;;  %v3412_v2 = vpop.f32.mrb[8].mxu0 }
 0x178   : > { %v1025_v3 = vpop.f32.mrb[9].mxu1  ;;  %v2256_v4 = vadd.f32 %v2255_v1, %v2254_v63  ;;  %v4091_v5 = vadd.f32 %v3412_v2, %v3310_v0  ;;  %v2116_v6 = vpop.f32.mrb[9].mxu0 }
 0x179   : > { %v3311_v7 = vpop.f32.mrb[10].mxu1  ;;  %v4095_v9 = vadd.f32 %v2116_v6, %v1025_v3  ;;  %v3413_v10 = vpop.f32.mrb[10].mxu0 }
 0x17a   : > { %v1028_v11 = vpop.f32.mrb[11].mxu1  ;;  %v2258_v12 = vadd.f32 %v2257_v8, %v2256_v4  ;;  %v4097_v13 = vadd.f32 %v3413_v10, %v3311_v7  ;;  %v2119_v14 = vpop.f32.mrb[11].mxu0  ;;  %v2263_v21 = vsel %vm2243_vm2, %v4091_v5, 0.0 }
 0x17b   : > { %v2259_v15 = vsel %vm2243_vm2, %v4095_v9, 0.0  ;;  %v4101_v16 = vadd.f32 %v2119_v14, %v1028_v11 }
 0x17c   : > { %v2260_v17 = vadd.f32 %v2259_v15, %v2258_v12  ;;  %v2265_v28 = vsel %vm2243_vm2, %v4097_v13, 0.0 }
 0x17d   : > { %v2261_v18 = vsel %vm2243_vm2, %v4101_v16, 0.0 }
 0x17e   : > { %v2262_v19 = vadd.f32 %v2261_v18, %v2260_v17 }
 0x17f   : > { %v3314_v20 = vpop.f32.mrb[12].mxu1  ;;  %v3416_v22 = vpop.f32.mrb[12].mxu0 }
 0x180   : > { %v1041_v23 = vpop.f32.mrb[13].mxu1  ;;  %v2264_v24 = vadd.f32 %v2263_v21, %v2262_v19  ;;  %v4107_v25 = vadd.f32 %v3416_v22, %v3314_v20  ;;  %v2132_v26 = vpop.f32.mrb[13].mxu0 }
 0x181   : > { %v3315_v27 = vpop.f32.mrb[14].mxu1  ;;  %v4111_v29 = vadd.f32 %v2132_v26, %v1041_v23  ;;  %v3417_v30 = vpop.f32.mrb[14].mxu0 }
 0x182   : > { %v1044_v31 = vpop.f32.mrb[15].mxu1  ;;  %v2266_v33 = vadd.f32 %v2265_v28, %v2264_v24  ;;  %v4113_v34 = vadd.f32 %v3417_v30, %v3315_v27  ;;  %v2135_v36 = vpop.f32.mrb[15].mxu0  ;;  %v2271_v45 = vsel %vm2243_vm2, %v4107_v25, 0.0 }
 0x183   : > { %v2267_v37 = vsel %vm2243_vm2, %v4111_v29, 0.0  ;;  %v4117_v39 = vadd.f32 %v2135_v36, %v1044_v31 }
 0x184   : > { %v2268_v41 = vadd.f32 %v2267_v37, %v2266_v33  ;;  %v2273_v54 = vsel %vm2243_vm2, %v4113_v34, 0.0 }
 0x185   : > { %v2269_v42 = vsel %vm2243_vm2, %v4117_v39, 0.0 }
 0x186   : > { %v2270_v43 = vadd.f32 %v2269_v42, %v2268_v41 }
 0x187   : > { %v3318_v44 = vpop.f32.mrb[16].mxu1  ;;  %v3420_v46 = vpop.f32.mrb[16].mxu0 }
 0x188   : > { %v1057_v47 = vpop.f32.mrb[17].mxu1  ;;  %v2272_v48 = vadd.f32 %v2271_v45, %v2270_v43  ;;  %v4123_v50 = vadd.f32 %v3420_v46, %v3318_v44  ;;  %v2148_v51 = vpop.f32.mrb[17].mxu0 }
 0x189   : > { %v3319_v52 = vpop.f32.mrb[18].mxu1  ;;  %v4127_v55 = vadd.f32 %v2148_v51, %v1057_v47  ;;  %v3421_v56 = vpop.f32.mrb[18].mxu0 }
 0x18a   : > { %v1060_v58 = vpop.f32.mrb[19].mxu1  ;;  %v2274_v59 = vadd.f32 %v2273_v54, %v2272_v48  ;;  %v4129_v61 = vadd.f32 %v3421_v56, %v3319_v52  ;;  %v2151_v62 = vpop.f32.mrb[19].mxu0  ;;  %v2279_v6 = vsel %vm2243_vm2, %v4123_v50, 0.0 }
 0x18b   : > { %v2275_v63 = vsel %vm2243_vm2, %v4127_v55, 0.0  ;;  %v4133_v0 = vadd.f32 %v2151_v62, %v1060_v58 }
 0x18c   : > { %v2276_v1 = vadd.f32 %v2275_v63, %v2274_v59  ;;  %v2281_v15 = vsel %vm2243_vm2, %v4129_v61, 0.0 }
 0x18d   : > { %v2277_v2 = vsel %vm2243_vm2, %v4133_v0, 0.0 }
 0x18e   : > { %v2278_v3 = vadd.f32 %v2277_v2, %v2276_v1 }
 0x18f   : > { %v3322_v4 = vpop.f32.mrb[20].mxu1  ;;  %v3424_v7 = vpop.f32.mrb[20].mxu0 }
 0x190   : > { %v1073_v8 = vpop.f32.mrb[21].mxu1  ;;  %v2280_v10 = vadd.f32 %v2279_v6, %v2278_v3  ;;  %v4139_v11 = vadd.f32 %v3424_v7, %v3322_v4  ;;  %v2164_v12 = vpop.f32.mrb[21].mxu0 }
 0x191   : > { %v3323_v14 = vpop.f32.mrb[22].mxu1  ;;  %v4143_v17 = vadd.f32 %v2164_v12, %v1073_v8  ;;  %v3425_v18 = vpop.f32.mrb[22].mxu0 }
 0x192   : > { %v1076_v19 = vpop.f32.mrb[23].mxu1  ;;  %v2282_v20 = vadd.f32 %v2281_v15, %v2280_v10  ;;  %v4145_v21 = vadd.f32 %v3425_v18, %v3323_v14  ;;  %v2167_v22 = vpop.f32.mrb[23].mxu0  ;;  %v2287_v31 = vsel %vm2243_vm2, %v4139_v11, 0.0 }
 0x193   : > { %v2283_v23 = vsel %vm2243_vm2, %v4143_v17, 0.0  ;;  %v4149_v24 = vadd.f32 %v2167_v22, %v1076_v19 }
 0x194   : > { %v2284_v26 = vadd.f32 %v2283_v23, %v2282_v20  ;;  %v2289_v44 = vsel %vm2243_vm2, %v4145_v21, 0.0 }
 0x195   : > { %v2285_v27 = vsel %vm2243_vm2, %v4149_v24, 0.0 }
 0x196   : > { %v2286_v28 = vadd.f32 %v2285_v27, %v2284_v26 }
 0x197   : > { %v3326_v30 = vpop.f32.mrb[24].mxu1  ;;  %v3428_v33 = vpop.f32.mrb[24].mxu0 }
 0x198   : > { %v1089_v36 = vpop.f32.mrb[25].mxu1  ;;  %v2288_v37 = vadd.f32 %v2287_v31, %v2286_v28  ;;  %v3458_v41 = vadd.f32 %v3428_v33, %v3326_v30  ;;  %v2180_v42 = vpop.f32.mrb[25].mxu0 }
 0x199   : > { %v3327_v43 = vpop.f32.mrb[26].mxu1  ;;  %v3459_v45 = vadd.f32 %v2180_v42, %v1089_v36  ;;  %v3429_v46 = vpop.f32.mrb[26].mxu0 }
 0x19a   : > { %v1092_v47 = vpop.f32.mrb[27].mxu1  ;;  %v2290_v48 = vadd.f32 %v2289_v44, %v2288_v37  ;;  %v3460_v51 = vadd.f32 %v3429_v46, %v3327_v43  ;;  %v2183_v52 = vpop.f32.mrb[27].mxu0  ;;  %v2295_v1 = vsel %vm2243_vm2, %v3458_v41, 0.0 }
 0x19b   : > { %v2291_v54 = vsel %vm2243_vm2, %v3459_v45, 0.0  ;;  %v3461_v56 = vadd.f32 %v2183_v52, %v1092_v47 }
 0x19c   : > { %v2292_v58 = vadd.f32 %v2291_v54, %v2290_v48  ;;  %v2297_v10 = vsel %vm2243_vm2, %v3460_v51, 0.0 }
 0x19d   : > { %v2293_v59 = vsel %vm2243_vm2, %v3461_v56, 0.0 }
 0x19e   : > { %v2294_v62 = vadd.f32 %v2293_v59, %v2292_v58 }
 0x19f   : > { %v3330_v63 = vpop.f32.mrb[28].mxu1  ;;  %v3432_v2 = vpop.f32.mrb[28].mxu0 }
 0x1a0   : > { %v1105_v3 = vpop.f32.mrb[29].mxu1  ;;  %v2296_v4 = vadd.f32 %v2295_v1, %v2294_v62  ;;  %v3462_v6 = vadd.f32 %v3432_v2, %v3330_v63  ;;  %v2196_v7 = vpop.f32.mrb[29].mxu0 }
 0x1a1   : > { %v3331_v8 = vpop.f32.mrb[30].mxu1  ;;  %v3463_v12 = vadd.f32 %v2196_v7, %v1105_v3  ;;  %v3433_v14 = vpop.f32.mrb[30].mxu0 }
 0x1a2   : > { %v1108_v15 = vpop.f32.mrb[31].mxu1  ;;  %v2298_v18 = vadd.f32 %v2297_v10, %v2296_v4  ;;  %v3464_v19 = vadd.f32 %v3433_v14, %v3331_v8  ;;  %v2199_v20 = vpop.f32.mrb[31].mxu0  ;;  %v2303_v30 = vsel %vm2243_vm2, %v3462_v6, 0.0 }
 0x1a3   : > { %v2299_v22 = vsel %vm2243_vm2, %v3463_v12, 0.0  ;;  %v3465_v23 = vadd.f32 %v2199_v20, %v1108_v15 }
 0x1a4   : > { %v2300_v26 = vadd.f32 %v2299_v22, %v2298_v18  ;;  %v2305_v33 = vsel %vm2243_vm2, %v3464_v19, 0.0 }
 0x1a5   : > { %v2301_v27 = vsel %vm2243_vm2, %v3465_v23, 0.0 }
 0x1a6   : > { %v2302_v28 = vadd.f32 %v2301_v27, %v2300_v26 }
 0x1a8   : > { %v2304_v31 = vadd.f32 %v2303_v30, %v2302_v28 }
 0x1aa   : > { %v2306_v36 = vadd.f32 %v2305_v33, %v2304_v31 }
 0x1ac   : > { %v2307_v37 = vrot.slane %v2306_v36, 4 }
 0x1ae   : > { %v2308_v42 = vadd.f32 %v2307_v37, %v2306_v36 }
 0x1b0   : > { %v2309_v43 = vrot.slane %v2308_v42, 2 }
 0x1b2   : > { %v2310_v44 = vadd.f32 %v2309_v43, %v2308_v42 }
 0x1b4   : > { %v2311_v46 = vrot.slane %v2310_v44, 1 }
 0x1b6   : > { %v2312_v47 = vadd.f32 %v2311_v46, %v2310_v44 }
 0x1b8   : > { %v2313_v48 = vmul.f32 0.00390625, %v2312_v47 }
 0x1ba   : > { %v4166_v52 = vsub.f32 %v4101_v16, %v2313_v48  ;;  %v4169_v54 = vsub.f32 %v4097_v13, %v2313_v48  ;;  %v4172_v58 = vsub.f32 %v4111_v29, %v2313_v48  ;;  %v4175_v59 = vsub.f32 %v4117_v39, %v2313_v48 }
 0x1bb   : > { %v4178_v62 = vsub.f32 %v4107_v25, %v2313_v48  ;;  %v4181_v63 = vsub.f32 %v4113_v34, %v2313_v48  ;;  %v4184_v1 = vsub.f32 %v4127_v55, %v2313_v48  ;;  %v4187_v16 = vsub.f32 %v4133_v0, %v2313_v48 }
 0x1bc   : > { %v4190_v13 = vsub.f32 %v4123_v50, %v2313_v48  ;;  %v4193_v29 = vsub.f32 %v4129_v61, %v2313_v48  ;;  %v4196_v39 = vsub.f32 %v4143_v17, %v2313_v48  ;;  %v4199_v25 = vsub.f32 %v4149_v24, %v2313_v48 }
 0x1bd   : > { %v4202_v34 = vsub.f32 %v4139_v11, %v2313_v48  ;;  %v4205_v55 = vsub.f32 %v4145_v21, %v2313_v48  ;;  %v4207_v0 = vsub.f32 %v3459_v45, %v2313_v48  ;;  %v4209_v2 = vsub.f32 %v3461_v56, %v2313_v48 }
 0x1be   : > { %v4211_v50 = vsub.f32 %v3458_v41, %v2313_v48  ;;  %v4213_v61 = vsub.f32 %v3460_v51, %v2313_v48  ;;  %v4215_v3 = vsub.f32 %v3463_v12, %v2313_v48  ;;  %v4217_v17 = vsub.f32 %v3465_v23, %v2313_v48 }
 0x1bf   : > { %v4219_v24 = vsub.f32 %v3462_v6, %v2313_v48  ;;  %v4221_v4 = vsub.f32 %v3464_v19, %v2313_v48  ;;  %v4224_v11 = vsub.f32 %v4063_v35, %v2313_v48  ;;  %v4227_v21 = vsub.f32 %v4067_v40, %v2313_v48 }
 0x1c0   : > { %v4230_v45 = vsub.f32 %v4061_v32, %v2313_v48  ;;  %v4233_v41 = vsub.f32 %v4065_v38, %v2313_v48  ;;  %v4240_v6 = vsub.f32 %v4079_v53, %v2313_v48  ;;  %v4245_v40 = vsub.f32 %v4085_v60, %v2313_v48 }
 0x1c1   : > { %v2346_v51 = vmul.f32 %v4224_v11, %v4224_v11  ;;  %v2347_v56 = vmul.f32 %v4227_v21, %v4227_v21  ;;  %v4252_v10 = vsub.f32 %v4075_v49, %v2313_v48  ;;  %v4258_v60 = vsub.f32 %v4081_v57, %v2313_v48 }
 0x1c2   : > { %v2348_v35 = vmul.f32 %v4230_v45, %v4230_v45  ;;  %v2349_v32 = vmul.f32 %v4233_v41, %v4233_v41  ;;  %v2350_v53 = vmul.f32 %v4240_v6, %v4240_v6  ;;  %v2351_v15 = vmul.f32 %v4245_v40, %v4245_v40 }
 0x1c3   : > { %v2378_v38 = vsel %vm2243_vm2, %v2346_v51, 0.0  ;;  %v2379_v7 = vsel %vm2243_vm2, %v2347_v56, 0.0  ;;  %v4264_v20 = vsub.f32 %v4095_v9, %v2313_v48  ;;  %v2352_v49 = vmul.f32 %v4252_v10, %v4252_v10 }
 0x1c4   : > { %v2380_v8 = vadd.f32 %v2379_v7, %v2378_v38  ;;  %v2381_v12 = vsel %vm2243_vm2, %v2348_v35, 0.0  ;;  %v2383_v18 = vsel %vm2243_vm2, %v2349_v32, 0.0  ;;  %v2385_v22 = vsel %vm2243_vm2, %v2350_v53, 0.0 }
 0x1c5   : > { %v2353_v26 = vmul.f32 %v4258_v60, %v4258_v60  ;;  %v2387_v57 = vsel %vm2243_vm2, %v2351_v15, 0.0  ;;  %v4273_v28 = vsub.f32 %v4091_v5, %v2313_v48  ;;  %v2354_v30 = vmul.f32 %v4264_v20, %v4264_v20 }
 0x1c6   : > { %v2382_v14 = vadd.f32 %v2381_v12, %v2380_v8  ;;  %v2389_v9 = vsel %vm2243_vm2, %v2352_v49, 0.0  ;;  %v2355_v33 = vmul.f32 %v4166_v52, %v4166_v52  ;;  %v2357_v5 = vmul.f32 %v4169_v54, %v4169_v54 }
 0x1c7   : > { %v2391_v36 = vsel %vm2243_vm2, %v2353_v26, 0.0  ;;  %v2356_v42 = vmul.f32 %v4273_v28, %v4273_v28  ;;  %v2393_v43 = vsel %vm2243_vm2, %v2354_v30, 0.0  ;;  %v2358_v48 = vmul.f32 %v4172_v58, %v4172_v58 }
 0x1c8   : > { %v2384_v19 = vadd.f32 %v2383_v18, %v2382_v14  ;;  %v2395_v46 = vsel %vm2243_vm2, %v2355_v33, 0.0  ;;  %v2359_v35 = vmul.f32 %v4175_v59, %v4175_v59  ;;  %v2399_v32 = vsel %vm2243_vm2, %v2357_v5, 0.0 }
 0x1c9   : > { %v2397_v51 = vsel %vm2243_vm2, %v2356_v42, 0.0  ;;  %v2360_v7 = vmul.f32 %v4178_v62, %v4178_v62  ;;  %v2401_v8 = vsel %vm2243_vm2, %v2358_v48, 0.0  ;;  %v2361_v12 = vmul.f32 %v4181_v63, %v4181_v63 }
 0x1ca   : > { %v2386_v23 = vadd.f32 %v2385_v22, %v2384_v19  ;;  %v2403_v14 = vsel %vm2243_vm2, %v2359_v35, 0.0  ;;  %v2362_v18 = vmul.f32 %v4184_v1, %v4184_v1  ;;  %v2363_v22 = vmul.f32 %v4187_v16, %v4187_v16 }
 0x1cb   : > { %v2405_v19 = vsel %vm2243_vm2, %v2360_v7, 0.0 }
 0x1cc   : > { %v2388_v27 = vadd.f32 %v2387_v57, %v2386_v23  ;;  %v2407_v23 = vsel %vm2243_vm2, %v2361_v12, 0.0  ;;  %v2364_v57 = vmul.f32 %v4190_v13, %v4190_v13 }
 0x1ce   : > { %v2390_v31 = vadd.f32 %v2389_v9, %v2388_v27  ;;  %v2409_v27 = vsel %vm2243_vm2, %v2362_v18, 0.0  ;;  %v2365_v9 = vmul.f32 %v4193_v29, %v4193_v29 }
 0x1d0   : > { %v2392_v37 = vadd.f32 %v2391_v36, %v2390_v31  ;;  %v2411_v31 = vsel %vm2243_vm2, %v2363_v22, 0.0  ;;  %v2366_v36 = vmul.f32 %v4196_v39, %v4196_v39 }
 0x1d2   : > { %v2394_v44 = vadd.f32 %v2393_v43, %v2392_v37  ;;  %v2413_v37 = vsel %vm2243_vm2, %v2364_v57, 0.0  ;;  %v2367_v43 = vmul.f32 %v4199_v25, %v4199_v25 }
 0x1d4   : > { %v2396_v47 = vadd.f32 %v2395_v46, %v2394_v44  ;;  %v2415_v44 = vsel %vm2243_vm2, %v2365_v9, 0.0  ;;  %v2368_v46 = vmul.f32 %v4202_v34, %v4202_v34 }
 0x1d6   : > { %v2398_v56 = vadd.f32 %v2397_v51, %v2396_v47  ;;  %v2417_v47 = vsel %vm2243_vm2, %v2366_v36, 0.0  ;;  %v2369_v51 = vmul.f32 %v4205_v55, %v4205_v55 }
 0x1d8   : > { %v2400_v38 = vadd.f32 %v2399_v32, %v2398_v56  ;;  %v2419_v56 = vsel %vm2243_vm2, %v2367_v43, 0.0  ;;  %v2370_v32 = vmul.f32 %v4207_v0, %v4207_v0 }
 0x1da   : > { %v2402_v53 = vadd.f32 %v2401_v8, %v2400_v38  ;;  %v2421_v38 = vsel %vm2243_vm2, %v2368_v46, 0.0  ;;  %v2371_v8 = vmul.f32 %v4209_v2, %v4209_v2 }
 0x1dc   : > { %v2404_v15 = vadd.f32 %v2403_v14, %v2402_v53  ;;  %v2423_v53 = vsel %vm2243_vm2, %v2369_v51, 0.0  ;;  %v2372_v14 = vmul.f32 %v4211_v50, %v4211_v50 }
 0x1de   : > { %v2406_v49 = vadd.f32 %v2405_v19, %v2404_v15  ;;  %v2425_v15 = vsel %vm2243_vm2, %v2370_v32, 0.0  ;;  %v2373_v19 = vmul.f32 %v4213_v61, %v4213_v61 }
 0x1e0   : > { %v2408_v26 = vadd.f32 %v2407_v23, %v2406_v49  ;;  %v2427_v49 = vsel %vm2243_vm2, %v2371_v8, 0.0  ;;  %v2374_v23 = vmul.f32 %v4215_v3, %v4215_v3 }
 0x1e2   : > { %v2410_v30 = vadd.f32 %v2409_v27, %v2408_v26  ;;  %v2429_v26 = vsel %vm2243_vm2, %v2372_v14, 0.0  ;;  %v2375_v27 = vmul.f32 %v4217_v17, %v4217_v17 }
 0x1e4   : > { %v2412_v33 = vadd.f32 %v2411_v31, %v2410_v30  ;;  %v2431_v30 = vsel %vm2243_vm2, %v2373_v19, 0.0  ;;  %v2376_v31 = vmul.f32 %v4219_v24, %v4219_v24 }
 0x1e6   : > { %v2414_v42 = vadd.f32 %v2413_v37, %v2412_v33  ;;  %v2433_v33 = vsel %vm2243_vm2, %v2374_v23, 0.0  ;;  %v2377_v37 = vmul.f32 %v4221_v4, %v4221_v4 }
 0x1e8   : > { %v2416_v5 = vadd.f32 %v2415_v44, %v2414_v42  ;;  %v2435_v42 = vsel %vm2243_vm2, %v2375_v27, 0.0  ;;  %v2437_v44 = vsel %vm2243_vm2, %v2376_v31, 0.0  ;;  %v2439_v46 = vsel %vm2243_vm2, %v2377_v37, 0.0 }
 0x1ea   : > { %v2418_v48 = vadd.f32 %v2417_v47, %v2416_v5 }
 0x1ec   : > { %v2420_v35 = vadd.f32 %v2419_v56, %v2418_v48 }
 0x1ee   : > { %v2422_v7 = vadd.f32 %v2421_v38, %v2420_v35 }
 0x1f0   : > { %v2424_v12 = vadd.f32 %v2423_v53, %v2422_v7 }
 0x1f2   : > { %v2426_v18 = vadd.f32 %v2425_v15, %v2424_v12 }
 0x1f4   : > { %v2428_v22 = vadd.f32 %v2427_v49, %v2426_v18 }
 0x1f6   : > { %v2430_v57 = vadd.f32 %v2429_v26, %v2428_v22 }
 0x1f8   : > { %v2432_v9 = vadd.f32 %v2431_v30, %v2430_v57 }
 0x1fa   : > { %v2434_v36 = vadd.f32 %v2433_v33, %v2432_v9 }
 0x1fc   : > { %v2436_v43 = vadd.f32 %v2435_v42, %v2434_v36 }
 0x1fe   : > { %v2438_v5 = vadd.f32 %v2437_v44, %v2436_v43 }
 0x200   : > { %v2440_v47 = vadd.f32 %v2439_v46, %v2438_v5 }
 0x202   : > { %v2441_v48 = vrot.slane %v2440_v47, 4 }
 0x204   : > { %v2442_v51 = vadd.f32 %v2441_v48, %v2440_v47 }
 0x206   : > { %v2443_v56 = vrot.slane %v2442_v51, 2 }
 0x208   : > { %v2444_v35 = vadd.f32 %v2443_v56, %v2442_v51 }
 0x20a   : > { %v2445_v32 = vrot.slane %v2444_v35, 1 }
 0x20c   : > { %v2446_v38 = vadd.f32 %v2445_v32, %v2444_v35 }
 0x20e   : > { %v2447_v7 = vmul.f32 0.00390625, %v2446_v38 }
 0x210   : > { %v2448_v8 = vadd.f32 1e-05, %v2447_v7 }
 0x212   : > { %3712 = vrsqrt.f32 %v2448_v8 }
 0x21c   : > { %v3713_v53 = vpop.eup %3712 }
 0x21d   : > { %v4350_v12 = vmul.f32 %v3713_v53, %v4187_v16  ;;  %v4353_v14 = vmul.f32 %v3713_v53, %v4190_v13  ;;  %v4356_v15 = vmul.f32 %v3713_v53, %v4193_v29  ;;  %v4359_v18 = vmul.f32 %v3713_v53, %v4196_v39 }
 0x21e   : > { %v4362_v19 = vmul.f32 %v3713_v53, %v4199_v25  ;;  %v4365_v49 = vmul.f32 %v3713_v53, %v4202_v34  ;;  %v4368_v22 = vmul.f32 %v3713_v53, %v4205_v55  ;;  %v4371_v16 = vmul.f32 %v3713_v53, %v4207_v0 }
 0x21f   : > { %v4374_v13 = vmul.f32 %v3713_v53, %v4209_v2  ;;  %v4377_v29 = vmul.f32 %v3713_v53, %v4211_v50  ;;  %v4380_v39 = vmul.f32 %v3713_v53, %v4213_v61  ;;  %v4383_v25 = vmul.f32 %v3713_v53, %v4215_v3 }
 0x220   : > { %v4386_v34 = vmul.f32 %v3713_v53, %v4217_v17  ;;  %v4389_v55 = vmul.f32 %v3713_v53, %v4219_v24  ;;  %v4392_v0 = vmul.f32 %v3713_v53, %v4221_v4  ;;  %v2450_v2 = vmul.f32 %v3713_v53, %v4224_v11 }
 0x221   : > { %v2451_v50 = vmul.f32 %v3713_v53, %v4227_v21  ;;  %v4397_v23 = vmul.f32 %v3713_v53, %v4230_v45  ;;  %v4400_v61 = vmul.f32 %v3713_v53, %v4233_v41  ;;  %v4403_v3 = vmul.f32 %v3713_v53, %v4240_v6 }
 0x222   : > { %v4406_v17 = vmul.f32 %v3713_v53, %v4245_v40  ;;  %v4409_v24 = vmul.f32 %v3713_v53, %v4252_v10  ;;  %v4412_v4 = vmul.f32 %v3713_v53, %v4258_v60  ;;  %v4415_v11 = vmul.f32 %v3713_v53, %v4264_v20 }
 0x223   : > { %v4418_v21 = vmul.f32 %v3713_v53, %v4166_v52  ;;  %v4421_v45 = vmul.f32 %v3713_v53, %v4273_v28  ;;  %v4424_v41 = vmul.f32 %v3713_v53, %v4169_v54  ;;  %v4427_v6 = vmul.f32 %v3713_v53, %v4172_v58 }
 0x224   : > { %v4430_v40 = vmul.f32 %v3713_v53, %v4175_v59  ;;  %v4433_v10 = vmul.f32 %v3713_v53, %v4178_v62  ;;  %v4436_v60 = vmul.f32 %v3713_v53, %v4181_v63  ;;  %v4439_v52 = vmul.f32 %v3713_v53, %v4184_v1 }
 0x225   : > { %vm2482_vm3 = vcmp.gt.f32.partialorder %v2450_v2, 0.0  ;;  %vm2483_vm4 = vcmp.gt.f32.partialorder %v2451_v50, 0.0  ;;  %vm2484_vm5 = vcmp.gt.f32.partialorder %v4397_v23, 0.0  ;;  %vm2485_vm6 = vcmp.gt.f32.partialorder %v4400_v61, 0.0 }
 0x226   : > { %vm2486_vm7 = vcmp.gt.f32.partialorder %v4403_v3, 0.0  ;;  %vm2487_vm8 = vcmp.gt.f32.partialorder %v4406_v17, 0.0  ;;  %vm2488_vm9 = vcmp.gt.f32.partialorder %v4409_v24, 0.0  ;;  %vm2489_vm10 = vcmp.gt.f32.partialorder %v4412_v4, 0.0 }
 0x227   : > { %vm2492_vm13 = vcmp.gt.f32.partialorder %v4421_v45, 0.0  ;;  %v2514_v54 = vmul.f32 0.2, %v2450_v2  ;;  %v2515_v58 = vmul.f32 0.2, %v2451_v50  ;;  %vm2497_vm2 = vcmp.gt.f32.partialorder %v4436_v60, 0.0 }
 0x228   : > { %v2516_v59 = vmul.f32 0.2, %v4397_v23  ;;  %v2517_v62 = vmul.f32 0.2, %v4400_v61  ;;  %v2518_v63 = vmul.f32 0.2, %v4403_v3 }
 0x229   : > { %v2519_v1 = vmul.f32 0.2, %v4406_v17  ;;  %vm2502_vm14 = vcmp.gt.f32.partialorder %v4359_v18, 0.0  ;;  %v2520_v20 = vmul.f32 0.2, %v4409_v24  ;;  %v4469_v57 = vsel %vm2482_vm3, %v2450_v2, %v2514_v54 }
 0x22a   : > { %v2521_v28 = vmul.f32 0.2, %v4412_v4  ;;  %v2522_v26 = vmul.f32 0.2, %v4415_v11  ;;  %vm2506_vm0 = vcmp.gt.f32.partialorder %v4371_v16, 0.0  ;;  %vm2507_vm15 = vcmp.gt.f32.partialorder %v4374_v13, 0.0 }
 0x22b   : > { %v2523_v27 = vmul.f32 0.2, %v4418_v21  ;;  %v2524_v30 = vmul.f32 0.2, %v4421_v45  ;;  %v2525_v9 = vmul.f32 0.2, %v4424_v41  ;;  %v4479_v31 = vsel %vm2483_vm4, %v2451_v50, %v2515_v58 }
 0x22c   : > { %vm2509_vm1 = vcmp.gt.f32.partialorder %v4380_v39, 0.0  ;;  %vm2510_vm12 = vcmp.gt.f32.partialorder %v4383_v25, 0.0  ;;  %vm2511_vm11 = vcmp.gt.f32.partialorder %v4386_v34, 0.0  ;;  %v2526_v33 = vmul.f32 0.2, %v4427_v6 }
 0x22d   : > { %v2527_v36 = vmul.f32 0.2, %v4430_v40  ;;  %v2528_v37 = vmul.f32 0.2, %v4433_v10  ;;  %v4491_v42 = vsel %vm2484_vm5, %v4397_v23, %v2516_v59  ;;  %vm2512_vm4 = vcmp.gt.f32.partialorder %v4389_v55, 0.0 }
 0x22e   : > { %vm2513_vm3 = vcmp.gt.f32.partialorder %v4392_v0, 0.0  ;;  %v2529_v43 = vmul.f32 0.2, %v4436_v60  ;;  %v2530_v44 = vmul.f32 0.2, %v4439_v52  ;;  %v4501_v46 = vsel %vm2485_vm6, %v4400_v61, %v2517_v62 }
 0x22f   : > { %v2531_v5 = vmul.f32 0.2, %v4350_v12  ;;  %v2532_v47 = vmul.f32 0.2, %v4353_v14  ;;  %v2533_v48 = vmul.f32 0.2, %v4356_v15  ;;  %v2550_v56 = vsel %vm2486_vm7, %v4403_v3, %v2518_v63 }
 0x230   : > { %v2534_v51 = vmul.f32 0.2, %v4359_v18  ;;  %v2535_v35 = vmul.f32 0.2, %v4362_v19  ;;  %v2536_v32 = vmul.f32 0.2, %v4365_v49  ;;  %v2551_v7 = vsel %vm2487_vm8, %v4406_v17, %v2519_v1 }
 0x231   : > { %v2537_v38 = vmul.f32 0.2, %v4368_v22  ;;  %vm2706_vm5 = vcmask 27648   ;;  %v2538_v8 = vmul.f32 0.2, %v4371_v16  ;;  %v2552_v50 = vsel %vm2488_vm9, %v4409_v24, %v2520_v20 }
 0x232   : > { %v2539_v53 = vmul.f32 0.2, %v4374_v13  ;;  %v2540_v2 = vmul.f32 0.2, %v4377_v29  ;;  %v2541_v23 = vmul.f32 0.2, %v4380_v39  ;;  %v2553_v17 = vsel %vm2489_vm10, %v4412_v4, %v2521_v28 }
 0x233   : > { %v2542_v61 = vmul.f32 0.2, %v4383_v25  ;;  %v2543_v3 = vmul.f32 0.2, %v4386_v34  ;;  %v2544_v54 = vmul.f32 0.2, %v4389_v55  ;;  %v2556_v62 = vsel %vm2492_vm13, %v4421_v45, %v2524_v30 }
 0x234   : > { %v2545_v58 = vmul.f32 0.2, %v4392_v0  ;;  %vm4749_vm6 = vcmp.gt.f32.partialorder %v4415_v11, 0.0  ;;  %vm4750_vm7 = vcmp.gt.f32.partialorder %v4418_v21, 0.0  ;;  %vm4751_vm8 = vcmp.gt.f32.partialorder %v4424_v41, 0.0 }
 0x235   : > { %v2554_v59 = vsel %vm4749_vm6, %v4415_v11, %v2522_v26  ;;  %v2555_v24 = vsel %vm4750_vm7, %v4418_v21, %v2523_v27  ;;  %v2557_v4 = vsel %vm4751_vm8, %v4424_v41, %v2525_v9  ;;  %vm4752_vm9 = vcmp.gt.f32.partialorder %v4427_v6, 0.0 }
 0x236   : > { %v2558_v63 = vsel %vm4752_vm9, %v4427_v6, %v2526_v33  ;;  %vm4753_vm10 = vcmp.gt.f32.partialorder %v4430_v40, 0.0  ;;  %vm4754_vm6 = vcmp.gt.f32.partialorder %v4433_v10, 0.0  ;;  %v2561_v45 = vsel %vm2497_vm2, %v4436_v60, %v2529_v43 }
 0x237   : > { %v2559_v11 = vsel %vm4753_vm10, %v4430_v40, %v2527_v36  ;;  %v2560_v21 = vsel %vm4754_vm6, %v4433_v10, %v2528_v37  ;;  %vm4755_vm13 = vcmp.gt.f32.partialorder %v4439_v52, 0.0  ;;  %vm4756_vm7 = vcmp.gt.f32.partialorder %v4350_v12, 0.0 }
 0x238   : > { %v2562_v41 = vsel %vm4755_vm13, %v4439_v52, %v2530_v44  ;;  %v2563_v6 = vsel %vm4756_vm7, %v4350_v12, %v2531_v5  ;;  %vm4757_vm8 = vcmp.gt.f32.partialorder %v4353_v14, 0.0  ;;  %vm4758_vm9 = vcmp.gt.f32.partialorder %v4356_v15, 0.0 }
 0x239   : > { %v4563_v40 = vsel %vm4757_vm8, %v4353_v14, %v2532_v47  ;;  %v4568_v10 = vsel %vm4758_vm9, %v4356_v15, %v2533_v48  ;;  %v4573_v60 = vsel %vm2502_vm14, %v4359_v18, %v2534_v51  ;;  %vm4759_vm2 = vcmp.gt.f32.partialorder %v4362_v19, 0.0 }
 0x23a   : > { %v4578_v52 = vsel %vm4759_vm2, %v4362_v19, %v2535_v35  ;;  %vm4760_vm10 = vcmp.gt.f32.partialorder %v4365_v49, 0.0  ;;  %vm4761_vm6 = vcmp.gt.f32.partialorder %v4368_v22, 0.0  ;;  %v4593_v15 = vsel %vm2506_vm0, %v4371_v16, %v2538_v8 }
 0x23b   : > { %v4583_v12 = vsel %vm4760_vm10, %v4365_v49, %v2536_v32  ;;  %v4588_v14 = vsel %vm4761_vm6, %v4368_v22, %v2537_v38  ;;  %v4598_v18 = vsel %vm2507_vm15, %v4374_v13, %v2539_v53  ;;  %vm4762_vm14 = vcmp.gt.f32.partialorder %v4377_v29, 0.0 }
 0x23c   : > { %v4608_v19 = vsel %vm4762_vm14, %v4377_v29, %v2540_v2  ;;  %v4613_v49 = vsel %vm2509_vm1, %v4380_v39, %v2541_v23  ;;  %v4618_v22 = vsel %vm2510_vm12, %v4383_v25, %v2542_v61  ;;  %v4623_v16 = vsel %vm2511_vm11, %v4386_v34, %v2543_v3 }
 0x23d   : > { %v4628_v13 = vsel %vm2512_vm4, %v4389_v55, %v2544_v54  ;;  %v4633_v29 = vsel %vm2513_vm3, %v4392_v0, %v2545_v58  ;;  %v3096_v39 = vpack.c.bf16 %v4469_v57, %v4469_v57  ;;  %v3097_v25 = vpack.c.bf16 %v4479_v31, %v4479_v31 }
 0x23e   : > { %v3098_v34 = vpack.c.bf16 %v4491_v42, %v4491_v42  ;;  %v3099_v55 = vpack.c.bf16 %v4501_v46, %v4501_v46  ;;  %v3100_v1 = vpack.c.bf16 %v2550_v56, %v2550_v56  ;;  %v3101_v20 = vpack.c.bf16 %v2551_v7, %v2551_v7 }
 0x23f   : > { %v3102_v0 = vpack.c.bf16 %v2552_v50, %v2552_v50  ;;  %v3103_v28 = vpack.c.bf16 %v2553_v17, %v2553_v17  ;;  %v3104_v26 = vpack.c.bf16 %v2554_v59, %v2554_v59  ;;  %v3105_v57 = vpack.c.bf16 %v2555_v24, %v2555_v24  ;;  %2707 = vst.msk [vmem:[%s4603_s15] sm:$0xf] %vm2706_vm5, %v3096_v39 }
 0x240   : > { %2708 = vst.msk [vmem:[%s4603_s15 + $0x4] sm:$0xf] %vm2706_vm5, %v3097_v25  ;;  %v3106_v27 = vpack.c.bf16 %v2556_v62, %v2556_v62  ;;  %v3107_v30 = vpack.c.bf16 %v2557_v4, %v2557_v4  ;;  %v3108_v9 = vpack.c.bf16 %v2558_v63, %v2558_v63  ;;  %v3109_v31 = vpack.c.bf16 %v2559_v11, %v2559_v11 }
 0x241   : > { %2709 = vst.msk [vmem:[%s4603_s15 + $0x8] sm:$0xf] %vm2706_vm5, %v3098_v34  ;;  %2710 = vst.msk [vmem:[%s4603_s15 + $0xc] sm:$0xf] %vm2706_vm5, %v3099_v55  ;;  %v3110_v33 = vpack.c.bf16 %v2560_v21, %v2560_v21  ;;  %v3111_v36 = vpack.c.bf16 %v2561_v45, %v2561_v45  ;;  %v3112_v37 = vpack.c.bf16 %v2562_v41, %v2562_v41 }
 0x242   : > { %2711 = vst.msk [vmem:[%s4603_s15 + $0x10] sm:$0xf] %vm2706_vm5, %v3100_v1  ;;  %2712 = vst.msk [vmem:[%s4603_s15 + $0x14] sm:$0xf] %vm2706_vm5, %v3101_v20  ;;  %v3113_v42 = vpack.c.bf16 %v2563_v6, %v2563_v6  ;;  %v3114_v43 = vpack.c.bf16 %v4563_v40, %v4563_v40  ;;  %v3115_v44 = vpack.c.bf16 %v4568_v10, %v4568_v10 }
 0x243   : > { %2713 = vst.msk [vmem:[%s4603_s15 + $0x18] sm:$0xf] %vm2706_vm5, %v3102_v0  ;;  %2714 = vst.msk [vmem:[%s4603_s15 + $0x1c] sm:$0xf] %vm2706_vm5, %v3103_v28  ;;  %v3116_v5 = vpack.c.bf16 %v4573_v60, %v4573_v60  ;;  %v3117_v46 = vpack.c.bf16 %v4578_v52, %v4578_v52  ;;  %v3118_v47 = vpack.c.bf16 %v4583_v12, %v4583_v12 }
 0x244   : > { %2715 = vst.msk [vmem:[%s4603_s15 + $0x20] sm:$0xf] %vm2706_vm5, %v3104_v26  ;;  %2716 = vst.msk [vmem:[%s4603_s15 + $0x24] sm:$0xf] %vm2706_vm5, %v3105_v57  ;;  %v3119_v48 = vpack.c.bf16 %v4588_v14, %v4588_v14  ;;  %v3120_v51 = vpack.c.bf16 %v4593_v15, %v4593_v15  ;;  %v3121_v56 = vpack.c.bf16 %v4598_v18, %v4598_v18 }
 0x245   : > { %2717 = vst.msk [vmem:[%s4603_s15 + $0x28] sm:$0xf] %vm2706_vm5, %v3106_v27  ;;  %2718 = vst.msk [vmem:[%s4603_s15 + $0x2c] sm:$0xf] %vm2706_vm5, %v3107_v30  ;;  %v3122_v35 = vpack.c.bf16 %v4608_v19, %v4608_v19  ;;  %v3123_v32 = vpack.c.bf16 %v4613_v49, %v4613_v49  ;;  %v3124_v38 = vpack.c.bf16 %v4618_v22, %v4618_v22 }
 0x246   : > { %2719 = vst.msk [vmem:[%s4603_s15 + $0x30] sm:$0xf] %vm2706_vm5, %v3108_v9  ;;  %2720 = vst.msk [vmem:[%s4603_s15 + $0x34] sm:$0xf] %vm2706_vm5, %v3109_v31  ;;  %v3125_v7 = vpack.c.bf16 %v4623_v16, %v4623_v16  ;;  %v3126_v8 = vpack.c.bf16 %v4628_v13, %v4628_v13  ;;  %v3127_v53 = vpack.c.bf16 %v4633_v29, %v4633_v29 }
 0x247   : > { %2721 = vst.msk [vmem:[%s4603_s15 + $0x38] sm:$0xf] %vm2706_vm5, %v3110_v33  ;;  %2722 = vst.msk [vmem:[%s4603_s15 + $0x3c] sm:$0xf] %vm2706_vm5, %v3111_v36 }
 0x248   : > { %2723 = vst.msk [vmem:[%s4603_s15 + $0x40] sm:$0xf] %vm2706_vm5, %v3112_v37  ;;  %2724 = vst.msk [vmem:[%s4603_s15 + $0x44] sm:$0xf] %vm2706_vm5, %v3113_v42 }
 0x249   : > { %2725 = vst.msk [vmem:[%s4603_s15 + $0x48] sm:$0xf] %vm2706_vm5, %v3114_v43  ;;  %2726 = vst.msk [vmem:[%s4603_s15 + $0x4c] sm:$0xf] %vm2706_vm5, %v3115_v44 }
 0x24a   : > { %2727 = vst.msk [vmem:[%s4603_s15 + $0x50] sm:$0xf] %vm2706_vm5, %v3116_v5  ;;  %2728 = vst.msk [vmem:[%s4603_s15 + $0x54] sm:$0xf] %vm2706_vm5, %v3117_v46 }
 0x24b   : > { %2729 = vst.msk [vmem:[%s4603_s15 + $0x58] sm:$0xf] %vm2706_vm5, %v3118_v47  ;;  %2730 = vst.msk [vmem:[%s4603_s15 + $0x5c] sm:$0xf] %vm2706_vm5, %v3119_v48 }
 0x24c   : > { %2731 = vst.msk [vmem:[%s4603_s15 + $0x60] sm:$0xf] %vm2706_vm5, %v3120_v51  ;;  %2732 = vst.msk [vmem:[%s4603_s15 + $0x64] sm:$0xf] %vm2706_vm5, %v3121_v56 }
 0x24d   : > { %2733 = vst.msk [vmem:[%s4603_s15 + $0x68] sm:$0xf] %vm2706_vm5, %v3122_v35  ;;  %2734 = vst.msk [vmem:[%s4603_s15 + $0x6c] sm:$0xf] %vm2706_vm5, %v3123_v32 }
 0x24e   : > { %2735 = vst.msk [vmem:[%s4603_s15 + $0x70] sm:$0xf] %vm2706_vm5, %v3124_v38  ;;  %2736 = vst.msk [vmem:[%s4603_s15 + $0x74] sm:$0xf] %vm2706_vm5, %v3125_v7 }
 0x24f   : > { %2737 = vst.msk [vmem:[%s4603_s15 + $0x78] sm:$0xf] %vm2706_vm5, %v3126_v8  ;;  %2738 = vst.msk [vmem:[%s4603_s15 + $0x7c] sm:$0xf] %vm2706_vm5, %v3127_v53 }
 0x250 PF: > { %s14_s17 = sadd.s32 1, %s3736_s17   ;;  %s4763_s15 = smov %s3732_s16 }
 0x251   : > { %p11_p5 = scmp.ge.s32.totalorder %s14_s17, 4   ;;  %s4764_s16 = smov %s4766_s18 }
 0x253   :  { %13 = sbr.rel (!%p11_p5) target bundleno = 2 (0x2), region = 79 }

</bundles_post_ra>
